<compile_context>
chip_gen: v5e
topology: v5e:2x2
jax: 0.10.0
libtpu: 0.0.40
codegen_flags: <defaults>
</compile_context>

<pallas_src>
import functools

import jax
import jax.numpy as jnp
import numpy as np
from jax.experimental import pallas as pl
from jax.experimental.pallas import tpu as pltpu

MARGIN = 128  # zero lane-margin on each side of the padded-flat pixel axis


# ------------------------------- fused kernel -------------------------------

def _fused_cnn_kernel(
    # inputs
    x0_ref, w1_ref, b1_ref, w2_ref, b2_ref, w3_ref, b3_ref, w4_ref, b4_ref,
    mask1_ref, mask2_ref, s1_ref, wsel_ref, bfc_ref, esum_ref,
    # output
    out_ref,
    # VMEM scratch
    buf1a, buf1b, buf2a, buf2b, buf2c,
    # static config
    *, m1, wp1, m2, wp2, hidden, cin_one,
):
    """Whole forward pass in one invocation; all intermediates stay in VMEM."""
    g = MARGIN

    # Margins are read by the shifted slices below: they must hold finite
    # zeros (uninitialised VMEM could contain NaN bit patterns and 0*NaN would
    # leak through the selection matmuls).
    for buf in (buf1a, buf1b, buf2a, buf2b, buf2c):
        buf[...] = jnp.zeros(buf.shape, buf.dtype)

    def conv3x3(src_ref, w_ref, b_ref, m, wp, bcast):
        """3x3 / stride-1 / pad-1 conv = 9 shifted lane slices, each either a
        (Cout,Cin)@(Cin,m) MXU matmul or a VPU broadcast-mul when Cin == 1."""
        offs = [(dy - 1) * wp + (dx - 1) for dy in range(3) for dx in range(3)]
        acc = None
        for t, off in enumerate(offs):
            xs = src_ref[:, g + off:g + off + m]             # (Cin, m)
            wt = w_ref[t]                                    # (Cout, Cin)
            term = wt * xs if bcast else jnp.dot(
                wt, xs, preferred_element_type=jnp.float32)  # (Cout, m)
            acc = term if acc is None else acc + term
        return acc + b_ref[...]                              # bias (Cout, 1)

    def pool_max(src_ref, m, wp):
        """Max over the 2x2 window anchored at every flat position."""
        r = jnp.maximum(src_ref[:, g:g + m], src_ref[:, g + 1:g + 1 + m])
        r = jnp.maximum(r, src_ref[:, g + wp:g + wp + m])
        return jnp.maximum(r, src_ref[:, g + wp + 1:g + wp + 1 + m])

    # ---- conv block 1 (28x28 level) ----
    a1 = jnp.maximum(conv3x3(x0_ref, w1_ref, b1_ref, m1, wp1, cin_one), 0.0)
    buf1a[:, g:g + m1] = a1 * mask1_ref[...]        # zero the padding ring

    a2 = jnp.maximum(conv3x3(buf1a, w2_ref, b2_ref, m1, wp1, False), 0.0)
    buf1b[:, g:g + m1] = a2

    # 2x2 max-pool: window max + 0/1 lane-selection matmul gathering the even
    # anchors into the 14x14 padded-flat layout (border lanes come out 0).
    p1 = pool_max(buf1b, m1, wp1)
    s1 = s1_ref[...].astype(jnp.float32)            # bf16 0/1 matrix -> exact
    buf2a[:, g:g + m2] = jnp.dot(p1, s1, preferred_element_type=jnp.float32)

    # ---- conv block 2 (14x14 level) ----
    a3 = jnp.maximum(conv3x3(buf2a, w3_ref, b3_ref, m2, wp2, False), 0.0)
    buf2b[:, g:g + m2] = a3 * mask2_ref[...]

    a4 = jnp.maximum(conv3x3(buf2b, w4_ref, b4_ref, m2, wp2, False), 0.0)
    buf2c[:, g:g + m2] = a4

    # ---- 2x2 max-pool fused with Flatten + Linear ----
    # The FC weight was pre-scattered onto the pooling-anchor lanes (wsel), so
    # pool2 + flatten + linear collapse into `hidden` broadcast MACs plus one
    # lane-dense matmul and a per-image lane sum (esum).
    p2 = pool_max(buf2c, m2, wp2)                   # (hidden, m2)
    z = jnp.zeros((out_ref.shape[0], m2), jnp.float32)
    for c in range(hidden):
        z = z + wsel_ref[c] * p2[c:c + 1, :]        # (classes, m2) * (1, m2)
    out_ref[...] = (jnp.dot(z, esum_ref[...], preferred_element_type=jnp.float32)
                    + bfc_ref[...]).astype(out_ref.dtype)


# --------------------- one-time parameter / constant prep -------------------

def _conv_taps(w):
    """(Cout, Cin, 3, 3) -> (9, Cout, Cin), tap index t = dy*3 + dx."""
    w = np.asarray(w, np.float32)
    return np.transpose(w, (2, 3, 0, 1)).reshape(9, w.shape[0], w.shape[1])


def _col(v):
    return np.asarray(v, np.float32).reshape(-1, 1)


def _interior_mask(batch, h, w):
    m = np.zeros((batch, h + 2, w + 2), np.float32)
    m[:, 1:h + 1, 1:w + 1] = 1.0
    return m.reshape(1, -1)


def _pool_select(batch, ho, wo):
    """0/1 matrix gathering the 2x2-window anchor of every pooled pixel from
    the padded-flat input level into the padded-flat output level."""
    hip, wip = 2 * ho + 2, 2 * wo + 2
    hop, wop = ho + 2, wo + 2
    s = np.zeros((batch * hip * wip, batch * hop * wop), np.float32)
    for b in range(batch):
        for y in range(ho):
            for x in range(wo):
                src = b * hip * wip + (2 * y + 1) * wip + (2 * x + 1)
                dst = b * hop * wop + (y + 1) * wop + (x + 1)
                s[src, dst] = 1.0
    return s


def prepare_params(params, *, batch, hidden, num_classes, hw=28):
    """Host-side, once-per-model re-layout of the PyTorch-style parameters plus
    the constant selection matrices / masks (nothing here runs per forward)."""
    sz1, sz2, sz3 = hw, hw // 2, hw // 4            # 28, 14, 7
    wp2 = sz2 + 2
    m2 = batch * (sz2 + 2) * wp2

    wfc = np.asarray(params["wfc"], np.float32)     # (classes, hidden*7*7)
    assert wfc.shape == (num_classes, hidden * sz3 * sz3)
    # Scatter the FC weight onto the lane of each 2x2 pooling anchor of the
    # 14x14 level (NCHW flatten order c*49 + y*7 + x).
    wsel = np.zeros((hidden, num_classes, m2), np.float32)
    for b in range(batch):
        for y in range(sz3):
            for x in range(sz3):
                q = b * (sz2 + 2) * wp2 + (2 * y + 1) * wp2 + (2 * x + 1)
                for c in range(hidden):
                    wsel[c, :, q] = wfc[:, c * sz3 * sz3 + y * sz3 + x]

    esum = np.kron(np.eye(batch, dtype=np.float32),
                   np.ones(((sz2 + 2) * wp2, 1), np.float32))  # (m2, batch)

    return {
        "w1": jnp.asarray(_conv_taps(params["w1"])),
        "b1": jnp.asarray(_col(params["b1"])),
        "w2": jnp.asarray(_conv_taps(params["w2"])),
        "b2": jnp.asarray(_col(params["b2"])),
        "w3": jnp.asarray(_conv_taps(params["w3"])),
        "b3": jnp.asarray(_col(params["b3"])),
        "w4": jnp.asarray(_conv_taps(params["w4"])),
        "b4": jnp.asarray(_col(params["b4"])),
        "mask1": jnp.asarray(_interior_mask(batch, sz1, sz1)),
        "mask2": jnp.asarray(_interior_mask(batch, sz2, sz2)),
        # 0/1 selection matrix: bf16 halves its HBM->VMEM DMA and stays exact.
        "s1": jnp.asarray(_pool_select(batch, sz2, sz2), dtype=jnp.bfloat16),
        "wsel": jnp.asarray(wsel),
        "bfc": jnp.asarray(_col(params["bfc"])),
        "esum": jnp.asarray(esum),
    }


# ------------------------------- forward pass --------------------------------

def cnn_forward(x_nchw, prep):
    n, cin, h, w = x_nchw.shape
    hidden = prep["w2"].shape[1]
    num_classes = prep["bfc"].shape[0]
    g = MARGIN
    wp1, wp2 = w + 2, (w // 2) + 2
    m1 = n * (h + 2) * wp1
    m2 = n * (h // 2 + 2) * wp2

    # Tiny layout glue on the raw network input only (a few KB): NCHW ->
    # channels-on-sublanes, zero-padded flattened pixels on lanes, plus margin.
    xp = jnp.pad(x_nchw.astype(jnp.float32), ((0, 0), (0, 0), (1, 1), (1, 1)))
    xf = jnp.transpose(xp, (1, 0, 2, 3)).reshape(cin, m1)
    xf = jnp.pad(xf, ((0, 0), (g, g)))

    kernel = functools.partial(
        _fused_cnn_kernel, m1=m1, wp1=wp1, m2=m2, wp2=wp2,
        hidden=hidden, cin_one=(cin == 1))

    vmem = pl.BlockSpec(memory_space=pltpu.MemorySpace.VMEM)
    out = pl.pallas_call(
        kernel,
        out_shape=jax.ShapeDtypeStruct((num_classes, n), jnp.float32),
        in_specs=[vmem] * 15,
        out_specs=vmem,
        scratch_shapes=[
            pltpu.VMEM((hidden, m1 + 2 * g), jnp.float32),   # conv1 out
            pltpu.VMEM((hidden, m1 + 2 * g), jnp.float32),   # conv2 out
            pltpu.VMEM((hidden, m2 + 2 * g), jnp.float32),   # pooled level 2
            pltpu.VMEM((hidden, m2 + 2 * g), jnp.float32),   # conv3 out
            pltpu.VMEM((hidden, m2 + 2 * g), jnp.float32),   # conv4 out
        ],
    )(xf, prep["w1"], prep["b1"], prep["w2"], prep["b2"],
      prep["w3"], prep["b3"], prep["w4"], prep["b4"],
      prep["mask1"], prep["mask2"], prep["s1"],
      prep["wsel"], prep["bfc"], prep["esum"])
    return out.T                                    # (N, num_classes)


# --------------------------- pure-JAX reference ------------------------------

def reference_forward(x_nchw, params):
    def conv(x, w, b):
        y = jax.lax.conv_general_dilated(
            x, w, window_strides=(1, 1), padding=((1, 1), (1, 1)),
            dimension_numbers=("NCHW", "OIHW", "NCHW"))
        return jax.nn.relu(y + b[None, :, None, None])

    def pool(x):
        return jax.lax.reduce_window(x, -jnp.inf, jax.lax.max,
                                     (1, 1, 2, 2), (1, 1, 2, 2), "VALID")

    x = x_nchw.astype(jnp.float32)
    x = conv(x, params["w1"], params["b1"])
    x = conv(x, params["w2"], params["b2"])
    x = pool(x)
    x = conv(x, params["w3"], params["b3"])
    x = conv(x, params["w4"], params["b4"])
    x = pool(x)
    flat = x.reshape(x.shape[0], -1)
    return flat @ params["wfc"].T + params["bfc"]


# ----------------------------------- main ------------------------------------

if __name__ == "__main__":
    # Module config: input_shape=1 channel, hidden_units=8, output_shape=10.
    # Spatial must be 28x28 to satisfy the hidden_units*7*7 classifier.
    batch, in_ch, hidden, out_dim, hw = 2, 1, 8, 10, 28

    key = jax.random.PRNGKey(0)
    ks = jax.random.split(key, 11)
    params = {
        "w1": 0.1 * jax.random.normal(ks[0], (hidden, in_ch, 3, 3), jnp.float32),
        "b1": 0.1 * jax.random.normal(ks[1], (hidden,), jnp.float32),
        "w2": 0.1 * jax.random.normal(ks[2], (hidden, hidden, 3, 3), jnp.float32),
        "b2": 0.1 * jax.random.normal(ks[3], (hidden,), jnp.float32),
        "w3": 0.1 * jax.random.normal(ks[4], (hidden, hidden, 3, 3), jnp.float32),
        "b3": 0.1 * jax.random.normal(ks[5], (hidden,), jnp.float32),
        "w4": 0.1 * jax.random.normal(ks[6], (hidden, hidden, 3, 3), jnp.float32),
        "b4": 0.1 * jax.random.normal(ks[7], (hidden,), jnp.float32),
        "wfc": 0.1 * jax.random.normal(ks[8], (out_dim, hidden * 7 * 7), jnp.float32),
        "bfc": 0.1 * jax.random.normal(ks[9], (out_dim,), jnp.float32),
    }
    x = jax.random.normal(ks[10], (batch, in_ch, hw, hw), jnp.float32)

    # one-time prep (outside the jitted hot path)
    prep = prepare_params(params, batch=batch, hidden=hidden,
                          num_classes=out_dim, hw=hw)

    out = jax.block_until_ready(jax.jit(cnn_forward)(x, prep))
    ref = jax.block_until_ready(reference_forward(x, params))

    assert out.shape == (batch, out_dim), out.shape
    np.testing.assert_allclose(np.asarray(out), np.asarray(ref),
                               rtol=1e-3, atol=1e-3)
    print("KERNEL_OK")
</pallas_src>

<mosaic_0001>
module attributes {stable_mosaic.version = 11 : i64} {
  func.func @_fused_cnn_kernel(%arg0: memref<1x2056xf32, #tpu.memory_space<vmem>>, %arg1: memref<9x8x1xf32, #tpu.memory_space<vmem>>, %arg2: memref<8x1xf32, #tpu.memory_space<vmem>>, %arg3: memref<9x8x8xf32, #tpu.memory_space<vmem>>, %arg4: memref<8x1xf32, #tpu.memory_space<vmem>>, %arg5: memref<9x8x8xf32, #tpu.memory_space<vmem>>, %arg6: memref<8x1xf32, #tpu.memory_space<vmem>>, %arg7: memref<9x8x8xf32, #tpu.memory_space<vmem>>, %arg8: memref<8x1xf32, #tpu.memory_space<vmem>>, %arg9: memref<1x1800xf32, #tpu.memory_space<vmem>>, %arg10: memref<1x512xf32, #tpu.memory_space<vmem>>, %arg11: memref<1800x512xbf16, #tpu.memory_space<vmem>>, %arg12: memref<8x10x512xf32, #tpu.memory_space<vmem>>, %arg13: memref<10x1xf32, #tpu.memory_space<vmem>>, %arg14: memref<512x2xf32, #tpu.memory_space<vmem>>, %arg15: memref<10x2xf32, #tpu.memory_space<vmem>>, %arg16: memref<8x2056xf32, #tpu.memory_space<vmem>>, %arg17: memref<8x2056xf32, #tpu.memory_space<vmem>>, %arg18: memref<8x768xf32, #tpu.memory_space<vmem>>, %arg19: memref<8x768xf32, #tpu.memory_space<vmem>>, %arg20: memref<8x768xf32, #tpu.memory_space<vmem>>) attributes {dimension_semantics = [], scalar_prefetch = 0 : i64, scratch_operands = 5 : i64, tpu.core_type = #tpu.core_type<tc>} {
    %cst = arith.constant 0.000000e+00 : f32
    %0 = vector.broadcast %cst : f32 to vector<8x2056xf32>
    %c0 = arith.constant 0 : index
    %c0_0 = arith.constant 0 : index
    %1 = vector.load %arg16[%c0, %c0_0] : memref<8x2056xf32, #tpu.memory_space<vmem>>, vector<8x2056xf32>
    tpu.vector_store %arg16[%c0, %c0_0], %0 {strides = array<i32>} : memref<8x2056xf32, #tpu.memory_space<vmem>>, vector<8x2056xf32>,
    %cst_1 = arith.constant 0.000000e+00 : f32
    %2 = vector.broadcast %cst_1 : f32 to vector<8x2056xf32>
    %c0_2 = arith.constant 0 : index
    %c0_3 = arith.constant 0 : index
    %3 = vector.load %arg17[%c0_2, %c0_3] : memref<8x2056xf32, #tpu.memory_space<vmem>>, vector<8x2056xf32>
    tpu.vector_store %arg17[%c0_2, %c0_3], %2 {strides = array<i32>} : memref<8x2056xf32, #tpu.memory_space<vmem>>, vector<8x2056xf32>,
    %cst_4 = arith.constant 0.000000e+00 : f32
    %4 = vector.broadcast %cst_4 : f32 to vector<8x768xf32>
    %c0_5 = arith.constant 0 : index
    %c0_6 = arith.constant 0 : index
    %5 = vector.load %arg18[%c0_5, %c0_6] : memref<8x768xf32, #tpu.memory_space<vmem>>, vector<8x768xf32>
    tpu.vector_store %arg18[%c0_5, %c0_6], %4 {strides = array<i32>} : memref<8x768xf32, #tpu.memory_space<vmem>>, vector<8x768xf32>,
    %cst_7 = arith.constant 0.000000e+00 : f32
    %6 = vector.broadcast %cst_7 : f32 to vector<8x768xf32>
    %c0_8 = arith.constant 0 : index
    %c0_9 = arith.constant 0 : index
    %7 = vector.load %arg19[%c0_8, %c0_9] : memref<8x768xf32, #tpu.memory_space<vmem>>, vector<8x768xf32>
    tpu.vector_store %arg19[%c0_8, %c0_9], %6 {strides = array<i32>} : memref<8x768xf32, #tpu.memory_space<vmem>>, vector<8x768xf32>,
    %cst_10 = arith.constant 0.000000e+00 : f32
    %8 = vector.broadcast %cst_10 : f32 to vector<8x768xf32>
    %c0_11 = arith.constant 0 : index
    %c0_12 = arith.constant 0 : index
    %9 = vector.load %arg20[%c0_11, %c0_12] : memref<8x768xf32, #tpu.memory_space<vmem>>, vector<8x768xf32>
    tpu.vector_store %arg20[%c0_11, %c0_12], %8 {strides = array<i32>} : memref<8x768xf32, #tpu.memory_space<vmem>>, vector<8x768xf32>,
    %c0_13 = arith.constant 0 : index
    %c97 = arith.constant 97 : index
    %10 = vector.load %arg0[%c0_13, %c97] : memref<1x2056xf32, #tpu.memory_space<vmem>>, vector<1x1800xf32>
    %c0_14 = arith.constant 0 : index
    %c0_15 = arith.constant 0 : index
    %c0_16 = arith.constant 0 : index
    %11 = vector.load %arg1[%c0_14, %c0_15, %c0_16] : memref<9x8x1xf32, #tpu.memory_space<vmem>>, vector<1x8x1xf32>
    %12 = vector.shape_cast %11 : vector<1x8x1xf32> to vector<8x1xf32>
    %13 = vector.broadcast %12 : vector<8x1xf32> to vector<8x1800xf32>
    %14 = vector.broadcast %10 : vector<1x1800xf32> to vector<8x1800xf32>
    %15 = arith.mulf %13, %14 : vector<8x1800xf32>
    %c0_17 = arith.constant 0 : index
    %c98 = arith.constant 98 : index
    %16 = vector.load %arg0[%c0_17, %c98] : memref<1x2056xf32, #tpu.memory_space<vmem>>, vector<1x1800xf32>
    %c1 = arith.constant 1 : index
    %c0_18 = arith.constant 0 : index
    %c0_19 = arith.constant 0 : index
    %17 = vector.load %arg1[%c1, %c0_18, %c0_19] : memref<9x8x1xf32, #tpu.memory_space<vmem>>, vector<1x8x1xf32>
    %18 = vector.shape_cast %17 : vector<1x8x1xf32> to vector<8x1xf32>
    %19 = vector.broadcast %18 : vector<8x1xf32> to vector<8x1800xf32>
    %20 = vector.broadcast %16 : vector<1x1800xf32> to vector<8x1800xf32>
    %21 = arith.mulf %19, %20 : vector<8x1800xf32>
    %22 = arith.addf %15, %21 : vector<8x1800xf32>
    %c0_20 = arith.constant 0 : index
    %c99 = arith.constant 99 : index
    %23 = vector.load %arg0[%c0_20, %c99] : memref<1x2056xf32, #tpu.memory_space<vmem>>, vector<1x1800xf32>
    %c2 = arith.constant 2 : index
    %c0_21 = arith.constant 0 : index
    %c0_22 = arith.constant 0 : index
    %24 = vector.load %arg1[%c2, %c0_21, %c0_22] : memref<9x8x1xf32, #tpu.memory_space<vmem>>, vector<1x8x1xf32>
    %25 = vector.shape_cast %24 : vector<1x8x1xf32> to vector<8x1xf32>
    %26 = vector.broadcast %25 : vector<8x1xf32> to vector<8x1800xf32>
    %27 = vector.broadcast %23 : vector<1x1800xf32> to vector<8x1800xf32>
    %28 = arith.mulf %26, %27 : vector<8x1800xf32>
    %29 = arith.addf %22, %28 : vector<8x1800xf32>
    %c0_23 = arith.constant 0 : index
    %c127 = arith.constant 127 : index
    %30 = vector.load %arg0[%c0_23, %c127] : memref<1x2056xf32, #tpu.memory_space<vmem>>, vector<1x1800xf32>
    %c3 = arith.constant 3 : index
    %c0_24 = arith.constant 0 : index
    %c0_25 = arith.constant 0 : index
    %31 = vector.load %arg1[%c3, %c0_24, %c0_25] : memref<9x8x1xf32, #tpu.memory_space<vmem>>, vector<1x8x1xf32>
    %32 = vector.shape_cast %31 : vector<1x8x1xf32> to vector<8x1xf32>
    %33 = vector.broadcast %32 : vector<8x1xf32> to vector<8x1800xf32>
    %34 = vector.broadcast %30 : vector<1x1800xf32> to vector<8x1800xf32>
    %35 = arith.mulf %33, %34 : vector<8x1800xf32>
    %36 = arith.addf %29, %35 : vector<8x1800xf32>
    %c0_26 = arith.constant 0 : index
    %c128 = arith.constant 128 : index
    %37 = vector.load %arg0[%c0_26, %c128] : memref<1x2056xf32, #tpu.memory_space<vmem>>, vector<1x1800xf32>
    %c4 = arith.constant 4 : index
    %c0_27 = arith.constant 0 : index
    %c0_28 = arith.constant 0 : index
    %38 = vector.load %arg1[%c4, %c0_27, %c0_28] : memref<9x8x1xf32, #tpu.memory_space<vmem>>, vector<1x8x1xf32>
    %39 = vector.shape_cast %38 : vector<1x8x1xf32> to vector<8x1xf32>
    %40 = vector.broadcast %39 : vector<8x1xf32> to vector<8x1800xf32>
    %41 = vector.broadcast %37 : vector<1x1800xf32> to vector<8x1800xf32>
    %42 = arith.mulf %40, %41 : vector<8x1800xf32>
    %43 = arith.addf %36, %42 : vector<8x1800xf32>
    %c0_29 = arith.constant 0 : index
    %c129 = arith.constant 129 : index
    %44 = vector.load %arg0[%c0_29, %c129] : memref<1x2056xf32, #tpu.memory_space<vmem>>, vector<1x1800xf32>
    %c5 = arith.constant 5 : index
    %c0_30 = arith.constant 0 : index
    %c0_31 = arith.constant 0 : index
    %45 = vector.load %arg1[%c5, %c0_30, %c0_31] : memref<9x8x1xf32, #tpu.memory_space<vmem>>, vector<1x8x1xf32>
    %46 = vector.shape_cast %45 : vector<1x8x1xf32> to vector<8x1xf32>
    %47 = vector.broadcast %46 : vector<8x1xf32> to vector<8x1800xf32>
    %48 = vector.broadcast %44 : vector<1x1800xf32> to vector<8x1800xf32>
    %49 = arith.mulf %47, %48 : vector<8x1800xf32>
    %50 = arith.addf %43, %49 : vector<8x1800xf32>
    %c0_32 = arith.constant 0 : index
    %c157 = arith.constant 157 : index
    %51 = vector.load %arg0[%c0_32, %c157] : memref<1x2056xf32, #tpu.memory_space<vmem>>, vector<1x1800xf32>
    %c6 = arith.constant 6 : index
    %c0_33 = arith.constant 0 : index
    %c0_34 = arith.constant 0 : index
    %52 = vector.load %arg1[%c6, %c0_33, %c0_34] : memref<9x8x1xf32, #tpu.memory_space<vmem>>, vector<1x8x1xf32>
    %53 = vector.shape_cast %52 : vector<1x8x1xf32> to vector<8x1xf32>
    %54 = vector.broadcast %53 : vector<8x1xf32> to vector<8x1800xf32>
    %55 = vector.broadcast %51 : vector<1x1800xf32> to vector<8x1800xf32>
    %56 = arith.mulf %54, %55 : vector<8x1800xf32>
    %57 = arith.addf %50, %56 : vector<8x1800xf32>
    %c0_35 = arith.constant 0 : index
    %c158 = arith.constant 158 : index
    %58 = vector.load %arg0[%c0_35, %c158] : memref<1x2056xf32, #tpu.memory_space<vmem>>, vector<1x1800xf32>
    %c7 = arith.constant 7 : index
    %c0_36 = arith.constant 0 : index
    %c0_37 = arith.constant 0 : index
    %59 = vector.load %arg1[%c7, %c0_36, %c0_37] : memref<9x8x1xf32, #tpu.memory_space<vmem>>, vector<1x8x1xf32>
    %60 = vector.shape_cast %59 : vector<1x8x1xf32> to vector<8x1xf32>
    %61 = vector.broadcast %60 : vector<8x1xf32> to vector<8x1800xf32>
    %62 = vector.broadcast %58 : vector<1x1800xf32> to vector<8x1800xf32>
    %63 = arith.mulf %61, %62 : vector<8x1800xf32>
    %64 = arith.addf %57, %63 : vector<8x1800xf32>
    %c0_38 = arith.constant 0 : index
    %c159 = arith.constant 159 : index
    %65 = vector.load %arg0[%c0_38, %c159] : memref<1x2056xf32, #tpu.memory_space<vmem>>, vector<1x1800xf32>
    %c8 = arith.constant 8 : index
    %c0_39 = arith.constant 0 : index
    %c0_40 = arith.constant 0 : index
    %66 = vector.load %arg1[%c8, %c0_39, %c0_40] : memref<9x8x1xf32, #tpu.memory_space<vmem>>, vector<1x8x1xf32>
    %67 = vector.shape_cast %66 : vector<1x8x1xf32> to vector<8x1xf32>
    %68 = vector.broadcast %67 : vector<8x1xf32> to vector<8x1800xf32>
    %69 = vector.broadcast %65 : vector<1x1800xf32> to vector<8x1800xf32>
    %70 = arith.mulf %68, %69 : vector<8x1800xf32>
    %71 = arith.addf %64, %70 : vector<8x1800xf32>
    %c0_41 = arith.constant 0 : index
    %c0_42 = arith.constant 0 : index
    %72 = vector.load %arg2[%c0_41, %c0_42] : memref<8x1xf32, #tpu.memory_space<vmem>>, vector<8x1xf32>
    %73 = vector.broadcast %72 : vector<8x1xf32> to vector<8x1800xf32>
    %74 = arith.addf %71, %73 : vector<8x1800xf32>
    %cst_43 = arith.constant 0.000000e+00 : f32
    %75 = vector.broadcast %cst_43 : f32 to vector<8x1800xf32>
    %76 = arith.maximumf %74, %75 : vector<8x1800xf32>
    %c0_44 = arith.constant 0 : index
    %c0_45 = arith.constant 0 : index
    %77 = vector.load %arg9[%c0_44, %c0_45] : memref<1x1800xf32, #tpu.memory_space<vmem>>, vector<1x1800xf32>
    %78 = vector.broadcast %77 : vector<1x1800xf32> to vector<8x1800xf32>
    %79 = arith.mulf %76, %78 : vector<8x1800xf32>
    %c0_46 = arith.constant 0 : index
    %c128_47 = arith.constant 128 : index
    %80 = vector.load %arg16[%c0_46, %c128_47] : memref<8x2056xf32, #tpu.memory_space<vmem>>, vector<8x1800xf32>
    tpu.vector_store %arg16[%c0_46, %c128_47], %79 {strides = array<i32>} : memref<8x2056xf32, #tpu.memory_space<vmem>>, vector<8x1800xf32>,
    %c0_48 = arith.constant 0 : index
    %c97_49 = arith.constant 97 : index
    %81 = vector.load %arg16[%c0_48, %c97_49] : memref<8x2056xf32, #tpu.memory_space<vmem>>, vector<8x1800xf32>
    %c0_50 = arith.constant 0 : index
    %c0_51 = arith.constant 0 : index
    %c0_52 = arith.constant 0 : index
    %82 = vector.load %arg3[%c0_50, %c0_51, %c0_52] : memref<9x8x8xf32, #tpu.memory_space<vmem>>, vector<1x8x8xf32>
    %83 = vector.shape_cast %82 : vector<1x8x8xf32> to vector<8x8xf32>
    %cst_53 = arith.constant dense<0.000000e+00> : vector<8x1800xf32>
    %84 = tpu.matmul %83, %81, %cst_53 {dimension_numbers = #tpu.dot_dimension_numbers<[1], [0], [0], [1], [0, 0, 1, 1], [], []>} : vector<8x8xf32>, vector<8x1800xf32>, vector<8x1800xf32> -> vector<8x1800xf32>
    %c0_54 = arith.constant 0 : index
    %c98_55 = arith.constant 98 : index
    %85 = vector.load %arg16[%c0_54, %c98_55] : memref<8x2056xf32, #tpu.memory_space<vmem>>, vector<8x1800xf32>
    %c1_56 = arith.constant 1 : index
    %c0_57 = arith.constant 0 : index
    %c0_58 = arith.constant 0 : index
    %86 = vector.load %arg3[%c1_56, %c0_57, %c0_58] : memref<9x8x8xf32, #tpu.memory_space<vmem>>, vector<1x8x8xf32>
    %87 = vector.shape_cast %86 : vector<1x8x8xf32> to vector<8x8xf32>
    %cst_59 = arith.constant dense<0.000000e+00> : vector<8x1800xf32>
    %88 = tpu.matmul %87, %85, %cst_59 {dimension_numbers = #tpu.dot_dimension_numbers<[1], [0], [0], [1], [0, 0, 1, 1], [], []>} : vector<8x8xf32>, vector<8x1800xf32>, vector<8x1800xf32> -> vector<8x1800xf32>
    %89 = arith.addf %84, %88 : vector<8x1800xf32>
    %c0_60 = arith.constant 0 : index
    %c99_61 = arith.constant 99 : index
    %90 = vector.load %arg16[%c0_60, %c99_61] : memref<8x2056xf32, #tpu.memory_space<vmem>>, vector<8x1800xf32>
    %c2_62 = arith.constant 2 : index
    %c0_63 = arith.constant 0 : index
    %c0_64 = arith.constant 0 : index
    %91 = vector.load %arg3[%c2_62, %c0_63, %c0_64] : memref<9x8x8xf32, #tpu.memory_space<vmem>>, vector<1x8x8xf32>
    %92 = vector.shape_cast %91 : vector<1x8x8xf32> to vector<8x8xf32>
    %cst_65 = arith.constant dense<0.000000e+00> : vector<8x1800xf32>
    %93 = tpu.matmul %92, %90, %cst_65 {dimension_numbers = #tpu.dot_dimension_numbers<[1], [0], [0], [1], [0, 0, 1, 1], [], []>} : vector<8x8xf32>, vector<8x1800xf32>, vector<8x1800xf32> -> vector<8x1800xf32>
    %94 = arith.addf %89, %93 : vector<8x1800xf32>
    %c0_66 = arith.constant 0 : index
    %c127_67 = arith.constant 127 : index
    %95 = vector.load %arg16[%c0_66, %c127_67] : memref<8x2056xf32, #tpu.memory_space<vmem>>, vector<8x1800xf32>
    %c3_68 = arith.constant 3 : index
    %c0_69 = arith.constant 0 : index
    %c0_70 = arith.constant 0 : index
    %96 = vector.load %arg3[%c3_68, %c0_69, %c0_70] : memref<9x8x8xf32, #tpu.memory_space<vmem>>, vector<1x8x8xf32>
    %97 = vector.shape_cast %96 : vector<1x8x8xf32> to vector<8x8xf32>
    %cst_71 = arith.constant dense<0.000000e+00> : vector<8x1800xf32>
    %98 = tpu.matmul %97, %95, %cst_71 {dimension_numbers = #tpu.dot_dimension_numbers<[1], [0], [0], [1], [0, 0, 1, 1], [], []>} : vector<8x8xf32>, vector<8x1800xf32>, vector<8x1800xf32> -> vector<8x1800xf32>
    %99 = arith.addf %94, %98 : vector<8x1800xf32>
    %c0_72 = arith.constant 0 : index
    %c128_73 = arith.constant 128 : index
    %100 = vector.load %arg16[%c0_72, %c128_73] : memref<8x2056xf32, #tpu.memory_space<vmem>>, vector<8x1800xf32>
    %c4_74 = arith.constant 4 : index
    %c0_75 = arith.constant 0 : index
    %c0_76 = arith.constant 0 : index
    %101 = vector.load %arg3[%c4_74, %c0_75, %c0_76] : memref<9x8x8xf32, #tpu.memory_space<vmem>>, vector<1x8x8xf32>
    %102 = vector.shape_cast %101 : vector<1x8x8xf32> to vector<8x8xf32>
    %cst_77 = arith.constant dense<0.000000e+00> : vector<8x1800xf32>
    %103 = tpu.matmul %102, %100, %cst_77 {dimension_numbers = #tpu.dot_dimension_numbers<[1], [0], [0], [1], [0, 0, 1, 1], [], []>} : vector<8x8xf32>, vector<8x1800xf32>, vector<8x1800xf32> -> vector<8x1800xf32>
    %104 = arith.addf %99, %103 : vector<8x1800xf32>
    %c0_78 = arith.constant 0 : index
    %c129_79 = arith.constant 129 : index
    %105 = vector.load %arg16[%c0_78, %c129_79] : memref<8x2056xf32, #tpu.memory_space<vmem>>, vector<8x1800xf32>
    %c5_80 = arith.constant 5 : index
    %c0_81 = arith.constant 0 : index
    %c0_82 = arith.constant 0 : index
    %106 = vector.load %arg3[%c5_80, %c0_81, %c0_82] : memref<9x8x8xf32, #tpu.memory_space<vmem>>, vector<1x8x8xf32>
    %107 = vector.shape_cast %106 : vector<1x8x8xf32> to vector<8x8xf32>
    %cst_83 = arith.constant dense<0.000000e+00> : vector<8x1800xf32>
    %108 = tpu.matmul %107, %105, %cst_83 {dimension_numbers = #tpu.dot_dimension_numbers<[1], [0], [0], [1], [0, 0, 1, 1], [], []>} : vector<8x8xf32>, vector<8x1800xf32>, vector<8x1800xf32> -> vector<8x1800xf32>
    %109 = arith.addf %104, %108 : vector<8x1800xf32>
    %c0_84 = arith.constant 0 : index
    %c157_85 = arith.constant 157 : index
    %110 = vector.load %arg16[%c0_84, %c157_85] : memref<8x2056xf32, #tpu.memory_space<vmem>>, vector<8x1800xf32>
    %c6_86 = arith.constant 6 : index
    %c0_87 = arith.constant 0 : index
    %c0_88 = arith.constant 0 : index
    %111 = vector.load %arg3[%c6_86, %c0_87, %c0_88] : memref<9x8x8xf32, #tpu.memory_space<vmem>>, vector<1x8x8xf32>
    %112 = vector.shape_cast %111 : vector<1x8x8xf32> to vector<8x8xf32>
    %cst_89 = arith.constant dense<0.000000e+00> : vector<8x1800xf32>
    %113 = tpu.matmul %112, %110, %cst_89 {dimension_numbers = #tpu.dot_dimension_numbers<[1], [0], [0], [1], [0, 0, 1, 1], [], []>} : vector<8x8xf32>, vector<8x1800xf32>, vector<8x1800xf32> -> vector<8x1800xf32>
    %114 = arith.addf %109, %113 : vector<8x1800xf32>
    %c0_90 = arith.constant 0 : index
    %c158_91 = arith.constant 158 : index
    %115 = vector.load %arg16[%c0_90, %c158_91] : memref<8x2056xf32, #tpu.memory_space<vmem>>, vector<8x1800xf32>
    %c7_92 = arith.constant 7 : index
    %c0_93 = arith.constant 0 : index
    %c0_94 = arith.constant 0 : index
    %116 = vector.load %arg3[%c7_92, %c0_93, %c0_94] : memref<9x8x8xf32, #tpu.memory_space<vmem>>, vector<1x8x8xf32>
    %117 = vector.shape_cast %116 : vector<1x8x8xf32> to vector<8x8xf32>
    %cst_95 = arith.constant dense<0.000000e+00> : vector<8x1800xf32>
    %118 = tpu.matmul %117, %115, %cst_95 {dimension_numbers = #tpu.dot_dimension_numbers<[1], [0], [0], [1], [0, 0, 1, 1], [], []>} : vector<8x8xf32>, vector<8x1800xf32>, vector<8x1800xf32> -> vector<8x1800xf32>
    %119 = arith.addf %114, %118 : vector<8x1800xf32>
    %c0_96 = arith.constant 0 : index
    %c159_97 = arith.constant 159 : index
    %120 = vector.load %arg16[%c0_96, %c159_97] : memref<8x2056xf32, #tpu.memory_space<vmem>>, vector<8x1800xf32>
    %c8_98 = arith.constant 8 : index
    %c0_99 = arith.constant 0 : index
    %c0_100 = arith.constant 0 : index
    %121 = vector.load %arg3[%c8_98, %c0_99, %c0_100] : memref<9x8x8xf32, #tpu.memory_space<vmem>>, vector<1x8x8xf32>
    %122 = vector.shape_cast %121 : vector<1x8x8xf32> to vector<8x8xf32>
    %cst_101 = arith.constant dense<0.000000e+00> : vector<8x1800xf32>
    %123 = tpu.matmul %122, %120, %cst_101 {dimension_numbers = #tpu.dot_dimension_numbers<[1], [0], [0], [1], [0, 0, 1, 1], [], []>} : vector<8x8xf32>, vector<8x1800xf32>, vector<8x1800xf32> -> vector<8x1800xf32>
    %124 = arith.addf %119, %123 : vector<8x1800xf32>
    %c0_102 = arith.constant 0 : index
    %c0_103 = arith.constant 0 : index
    %125 = vector.load %arg4[%c0_102, %c0_103] : memref<8x1xf32, #tpu.memory_space<vmem>>, vector<8x1xf32>
    %126 = vector.broadcast %125 : vector<8x1xf32> to vector<8x1800xf32>
    %127 = arith.addf %124, %126 : vector<8x1800xf32>
    %cst_104 = arith.constant 0.000000e+00 : f32
    %128 = vector.broadcast %cst_104 : f32 to vector<8x1800xf32>
    %129 = arith.maximumf %127, %128 : vector<8x1800xf32>
    %c0_105 = arith.constant 0 : index
    %c128_106 = arith.constant 128 : index
    %130 = vector.load %arg17[%c0_105, %c128_106] : memref<8x2056xf32, #tpu.memory_space<vmem>>, vector<8x1800xf32>
    tpu.vector_store %arg17[%c0_105, %c128_106], %129 {strides = array<i32>} : memref<8x2056xf32, #tpu.memory_space<vmem>>, vector<8x1800xf32>,
    %c0_107 = arith.constant 0 : index
    %c128_108 = arith.constant 128 : index
    %131 = vector.load %arg17[%c0_107, %c128_108] : memref<8x2056xf32, #tpu.memory_space<vmem>>, vector<8x1800xf32>
    %c0_109 = arith.constant 0 : index
    %c129_110 = arith.constant 129 : index
    %132 = vector.load %arg17[%c0_109, %c129_110] : memref<8x2056xf32, #tpu.memory_space<vmem>>, vector<8x1800xf32>
    %133 = arith.maximumf %131, %132 : vector<8x1800xf32>
    %c0_111 = arith.constant 0 : index
    %c158_112 = arith.constant 158 : index
    %134 = vector.load %arg17[%c0_111, %c158_112] : memref<8x2056xf32, #tpu.memory_space<vmem>>, vector<8x1800xf32>
    %135 = arith.maximumf %133, %134 : vector<8x1800xf32>
    %c0_113 = arith.constant 0 : index
    %c159_114 = arith.constant 159 : index
    %136 = vector.load %arg17[%c0_113, %c159_114] : memref<8x2056xf32, #tpu.memory_space<vmem>>, vector<8x1800xf32>
    %137 = arith.maximumf %135, %136 : vector<8x1800xf32>
    %c0_115 = arith.constant 0 : index
    %c0_116 = arith.constant 0 : index
    %138 = vector.load %arg11[%c0_115, %c0_116] : memref<1800x512xbf16, #tpu.memory_space<vmem>>, vector<1800x512xbf16>
    %139 = arith.extf %138 : vector<1800x512xbf16> to vector<1800x512xf32>
    %cst_117 = arith.constant dense<0.000000e+00> : vector<8x512xf32>
    %140 = tpu.matmul %137, %139, %cst_117 {dimension_numbers = #tpu.dot_dimension_numbers<[1], [0], [0], [1], [0, 0, 1, 1], [], []>} : vector<8x1800xf32>, vector<1800x512xf32>, vector<8x512xf32> -> vector<8x512xf32>
    %c0_118 = arith.constant 0 : index
    %c128_119 = arith.constant 128 : index
    %141 = vector.load %arg18[%c0_118, %c128_119] : memref<8x768xf32, #tpu.memory_space<vmem>>, vector<8x512xf32>
    tpu.vector_store %arg18[%c0_118, %c128_119], %140 {strides = array<i32>} : memref<8x768xf32, #tpu.memory_space<vmem>>, vector<8x512xf32>,
    %c0_120 = arith.constant 0 : index
    %c111 = arith.constant 111 : index
    %142 = vector.load %arg18[%c0_120, %c111] : memref<8x768xf32, #tpu.memory_space<vmem>>, vector<8x512xf32>
    %c0_121 = arith.constant 0 : index
    %c0_122 = arith.constant 0 : index
    %c0_123 = arith.constant 0 : index
    %143 = vector.load %arg5[%c0_121, %c0_122, %c0_123] : memref<9x8x8xf32, #tpu.memory_space<vmem>>, vector<1x8x8xf32>
    %144 = vector.shape_cast %143 : vector<1x8x8xf32> to vector<8x8xf32>
    %cst_124 = arith.constant dense<0.000000e+00> : vector<8x512xf32>
    %145 = tpu.matmul %144, %142, %cst_124 {dimension_numbers = #tpu.dot_dimension_numbers<[1], [0], [0], [1], [0, 0, 1, 1], [], []>} : vector<8x8xf32>, vector<8x512xf32>, vector<8x512xf32> -> vector<8x512xf32>
    %c0_125 = arith.constant 0 : index
    %c112 = arith.constant 112 : index
    %146 = vector.load %arg18[%c0_125, %c112] : memref<8x768xf32, #tpu.memory_space<vmem>>, vector<8x512xf32>
    %c1_126 = arith.constant 1 : index
    %c0_127 = arith.constant 0 : index
    %c0_128 = arith.constant 0 : index
    %147 = vector.load %arg5[%c1_126, %c0_127, %c0_128] : memref<9x8x8xf32, #tpu.memory_space<vmem>>, vector<1x8x8xf32>
    %148 = vector.shape_cast %147 : vector<1x8x8xf32> to vector<8x8xf32>
    %cst_129 = arith.constant dense<0.000000e+00> : vector<8x512xf32>
    %149 = tpu.matmul %148, %146, %cst_129 {dimension_numbers = #tpu.dot_dimension_numbers<[1], [0], [0], [1], [0, 0, 1, 1], [], []>} : vector<8x8xf32>, vector<8x512xf32>, vector<8x512xf32> -> vector<8x512xf32>
    %150 = arith.addf %145, %149 : vector<8x512xf32>
    %c0_130 = arith.constant 0 : index
    %c113 = arith.constant 113 : index
    %151 = vector.load %arg18[%c0_130, %c113] : memref<8x768xf32, #tpu.memory_space<vmem>>, vector<8x512xf32>
    %c2_131 = arith.constant 2 : index
    %c0_132 = arith.constant 0 : index
    %c0_133 = arith.constant 0 : index
    %152 = vector.load %arg5[%c2_131, %c0_132, %c0_133] : memref<9x8x8xf32, #tpu.memory_space<vmem>>, vector<1x8x8xf32>
    %153 = vector.shape_cast %152 : vector<1x8x8xf32> to vector<8x8xf32>
    %cst_134 = arith.constant dense<0.000000e+00> : vector<8x512xf32>
    %154 = tpu.matmul %153, %151, %cst_134 {dimension_numbers = #tpu.dot_dimension_numbers<[1], [0], [0], [1], [0, 0, 1, 1], [], []>} : vector<8x8xf32>, vector<8x512xf32>, vector<8x512xf32> -> vector<8x512xf32>
    %155 = arith.addf %150, %154 : vector<8x512xf32>
    %c0_135 = arith.constant 0 : index
    %c127_136 = arith.constant 127 : index
    %156 = vector.load %arg18[%c0_135, %c127_136] : memref<8x768xf32, #tpu.memory_space<vmem>>, vector<8x512xf32>
    %c3_137 = arith.constant 3 : index
    %c0_138 = arith.constant 0 : index
    %c0_139 = arith.constant 0 : index
    %157 = vector.load %arg5[%c3_137, %c0_138, %c0_139] : memref<9x8x8xf32, #tpu.memory_space<vmem>>, vector<1x8x8xf32>
    %158 = vector.shape_cast %157 : vector<1x8x8xf32> to vector<8x8xf32>
    %cst_140 = arith.constant dense<0.000000e+00> : vector<8x512xf32>
    %159 = tpu.matmul %158, %156, %cst_140 {dimension_numbers = #tpu.dot_dimension_numbers<[1], [0], [0], [1], [0, 0, 1, 1], [], []>} : vector<8x8xf32>, vector<8x512xf32>, vector<8x512xf32> -> vector<8x512xf32>
    %160 = arith.addf %155, %159 : vector<8x512xf32>
    %c0_141 = arith.constant 0 : index
    %c128_142 = arith.constant 128 : index
    %161 = vector.load %arg18[%c0_141, %c128_142] : memref<8x768xf32, #tpu.memory_space<vmem>>, vector<8x512xf32>
    %c4_143 = arith.constant 4 : index
    %c0_144 = arith.constant 0 : index
    %c0_145 = arith.constant 0 : index
    %162 = vector.load %arg5[%c4_143, %c0_144, %c0_145] : memref<9x8x8xf32, #tpu.memory_space<vmem>>, vector<1x8x8xf32>
    %163 = vector.shape_cast %162 : vector<1x8x8xf32> to vector<8x8xf32>
    %cst_146 = arith.constant dense<0.000000e+00> : vector<8x512xf32>
    %164 = tpu.matmul %163, %161, %cst_146 {dimension_numbers = #tpu.dot_dimension_numbers<[1], [0], [0], [1], [0, 0, 1, 1], [], []>} : vector<8x8xf32>, vector<8x512xf32>, vector<8x512xf32> -> vector<8x512xf32>
    %165 = arith.addf %160, %164 : vector<8x512xf32>
    %c0_147 = arith.constant 0 : index
    %c129_148 = arith.constant 129 : index
    %166 = vector.load %arg18[%c0_147, %c129_148] : memref<8x768xf32, #tpu.memory_space<vmem>>, vector<8x512xf32>
    %c5_149 = arith.constant 5 : index
    %c0_150 = arith.constant 0 : index
    %c0_151 = arith.constant 0 : index
    %167 = vector.load %arg5[%c5_149, %c0_150, %c0_151] : memref<9x8x8xf32, #tpu.memory_space<vmem>>, vector<1x8x8xf32>
    %168 = vector.shape_cast %167 : vector<1x8x8xf32> to vector<8x8xf32>
    %cst_152 = arith.constant dense<0.000000e+00> : vector<8x512xf32>
    %169 = tpu.matmul %168, %166, %cst_152 {dimension_numbers = #tpu.dot_dimension_numbers<[1], [0], [0], [1], [0, 0, 1, 1], [], []>} : vector<8x8xf32>, vector<8x512xf32>, vector<8x512xf32> -> vector<8x512xf32>
    %170 = arith.addf %165, %169 : vector<8x512xf32>
    %c0_153 = arith.constant 0 : index
    %c143 = arith.constant 143 : index
    %171 = vector.load %arg18[%c0_153, %c143] : memref<8x768xf32, #tpu.memory_space<vmem>>, vector<8x512xf32>
    %c6_154 = arith.constant 6 : index
    %c0_155 = arith.constant 0 : index
    %c0_156 = arith.constant 0 : index
    %172 = vector.load %arg5[%c6_154, %c0_155, %c0_156] : memref<9x8x8xf32, #tpu.memory_space<vmem>>, vector<1x8x8xf32>
    %173 = vector.shape_cast %172 : vector<1x8x8xf32> to vector<8x8xf32>
    %cst_157 = arith.constant dense<0.000000e+00> : vector<8x512xf32>
    %174 = tpu.matmul %173, %171, %cst_157 {dimension_numbers = #tpu.dot_dimension_numbers<[1], [0], [0], [1], [0, 0, 1, 1], [], []>} : vector<8x8xf32>, vector<8x512xf32>, vector<8x512xf32> -> vector<8x512xf32>
    %175 = arith.addf %170, %174 : vector<8x512xf32>
    %c0_158 = arith.constant 0 : index
    %c144 = arith.constant 144 : index
    %176 = vector.load %arg18[%c0_158, %c144] : memref<8x768xf32, #tpu.memory_space<vmem>>, vector<8x512xf32>
    %c7_159 = arith.constant 7 : index
    %c0_160 = arith.constant 0 : index
    %c0_161 = arith.constant 0 : index
    %177 = vector.load %arg5[%c7_159, %c0_160, %c0_161] : memref<9x8x8xf32, #tpu.memory_space<vmem>>, vector<1x8x8xf32>
    %178 = vector.shape_cast %177 : vector<1x8x8xf32> to vector<8x8xf32>
    %cst_162 = arith.constant dense<0.000000e+00> : vector<8x512xf32>
    %179 = tpu.matmul %178, %176, %cst_162 {dimension_numbers = #tpu.dot_dimension_numbers<[1], [0], [0], [1], [0, 0, 1, 1], [], []>} : vector<8x8xf32>, vector<8x512xf32>, vector<8x512xf32> -> vector<8x512xf32>
    %180 = arith.addf %175, %179 : vector<8x512xf32>
    %c0_163 = arith.constant 0 : index
    %c145 = arith.constant 145 : index
    %181 = vector.load %arg18[%c0_163, %c145] : memref<8x768xf32, #tpu.memory_space<vmem>>, vector<8x512xf32>
    %c8_164 = arith.constant 8 : index
    %c0_165 = arith.constant 0 : index
    %c0_166 = arith.constant 0 : index
    %182 = vector.load %arg5[%c8_164, %c0_165, %c0_166] : memref<9x8x8xf32, #tpu.memory_space<vmem>>, vector<1x8x8xf32>
    %183 = vector.shape_cast %182 : vector<1x8x8xf32> to vector<8x8xf32>
    %cst_167 = arith.constant dense<0.000000e+00> : vector<8x512xf32>
    %184 = tpu.matmul %183, %181, %cst_167 {dimension_numbers = #tpu.dot_dimension_numbers<[1], [0], [0], [1], [0, 0, 1, 1], [], []>} : vector<8x8xf32>, vector<8x512xf32>, vector<8x512xf32> -> vector<8x512xf32>
    %185 = arith.addf %180, %184 : vector<8x512xf32>
    %c0_168 = arith.constant 0 : index
    %c0_169 = arith.constant 0 : index
    %186 = vector.load %arg6[%c0_168, %c0_169] : memref<8x1xf32, #tpu.memory_space<vmem>>, vector<8x1xf32>
    %187 = vector.broadcast %186 : vector<8x1xf32> to vector<8x512xf32>
    %188 = arith.addf %185, %187 : vector<8x512xf32>
    %cst_170 = arith.constant 0.000000e+00 : f32
    %189 = vector.broadcast %cst_170 : f32 to vector<8x512xf32>
    %190 = arith.maximumf %188, %189 : vector<8x512xf32>
    %c0_171 = arith.constant 0 : index
    %c0_172 = arith.constant 0 : index
    %191 = vector.load %arg10[%c0_171, %c0_172] : memref<1x512xf32, #tpu.memory_space<vmem>>, vector<1x512xf32>
    %192 = vector.broadcast %191 : vector<1x512xf32> to vector<8x512xf32>
    %193 = arith.mulf %190, %192 : vector<8x512xf32>
    %c0_173 = arith.constant 0 : index
    %c128_174 = arith.constant 128 : index
    %194 = vector.load %arg19[%c0_173, %c128_174] : memref<8x768xf32, #tpu.memory_space<vmem>>, vector<8x512xf32>
    tpu.vector_store %arg19[%c0_173, %c128_174], %193 {strides = array<i32>} : memref<8x768xf32, #tpu.memory_space<vmem>>, vector<8x512xf32>,
    %c0_175 = arith.constant 0 : index
    %c111_176 = arith.constant 111 : index
    %195 = vector.load %arg19[%c0_175, %c111_176] : memref<8x768xf32, #tpu.memory_space<vmem>>, vector<8x512xf32>
    %c0_177 = arith.constant 0 : index
    %c0_178 = arith.constant 0 : index
    %c0_179 = arith.constant 0 : index
    %196 = vector.load %arg7[%c0_177, %c0_178, %c0_179] : memref<9x8x8xf32, #tpu.memory_space<vmem>>, vector<1x8x8xf32>
    %197 = vector.shape_cast %196 : vector<1x8x8xf32> to vector<8x8xf32>
    %cst_180 = arith.constant dense<0.000000e+00> : vector<8x512xf32>
    %198 = tpu.matmul %197, %195, %cst_180 {dimension_numbers = #tpu.dot_dimension_numbers<[1], [0], [0], [1], [0, 0, 1, 1], [], []>} : vector<8x8xf32>, vector<8x512xf32>, vector<8x512xf32> -> vector<8x512xf32>
    %c0_181 = arith.constant 0 : index
    %c112_182 = arith.constant 112 : index
    %199 = vector.load %arg19[%c0_181, %c112_182] : memref<8x768xf32, #tpu.memory_space<vmem>>, vector<8x512xf32>
    %c1_183 = arith.constant 1 : index
    %c0_184 = arith.constant 0 : index
    %c0_185 = arith.constant 0 : index
    %200 = vector.load %arg7[%c1_183, %c0_184, %c0_185] : memref<9x8x8xf32, #tpu.memory_space<vmem>>, vector<1x8x8xf32>
    %201 = vector.shape_cast %200 : vector<1x8x8xf32> to vector<8x8xf32>
    %cst_186 = arith.constant dense<0.000000e+00> : vector<8x512xf32>
    %202 = tpu.matmul %201, %199, %cst_186 {dimension_numbers = #tpu.dot_dimension_numbers<[1], [0], [0], [1], [0, 0, 1, 1], [], []>} : vector<8x8xf32>, vector<8x512xf32>, vector<8x512xf32> -> vector<8x512xf32>
    %203 = arith.addf %198, %202 : vector<8x512xf32>
    %c0_187 = arith.constant 0 : index
    %c113_188 = arith.constant 113 : index
    %204 = vector.load %arg19[%c0_187, %c113_188] : memref<8x768xf32, #tpu.memory_space<vmem>>, vector<8x512xf32>
    %c2_189 = arith.constant 2 : index
    %c0_190 = arith.constant 0 : index
    %c0_191 = arith.constant 0 : index
    %205 = vector.load %arg7[%c2_189, %c0_190, %c0_191] : memref<9x8x8xf32, #tpu.memory_space<vmem>>, vector<1x8x8xf32>
    %206 = vector.shape_cast %205 : vector<1x8x8xf32> to vector<8x8xf32>
    %cst_192 = arith.constant dense<0.000000e+00> : vector<8x512xf32>
    %207 = tpu.matmul %206, %204, %cst_192 {dimension_numbers = #tpu.dot_dimension_numbers<[1], [0], [0], [1], [0, 0, 1, 1], [], []>} : vector<8x8xf32>, vector<8x512xf32>, vector<8x512xf32> -> vector<8x512xf32>
    %208 = arith.addf %203, %207 : vector<8x512xf32>
    %c0_193 = arith.constant 0 : index
    %c127_194 = arith.constant 127 : index
    %209 = vector.load %arg19[%c0_193, %c127_194] : memref<8x768xf32, #tpu.memory_space<vmem>>, vector<8x512xf32>
    %c3_195 = arith.constant 3 : index
    %c0_196 = arith.constant 0 : index
    %c0_197 = arith.constant 0 : index
    %210 = vector.load %arg7[%c3_195, %c0_196, %c0_197] : memref<9x8x8xf32, #tpu.memory_space<vmem>>, vector<1x8x8xf32>
    %211 = vector.shape_cast %210 : vector<1x8x8xf32> to vector<8x8xf32>
    %cst_198 = arith.constant dense<0.000000e+00> : vector<8x512xf32>
    %212 = tpu.matmul %211, %209, %cst_198 {dimension_numbers = #tpu.dot_dimension_numbers<[1], [0], [0], [1], [0, 0, 1, 1], [], []>} : vector<8x8xf32>, vector<8x512xf32>, vector<8x512xf32> -> vector<8x512xf32>
    %213 = arith.addf %208, %212 : vector<8x512xf32>
    %c0_199 = arith.constant 0 : index
    %c128_200 = arith.constant 128 : index
    %214 = vector.load %arg19[%c0_199, %c128_200] : memref<8x768xf32, #tpu.memory_space<vmem>>, vector<8x512xf32>
    %c4_201 = arith.constant 4 : index
    %c0_202 = arith.constant 0 : index
    %c0_203 = arith.constant 0 : index
    %215 = vector.load %arg7[%c4_201, %c0_202, %c0_203] : memref<9x8x8xf32, #tpu.memory_space<vmem>>, vector<1x8x8xf32>
    %216 = vector.shape_cast %215 : vector<1x8x8xf32> to vector<8x8xf32>
    %cst_204 = arith.constant dense<0.000000e+00> : vector<8x512xf32>
    %217 = tpu.matmul %216, %214, %cst_204 {dimension_numbers = #tpu.dot_dimension_numbers<[1], [0], [0], [1], [0, 0, 1, 1], [], []>} : vector<8x8xf32>, vector<8x512xf32>, vector<8x512xf32> -> vector<8x512xf32>
    %218 = arith.addf %213, %217 : vector<8x512xf32>
    %c0_205 = arith.constant 0 : index
    %c129_206 = arith.constant 129 : index
    %219 = vector.load %arg19[%c0_205, %c129_206] : memref<8x768xf32, #tpu.memory_space<vmem>>, vector<8x512xf32>
    %c5_207 = arith.constant 5 : index
    %c0_208 = arith.constant 0 : index
    %c0_209 = arith.constant 0 : index
    %220 = vector.load %arg7[%c5_207, %c0_208, %c0_209] : memref<9x8x8xf32, #tpu.memory_space<vmem>>, vector<1x8x8xf32>
    %221 = vector.shape_cast %220 : vector<1x8x8xf32> to vector<8x8xf32>
    %cst_210 = arith.constant dense<0.000000e+00> : vector<8x512xf32>
    %222 = tpu.matmul %221, %219, %cst_210 {dimension_numbers = #tpu.dot_dimension_numbers<[1], [0], [0], [1], [0, 0, 1, 1], [], []>} : vector<8x8xf32>, vector<8x512xf32>, vector<8x512xf32> -> vector<8x512xf32>
    %223 = arith.addf %218, %222 : vector<8x512xf32>
    %c0_211 = arith.constant 0 : index
    %c143_212 = arith.constant 143 : index
    %224 = vector.load %arg19[%c0_211, %c143_212] : memref<8x768xf32, #tpu.memory_space<vmem>>, vector<8x512xf32>
    %c6_213 = arith.constant 6 : index
    %c0_214 = arith.constant 0 : index
    %c0_215 = arith.constant 0 : index
    %225 = vector.load %arg7[%c6_213, %c0_214, %c0_215] : memref<9x8x8xf32, #tpu.memory_space<vmem>>, vector<1x8x8xf32>
    %226 = vector.shape_cast %225 : vector<1x8x8xf32> to vector<8x8xf32>
    %cst_216 = arith.constant dense<0.000000e+00> : vector<8x512xf32>
    %227 = tpu.matmul %226, %224, %cst_216 {dimension_numbers = #tpu.dot_dimension_numbers<[1], [0], [0], [1], [0, 0, 1, 1], [], []>} : vector<8x8xf32>, vector<8x512xf32>, vector<8x512xf32> -> vector<8x512xf32>
    %228 = arith.addf %223, %227 : vector<8x512xf32>
    %c0_217 = arith.constant 0 : index
    %c144_218 = arith.constant 144 : index
    %229 = vector.load %arg19[%c0_217, %c144_218] : memref<8x768xf32, #tpu.memory_space<vmem>>, vector<8x512xf32>
    %c7_219 = arith.constant 7 : index
    %c0_220 = arith.constant 0 : index
    %c0_221 = arith.constant 0 : index
    %230 = vector.load %arg7[%c7_219, %c0_220, %c0_221] : memref<9x8x8xf32, #tpu.memory_space<vmem>>, vector<1x8x8xf32>
    %231 = vector.shape_cast %230 : vector<1x8x8xf32> to vector<8x8xf32>
    %cst_222 = arith.constant dense<0.000000e+00> : vector<8x512xf32>
    %232 = tpu.matmul %231, %229, %cst_222 {dimension_numbers = #tpu.dot_dimension_numbers<[1], [0], [0], [1], [0, 0, 1, 1], [], []>} : vector<8x8xf32>, vector<8x512xf32>, vector<8x512xf32> -> vector<8x512xf32>
    %233 = arith.addf %228, %232 : vector<8x512xf32>
    %c0_223 = arith.constant 0 : index
    %c145_224 = arith.constant 145 : index
    %234 = vector.load %arg19[%c0_223, %c145_224] : memref<8x768xf32, #tpu.memory_space<vmem>>, vector<8x512xf32>
    %c8_225 = arith.constant 8 : index
    %c0_226 = arith.constant 0 : index
    %c0_227 = arith.constant 0 : index
    %235 = vector.load %arg7[%c8_225, %c0_226, %c0_227] : memref<9x8x8xf32, #tpu.memory_space<vmem>>, vector<1x8x8xf32>
    %236 = vector.shape_cast %235 : vector<1x8x8xf32> to vector<8x8xf32>
    %cst_228 = arith.constant dense<0.000000e+00> : vector<8x512xf32>
    %237 = tpu.matmul %236, %234, %cst_228 {dimension_numbers = #tpu.dot_dimension_numbers<[1], [0], [0], [1], [0, 0, 1, 1], [], []>} : vector<8x8xf32>, vector<8x512xf32>, vector<8x512xf32> -> vector<8x512xf32>
    %238 = arith.addf %233, %237 : vector<8x512xf32>
    %c0_229 = arith.constant 0 : index
    %c0_230 = arith.constant 0 : index
    %239 = vector.load %arg8[%c0_229, %c0_230] : memref<8x1xf32, #tpu.memory_space<vmem>>, vector<8x1xf32>
    %240 = vector.broadcast %239 : vector<8x1xf32> to vector<8x512xf32>
    %241 = arith.addf %238, %240 : vector<8x512xf32>
    %cst_231 = arith.constant 0.000000e+00 : f32
    %242 = vector.broadcast %cst_231 : f32 to vector<8x512xf32>
    %243 = arith.maximumf %241, %242 : vector<8x512xf32>
    %c0_232 = arith.constant 0 : index
    %c128_233 = arith.constant 128 : index
    %244 = vector.load %arg20[%c0_232, %c128_233] : memref<8x768xf32, #tpu.memory_space<vmem>>, vector<8x512xf32>
    tpu.vector_store %arg20[%c0_232, %c128_233], %243 {strides = array<i32>} : memref<8x768xf32, #tpu.memory_space<vmem>>, vector<8x512xf32>,
    %c0_234 = arith.constant 0 : index
    %c128_235 = arith.constant 128 : index
    %245 = vector.load %arg20[%c0_234, %c128_235] : memref<8x768xf32, #tpu.memory_space<vmem>>, vector<8x512xf32>
    %c0_236 = arith.constant 0 : index
    %c129_237 = arith.constant 129 : index
    %246 = vector.load %arg20[%c0_236, %c129_237] : memref<8x768xf32, #tpu.memory_space<vmem>>, vector<8x512xf32>
    %247 = arith.maximumf %245, %246 : vector<8x512xf32>
    %c0_238 = arith.constant 0 : index
    %c144_239 = arith.constant 144 : index
    %248 = vector.load %arg20[%c0_238, %c144_239] : memref<8x768xf32, #tpu.memory_space<vmem>>, vector<8x512xf32>
    %249 = arith.maximumf %247, %248 : vector<8x512xf32>
    %c0_240 = arith.constant 0 : index
    %c145_241 = arith.constant 145 : index
    %250 = vector.load %arg20[%c0_240, %c145_241] : memref<8x768xf32, #tpu.memory_space<vmem>>, vector<8x512xf32>
    %251 = arith.maximumf %249, %250 : vector<8x512xf32>
    %cst_242 = arith.constant 0.000000e+00 : f32
    %252 = vector.broadcast %cst_242 : f32 to vector<10x512xf32>
    %c0_243 = arith.constant 0 : index
    %c0_244 = arith.constant 0 : index
    %c0_245 = arith.constant 0 : index
    %253 = vector.load %arg12[%c0_243, %c0_244, %c0_245] : memref<8x10x512xf32, #tpu.memory_space<vmem>>, vector<1x10x512xf32>
    %254 = vector.shape_cast %253 : vector<1x10x512xf32> to vector<10x512xf32>
    %255 = vector.extract_strided_slice %251 {offsets = [0, 0], sizes = [1, 512], strides = [1, 1]} : vector<8x512xf32> to vector<1x512xf32>
    %256 = vector.broadcast %255 : vector<1x512xf32> to vector<10x512xf32>
    %257 = arith.mulf %254, %256 : vector<10x512xf32>
    %258 = arith.addf %252, %257 : vector<10x512xf32>
    %c1_246 = arith.constant 1 : index
    %c0_247 = arith.constant 0 : index
    %c0_248 = arith.constant 0 : index
    %259 = vector.load %arg12[%c1_246, %c0_247, %c0_248] : memref<8x10x512xf32, #tpu.memory_space<vmem>>, vector<1x10x512xf32>
    %260 = vector.shape_cast %259 : vector<1x10x512xf32> to vector<10x512xf32>
    %261 = vector.extract_strided_slice %251 {offsets = [1, 0], sizes = [1, 512], strides = [1, 1]} : vector<8x512xf32> to vector<1x512xf32>
    %262 = vector.broadcast %261 : vector<1x512xf32> to vector<10x512xf32>
    %263 = arith.mulf %260, %262 : vector<10x512xf32>
    %264 = arith.addf %258, %263 : vector<10x512xf32>
    %c2_249 = arith.constant 2 : index
    %c0_250 = arith.constant 0 : index
    %c0_251 = arith.constant 0 : index
    %265 = vector.load %arg12[%c2_249, %c0_250, %c0_251] : memref<8x10x512xf32, #tpu.memory_space<vmem>>, vector<1x10x512xf32>
    %266 = vector.shape_cast %265 : vector<1x10x512xf32> to vector<10x512xf32>
    %267 = vector.extract_strided_slice %251 {offsets = [2, 0], sizes = [1, 512], strides = [1, 1]} : vector<8x512xf32> to vector<1x512xf32>
    %268 = vector.broadcast %267 : vector<1x512xf32> to vector<10x512xf32>
    %269 = arith.mulf %266, %268 : vector<10x512xf32>
    %270 = arith.addf %264, %269 : vector<10x512xf32>
    %c3_252 = arith.constant 3 : index
    %c0_253 = arith.constant 0 : index
    %c0_254 = arith.constant 0 : index
    %271 = vector.load %arg12[%c3_252, %c0_253, %c0_254] : memref<8x10x512xf32, #tpu.memory_space<vmem>>, vector<1x10x512xf32>
    %272 = vector.shape_cast %271 : vector<1x10x512xf32> to vector<10x512xf32>
    %273 = vector.extract_strided_slice %251 {offsets = [3, 0], sizes = [1, 512], strides = [1, 1]} : vector<8x512xf32> to vector<1x512xf32>
    %274 = vector.broadcast %273 : vector<1x512xf32> to vector<10x512xf32>
    %275 = arith.mulf %272, %274 : vector<10x512xf32>
    %276 = arith.addf %270, %275 : vector<10x512xf32>
    %c4_255 = arith.constant 4 : index
    %c0_256 = arith.constant 0 : index
    %c0_257 = arith.constant 0 : index
    %277 = vector.load %arg12[%c4_255, %c0_256, %c0_257] : memref<8x10x512xf32, #tpu.memory_space<vmem>>, vector<1x10x512xf32>
    %278 = vector.shape_cast %277 : vector<1x10x512xf32> to vector<10x512xf32>
    %279 = vector.extract_strided_slice %251 {offsets = [4, 0], sizes = [1, 512], strides = [1, 1]} : vector<8x512xf32> to vector<1x512xf32>
    %280 = vector.broadcast %279 : vector<1x512xf32> to vector<10x512xf32>
    %281 = arith.mulf %278, %280 : vector<10x512xf32>
    %282 = arith.addf %276, %281 : vector<10x512xf32>
    %c5_258 = arith.constant 5 : index
    %c0_259 = arith.constant 0 : index
    %c0_260 = arith.constant 0 : index
    %283 = vector.load %arg12[%c5_258, %c0_259, %c0_260] : memref<8x10x512xf32, #tpu.memory_space<vmem>>, vector<1x10x512xf32>
    %284 = vector.shape_cast %283 : vector<1x10x512xf32> to vector<10x512xf32>
    %285 = vector.extract_strided_slice %251 {offsets = [5, 0], sizes = [1, 512], strides = [1, 1]} : vector<8x512xf32> to vector<1x512xf32>
    %286 = vector.broadcast %285 : vector<1x512xf32> to vector<10x512xf32>
    %287 = arith.mulf %284, %286 : vector<10x512xf32>
    %288 = arith.addf %282, %287 : vector<10x512xf32>
    %c6_261 = arith.constant 6 : index
    %c0_262 = arith.constant 0 : index
    %c0_263 = arith.constant 0 : index
    %289 = vector.load %arg12[%c6_261, %c0_262, %c0_263] : memref<8x10x512xf32, #tpu.memory_space<vmem>>, vector<1x10x512xf32>
    %290 = vector.shape_cast %289 : vector<1x10x512xf32> to vector<10x512xf32>
    %291 = vector.extract_strided_slice %251 {offsets = [6, 0], sizes = [1, 512], strides = [1, 1]} : vector<8x512xf32> to vector<1x512xf32>
    %292 = vector.broadcast %291 : vector<1x512xf32> to vector<10x512xf32>
    %293 = arith.mulf %290, %292 : vector<10x512xf32>
    %294 = arith.addf %288, %293 : vector<10x512xf32>
    %c7_264 = arith.constant 7 : index
    %c0_265 = arith.constant 0 : index
    %c0_266 = arith.constant 0 : index
    %295 = vector.load %arg12[%c7_264, %c0_265, %c0_266] : memref<8x10x512xf32, #tpu.memory_space<vmem>>, vector<1x10x512xf32>
    %296 = vector.shape_cast %295 : vector<1x10x512xf32> to vector<10x512xf32>
    %297 = vector.extract_strided_slice %251 {offsets = [7, 0], sizes = [1, 512], strides = [1, 1]} : vector<8x512xf32> to vector<1x512xf32>
    %298 = vector.broadcast %297 : vector<1x512xf32> to vector<10x512xf32>
    %299 = arith.mulf %296, %298 : vector<10x512xf32>
    %300 = arith.addf %294, %299 : vector<10x512xf32>
    %c0_267 = arith.constant 0 : index
    %c0_268 = arith.constant 0 : index
    %301 = vector.load %arg14[%c0_267, %c0_268] : memref<512x2xf32, #tpu.memory_space<vmem>>, vector<512x2xf32>
    %cst_269 = arith.constant dense<0.000000e+00> : vector<10x2xf32>
    %302 = tpu.matmul %300, %301, %cst_269 {dimension_numbers = #tpu.dot_dimension_numbers<[1], [0], [0], [1], [0, 0, 1, 1], [], []>} : vector<10x512xf32>, vector<512x2xf32>, vector<10x2xf32> -> vector<10x2xf32>
    %c0_270 = arith.constant 0 : index
    %c0_271 = arith.constant 0 : index
    %303 = vector.load %arg13[%c0_270, %c0_271] : memref<10x1xf32, #tpu.memory_space<vmem>>, vector<10x1xf32>
    %304 = vector.broadcast %303 : vector<10x1xf32> to vector<10x2xf32>
    %305 = arith.addf %302, %304 : vector<10x2xf32>
    %c0_272 = arith.constant 0 : index
    %c0_273 = arith.constant 0 : index
    %306 = vector.load %arg15[%c0_272, %c0_273] : memref<10x2xf32, #tpu.memory_space<vmem>>, vector<10x2xf32>
    tpu.vector_store %arg15[%c0_272, %c0_273], %305 {strides = array<i32>} : memref<10x2xf32, #tpu.memory_space<vmem>>, vector<10x2xf32>,
    return
  }
}

</mosaic_0001>

<bundles_post_ra>
// kernel: cnn_forward.1
= control target key start
LH: loop header
LB: loop body
LE: loop exit
PB: predicated region body
PF: predicated region fallthrough
CT: control target
= control target key end

     0   :  { %20 = vsyncpa [#allocation8], 0  ;;  %s15691_s0 = inlined_call_operand.vmem [shape: f32[1,2056], index: 0, kind: input, shape index: {}]   ;;  %s15692_s1 = inlined_call_operand.vmem [shape: f32[9,8,1], index: 1, kind: input, shape index: {}]   ;;  %s15693_s2 = inlined_call_operand.vmem [shape: f32[8,1], index: 2, kind: input, shape index: {}]   ;;  %s15694_s3 = inlined_call_operand.vmem [shape: f32[9,8,8], index: 3, kind: input, shape index: {}]   ;;  %s15695_s4 = inlined_call_operand.vmem [shape: f32[8,1], index: 4, kind: input, shape index: {}]   ;;  %s15696_s5 = inlined_call_operand.vmem [shape: f32[9,8,8], index: 5, kind: input, shape index: {}]   ;;  %s15697_s6 = inlined_call_operand.vmem [shape: f32[8,1], index: 6, kind: input, shape index: {}]   ;;  %s15698_s7 = inlined_call_operand.vmem [shape: f32[9,8,8], index: 7, kind: input, shape index: {}]   ;;  %s15699_s8 = inlined_call_operand.vmem [shape: f32[8,1], index: 8, kind: input, shape index: {}]   ;;  %s15700_s9 = inlined_call_operand.hbm [shape: f32[1,1800], index: 9, kind: input, shape index: {}]   ;;  %s15701_s10 = inlined_call_operand.hbm [shape: f32[1,512], index: 10, kind: input, shape index: {}]   ;;  %s15702_s11 = inlined_call_operand.hbm [shape: bf16[1800,512], index: 11, kind: input, shape index: {}]   ;;  %s15703_s12 = inlined_call_operand.vmem [shape: f32[8,10,512], index: 12, kind: input, shape index: {}]   ;;  %s15704_s13 = inlined_call_operand.vmem [shape: f32[10,1], index: 13, kind: input, shape index: {}]   ;;  %s15705_s14 = inlined_call_operand.vmem [shape: f32[512,2], index: 14, kind: input, shape index: {}]   ;;  %s15706_s15 = inlined_call_operand.vmem [shape: f32[10,2], index: 15, kind: output, shape index: {}]  }
   0x1   :  { %21 = vsyncpa [#allocation10], 0  ;;  %s56_s20 = sshll.u32 %s15701_s10, 4  ;;  %s11428_s21 = smov [#allocation9]   ;;  %s57_s20 = int_to_ptr.hbm [resolvable:$true] %s56_s20 }
   0x2   :  { %s58_s22 = sshll.u32 %s11428_s21, 4  ;;  %s45_s25 = sshll.u32 %s15700_s9, 4  ;;  %s59_s22 = int_to_ptr.vmem [resolvable:$true] %s58_s22  ;;  %s46_s25 = int_to_ptr.hbm [resolvable:$true] %s45_s25 }
   0x3   :  { %61 = dma.hbm_to_vmem [thread:$0]  %s57_s20, 64, %s59_s22, [#allocation10]  }
   0x4   :  { %s11429_s26 = smov [#allocation7]   ;;  %s66_s30 = sshll.u32 %s15702_s11, 4  ;;  %s67_s30 = int_to_ptr.hbm [resolvable:$true] %s66_s30 }
   0x5   :  { %s47_s27 = sshll.u32 %s11429_s26, 4  ;;  %s11430_s10 = smov [#allocation11]   ;;  %s48_s27 = int_to_ptr.vmem [resolvable:$true] %s47_s27 }
   0x6   :  { %50 = dma.hbm_to_vmem [thread:$0]  %s46_s25, 240, %s48_s27, [#allocation8]  }
   0x7   :  { %s68_s16 = sshll.u32 %s11430_s10, 4  ;;  %s11431_s17 = smov 256   ;;  %s69_s16 = int_to_ptr.vmem [resolvable:$true] %s68_s16 }
   0x8   :  { %s11432_s18 = smov 16  }
   0x9   :  { %74 = dma.hbm_to_vmem [thread:$0]  %s67_s30, 57600, %s69_s16, [#allocation10], %s11431_s17, %s11431_s17, %s11432_s18  }
   0xa   :  { %11424 = dma.done.wait [#allocation8], 240  }
   0xb   :  { %11425 = vsyncadd [#allocation8], 4294967056 }
   0xc   :  { %11426 = dma.done.wait [#allocation10], 57664  }
   0xd   :  { %11427 = vsyncadd [#allocation10], 4294909632  ;;  %vm109_vm0 = vcmask 64512   ;;  %v11433_v0 = vmov 0   ;;  %v11434_v1 = vmov 0.0   ;;  %v10098_v2 = vld [vmem:[%s15692_s1 + $0x8] sm:$0xff] }
   0xe   :  { %10422 = vset.pattern.permute.xlu0 %v11433_v0  ;;  %10423 = vset.pattern.permute.xlu1 %v11433_v0  ;;  %111 = vst [vmem:[#allocation3] sm:$0xff] %v11434_v1  ;;  %v10100_v3 = vld [vmem:[%s15692_s1 + $0x18] sm:$0xff]  ;;  %v10102_v4 = vld [vmem:[%s15692_s1 + $0x28] sm:$0xff]  ;;  %v10099_v5 = vld [vmem:[%s15692_s1 + $0x10] sm:$0xff]  ;;  %s11436_s20 = smov 126   ;;  %s11437_s21 = smov 98  }
   0xf   :  { %10424 = vset.pattern.permute.xlu2 %v11433_v0  ;;  %108 = vst [vmem:[#allocation2 + $0x78] sm:$0xff] %v11434_v1  ;;  %205 = vperm.xlu0 %10422, %v10098_v2   ;;  %v10101_v6 = vld [vmem:[%s15692_s1 + $0x20] sm:$0xff]  ;;  %v10103_v7 = vld [vmem:[%s15692_s1 + $0x30] sm:$0xff]  ;;  %v10104_v8 = vld [vmem:[%s15692_s1 + $0x38] sm:$0xff]  ;;  %s11438_s24 = smov 97   ;;  %s11439_s25 = smov 96  }
  0x10   :  { %126 = vst [vmem:[#allocation3 + $0x78] sm:$0xff] %v11434_v1  ;;  %431 = vperm.xlu1 %10423, %v10100_v3   ;;  %728 = vperm.xlu2 %10424, %v10102_v4   ;;  %v10105_v9 = vld [vmem:[%s15692_s1 + $0x40] sm:$0xff]  ;;  %s11440_s26 = smov 68   ;;  %s11441_s29 = smov 67   ;;  %vm268_vm1 = vcmask 1039360   ;;  %vm380_vm2 = vcmask 1031168  }
  0x11   :  { %v148_v10 = vld [vmem:[%s15692_s1] sm:$0xff]  ;;  %s11435_s1 = smov 127   ;;  %s11442_s30 = smov 66   ;;  %vm532_vm3 = vcmask 801792   ;;  %vm679_vm4 = vcmask 793600   ;;  %vm791_vm5 = vcmask 785408  }
  0x12   :  { %v146_v11 = vld [vmem:[%s15691_s0] sm:$0xff]  ;;  %vm903_vm6 = vcmask 556032   ;;  %vm1015_vm7 = vcmask 547840   ;;  %vm1127_vm8 = vcmask 539648   ;;  %vm1346_vm9 = vcmask 252928   ;;  %s11444_s19 = smov 30  }
  0x13   :  { %v11573_v12 = vperm.slane %v146_v11, 2  ;;  %v11575_v13 = vperm.slane %v146_v11, 1  ;;  %v11577_v14 = vperm.slane %v146_v11, 0  ;;  %v11590_v19 = vperm.slane %v146_v11, 3  ;;  %v11626_v31 = vld [vmem:[%s15691_s0 + $0x1] sm:$0xff]  ;;  %s11446_s22 = smov 1  }
  0x14   :  { %v11628_v32 = vperm.slane %v146_v11, 5  ;;  %v11630_v33 = vperm.slane %v146_v11, 4  ;;  %v11633_v34 = vperm.slane %v11626_v31, 0  ;;  %v11646_v39 = vperm.slane %v146_v11, 6  ;;  %s11451_s28 = smov 112  }
  0x15   :  { %v11649_v40 = vperm.slane %v11626_v31, 2  ;;  %v11652_v41 = vperm.slane %v11626_v31, 1  ;;  %v11663_v45 = vperm.slane %v146_v11, 7  ;;  %v11719_v1 = vperm.slane %v11626_v31, 4 }
  0x16   :  { %15795 = vst [vmem:[#allocation14_spill] sm:$0xff] %v11646_v39  ;;  %v11722_v2 = vperm.slane %v11626_v31, 3  ;;  %vm1454_vm10 = vcmask 244736   ;;  %vm2181_vm11 = vcmask 236544   ;;  %vm2595_vm12 = vcmask 7168  }
  0x17   :  { %317 = vperm.xlu0 %10422, %v10099_v5   ;;  %15796 = vst [vmem:[#allocation15_spill] sm:$0xff] %v11663_v45  ;;  %vm3675_vm13 = vcmask 809984   ;;  %vm7766_vm14 = vcmask 138240   ;;  %vm7870_vm15 = vcmask 121856  }
  0x18   :  { %584 = vperm.xlu1 %10423, %v10101_v6   ;;  %840 = vperm.xlu2 %10424, %v10103_v7   ;;  %v11733_v6 = vld [vmem:[%s15691_s0 + $0x8] sm:$0x7f] }
  0x1f   :  { %952 = vperm.xlu0 %10422, %v10104_v8   ;;  %v11741_v8 = vperm.slane %v11733_v6, 0 }
  0x20   :  { %1064 = vperm.xlu1 %10423, %v10105_v9   ;;  %151 = vperm.xlu2 %10424, %v148_v10  }
  0x21   :  { %15797 = vst [vmem:[#allocation16_spill] sm:$0xff] %v11741_v8 }
  0x6a   :  { %v11674_v49 = vpop.permute.xlu2 %728 }
  0x6b   :  { %v733_v50 = vmul.f32 %v11674_v49, %v11649_v40  ;;  %v732_v51 = vmul.f32 %v11674_v49, %v11652_v41  ;;  %v731_v52 = vmul.f32 %v11674_v49, %v11633_v34 }
  0x72   :  { %v11694_v56 = vpop.permute.xlu2 %840 }
  0x73   :  { %v844_v57 = vmul.f32 %v11694_v56, %v11652_v41  ;;  %v843_v58 = vmul.f32 %v11694_v56, %v11633_v34  ;;  %v845_v62 = vmul.f32 %v11694_v56, %v11649_v40 }
  0x7a   :  { %v11714_v63 = vpop.permute.xlu2 %151 }
  0x81   :  { %v11579_v15 = vpop.permute.xlu0 %205 }
  0x82   :  { %v210_v16 = vmul.f32 %v11579_v15, %v11573_v12  ;;  %v209_v17 = vmul.f32 %v11579_v15, %v11575_v13  ;;  %v208_v18 = vmul.f32 %v11579_v15, %v11577_v14  ;;  %v211_v23 = vmul.f32 %v11579_v15, %v11590_v19  ;;  %v11603_v24 = vpop.permute.xlu1 %431 }
  0x83   :  { %v468_v25 = vmul.f32 %v11603_v24, %v11577_v14  ;;  %v471_v28 = vmul.f32 %v11603_v24, %v11590_v19  ;;  %v470_v29 = vmul.f32 %v11603_v24, %v11573_v12  ;;  %v469_v30 = vmul.f32 %v11603_v24, %v11575_v13 }
  0x84   :  { %242 = vrot.lane.b32.xlu2 %v210_v16, %s11435_s1  ;;  %240 = vrot.lane.b32.xlu1 %v209_v17, %s11435_s1  ;;  %v213_v37 = vmul.f32 %v11579_v15, %v11628_v32  ;;  %v212_v38 = vmul.f32 %v11579_v15, %v11630_v33  ;;  %v214_v42 = vmul.f32 %v11579_v15, %v11646_v39  ;;  %v11755_v17 = vperm.slane %v11733_v6, 1 }
  0x85   :  { %238 = vrot.lane.b32.xlu0 %v208_v18, %s11435_s1  ;;  %v215_v48 = vmul.f32 %v11579_v15, %v11663_v45  ;;  %v472_v53 = vmul.f32 %v11603_v24, %v11630_v33  ;;  %v473_v59 = vmul.f32 %v11603_v24, %v11628_v32  ;;  %v475_v60 = vmul.f32 %v11603_v24, %v11663_v45 }
  0x86   :  { %v474_v61 = vmul.f32 %v11603_v24, %v11646_v39  ;;  %v216_v9 = vmul.f32 %v11579_v15, %v11741_v8  ;;  %15798 = vst [vmem:[#allocation17_spill] sm:$0xff] %v11755_v17  ;;  %v11758_v18 = vperm.slane %v11626_v31, 6 }
  0x89   :  { %v11592_v20 = vpop.permute.xlu0 %317 }
  0x8a   :  { %v321_v21 = vmul.f32 %v11592_v20, %v11575_v13  ;;  %v320_v22 = vmul.f32 %v11592_v20, %v11577_v14  ;;  %v323_v26 = vmul.f32 %v11592_v20, %v11590_v19  ;;  %v322_v27 = vmul.f32 %v11592_v20, %v11573_v12  ;;  %v11635_v35 = vpop.permute.xlu1 %584 }
  0x8b   :  { %v619_v36 = vmul.f32 %v11633_v34, %v11635_v35  ;;  %v621_v43 = vmul.f32 %v11649_v40, %v11635_v35  ;;  %v620_v44 = vmul.f32 %v11652_v41, %v11635_v35  ;;  %v325_v46 = vmul.f32 %v11592_v20, %v11628_v32 }
  0x8c   :  { %352 = vrot.lane.b32.xlu2 %v321_v21, %s11436_s20  ;;  %350 = vrot.lane.b32.xlu1 %v320_v22, %s11436_s20  ;;  %v324_v47 = vmul.f32 %v11592_v20, %v11630_v33  ;;  %v327_v54 = vmul.f32 %v11592_v20, %v11663_v45  ;;  %v326_v55 = vmul.f32 %v11592_v20, %v11646_v39  ;;  %v11761_v21 = vperm.slane %v11626_v31, 5 }
  0x8d   :  { %244 = vrot.lane.b32.xlu0 %v211_v23, %s11435_s1  ;;  %v623_v4 = vmul.f32 %v11719_v1, %v11635_v35  ;;  %v622_v5 = vmul.f32 %v11722_v2, %v11635_v35  ;;  %v625_v22 = vmul.f32 %v11758_v18, %v11635_v35 }
  0x8e   :  { %v624_v23 = vmul.f32 %v11761_v21, %v11635_v35 }
  0x91   :  { %v11716_v0 = vpop.permute.xlu0 %952 }
  0x92   :  { %v955_v3 = vmul.f32 %v11716_v0, %v11633_v34  ;;  %v957_v10 = vmul.f32 %v11716_v0, %v11649_v40  ;;  %v956_v11 = vmul.f32 %v11716_v0, %v11652_v41 }
  0x94   :  { %500 = vrot.lane.b32.xlu2 %v468_v25, %s11437_s21  ;;  %356 = vrot.lane.b32.xlu1 %v323_v26, %s11436_s20  ;;  %v217_v25 = vmul.f32 %v11579_v15, %v11755_v17  ;;  %v11772_v26 = vpop.permute.xlu1 %1064 }
  0x95   :  { %354 = vrot.lane.b32.xlu0 %v322_v27, %s11436_s20 }
  0x9c   :  { %506 = vrot.lane.b32.xlu2 %v471_v28, %s11437_s21  ;;  %504 = vrot.lane.b32.xlu1 %v470_v29, %s11437_s21  ;;  %v1067_v28 = vmul.f32 %v11772_v26, %v11633_v34  ;;  %v735_v29 = vmul.f32 %v11674_v49, %v11719_v1 }
  0x9d   :  { %502 = vrot.lane.b32.xlu0 %v469_v30, %s11437_s21  ;;  %v734_v30 = vmul.f32 %v11674_v49, %v11722_v2 }
  0xa4   :  { %649 = vrot.lane.b32.xlu2 %v619_v36, %s11438_s24  ;;  %248 = vrot.lane.b32.xlu1 %v213_v37, %s11435_s1 }
  0xa5   :  { %246 = vrot.lane.b32.xlu0 %v212_v38, %s11435_s1  ;;  %v11790_v38 = vperm.slane %v11733_v6, 2 }
  0xa7   :  { %15799 = vst [vmem:[#allocation18_spill] sm:$0xff] %v11790_v38 }
  0xac   :  { %250 = vrot.lane.b32.xlu2 %v214_v42, %s11435_s1  ;;  %653 = vrot.lane.b32.xlu1 %v621_v43, %s11438_s24  ;;  %v218_v42 = vmul.f32 %v11579_v15, %v11790_v38  ;;  %v1069_v43 = vmul.f32 %v11772_v26, %v11649_v40  ;;  %v329_v40 = vmul.f32 %v11592_v20, %v11755_v17 }
  0xad   :  { %651 = vrot.lane.b32.xlu0 %v620_v44, %s11438_s24  ;;  %v1068_v44 = vmul.f32 %v11772_v26, %v11652_v41  ;;  %v328_v41 = vmul.f32 %v11592_v20, %v11741_v8 }
  0xb4   :  { %360 = vrot.lane.b32.xlu2 %v325_v46, %s11436_s20  ;;  %358 = vrot.lane.b32.xlu1 %v324_v47, %s11436_s20 }
  0xb5   :  { %252 = vrot.lane.b32.xlu0 %v215_v48, %s11435_s1 }
  0xbc   :  { %765 = vrot.lane.b32.xlu2 %v733_v50, %s11439_s25  ;;  %763 = vrot.lane.b32.xlu1 %v732_v51, %s11439_s25  ;;  %v11810_v50 = vperm.slane %v11733_v6, 3 }
  0xbd   :  { %761 = vrot.lane.b32.xlu0 %v731_v52, %s11439_s25 }
  0xbe   :  { %15800 = vst [vmem:[#allocation19_spill] sm:$0xff] %v11810_v50  ;;  %v219_v51 = vmul.f32 %v11579_v15, %v11810_v50 }
  0xc4   :  { %508 = vrot.lane.b32.xlu2 %v472_v53, %s11437_s21  ;;  %364 = vrot.lane.b32.xlu1 %v327_v54, %s11436_s20 }
  0xc5   :  { %362 = vrot.lane.b32.xlu0 %v326_v55, %s11436_s20  ;;  %v846_v55 = vmul.f32 %v11694_v56, %v11722_v2 }
  0xcc   :  { %875 = vrot.lane.b32.xlu2 %v844_v57, %s11440_s26  ;;  %873 = vrot.lane.b32.xlu1 %v843_v58, %s11440_s26  ;;  %v737_v57 = vmul.f32 %v11674_v49, %v11758_v18  ;;  %v736_v58 = vmul.f32 %v11674_v49, %v11761_v21 }
  0xcd   :  { %510 = vrot.lane.b32.xlu0 %v473_v59, %s11437_s21 }
  0xd4   :  { %514 = vrot.lane.b32.xlu2 %v475_v60, %s11437_s21  ;;  %512 = vrot.lane.b32.xlu1 %v474_v61, %s11437_s21 }
  0xd5   :  { %877 = vrot.lane.b32.xlu0 %v845_v62, %s11440_s26  ;;  %v1172_v62 = vld [vmem:[%s15693_s2] sm:$0xff] }
  0xdc   :  { %985 = vrot.lane.b32.xlu2 %v955_v3, %s11441_s29  ;;  %657 = vrot.lane.b32.xlu1 %v623_v4, %s11438_s24  ;;  %v330_v3 = vmul.f32 %v11592_v20, %v11790_v38  ;;  %v847_v4 = vmul.f32 %v11694_v56, %v11719_v1  ;;  %v961_v38 = vmul.f32 %v11716_v0, %v11758_v18 }
  0xdd   :  { %655 = vrot.lane.b32.xlu0 %v622_v5, %s11438_s24  ;;  %v11852_v5 = vld [vmem:[%s15691_s0 + $0x8] sm:$0xff] }
  0xde   :  { %v11738_v7 = vpop.permute.xlu2 %242 }
  0xe4   :  { %254 = vrot.lane.b32.xlu2 %v216_v9, %s11435_s1  ;;  %989 = vrot.lane.b32.xlu1 %v957_v10, %s11441_s29 }
  0xe5   :  { %987 = vrot.lane.b32.xlu0 %v956_v11, %s11441_s29  ;;  %v445_v11 = vperm.slane %v11852_v5, 1 }
  0xe6   :  { %v11752_v16 = vpop.permute.xlu2 %352 }
  0xec   :  { %661 = vrot.lane.b32.xlu2 %v625_v22, %s11438_s24  ;;  %659 = vrot.lane.b32.xlu1 %v624_v23, %s11438_s24  ;;  %v444_v22 = vperm.slane %v11852_v5, 0 }
  0xed   :  { %256 = vrot.lane.b32.xlu0 %v217_v25, %s11435_s1  ;;  %v477_v25 = vmul.f32 %v445_v11, %v11603_v24  ;;  %v959_v11 = vmul.f32 %v11716_v0, %v11719_v1 }
  0xee   :  { %v11774_v27 = vpop.permute.xlu2 %500 }
  0xf4   :  { %1097 = vrot.lane.b32.xlu2 %v1067_v28, %s11442_s30  ;;  %769 = vrot.lane.b32.xlu1 %v735_v29, %s11439_s25  ;;  %v476_v28 = vmul.f32 %v444_v22, %v11603_v24  ;;  %v331_v29 = vmul.f32 %v11592_v20, %v11810_v50  ;;  %v11904_v22 = vld [vmem:[%s15691_s0 + $0x9] sm:$0x7f]  ;;  %v1070_v50 = vmul.f32 %v11772_v26, %v11722_v2  ;;  %s11443_s0 = smov 31  }
  0xf5   :  { %767 = vrot.lane.b32.xlu0 %v734_v30, %s11439_s25 }
  0xf6   :  { %v11785_v36 = vpop.permute.xlu2 %506  ;;  %v11787_v37 = vpop.permute.xlu1 %240 }
  0xf7   :  { %v11792_v34 = vpop.permute.xlu0 %238 }
  0xfc   :  { %258 = vrot.lane.b32.xlu2 %v218_v42, %s11435_s1  ;;  %1101 = vrot.lane.b32.xlu1 %v1069_v43, %s11442_s30 }
  0xfd   :  { %1099 = vrot.lane.b32.xlu0 %v1068_v44, %s11442_s30  ;;  %v958_v44 = vmul.f32 %v11716_v0, %v11722_v2 }
  0xfe   :  { %v11803_v46 = vpop.permute.xlu2 %649  ;;  %v11805_v47 = vpop.permute.xlu1 %350 }
  0xff   :  { %v11807_v48 = vpop.permute.xlu0 %244 }
 0x104   :  { %368 = vrot.lane.b32.xlu2 %v329_v40, %s11436_s20  ;;  %366 = vrot.lane.b32.xlu1 %v328_v41, %s11436_s20  ;;  %v849_v40 = vmul.f32 %v11694_v56, %v11758_v18  ;;  %v848_v41 = vmul.f32 %v11694_v56, %v11761_v21 }
 0x105   :  { %260 = vrot.lane.b32.xlu0 %v219_v51, %s11435_s1 }
 0x106   :  { %v11821_v52 = vpop.permute.xlu2 %250  ;;  %v11823_v53 = vpop.permute.xlu1 %356 }
 0x107   :  { %v11825_v54 = vpop.permute.xlu0 %354 }
 0x10c   :  { %879 = vrot.lane.b32.xlu2 %v846_v55, %s11440_s26  ;;  %773 = vrot.lane.b32.xlu1 %v737_v57, %s11439_s25  ;;  %v447_v57 = vperm.slane %v11852_v5, 3 }
 0x10d   :  { %771 = vrot.lane.b32.xlu0 %v736_v58, %s11439_s25  ;;  %v446_v58 = vperm.slane %v11852_v5, 2 }
 0x10e   :  { %v11836_v59 = vpop.permute.xlu2 %360  ;;  %v11838_v60 = vpop.permute.xlu1 %504 }
 0x10f   :  { %v11840_v61 = vpop.permute.xlu0 %502 }
 0x114   :  { %370 = vrot.lane.b32.xlu2 %v330_v3, %s11436_s20  ;;  %1175 = vperm.xlu1 %10423, %v1172_v62   ;;  %v479_v3 = vmul.f32 %v447_v57, %v11603_v24 }
 0x115   :  { %881 = vrot.lane.b32.xlu0 %v847_v4, %s11440_s26  ;;  %v478_v4 = vmul.f32 %v446_v58, %v11603_v24 }
 0x116   :  { %v11856_v9 = vpop.permute.xlu2 %765  ;;  %v11858_v10 = vpop.permute.xlu1 %248 }
 0x117   :  { %v11862_v23 = vpop.permute.xlu0 %246 }
 0x11c   :  { %518 = vrot.lane.b32.xlu2 %v477_v25, %s11437_s21  ;;  %516 = vrot.lane.b32.xlu1 %v476_v28, %s11437_s21 }
 0x11d   :  { %372 = vrot.lane.b32.xlu0 %v331_v29, %s11436_s20 }
 0x11e   :  { %v11871_v30 = vpop.permute.xlu2 %508  ;;  %v11873_v42 = vpop.permute.xlu1 %653 }
 0x11f   :  { %v11875_v43 = vpop.permute.xlu0 %651 }
 0x124   :  { %991 = vrot.lane.b32.xlu2 %v958_v44, %s11441_s29  ;;  %885 = vrot.lane.b32.xlu1 %v849_v40, %s11440_s26  ;;  %v11913_v44 = vperm.slane %v11904_v22, 0  ;;  %v11916_v40 = vperm.slane %v11626_v31, 7 }
 0x125   :  { %883 = vrot.lane.b32.xlu0 %v848_v41, %s11440_s26  ;;  %v960_v41 = vmul.f32 %v11716_v0, %v11761_v21 }
 0x126   :  { %v11886_v51 = vpop.permute.xlu2 %875  ;;  %v11888_v55 = vpop.permute.xlu1 %358  ;;  %v627_v57 = vmul.f32 %v11913_v44, %v11635_v35  ;;  %v626_v58 = vmul.f32 %v11916_v40, %v11635_v35 }
 0x127   :  { %v11892_v62 = vpop.permute.xlu0 %252 }
 0x128   :  { %15801 = vst [vmem:[#allocation20_spill] sm:$0xff] %v11892_v62  ;;  %v11987_v62 = vperm.slane %v11904_v22, 2 }
 0x12c   :  { %522 = vrot.lane.b32.xlu2 %v479_v3, %s11437_s21  ;;  %520 = vrot.lane.b32.xlu1 %v478_v4, %s11437_s21 }
 0x12d   :  { %993 = vrot.lane.b32.xlu0 %v959_v11, %s11441_s29  ;;  %v1071_v11 = vmul.f32 %v11772_v26, %v11719_v1 }
 0x12e   :  { %v11906_v25 = vpop.permute.xlu2 %514  ;;  %v11908_v28 = vpop.permute.xlu1 %763 }
 0x12f   :  { %15802 = vst [vmem:[#allocation21_spill] sm:$0xff] %v11906_v25  ;;  %v11910_v29 = vpop.permute.xlu0 %761  ;;  %v11969_v25 = vperm.slane %v11904_v22, 1 }
 0x134   :  { %995 = vrot.lane.b32.xlu2 %v960_v41, %s11441_s29  ;;  %665 = vrot.lane.b32.xlu1 %v627_v57, %s11438_s24  ;;  %v11942_v41 = vld [vmem:[#allocation7] sm:$0xff] }
 0x135   :  { %663 = vrot.lane.b32.xlu0 %v626_v58, %s11438_s24  ;;  %v1214_v1 = vperm.slane %v11942_v41, 2  ;;  %v1213_v2 = vperm.slane %v11942_v41, 1  ;;  %v1212_v8 = vperm.slane %v11942_v41, 0 }
 0x136   :  { %v11927_v3 = vpop.permute.xlu2 %985  ;;  %v11929_v4 = vpop.permute.xlu1 %364 }
 0x137   :  { %15803 = vst [vmem:[#allocation22_spill] sm:$0xff] %v11927_v3  ;;  %v11931_v31 = vpop.permute.xlu0 %362  ;;  %v1073_v3 = vmul.f32 %v11772_v26, %v11758_v18 }
 0x138   :  { %15804 = vst [vmem:[#allocation23_spill] sm:$0xff] %v11929_v4 }
 0x13c   :  { %1105 = vrot.lane.b32.xlu2 %v1071_v11, %s11442_s30  ;;  %1103 = vrot.lane.b32.xlu1 %v1070_v50, %s11442_s30  ;;  %v11961_v11 = vperm.slane %v11733_v6, 5 }
 0x13d   :  { %997 = vrot.lane.b32.xlu0 %v961_v38, %s11441_s29 }
 0x13e   :  { %v11944_v57 = vpop.permute.xlu2 %254  ;;  %v11946_v58 = vpop.permute.xlu1 %873  ;;  %15808 = vst [vmem:[#allocation27_spill] sm:$0xff] %v11961_v11  ;;  %v333_v18 = vmul.f32 %v11592_v20, %v11961_v11 }
 0x13f   :  { %15805 = vst [vmem:[#allocation24_spill] sm:$0xff] %v11944_v57  ;;  %v11948_v17 = vpop.permute.xlu0 %510  ;;  %v11966_v57 = vperm.slane %v11733_v6, 4 }
 0x141   :  { %15810 = vst [vmem:[#allocation29_spill] sm:$0xff] %v11966_v57 }
 0x144   :  { %1231 = vrot.lane.b32.xlu2 %v1214_v1, %s11438_s24  ;;  %1229 = vrot.lane.b32.xlu1 %v1213_v2, %s11438_s24  ;;  %v628_v1 = vmul.f32 %v11969_v25, %v11635_v35  ;;  %v220_v2 = vmul.f32 %v11579_v15, %v11966_v57 }
 0x145   :  { %1227 = vrot.lane.b32.xlu0 %v1212_v8, %s11438_s24  ;;  %v221_v8 = vmul.f32 %v11579_v15, %v11961_v11  ;;  %v850_v11 = vmul.f32 %v11694_v56, %v11916_v40 }
 0x146   :  { %v11956_v38 = vpop.permute.xlu2 %661  ;;  %v11958_v50 = vpop.permute.xlu1 %512 }
 0x147   :  { %15806 = vst [vmem:[#allocation25_spill] sm:$0xff] %v11956_v38  ;;  %v11963_v45 = vpop.permute.xlu0 %877 }
 0x148   :  { %15807 = vst [vmem:[#allocation26_spill] sm:$0xff] %v11958_v50  ;;  %v739_v50 = vmul.f32 %v11674_v49, %v11913_v44 }
 0x149   :  { %15809 = vst [vmem:[#allocation28_spill] sm:$0xff] %v11963_v45  ;;  %v738_v45 = vmul.f32 %v11674_v49, %v11916_v40 }
 0x14c   :  { %667 = vrot.lane.b32.xlu2 %v628_v1, %s11438_s24  ;;  %264 = vrot.lane.b32.xlu1 %v221_v8, %s11435_s1  ;;  %v629_v1 = vmul.f32 %v11987_v62, %v11635_v35 }
 0x14d   :  { %262 = vrot.lane.b32.xlu0 %v220_v2, %s11435_s1 }
 0x14e   :  { %v11980_v38 = vpop.permute.xlu2 %1097  ;;  %v11982_v4 = vpop.permute.xlu1 %657 }
 0x14f   :  { %15811 = vst [vmem:[#allocation30_spill] sm:$0xff] %v11980_v38  ;;  %v11984_v39 = vpop.permute.xlu0 %655 }
 0x150   :  { %15812 = vst [vmem:[#allocation31_spill] sm:$0xff] %v11982_v4  ;;  %v12003_v4 = vperm.slane %v11733_v6, 6 }
 0x151   :  { %15813 = vst [vmem:[#allocation32_spill] sm:$0xff] %v11984_v39 }
 0x152   :  { %15815 = vst [vmem:[#allocation34_spill] sm:$0xff] %v12003_v4  ;;  %v222_v39 = vmul.f32 %v11579_v15, %v12003_v4  ;;  %v740_v15 = vmul.f32 %v11674_v49, %v11969_v25 }
 0x154   :  { %777 = vrot.lane.b32.xlu2 %v739_v50, %s11439_s25  ;;  %775 = vrot.lane.b32.xlu1 %v738_v45, %s11439_s25  ;;  %v1072_v45 = vmul.f32 %v11772_v26, %v11761_v21  ;;  %v332_v21 = vmul.f32 %v11592_v20, %v11966_v57  ;;  %v741_v57 = vmul.f32 %v11674_v49, %v11987_v62 }
 0x155   :  { %669 = vrot.lane.b32.xlu0 %v629_v1, %s11438_s24 }
 0x156   :  { %v11998_v8 = vpop.permute.xlu2 %258  ;;  %v12000_v2 = vpop.permute.xlu1 %989 }
 0x157   :  { %15814 = vst [vmem:[#allocation33_spill] sm:$0xff] %v11998_v8  ;;  %v12005_v38 = vpop.permute.xlu0 %987  ;;  %v851_v8 = vmul.f32 %v11694_v56, %v11913_v44 }
 0x15c   :  { %266 = vrot.lane.b32.xlu2 %v222_v39, %s11435_s1  ;;  %1109 = vrot.lane.b32.xlu1 %v1073_v3, %s11442_s30 }
 0x15d   :  { %1107 = vrot.lane.b32.xlu0 %v1072_v45, %s11442_s30 }
 0x15e   :  { %v12016_v50 = vpop.permute.xlu2 %368  ;;  %v12018_v6 = vpop.permute.xlu1 %659 }
 0x15f   :  { %15816 = vst [vmem:[#allocation35_spill] sm:$0xff] %v12016_v50  ;;  %v12020_v1 = vpop.permute.xlu0 %256  ;;  %v448_v50 = vperm.slane %v11852_v5, 4 }
 0x160   :  { %15817 = vst [vmem:[#allocation36_spill] sm:$0xff] %v12020_v1 }
 0x164   :  { %779 = vrot.lane.b32.xlu2 %v740_v15, %s11439_s25  ;;  %376 = vrot.lane.b32.xlu1 %v333_v18, %s11436_s20 }
 0x165   :  { %374 = vrot.lane.b32.xlu0 %v332_v21, %s11436_s20  ;;  %v449_v21 = vperm.slane %v11852_v5, 5 }
 0x166   :  { %v12031_v39 = vpop.permute.xlu2 %879  ;;  %v12033_v3 = vpop.permute.xlu1 %769 }
 0x167   :  { %15818 = vst [vmem:[#allocation37_spill] sm:$0xff] %v12031_v39  ;;  %v12035_v45 = vpop.permute.xlu0 %767  ;;  %v481_v39 = vmul.f32 %v449_v21, %v11603_v24  ;;  %v962_v21 = vmul.f32 %v11716_v0, %v11916_v40 }
 0x168   :  { %15819 = vst [vmem:[#allocation38_spill] sm:$0xff] %v12033_v3  ;;  %v480_v3 = vmul.f32 %v448_v50, %v11603_v24  ;;  %v853_v50 = vmul.f32 %v11694_v56, %v11987_v62 }
 0x16c   :  { %889 = vrot.lane.b32.xlu2 %v851_v8, %s11440_s26  ;;  %887 = vrot.lane.b32.xlu1 %v850_v11, %s11440_s26  ;;  %v334_v8 = vmul.f32 %v11592_v20, %v12003_v4  ;;  %v852_v20 = vmul.f32 %v11694_v56, %v11969_v25  ;;  %v1216_v4 = vperm.slane %v11942_v41, 4 }
 0x16d   :  { %781 = vrot.lane.b32.xlu0 %v741_v57, %s11439_s25 }
 0x16e   :  { %v12046_v15 = vpop.permute.xlu2 %370  ;;  %v12048_v18 = vpop.permute.xlu1 %1101 }
 0x16f   :  { %15820 = vst [vmem:[#allocation39_spill] sm:$0xff] %v12046_v15  ;;  %v12052_v1 = vpop.permute.xlu0 %1099 }
 0x174   :  { %526 = vrot.lane.b32.xlu2 %v481_v39, %s11437_s21  ;;  %524 = vrot.lane.b32.xlu1 %v480_v3, %s11437_s21 }
 0x175   :  { %378 = vrot.lane.b32.xlu0 %v334_v8, %s11436_s20  ;;  %s11445_s20 = smov 29  }
 0x176   :  { %v12061_v57 = vpop.permute.xlu2 %518  ;;  %v12063_v11 = vpop.permute.xlu1 %366 }
 0x177   :  { %15821 = vst [vmem:[#allocation40_spill] sm:$0xff] %v12061_v57  ;;  %v12065_v15 = vpop.permute.xlu0 %260  ;;  %v963_v57 = vmul.f32 %v11716_v0, %v11913_v44 }
 0x178   :  { %15822 = vst [vmem:[#allocation41_spill] sm:$0xff] %v12063_v11 }
 0x179   :  { %15823 = vst [vmem:[#allocation42_spill] sm:$0xff] %v12065_v15  ;;  %v1215_v15 = vperm.slane %v11942_v41, 3 }
 0x17c   :  { %999 = vrot.lane.b32.xlu2 %v962_v21, %s11441_s29  ;;  %893 = vrot.lane.b32.xlu1 %v853_v50, %s11440_s26 }
 0x17d   :  { %891 = vrot.lane.b32.xlu0 %v852_v20, %s11440_s26  ;;  %v451_v20 = vperm.slane %v11852_v5, 7 }
 0x17e   :  { %v12076_v39 = vpop.permute.xlu2 %991  ;;  %v12078_v3 = vpop.permute.xlu1 %773 }
 0x17f   :  { %15824 = vst [vmem:[#allocation43_spill] sm:$0xff] %v12076_v39  ;;  %v12080_v8 = vpop.permute.xlu0 %771  ;;  %v12098_v39 = vperm.slane %v11904_v22, 3 }
 0x180   :  { %15825 = vst [vmem:[#allocation44_spill] sm:$0xff] %v12078_v3  ;;  %v450_v3 = vperm.slane %v11852_v5, 6 }
 0x181   :  { %15826 = vst [vmem:[#allocation45_spill] sm:$0xff] %v12080_v8  ;;  %v12114_v8 = vperm.slane %v11904_v22, 4 }
 0x184   :  { %1235 = vrot.lane.b32.xlu2 %v1216_v4, %s11438_s24  ;;  %1233 = vrot.lane.b32.xlu1 %v1215_v15, %s11438_s24  ;;  %v630_v4 = vmul.f32 %v12098_v39, %v11635_v35  ;;  %v483_v15 = vmul.f32 %v451_v20, %v11603_v24  ;;  %v965_v20 = vmul.f32 %v11716_v0, %v11987_v62 }
 0x185   :  { %1001 = vrot.lane.b32.xlu0 %v963_v57, %s11441_s29  ;;  %v482_v57 = vmul.f32 %v450_v3, %v11603_v24  ;;  %v964_v24 = vmul.f32 %v11716_v0, %v11969_v25  ;;  %v631_v3 = vmul.f32 %v12114_v8, %v11635_v35 }
 0x186   :  { %v12089_v21 = vpop.permute.xlu2 %522  ;;  %v12091_v50 = vpop.permute.xlu1 %1175 }
 0x187   :  { %15827 = vst [vmem:[#allocation46_spill] sm:$0xff] %v12089_v21  ;;  %v12094_v11 = vpop.permute.xlu0 %881 }
 0x188   :  { %15828 = vst [vmem:[#allocation47_spill] sm:$0xff] %v12094_v11 }
 0x18c   :  { %671 = vrot.lane.b32.xlu2 %v630_v4, %s11438_s24  ;;  %530 = vrot.lane.b32.xlu1 %v483_v15, %s11437_s21 }
 0x18d   :  { %528 = vrot.lane.b32.xlu0 %v482_v57, %s11437_s21 }
 0x18e   :  { %v12107_v21 = vpop.permute.xlu2 %995  ;;  %v12109_v11 = vpop.permute.xlu1 %516 }
 0x18f   :  { %15829 = vst [vmem:[#allocation48_spill] sm:$0xff] %v12107_v21  ;;  %v12111_v5 = vpop.permute.xlu0 %372  ;;  %v1074_v21 = vmul.f32 %v11772_v26, %v11916_v40  ;;  %v1218_v40 = vperm.slane %v11942_v41, 6 }
 0x190   :  { %15830 = vst [vmem:[#allocation49_spill] sm:$0xff] %v12109_v11  ;;  %v1075_v11 = vmul.f32 %v11772_v26, %v11913_v44  ;;  %v12149_v44 = vperm.slane %v11904_v22, 5 }
 0x191   :  { %15831 = vst [vmem:[#allocation50_spill] sm:$0xff] %v12111_v5  ;;  %v1217_v5 = vperm.slane %v11942_v41, 5 }
 0x194   :  { %1005 = vrot.lane.b32.xlu2 %v965_v20, %s11441_s29  ;;  %1003 = vrot.lane.b32.xlu1 %v964_v24, %s11441_s29 }
 0x195   :  { %673 = vrot.lane.b32.xlu0 %v631_v3, %s11438_s24 }
 0x196   :  { %v12125_v4 = vpop.permute.xlu2 %1105  ;;  %v12127_v15 = vpop.permute.xlu1 %885 }
 0x197   :  { %15832 = vst [vmem:[#allocation51_spill] sm:$0xff] %v12125_v4  ;;  %v12129_v57 = vpop.permute.xlu0 %883  ;;  %v743_v4 = vmul.f32 %v11674_v49, %v12114_v8 }
 0x198   :  { %15833 = vst [vmem:[#allocation52_spill] sm:$0xff] %v12127_v15  ;;  %v12146_v15 = vperm.slane %v11904_v22, 6 }
 0x19c   :  { %1237 = vrot.lane.b32.xlu2 %v1217_v5, %s11438_s24  ;;  %1113 = vrot.lane.b32.xlu1 %v1075_v11, %s11442_s30  ;;  %v633_v5 = vmul.f32 %v12146_v15, %v11635_v35  ;;  %v632_v11 = vmul.f32 %v12149_v44, %v11635_v35  ;;  %v742_v35 = vmul.f32 %v11674_v49, %v12098_v39 }
 0x19d   :  { %1111 = vrot.lane.b32.xlu0 %v1074_v21, %s11442_s30 }
 0x19e   :  { %v12139_v20 = vpop.permute.xlu2 %1231  ;;  %v12141_v24 = vpop.permute.xlu1 %520 }
 0x19f   :  { %15834 = vst [vmem:[#allocation53_spill] sm:$0xff] %v12139_v20  ;;  %v12143_v3 = vpop.permute.xlu0 %993  ;;  %v1076_v20 = vmul.f32 %v11772_v26, %v11969_v25  ;;  %v745_v25 = vmul.f32 %v11674_v49, %v12146_v15 }
 0x1a0   :  { %15835 = vst [vmem:[#allocation54_spill] sm:$0xff] %v12141_v24 }
 0x1a4   :  { %677 = vrot.lane.b32.xlu2 %v633_v5, %s11438_s24  ;;  %675 = vrot.lane.b32.xlu1 %v632_v11, %s11438_s24 }
 0x1a5   :  { %1239 = vrot.lane.b32.xlu0 %v1218_v40, %s11438_s24 }
 0x1a6   :  { %v12159_v21 = vpop.permute.xlu2 %667  ;;  %v12161_v24 = vpop.permute.xlu1 %665 }
 0x1a7   :  { %15836 = vst [vmem:[#allocation55_spill] sm:$0xff] %v12159_v21  ;;  %v12163_v22 = vpop.permute.xlu0 %663  ;;  %v744_v21 = vmul.f32 %v11674_v49, %v12149_v44  ;;  %v855_v49 = vmul.f32 %v11694_v56, %v12114_v8 }
 0x1a8   :  { %15837 = vst [vmem:[#allocation56_spill] sm:$0xff] %v12161_v24  ;;  %v1077_v24 = vmul.f32 %v11772_v26, %v11987_v62  ;;  %v854_v62 = vmul.f32 %v11694_v56, %v12098_v39 }
 0x1a9   :  { %15838 = vst [vmem:[#allocation57_spill] sm:$0xff] %v12163_v22  ;;  %v966_v22 = vmul.f32 %v11716_v0, %v12098_v39 }
 0x1ac   :  { %1115 = vrot.lane.b32.xlu2 %v1076_v20, %s11442_s30  ;;  %785 = vrot.lane.b32.xlu1 %v743_v4, %s11439_s25 }
 0x1ad   :  { %783 = vrot.lane.b32.xlu0 %v742_v35, %s11439_s25 }
 0x1ae   :  { %v12174_v40 = vpop.permute.xlu2 %777  ;;  %v12176_v5 = vpop.permute.xlu1 %1103 }
 0x1af   :  { %15839 = vst [vmem:[#allocation58_spill] sm:$0xff] %v12174_v40  ;;  %v12178_v11 = vpop.permute.xlu0 %997  ;;  %v856_v40 = vmul.f32 %v11694_v56, %v12149_v44 }
 0x1b0   :  { %15840 = vst [vmem:[#allocation59_spill] sm:$0xff] %v12178_v11  ;;  %v857_v11 = vmul.f32 %v11694_v56, %v12146_v15  ;;  %v968_v56 = vmul.f32 %v11716_v0, %v12149_v44 }
 0x1b4   :  { %789 = vrot.lane.b32.xlu2 %v745_v25, %s11439_s25  ;;  %787 = vrot.lane.b32.xlu1 %v744_v21, %s11439_s25 }
 0x1b5   :  { %1117 = vrot.lane.b32.xlu0 %v1077_v24, %s11442_s30 }
 0x1b6   :  { %v12189_v4 = vpop.permute.xlu2 %266  ;;  %v12191_v20 = vpop.permute.xlu1 %1229 }
 0x1b7   :  { %15841 = vst [vmem:[#allocation60_spill] sm:$0xff] %v12189_v4  ;;  %v12193_v35 = vpop.permute.xlu0 %1227  ;;  %v967_v4 = vmul.f32 %v11716_v0, %v12114_v8 }
 0x1bc   :  { %899 = vrot.lane.b32.xlu2 %v856_v40, %s11440_s26  ;;  %897 = vrot.lane.b32.xlu1 %v855_v49, %s11440_s26  ;;  %v12219_v40 = vld [vmem:[#allocation7 + $0x8] sm:$0x7f] }
 0x1bd   :  { %895 = vrot.lane.b32.xlu0 %v854_v62, %s11440_s26 }
 0x1be   :  { %v12204_v24 = vpop.permute.xlu2 %779  ;;  %v12206_v21 = vpop.permute.xlu1 %264 }
 0x1bf   :  { %15842 = vst [vmem:[#allocation61_spill] sm:$0xff] %v12204_v24  ;;  %v12208_v25 = vpop.permute.xlu0 %262  ;;  %v1220_v24 = vperm.slane %v12219_v40, 0 }
 0x1c0   :  { %15843 = vst [vmem:[#allocation62_spill] sm:$0xff] %v12206_v21 }
 0x1c1   :  { %15844 = vst [vmem:[#allocation63_spill] sm:$0xff] %v12208_v25  ;;  %v1219_v25 = vperm.slane %v11942_v41, 7 }
 0x1c4   :  { %1009 = vrot.lane.b32.xlu2 %v967_v4, %s11441_s29  ;;  %1007 = vrot.lane.b32.xlu1 %v966_v22, %s11441_s29  ;;  %v269_v22 = vsel %vm268_vm1, %v11792_v34, %v11787_v37  ;;  %v533_v34 = vsel %vm532_vm3, %v11774_v27, %v11840_v61  ;;  %v188_v27 = vmul.f32 %v11573_v12, %v11714_v63 }
 0x1c5   :  { %901 = vrot.lane.b32.xlu0 %v857_v11, %s11440_s26  ;;  %v186_v11 = vmul.f32 %v11577_v14, %v11714_v63  ;;  %v270_v14 = vsel %vm268_vm1, %v11787_v37, %v11738_v7  ;;  %v1080_v37 = vmul.f32 %v11772_v26, %v12149_v44  ;;  %v12282_v44 = vmul.f32 %v11772_v26, %v12146_v15  ;;  %s11447_s26 = smov 99  }
 0x1c6   :  { %v12221_v49 = vpop.permute.xlu2 %889  ;;  %v12223_v62 = vpop.permute.xlu1 %775 }
 0x1c7   :  { %15845 = vst [vmem:[#allocation64_spill] sm:$0xff] %v12221_v49  ;;  %v12225_v21 = vpop.permute.xlu0 %669  ;;  %v271_v49 = vsel %vm268_vm1, %v11738_v7, %v11807_v48  ;;  %v383_v7 = vsel %vm380_vm2, %v11825_v54, %v11823_v53 }
 0x1c8   :  { %15846 = vst [vmem:[#allocation65_spill] sm:$0xff] %v12225_v21 }
 0x1cc   :  { %1011 = vrot.lane.b32.xlu2 %v968_v56, %s11441_s29  ;;  %1243 = vrot.lane.b32.xlu1 %v1220_v24, %s11438_s24  ;;  %v381_v56 = vsel %vm380_vm2, %v11805_v47, %v11752_v16  ;;  %v298_v24 = vadd.f32 %v269_v22, %v186_v11  ;;  %v1078_v47 = vmul.f32 %v11772_v26, %v12098_v39 }
 0x1cd   :  { %1241 = vrot.lane.b32.xlu0 %v1219_v25, %s11438_s24  ;;  %v1079_v25 = vmul.f32 %v11772_v26, %v12114_v8  ;;  %v187_v22 = vmul.f32 %v11575_v13, %v11714_v63  ;;  %v969_v8 = vmul.f32 %v11716_v0, %v12146_v15  ;;  %v382_v11 = vsel %vm380_vm2, %v11752_v16, %v11825_v54 }
 0x1ce   :  { %v12239_v41 = vpop.permute.xlu2 %526  ;;  %v12241_v4 = vpop.permute.xlu1 %1109  ;;  %v300_v13 = vadd.f32 %v271_v49, %v188_v27  ;;  %v191_v0 = vmul.f32 %v11628_v32, %v11714_v63  ;;  %v535_v16 = vsel %vm532_vm3, %v11838_v60, %v11785_v36  ;;  %v189_v54 = vmul.f32 %v11590_v19, %v11714_v63 }
 0x1cf   :  { %15847 = vst [vmem:[#allocation66_spill] sm:$0xff] %v12239_v41  ;;  %v12246_v21 = vpop.permute.xlu0 %1107  ;;  %v410_v41 = vadd.f32 %v381_v56, %v298_v24  ;;  %v299_v12 = vadd.f32 %v270_v14, %v187_v22  ;;  %v272_v32 = vsel %vm268_vm1, %v11807_v48, %v11862_v23  ;;  %v534_v19 = vsel %vm532_vm3, %v11840_v61, %v11838_v60 }
 0x1d0   :  { %v412_v15 = vadd.f32 %v383_v7, %v300_v13  ;;  %v273_v14 = vsel %vm268_vm1, %v11862_v23, %v11858_v10  ;;  %v1221_v22 = vperm.slane %v12219_v40, 1  ;;  %v274_v60 = vsel %vm268_vm1, %v11858_v10, %v11821_v52 }
 0x1d1   :  { %v563_v39 = vadd.f32 %v533_v34, %v410_v41  ;;  %v190_v41 = vmul.f32 %v11630_v33, %v11714_v63  ;;  %v411_v26 = vadd.f32 %v382_v11, %v299_v12  ;;  %v384_v33 = vsel %vm380_vm2, %v11823_v53, %v11888_v55 }
 0x1d2   :  { %v1222_v34 = vperm.slane %v12219_v40, 2  ;;  %v680_v53 = vsel %vm679_vm4, %v11803_v46, %v11875_v43  ;;  %v681_v61 = vsel %vm679_vm4, %v11875_v43, %v11873_v42  ;;  %v385_v23 = vsel %vm380_vm2, %v11888_v55, %v11836_v59 }
 0x1d3   :  { %v709_v48 = vadd.f32 %v11803_v46, %v563_v39  ;;  %v302_v7 = vadd.f32 %v273_v14, %v190_v41  ;;  %v792_v10 = vsel %vm791_vm5, %v11910_v29, %v11908_v28  ;;  %v303_v43 = vadd.f32 %v274_v60, %v191_v0  ;;  %v15850_v14 = vld [vmem:[#allocation28_spill] sm:$0xff] }
 0x1d4   :  { %1121 = vrot.lane.b32.xlu2 %v1079_v25, %s11442_s30  ;;  %1119 = vrot.lane.b32.xlu1 %v1078_v47, %s11442_s30  ;;  %v565_v25 = vadd.f32 %v535_v16, %v412_v15  ;;  %v301_v47 = vadd.f32 %v272_v32, %v189_v54  ;;  %v536_v39 = vsel %vm532_vm3, %v11785_v36, %v11871_v30 }
 0x1d5   :  { %1013 = vrot.lane.b32.xlu0 %v969_v8, %s11441_s29  ;;  %v821_v27 = vadd.f32 %v11910_v29, %v709_v48  ;;  %v564_v8 = vadd.f32 %v534_v19, %v411_v26  ;;  %v414_v13 = vadd.f32 %v385_v23, %v302_v7  ;;  %v793_v29 = vsel %vm791_vm5, %v11908_v28, %v11856_v9  ;;  %v15848_v26 = vld [vmem:[#allocation22_spill] sm:$0xff]  ;;  %s11452_s29 = smov 111  }
 0x1d6   :  { %v12294_v49 = vpop.permute.xlu2 %999  ;;  %v12296_v56 = vpop.permute.xlu1 %376  ;;  %v413_v11 = vadd.f32 %v384_v33, %v301_v47  ;;  %v711_v55 = vadd.f32 %v681_v61, %v565_v25  ;;  %v904_v0 = vsel %vm903_vm6, %v11946_v58, %v11886_v51  ;;  %v537_v41 = vsel %vm532_vm3, %v11871_v30, %v11948_v17 }
 0x1d7   :  { %v12298_v24 = vpop.permute.xlu0 %374  ;;  %v933_v46 = vadd.f32 %v11946_v58, %v821_v27  ;;  %v710_v12 = vadd.f32 %v680_v53, %v564_v8  ;;  %v1224_v58 = vperm.slane %v12219_v40, 4  ;;  %v1223_v33 = vperm.slane %v12219_v40, 3  ;;  %v15852_v53 = vld [vmem:[#allocation30_spill] sm:$0xff]  ;;  %v15853_v27 = vld [vmem:[#allocation31_spill] sm:$0xff] }
 0x1d8   :  { %v566_v32 = vadd.f32 %v536_v39, %v413_v11  ;;  %v823_v48 = vadd.f32 %v793_v29, %v711_v55  ;;  %v905_v30 = vsel %vm903_vm6, %v11886_v51, %v15850_v14  ;;  %v567_v47 = vadd.f32 %v537_v41, %v414_v13  ;;  %v15856_v41 = vld [vmem:[#allocation45_spill] sm:$0xff] }
 0x1d9   :  { %v822_v54 = vadd.f32 %v792_v10, %v710_v12  ;;  %v1045_v15 = vadd.f32 %v15848_v26, %v933_v46  ;;  %v1016_v51 = vsel %vm1015_vm7, %v15848_v26, %v12005_v38  ;;  %v1017_v11 = vsel %vm1015_vm7, %v12005_v38, %v12000_v2  ;;  %v15854_v12 = vld [vmem:[#allocation38_spill] sm:$0xff] }
 0x1da   :  { %v684_v7 = vsel %vm679_vm4, %v15853_v27, %v12018_v6  ;;  %v795_v55 = vsel %vm791_vm5, %v12035_v45, %v15854_v12 }
 0x1db   :  { %v934_v25 = vadd.f32 %v904_v0, %v822_v54  ;;  %v1157_v61 = vadd.f32 %v15852_v53, %v1045_v15  ;;  %v15855_v0 = vld [vmem:[#allocation37_spill] sm:$0xff]  ;;  %v15857_v15 = vld [vmem:[#allocation43_spill] sm:$0xff] }
 0x1dc   :  { %1123 = vrot.lane.b32.xlu2 %v1080_v37, %s11442_s30  ;;  %1247 = vrot.lane.b32.xlu1 %v1222_v34, %s11438_s24  ;;  %v386_v37 = vsel %vm380_vm2, %v11836_v59, %v11931_v31  ;;  %v15849_v59 = vld [vmem:[#allocation32_spill] sm:$0xff]  ;;  %v906_v54 = vsel %vm903_vm6, %v15850_v14, %v15855_v0  ;;  %v1225_v14 = vperm.slane %v12219_v40, 5 }
 0x1dd   :  { %1245 = vrot.lane.b32.xlu0 %v1221_v22, %s11438_s24  ;;  %v682_v19 = vsel %vm679_vm4, %v11873_v42, %v15849_v59  ;;  %v415_v34 = vadd.f32 %v386_v37, %v303_v43  ;;  %v15851_v22 = vld [vmem:[#allocation26_spill] sm:$0xff]  ;;  %v794_v42 = vsel %vm791_vm5, %v11856_v9, %v12035_v45  ;;  %v683_v8 = vsel %vm679_vm4, %v15849_v59, %v15853_v27 }
 0x1de   :  { %v12344_v16 = vpop.permute.xlu2 %1235  ;;  %v12346_v36 = vpop.permute.xlu1 %887  ;;  %v538_v60 = vsel %vm532_vm3, %v11948_v17, %v15851_v22  ;;  %v712_v23 = vadd.f32 %v682_v19, %v566_v32  ;;  %v935_v17 = vadd.f32 %v905_v30, %v823_v48  ;;  %v1178_v9 = vadd.f32 %v12091_v50, %v1157_v61  ;;  %v15859_v61 = vld [vmem:[#allocation48_spill] sm:$0xff] }
 0x1df   :  { %v12351_v28 = vpop.permute.xlu0 %781  ;;  %v568_v10 = vadd.f32 %v538_v60, %v415_v34  ;;  %v713_v43 = vadd.f32 %v683_v8, %v567_v47  ;;  %v1046_v39 = vadd.f32 %v1016_v51, %v934_v25  ;;  %v796_v32 = vsel %vm791_vm5, %v15854_v12, %v15856_v41  ;;  %v15858_v34 = vld [vmem:[#allocation47_spill] sm:$0xff] }
 0x1e0   :  { %v824_v46 = vadd.f32 %v794_v42, %v712_v23  ;;  %v1047_v38 = vadd.f32 %v1017_v11, %v935_v17  ;;  %v1128_v45 = vsel %vm1127_vm8, %v15852_v53, %v12052_v1  ;;  %v1018_v59 = vsel %vm1015_vm7, %v12000_v2, %v15857_v15  ;;  %v15860_v17 = vld [vmem:[#allocation51_spill] sm:$0xff] }
 0x1e1   :  { %v714_v37 = vadd.f32 %v684_v7, %v568_v10  ;;  %v1193_v19 = vmax.f32 %v1178_v9, 0.0  ;;  %v908_v25 = vsel %vm903_vm6, %v15858_v34, %v12129_v57  ;;  %v1158_v2 = vadd.f32 %v1128_v45, %v1046_v39  ;;  %v15861_v39 = vld [vmem:[#allocation53_spill] sm:$0xff] }
 0x1e2   :  { %v936_v48 = vadd.f32 %v906_v54, %v824_v46  ;;  %v1020_v42 = vsel %vm1015_vm7, %v12143_v3, %v15859_v61  ;;  %v1130_v27 = vsel %vm1127_vm8, %v12048_v18, %v12176_v5  ;;  %v1132_v7 = vsel %vm1127_vm8, %v15860_v17, %v12246_v21 }
 0x1e3   :  { %v826_v47 = vadd.f32 %v796_v32, %v714_v37  ;;  %v1286_v60 = vmul.f32 %v12193_v35, %v1193_v19  ;;  %v1179_v11 = vadd.f32 %v12091_v50, %v1158_v2  ;;  %v1257_v37 = vsel %vm679_vm4, %v12193_v35, %v12191_v20 }
 0x1e4   :  { %1251 = vrot.lane.b32.xlu2 %v1224_v58, %s11438_s24  ;;  %1249 = vrot.lane.b32.xlu1 %v1223_v33, %s11438_s24  ;;  %v1226_v58 = vperm.slane %v12219_v40, 6  ;;  %v825_v33 = vadd.f32 %v795_v55, %v713_v43  ;;  %v1048_v53 = vadd.f32 %v1018_v59, %v936_v48  ;;  %v1019_v40 = vsel %vm1015_vm7, %v15857_v15, %v12143_v3 }
 0x1e5   :  { %1125 = vrot.lane.b32.xlu0 %v12282_v44, %s11442_s30  ;;  %v1129_v44 = vsel %vm1127_vm8, %v12052_v1, %v12048_v18  ;;  %v907_v1 = vsel %vm903_vm6, %v15855_v0, %v15858_v34  ;;  %v938_v8 = vadd.f32 %v908_v25, %v826_v47  ;;  %v1131_v3 = vsel %vm1127_vm8, %v12176_v5, %v15860_v17 }
 0x1e6   :  { %v12389_v13 = vpop.permute.xlu2 %671  ;;  %v12391_v29 = vpop.permute.xlu1 %524  ;;  %v1159_v30 = vadd.f32 %v1129_v44, %v1047_v38  ;;  %v937_v51 = vadd.f32 %v907_v1, %v825_v33  ;;  %v1160_v9 = vadd.f32 %v1130_v27, %v1048_v53  ;;  %v1258_v38 = vsel %vm679_vm4, %v12191_v20, %v15861_v39 }
 0x1e7   :  { %v12402_v26 = vpop.permute.xlu0 %378  ;;  %v1050_v18 = vadd.f32 %v1020_v42, %v938_v8  ;;  %v1194_v5 = vmax.f32 %v1179_v11, 0.0  ;;  %v15863_v42 = vld [vmem:[#allocation14_spill] sm:$0xff]  ;;  %v15864_v8 = vld [vmem:[#allocation23_spill] sm:$0xff] }
 0x1e8   :  { %v1180_v23 = vadd.f32 %v12091_v50, %v1159_v30  ;;  %v1049_v43 = vadd.f32 %v1019_v40, %v937_v51  ;;  %v1181_v44 = vadd.f32 %v12091_v50, %v1160_v9  ;;  %v192_v27 = vmul.f32 %v15863_v42, %v11714_v63  ;;  %v15865_v51 = vld [vmem:[#allocation21_spill] sm:$0xff]  ;;  %v15867_v9 = vld [vmem:[#allocation44_spill] sm:$0xff] }
 0x1e9   :  { %v1162_v0 = vadd.f32 %v1132_v7, %v1050_v18  ;;  %v1287_v45 = vmul.f32 %v1257_v37, %v1194_v5  ;;  %v387_v40 = vsel %vm380_vm2, %v11931_v31, %v15864_v8  ;;  %v539_v11 = vsel %vm532_vm3, %v15851_v22, %v15865_v51  ;;  %v15866_v7 = vld [vmem:[#allocation25_spill] sm:$0xff] }
 0x1ea   :  { %v1195_v55 = vmax.f32 %v1180_v23, 0.0  ;;  %v1161_v54 = vadd.f32 %v1131_v3, %v1049_v43  ;;  %v1196_v33 = vmax.f32 %v1181_v44, 0.0  ;;  %v797_v43 = vsel %vm791_vm5, %v15856_v41, %v15867_v9  ;;  %v15873_v42 = vld [vmem:[#allocation41_spill] sm:$0xff] }
 0x1eb   :  { %v1183_v15 = vadd.f32 %v12091_v50, %v1162_v0  ;;  %v15869_v0 = vld [vmem:[#allocation59_spill] sm:$0xff]  ;;  %v1133_v5 = vsel %vm1127_vm8, %v12246_v21, %v12241_v4 }
 0x1ec   :  { %1255 = vrot.lane.b32.xlu1 %v1226_v58, %s11438_s24  ;;  %1316 = vrot.lane.b32.xlu2 %v1286_v60, %s11443_s0  ;;  %v1288_v32 = vmul.f32 %v1258_v38, %v1195_v55  ;;  %v1182_v59 = vadd.f32 %v12091_v50, %v1161_v54  ;;  %v15862_v60 = vld [vmem:[#allocation20_spill] sm:$0xff] }
 0x1ed   :  { %1253 = vrot.lane.b32.xlu0 %v1225_v14, %s11438_s24  ;;  %v1198_v34 = vmax.f32 %v1183_v15, 0.0  ;;  %v275_v2 = vsel %vm268_vm1, %v11821_v52, %v15862_v60  ;;  %v685_v52 = vsel %vm679_vm4, %v12018_v6, %v15866_v7  ;;  %v15868_v55 = vld [vmem:[#allocation52_spill] sm:$0xff]  ;;  %v1021_v6 = vsel %vm1015_vm7, %v15859_v61, %v15869_v0 }
 0x1ee   :  { %v12439_v10 = vpop.permute.xlu2 %1005  ;;  %v12441_v46 = vpop.permute.xlu1 %893  ;;  %v1197_v30 = vmax.f32 %v1182_v59, 0.0  ;;  %v304_v23 = vadd.f32 %v275_v2, %v192_v27  ;;  %v909_v22 = vsel %vm903_vm6, %v12129_v57, %v15868_v55  ;;  %v15872_v2 = vld [vmem:[#allocation36_spill] sm:$0xff]  ;;  %v388_v27 = vsel %vm380_vm2, %v15864_v8, %v15873_v42 }
 0x1ef   :  { %v12446_v12 = vpop.permute.xlu0 %891 }
 0x1f0   :  { %v416_v17 = vadd.f32 %v387_v40, %v304_v23 }
 0x1f2   :  { %v569_v3 = vadd.f32 %v539_v11, %v416_v17  ;;  %v15874_v11 = vld [vmem:[#allocation16_spill] sm:$0xff] }
 0x1f3   :  { %v194_v17 = vmul.f32 %v15874_v11, %v11714_v63 }
 0x1f4   :  { %1320 = vrot.lane.b32.xlu1 %v1288_v32, %s11443_s0  ;;  %v715_v31 = vadd.f32 %v685_v52, %v569_v3 }
 0x1f5   :  { %1318 = vrot.lane.b32.xlu0 %v1287_v45, %s11443_s0 }
 0x1f6   :  { %v1238_v19 = vpop.permute.xlu2 %1237  ;;  %v1234_v58 = vpop.permute.xlu1 %1233  ;;  %v827_v37 = vadd.f32 %v797_v43, %v715_v31  ;;  %v15876_v43 = vld [vmem:[#allocation49_spill] sm:$0xff] }
 0x1f7   :  { %v1261_v20 = vsel %vm679_vm4, %v12344_v16, %v1238_v19  ;;  %v1259_v35 = vsel %vm679_vm4, %v15861_v39, %v1234_v58  ;;  %v12460_v48 = vpop.permute.xlu0 %1001  ;;  %v1260_v25 = vsel %vm679_vm4, %v1234_v58, %v12344_v16  ;;  %v540_v31 = vsel %vm532_vm3, %v15865_v51, %v15876_v43 }
 0x1f8   :  { %v1289_v14 = vmul.f32 %v1259_v35, %v1196_v33  ;;  %v1291_v47 = vmul.f32 %v1261_v20, %v1198_v34  ;;  %v1290_v1 = vmul.f32 %v1260_v25, %v1197_v30  ;;  %v939_v54 = vadd.f32 %v909_v22, %v827_v37 }
 0x1f9   :  { %v798_v51 = vsel %vm791_vm5, %v15867_v9, %v12223_v62 }
 0x1fa   :  { %1322 = vrot.lane.b32.xlu2 %v1289_v14, %s11443_s0  ;;  %v1051_v41 = vadd.f32 %v1021_v6, %v939_v54  ;;  %v15870_v14 = vld [vmem:[#allocation24_spill] sm:$0xff]  ;;  %v15878_v54 = vld [vmem:[#allocation57_spill] sm:$0xff] }
 0x1fb   :  { %v276_v30 = vsel %vm268_vm1, %v15862_v60, %v15870_v14  ;;  %v15875_v60 = vld [vmem:[#allocation35_spill] sm:$0xff]  ;;  %v15877_v6 = vld [vmem:[#allocation40_spill] sm:$0xff] }
 0x1fc   :  { %1326 = vrot.lane.b32.xlu1 %v1291_v47, %s11443_s0  ;;  %v1163_v45 = vadd.f32 %v1133_v5, %v1051_v41  ;;  %v15871_v47 = vld [vmem:[#allocation15_spill] sm:$0xff]  ;;  %v389_v3 = vsel %vm380_vm2, %v15873_v42, %v15875_v60  ;;  %v541_v8 = vsel %vm532_vm3, %v15876_v43, %v15877_v6  ;;  %v686_v5 = vsel %vm679_vm4, %v15866_v7, %v15878_v54 }
 0x1fd   :  { %1324 = vrot.lane.b32.xlu0 %v1290_v1, %s11443_s0  ;;  %v193_v1 = vmul.f32 %v15871_v47, %v11714_v63  ;;  %v910_v7 = vsel %vm903_vm6, %v15868_v55, %v12346_v36 }
 0x1fe   :  { %v12470_v53 = vpop.permute.xlu1 %530  ;;  %v12485_v18 = vpop.permute.xlu2 %677  ;;  %v1184_v59 = vadd.f32 %v12091_v50, %v1163_v45 }
 0x1ff   :  { %v12474_v16 = vpop.permute.xlu0 %528  ;;  %v305_v23 = vadd.f32 %v276_v30, %v193_v1  ;;  %v15880_v30 = vld [vmem:[#allocation58_spill] sm:$0xff] }
 0x200   :  { %v1199_v58 = vmax.f32 %v1184_v59, 0.0  ;;  %v15879_v59 = vld [vmem:[#allocation56_spill] sm:$0xff]  ;;  %v799_v47 = vsel %vm791_vm5, %v12223_v62, %v15880_v30  ;;  %v1023_v62 = vsel %vm1015_vm7, %v12294_v49, %v12460_v48 }
 0x201   :  { %v417_v37 = vadd.f32 %v388_v27, %v305_v23  ;;  %v15881_v23 = vld [vmem:[#allocation64_spill] sm:$0xff] }
 0x202   :  { %v911_v9 = vsel %vm903_vm6, %v12346_v36, %v15881_v23 }
 0x203   :  { %v570_v45 = vadd.f32 %v540_v31, %v417_v37  ;;  %v15883_v31 = vld [vmem:[#allocation17_spill] sm:$0xff]  ;;  %v1022_v37 = vsel %vm1015_vm7, %v15869_v0, %v12294_v49 }
 0x206   :  { %v12490_v39 = vpop.permute.xlu1 %1003  ;;  %v12503_v44 = vpop.permute.xlu2 %1115 }
 0x207   :  { %v12492_v38 = vpop.permute.xlu0 %673 }
 0x20e   :  { %v12505_v32 = vpop.permute.xlu1 %1113  ;;  %v12512_v61 = vpop.permute.xlu2 %789 }
 0x20f   :  { %v1112_v15 = vpop.permute.xlu0 %1111 }
 0x210   :  { %v1134_v36 = vsel %vm1127_vm8, %v12241_v4, %v1112_v15 }
 0x216   :  { %v12508_v57 = vpop.permute.xlu1 %675  ;;  %v12521_v25 = vpop.permute.xlu2 %899 }
 0x217   :  { %v12510_v33 = vpop.permute.xlu0 %1239 }
 0x218   :  { %v1262_v20 = vsel %vm679_vm4, %v1238_v19, %v12510_v33  ;;  %v277_v19 = vsel %vm268_vm1, %v15870_v14, %v15872_v2  ;;  %v716_v14 = vadd.f32 %v686_v5, %v570_v45 }
 0x219   :  { %v1292_v21 = vmul.f32 %v1262_v20, %v1199_v58  ;;  %v306_v22 = vadd.f32 %v277_v19, %v194_v17  ;;  %v687_v58 = vsel %vm679_vm4, %v15878_v54, %v15879_v59  ;;  %v15884_v54 = vld [vmem:[#allocation39_spill] sm:$0xff] }
 0x21a   :  { %v828_v42 = vadd.f32 %v798_v51, %v716_v14  ;;  %v390_v5 = vsel %vm380_vm2, %v15875_v60, %v15884_v54  ;;  %v15887_v14 = vld [vmem:[#allocation50_spill] sm:$0xff] }
 0x21b   :  { %1328 = vrot.lane.b32.xlu2 %v1292_v21, %s11443_s0  ;;  %v418_v41 = vadd.f32 %v389_v3, %v306_v22  ;;  %v15882_v3 = vld [vmem:[#allocation33_spill] sm:$0xff]  ;;  %v195_v22 = vmul.f32 %v15883_v31, %v11714_v63 }
 0x21c   :  { %v940_v17 = vadd.f32 %v910_v7, %v828_v42  ;;  %v278_v55 = vsel %vm268_vm1, %v15872_v2, %v15882_v3 }
 0x21d   :  { %v571_v21 = vadd.f32 %v541_v8, %v418_v41  ;;  %v1135_v8 = vsel %vm1127_vm8, %v1112_v15, %v12505_v32  ;;  %v15885_v41 = vld [vmem:[#allocation42_spill] sm:$0xff]  ;;  %v307_v51 = vadd.f32 %v278_v55, %v195_v22  ;;  %v391_v15 = vsel %vm380_vm2, %v15884_v54, %v15887_v14  ;;  %v15892_v22 = vld [vmem:[#allocation29_spill] sm:$0xff] }
 0x21e   :  { %v12517_v35 = vpop.permute.xlu1 %785  ;;  %v12558_v20 = vpop.permute.xlu2 %1009  ;;  %v279_v2 = vsel %vm268_vm1, %v15882_v3, %v15885_v41  ;;  %v15890_v3 = vld [vmem:[#allocation46_spill] sm:$0xff] }
 0x21f   :  { %v12519_v34 = vpop.permute.xlu0 %783  ;;  %v717_v19 = vadd.f32 %v687_v58, %v571_v21  ;;  %v1052_v58 = vadd.f32 %v1022_v37, %v940_v17  ;;  %v15886_v21 = vld [vmem:[#allocation18_spill] sm:$0xff]  ;;  %v15889_v17 = vld [vmem:[#allocation19_spill] sm:$0xff] }
 0x220   :  { %v196_v49 = vmul.f32 %v15886_v21, %v11714_v63  ;;  %v15893_v37 = vld [vmem:[#allocation63_spill] sm:$0xff]  ;;  %v392_v21 = vsel %vm380_vm2, %v15887_v14, %v12298_v24 }
 0x221   :  { %v829_v11 = vadd.f32 %v799_v47, %v717_v19  ;;  %v15888_v47 = vld [vmem:[#allocation54_spill] sm:$0xff]  ;;  %v1164_v7 = vadd.f32 %v1134_v36, %v1052_v58  ;;  %v280_v36 = vsel %vm268_vm1, %v15885_v41, %v15893_v37 }
 0x222   :  { %v542_v60 = vsel %vm532_vm3, %v15877_v6, %v15888_v47  ;;  %v543_v55 = vsel %vm532_vm3, %v15888_v47, %v15890_v3  ;;  %v198_v6 = vmul.f32 %v15892_v22, %v11714_v63  ;;  %v15899_v22 = vld [vmem:[#allocation60_spill] sm:$0xff] }
 0x223   :  { %v941_v43 = vadd.f32 %v911_v9, %v829_v11  ;;  %v419_v9 = vadd.f32 %v390_v5, %v307_v51  ;;  %v308_v11 = vadd.f32 %v279_v2, %v196_v49  ;;  %v15894_v5 = vld [vmem:[#allocation61_spill] sm:$0xff]  ;;  %v1185_v41 = vadd.f32 %v12091_v50, %v1164_v7 }
 0x224   :  { %v800_v2 = vsel %vm791_vm5, %v15880_v30, %v15894_v5  ;;  %v15896_v51 = vld [vmem:[#allocation65_spill] sm:$0xff]  ;;  %v393_v30 = vsel %vm380_vm2, %v12298_v24, %v12296_v56 }
 0x225   :  { %v1053_v45 = vadd.f32 %v1023_v62, %v941_v43  ;;  %v197_v62 = vmul.f32 %v15889_v17, %v11714_v63  ;;  %v15891_v43 = vld [vmem:[#allocation55_spill] sm:$0xff]  ;;  %v572_v54 = vadd.f32 %v542_v60, %v419_v9  ;;  %v15897_v9 = vld [vmem:[#allocation34_spill] sm:$0xff] }
 0x226   :  { %v12534_v40 = vpop.permute.xlu1 %787  ;;  %v12596_v0 = vpop.permute.xlu2 %1011  ;;  %v688_v31 = vsel %vm679_vm4, %v15879_v59, %v15891_v43  ;;  %v689_v59 = vsel %vm679_vm4, %v15891_v43, %v15896_v51  ;;  %v15898_v17 = vld [vmem:[#allocation27_spill] sm:$0xff] }
 0x227   :  { %v12538_v52 = vpop.permute.xlu0 %1117  ;;  %v1165_v19 = vadd.f32 %v1135_v8, %v1053_v45  ;;  %v420_v8 = vadd.f32 %v391_v15, %v308_v11  ;;  %v15895_v45 = vld [vmem:[#allocation62_spill] sm:$0xff]  ;;  %v718_v47 = vadd.f32 %v688_v31, %v572_v54  ;;  %v309_v60 = vadd.f32 %v280_v36, %v197_v62 }
 0x228   :  { %v281_v58 = vsel %vm268_vm1, %v15893_v37, %v15895_v45  ;;  %v200_v11 = vmul.f32 %v15897_v9, %v11714_v63  ;;  %v199_v43 = vmul.f32 %v15898_v17, %v11714_v63  ;;  %v282_v14 = vsel %vm268_vm1, %v15895_v45, %v15899_v22 }
 0x229   :  { %v1186_v49 = vadd.f32 %v12091_v50, %v1165_v19  ;;  %v573_v15 = vadd.f32 %v543_v55, %v420_v8  ;;  %v310_v7 = vadd.f32 %v281_v58, %v198_v6  ;;  %v830_v37 = vadd.f32 %v800_v2, %v718_v47 }
 0x22a   :  { %v421_v55 = vadd.f32 %v392_v21, %v309_v60  ;;  %v801_v62 = vsel %vm791_vm5, %v15894_v5, %v12351_v28  ;;  %v544_v36 = vsel %vm532_vm3, %v15890_v3, %v12391_v29  ;;  %v1200_v63 = vmax.f32 %v1185_v41, 0.0 }
 0x22b   :  { %v719_v19 = vadd.f32 %v689_v59, %v573_v15  ;;  %v422_v24 = vadd.f32 %v393_v30, %v310_v7  ;;  %v1201_v8 = vmax.f32 %v1186_v49, 0.0  ;;  %v912_v6 = vsel %vm903_vm6, %v15881_v23, %v12446_v12  ;;  %v15900_v59 = vld [vmem:[#allocation66_spill] sm:$0xff] }
 0x22c   :  { %v913_v2 = vsel %vm903_vm6, %v12446_v12, %v12441_v46  ;;  %v545_v21 = vsel %vm532_vm3, %v12391_v29, %v15900_v59  ;;  %v690_v23 = vsel %vm679_vm4, %v15896_v51, %v12389_v13  ;;  %v574_v12 = vadd.f32 %v544_v36, %v421_v55 }
 0x22d   :  { %v831_v3 = vadd.f32 %v801_v62, %v719_v19  ;;  %v1024_v15 = vsel %vm1015_vm7, %v12460_v48, %v12490_v39  ;;  %v942_v47 = vadd.f32 %v912_v6, %v830_v37  ;;  %v691_v29 = vsel %vm679_vm4, %v12389_v13, %v12492_v38 }
 0x22e   :  { %v12566_v1 = vpop.permute.xlu1 %897  ;;  %v12659_v45 = vpop.permute.xlu2 %1121  ;;  %v575_v51 = vadd.f32 %v545_v21, %v422_v24  ;;  %v394_v30 = vsel %vm380_vm2, %v12296_v56, %v12402_v26  ;;  %v1136_v48 = vsel %vm1127_vm8, %v12505_v32, %v12503_v44  ;;  %v802_v13 = vsel %vm791_vm5, %v12351_v28, %v12519_v34 }
 0x22f   :  { %v12568_v27 = vpop.permute.xlu0 %895  ;;  %v943_v60 = vadd.f32 %v913_v2, %v831_v3  ;;  %v1054_v9 = vadd.f32 %v1024_v15, %v942_v47  ;;  %v803_v7 = vsel %vm791_vm5, %v12519_v34, %v12517_v35  ;;  %v311_v37 = vadd.f32 %v282_v14, %v199_v43 }
 0x230   :  { %v546_v56 = vsel %vm532_vm3, %v15900_v59, %v12474_v16  ;;  %v721_v32 = vadd.f32 %v691_v29, %v575_v51  ;;  %v720_v19 = vadd.f32 %v690_v23, %v574_v12  ;;  %v914_v24 = vsel %vm903_vm6, %v12441_v46, %v12568_v27 }
 0x231   :  { %v1166_v62 = vadd.f32 %v1136_v48, %v1054_v9  ;;  %v915_v28 = vsel %vm903_vm6, %v12568_v27, %v12566_v1  ;;  %v423_v34 = vadd.f32 %v394_v30, %v311_v37  ;;  %v692_v46 = vsel %vm679_vm4, %v12492_v38, %v12508_v57 }
 0x232   :  { %v832_v43 = vadd.f32 %v802_v13, %v720_v19  ;;  %v833_v14 = vadd.f32 %v803_v7, %v721_v32  ;;  %v804_v38 = vsel %vm791_vm5, %v12517_v35, %v12534_v40  ;;  %vm7664_vm2 = vcmask 130048  }
 0x233   :  { %v576_v6 = vadd.f32 %v546_v56, %v423_v34 }
 0x234   :  { %v944_v27 = vadd.f32 %v914_v24, %v832_v43  ;;  %v945_v2 = vadd.f32 %v915_v28, %v833_v14 }
 0x236   :  { %v12598_v4 = vpop.permute.xlu1 %1007 }
 0x237   :  { %v12606_v42 = vpop.permute.xlu0 %901 }
 0x238   :  { %v917_v30 = vsel %vm903_vm6, %v12521_v25, %v12606_v42 }
 0x23e   :  { %v12648_v31 = vpop.permute.xlu1 %1243 }
 0x23f   :  { %v1242_v54 = vpop.permute.xlu0 %1241 }
 0x240   :  { %v1263_v5 = vsel %vm679_vm4, %v12510_v33, %v1242_v54  ;;  %v1264_v58 = vsel %vm679_vm4, %v1242_v54, %v12648_v31  ;;  %v1025_v33 = vsel %vm1015_vm7, %v12490_v39, %v12439_v10  ;;  %v1137_v39 = vsel %vm1127_vm8, %v12503_v44, %v12538_v52 }
 0x241   :  { %v1293_v41 = vmul.f32 %v1263_v5, %v1200_v63  ;;  %v1294_v49 = vmul.f32 %v1264_v58, %v1201_v8  ;;  %v1055_v17 = vadd.f32 %v1025_v33, %v943_v60  ;;  %v312_v63 = vadd.f32 %v15899_v22, %v200_v11  ;;  %v1124_v5 = vpop.permute.xlu2 %1123 }
 0x242   :  { %v1026_v8 = vsel %vm1015_vm7, %v12439_v10, %v12598_v4  ;;  %v1027_v54 = vsel %vm1015_vm7, %v12598_v4, %v12558_v20  ;;  %v1187_v58 = vadd.f32 %v12091_v50, %v1166_v62  ;;  %v547_v4 = vsel %vm532_vm3, %v12474_v16, %v12470_v53 }
 0x243   :  { %1332 = vrot.lane.b32.xlu1 %v1294_v49, %s11443_s0  ;;  %1330 = vrot.lane.b32.xlu0 %v1293_v41, %s11443_s0  ;;  %v1167_v44 = vadd.f32 %v1137_v39, %v1055_v17  ;;  %v1056_v3 = vadd.f32 %v1026_v8, %v944_v27  ;;  %v1057_v59 = vadd.f32 %v1027_v54, %v945_v2 }
 0x244   :  { %v424_v21 = vadd.f32 %v12402_v26, %v312_v63  ;;  %v722_v41 = vadd.f32 %v692_v46, %v576_v6  ;;  %v916_v49 = vsel %vm903_vm6, %v12566_v1, %v12521_v25  ;;  %v1202_v33 = vmax.f32 %v1187_v58, 0.0 }
 0x245   :  { %v1188_v11 = vadd.f32 %v12091_v50, %v1167_v44  ;;  %v805_v26 = vsel %vm791_vm5, %v12534_v40, %v12512_v61  ;;  %v1028_v61 = vsel %vm1015_vm7, %v12558_v20, %v12596_v0  ;;  %v1140_v40 = vsel %vm1127_vm8, %v12659_v45, %v1124_v5 }
 0x246   :  { %v1120_v55 = vpop.permute.xlu1 %1119  ;;  %v577_v16 = vadd.f32 %v547_v4, %v424_v21  ;;  %v834_v15 = vadd.f32 %v804_v38, %v722_v41  ;;  %vm8507_vm5 = vcmask 908288  }
 0x247   :  { %v1014_v36 = vpop.permute.xlu0 %1013  ;;  %v1138_v22 = vsel %vm1127_vm8, %v12538_v52, %v1120_v55  ;;  %v1139_v10 = vsel %vm1127_vm8, %v1120_v55, %v12659_v45  ;;  %v693_v52 = vsel %vm679_vm4, %v12508_v57, %v12485_v18  ;;  %v1203_v35 = vmax.f32 %v1188_v11, 0.0 }
 0x248   :  { %v1168_v23 = vadd.f32 %v1138_v22, %v1056_v3  ;;  %v1169_v12 = vadd.f32 %v1139_v10, %v1057_v59  ;;  %v723_v57 = vadd.f32 %v693_v52, %v577_v16  ;;  %v946_v29 = vadd.f32 %v916_v49, %v834_v15  ;;  %v10975_v10 = vld [vmem:[#allocation3] sm:$0xff] }
 0x249   :  { %v1029_v25 = vsel %vm1015_vm7, %v12596_v0, %v1014_v36 }
 0x24a   :  { %v1189_v48 = vadd.f32 %v12091_v50, %v1168_v23  ;;  %v1190_v39 = vadd.f32 %v12091_v50, %v1169_v12  ;;  %v835_v9 = vadd.f32 %v805_v26, %v723_v57  ;;  %v1058_v42 = vadd.f32 %v1028_v61, %v946_v29 }
 0x24c   :  { %v947_v17 = vadd.f32 %v917_v30, %v835_v9  ;;  %v1204_v7 = vmax.f32 %v1189_v48, 0.0  ;;  %v1205_v37 = vmax.f32 %v1190_v39, 0.0  ;;  %v1170_v56 = vadd.f32 %v1140_v40, %v1058_v42 }
 0x24e   :  { %v1248_v53 = vpop.permute.xlu1 %1247  ;;  %v1059_v32 = vadd.f32 %v1029_v25, %v947_v17  ;;  %v1191_v0 = vadd.f32 %v12091_v50, %v1170_v56 }
 0x24f   :  { %v1246_v47 = vpop.permute.xlu0 %1245 }
 0x250   :  { %v1265_v60 = vsel %vm679_vm4, %v12648_v31, %v1246_v47  ;;  %v1266_v18 = vsel %vm679_vm4, %v1246_v47, %v1248_v53  ;;  %v1252_v31 = vpop.permute.xlu2 %1251  ;;  %v1206_v14 = vmax.f32 %v1191_v0, 0.0 }
 0x251   :  { %v1295_v1 = vmul.f32 %v1265_v60, %v1202_v33  ;;  %v1296_v51 = vmul.f32 %v1266_v18, %v1203_v35 }
 0x253   :  { %1336 = vrot.lane.b32.xlu0 %v1296_v51, %s11443_s0  ;;  %1334 = vrot.lane.b32.xlu2 %v1295_v1, %s11443_s0 }
 0x256   :  { %v1250_v13 = vpop.permute.xlu1 %1249 }
 0x257   :  { %v1267_v19 = vsel %vm679_vm4, %v1248_v53, %v1250_v13  ;;  %v1268_v55 = vsel %vm679_vm4, %v1250_v13, %v1252_v31  ;;  %v1126_v62 = vpop.permute.xlu0 %1125 }
 0x258   :  { %v1297_v20 = vmul.f32 %v1267_v19, %v1204_v7  ;;  %v1298_v44 = vmul.f32 %v1268_v55, %v1205_v37  ;;  %v1141_v45 = vsel %vm1127_vm8, %v1124_v5, %v1126_v62  ;;  %v1317_v36 = vpop.permute.xlu2 %1316 }
 0x259   :  { %v1171_v24 = vadd.f32 %v1141_v45, %v1059_v32 }
 0x25a   :  { %1338 = vrot.lane.b32.xlu1 %v1297_v20, %s11443_s0 }
 0x25b   :  { %v1192_v28 = vadd.f32 %v12091_v50, %v1171_v24  ;;  %1340 = vrot.lane.b32.xlu2 %v1298_v44, %s11443_s0  ;;  %v12892_v44 = vld [vmem:[%s15694_s3 + $0x8] sm:$0xff] }
 0x25d   :  { %v1207_v43 = vmax.f32 %v1192_v28, 0.0 }
 0x25e   :  { %v1256_v34 = vpop.permute.xlu1 %1255 }
 0x25f   :  { %v1254_v63 = vpop.permute.xlu0 %1253 }
 0x260   :  { %v1269_v8 = vsel %vm679_vm4, %v1252_v31, %v1254_v63  ;;  %v1270_v54 = vsel %vm679_vm4, %v1254_v63, %v1256_v34  ;;  %v1323_v27 = vpop.permute.xlu2 %1322 }
 0x261   :  { %v1299_v6 = vmul.f32 %v1269_v8, %v1206_v14  ;;  %v1300_v46 = vmul.f32 %v1270_v54, %v1207_v43 }
 0x263   :  { %1344 = vrot.lane.b32.xlu1 %v1300_v46, %s11443_s0  ;;  %1342 = vrot.lane.b32.xlu0 %v1299_v6, %s11443_s0 }
 0x266   :  { %v1321_v50 = vpop.permute.xlu1 %1320 }
 0x267   :  { %v12767_v2 = vsel %vm1346_vm9, %v1321_v50, %v1323_v27  ;;  %v1319_v5 = vpop.permute.xlu0 %1318 }
 0x268   :  { %v12770_v58 = vsel %vm1346_vm9, %v1317_v36, %v1319_v5  ;;  %v12773_v11 = vsel %vm1346_vm9, %v1319_v5, %v1321_v50 }
 0x269   :  { %v12777_v22 = vpack.i.bf16 %v12767_v2, %v12773_v11  ;;  %v12780_v4 = vpack.i.bf16 %v12770_v58, %v10975_v10  ;;  %v12916_v14 = vpack.i.bf16 %v12773_v11, %v12770_v58 }
 0x26b   :  { %10431 = vrot.lane.b32.xlu0 %v12777_v22, %s11444_s19  ;;  %10426 = vrot.lane.b32.xlu2 %v12780_v4, %s11444_s19 }
 0x26e   :  { %v1327_v38 = vpop.permute.xlu1 %1326 }
 0x26f   :  { %v1325_v3 = vpop.permute.xlu0 %1324 }
 0x270   :  { %v12787_v59 = vsel %vm1346_vm9, %v1323_v27, %v1325_v3  ;;  %v12790_v21 = vsel %vm1346_vm9, %v1325_v3, %v1327_v38 }
 0x271   :  { %v12794_v41 = vpack.i.bf16 %v12790_v21, %v12787_v59  ;;  %v10575_v54 = vpack.i.bf16 %v12787_v59, %v12767_v2 }
 0x273   :  { %10436 = vrot.lane.b32.xlu1 %v12794_v41, %s11444_s19 }
 0x275   :  { %v1329_v52 = vpop.permute.xlu2 %1328 }
 0x276   :  { %v12799_v49 = vsel %vm1346_vm9, %v1327_v38, %v1329_v52 }
 0x277   :  { %v10580_v63 = vpack.i.bf16 %v12799_v49, %v12790_v21 }
 0x2ad   :  { %v1335_v23 = vpop.permute.xlu2 %1334 }
 0x2b5   :  { %v1333_v12 = vpop.permute.xlu1 %1332  ;;  %v1331_v53 = vpop.permute.xlu0 %1330 }
 0x2b6   :  { %v12802_v16 = vsel %vm1346_vm9, %v1333_v12, %v1335_v23  ;;  %v12805_v15 = vsel %vm1346_vm9, %v1329_v52, %v1331_v53  ;;  %v12808_v33 = vsel %vm1346_vm9, %v1331_v53, %v1333_v12  ;;  %v1341_v26 = vpop.permute.xlu2 %1340 }
 0x2b7   :  { %v12812_v35 = vpack.i.bf16 %v12802_v16, %v12808_v33  ;;  %v12816_v47 = vpack.i.bf16 %v12805_v15, %v12799_v49  ;;  %v12934_v8 = vpack.i.bf16 %v12808_v33, %v12805_v15 }
 0x2b9   :  { %10446 = vrot.lane.b32.xlu0 %v12812_v35, %s11444_s19  ;;  %10441 = vrot.lane.b32.xlu2 %v12816_v47, %s11444_s19 }
 0x2c5   :  { %v1337_v60 = vpop.permute.xlu0 %1336  ;;  %v10427_v18 = vpop.permute.xlu2 %10426 }
 0x2c6   :  { %v12823_v57 = vsel %vm1346_vm9, %v1335_v23, %v1337_v60  ;;  %v10429_v29 = vunpack.i.h.bf16 %v10427_v18  ;;  %v10428_v1 = vunpack.i.l.bf16 %v10427_v18 }
 0x2c7   :  { %v10590_v27 = vpack.i.bf16 %v12823_v57, %v12802_v16 }
 0x2c8   :  { %v1455_v51 = vsel %vm1454_vm10, %v10428_v1, %v10429_v29 }
 0x2c9   :  { %1502 = vmatpush.msra.mxu0 %v1455_v51 }
 0x2ca   :  { %10107 = vmatmul.msk.f32.vlgmr.msra.gmra.mxu0 %vm109_vm0, %v12892_v44 }
 0x2cc   :  { %v1339_v30 = vpop.permute.xlu1 %1338 }
 0x2cd   :  { %v12827_v48 = vsel %vm1346_vm9, %v1337_v60, %v1339_v30  ;;  %v12830_v39 = vsel %vm1346_vm9, %v1339_v30, %v1341_v26 }
 0x2ce   :  { %v12834_v9 = vpack.i.bf16 %v12827_v48, %v12823_v57  ;;  %v12944_v6 = vpack.i.bf16 %v12830_v39, %v12827_v48 }
 0x2d0   :  { %10451 = vrot.lane.b32.xlu1 %v12834_v9, %s11444_s19 }
 0x2d5   :  { %v1345_v61 = vpop.permute.xlu1 %1344  ;;  %v1343_v40 = vpop.permute.xlu0 %1342 }
 0x2d6   :  { %1390 = vst.msk [vmem:[#allocation2 + $0x78] sm:$0xff] %vm109_vm0, %v1345_v61  ;;  %v12840_v31 = vsel %vm1346_vm9, %v1341_v26, %v1343_v40  ;;  %v12843_v25 = vsel %vm1346_vm9, %v1343_v40, %v1345_v61 }
 0x2d7   :  { %1452 = vrot.lane.b32.xlu0 %v12843_v25, %s11444_s19  ;;  %v12849_v42 = vpack.i.bf16 %v12840_v31, %v12830_v39  ;;  %v12948_v46 = vpack.i.bf16 %v12843_v25, %v12840_v31 }
 0x2d8   :  { %10461 = vrot.lane.b32.xlu1 %v12780_v4, %s11443_s0 }
 0x2d9   :  { %10456 = vrot.lane.b32.xlu2 %v12849_v42, %s11444_s19 }
 0x2dd   :  { %v10432_v17 = vpop.permute.xlu0 %10431  ;;  %v12902_v45 = vld [vmem:[#allocation2 + $0x78] sm:$0xff] }
 0x2de   :  { %v10434_v13 = vunpack.i.h.bf16 %v10432_v17  ;;  %v10433_v7 = vunpack.i.l.bf16 %v10432_v17  ;;  %v12910_v36 = vpack.i.bf16 %v12902_v45, %v12843_v25 }
 0x2df   :  { %10471 = vrot.lane.b32.xlu0 %v12794_v41, %s11443_s0 }
 0x2e0   :  { %v1457_v37 = vsel %vm1454_vm10, %v10433_v7, %v10434_v13  ;;  %10476 = vrot.lane.b32.xlu1 %v12816_v47, %s11443_s0  ;;  %v1456_v56 = vsel %vm1454_vm10, %v10429_v29, %v10433_v7 }
 0x2e1   :  { %1542 = vmatpush.msra.mxu2 %v1457_v37  ;;  %10466 = vrot.lane.b32.xlu2 %v12777_v22, %s11443_s0 }
 0x2e2   :  { %1522 = vmatpush.msra.mxu1 %v1456_v56  ;;  %10109 = vmatmul.msk.f32.vlgmr.msra.gmra.mxu2 %vm109_vm0, %v12892_v44  ;;  %v12991_v56 = vld [vmem:[%s15694_s3] sm:$0xff] }
 0x2e3   :  { %10108 = vmatmul.msk.f32.vlgmr.msra.gmra.mxu1 %vm109_vm0, %v12892_v44 }
 0x2e5   :  { %v10437_v32 = vpop.permute.xlu1 %10436 }
 0x2e6   :  { %v10439_v19 = vunpack.i.h.bf16 %v10437_v32  ;;  %v10438_v55 = vunpack.i.l.bf16 %v10437_v32 }
 0x2e7   :  { %10486 = vrot.lane.b32.xlu0 %v12834_v9, %s11443_s0 }
 0x2e8   :  { %v1458_v62 = vsel %vm1454_vm10, %v10434_v13, %v10438_v55  ;;  %10491 = vrot.lane.b32.xlu1 %v12849_v42, %s11443_s0  ;;  %v1459_v20 = vsel %vm1454_vm10, %v10438_v55, %v10439_v19 }
 0x2e9   :  { %1562 = vmatpush.msra.mxu3 %v1458_v62  ;;  %10481 = vrot.lane.b32.xlu2 %v12812_v35, %s11443_s0 }
 0x2ea   :  { %1582 = vmatpush.msrb.mxu0 %v1459_v20  ;;  %10110 = vmatmul.msk.f32.vlgmr.msra.gmra.mxu3 %vm109_vm0, %v12892_v44 }
 0x2eb   :  { %10111 = vmatmul.msk.f32.vlgmr.msrb.gmra.mxu0 %vm109_vm0, %v12892_v44 }
 0x2ef   :  { %10496 = vrot.lane.b32.xlu0 %v12780_v4, %s11445_s20 }
 0x2f0   :  { %10501 = vrot.lane.b32.xlu1 %v12777_v22, %s11445_s20 }
 0x2f1   :  { %1815 = vrot.lane.b32.xlu2 %v12843_v25, %s11443_s0 }
 0x2f7   :  { %10511 = vrot.lane.b32.xlu0 %v12816_v47, %s11445_s20 }
 0x2f8   :  { %10516 = vrot.lane.b32.xlu1 %v12812_v35, %s11445_s20 }
 0x2f9   :  { %10506 = vrot.lane.b32.xlu2 %v12794_v41, %s11445_s20 }
 0x2ff   :  { %10526 = vrot.lane.b32.xlu0 %v12849_v42, %s11445_s20 }
 0x300   :  { %2179 = vrot.lane.b32.xlu1 %v12843_v25, %s11445_s20 }
 0x301   :  { %10521 = vrot.lane.b32.xlu2 %v12834_v9, %s11445_s20 }
 0x307   :  { %10536 = vrot.lane.b32.xlu0 %v12777_v22, %s11446_s22 }
 0x308   :  { %10541 = vrot.lane.b32.xlu1 %v12794_v41, %s11446_s22 }
 0x309   :  { %10531 = vrot.lane.b32.xlu2 %v12780_v4, %s11446_s22 }
 0x30f   :  { %10551 = vrot.lane.b32.xlu0 %v12812_v35, %s11446_s22 }
 0x310   :  { %10556 = vrot.lane.b32.xlu1 %v12834_v9, %s11446_s22 }
 0x311   :  { %10546 = vrot.lane.b32.xlu2 %v12816_v47, %s11446_s22 }
 0x313   :  { %v10442_v24 = vpop.permute.xlu2 %10441 }
 0x314   :  { %v10444_v0 = vunpack.i.h.bf16 %v10442_v24  ;;  %v10443_v28 = vunpack.i.l.bf16 %v10442_v24 }
 0x316   :  { %v1460_v34 = vsel %vm1454_vm10, %v10439_v19, %v10443_v28  ;;  %v1461_v43 = vsel %vm1454_vm10, %v10443_v28, %v10444_v0 }
 0x317   :  { %10566 = vrot.lane.b32.xlu0 %v12910_v36, %s11446_s22  ;;  %1602 = vmatpush.msrb.mxu1 %v1460_v34 }
 0x318   :  { %1622 = vmatpush.msrb.mxu2 %v1461_v43  ;;  %10571 = vrot.lane.b32.xlu1 %v12916_v14, %s11435_s1 }
 0x319   :  { %10561 = vrot.lane.b32.xlu2 %v12849_v42, %s11446_s22  ;;  %10112 = vmatmul.msk.f32.vlgmr.msrb.gmra.mxu1 %vm109_vm0, %v12892_v44 }
 0x31a   :  { %10113 = vmatmul.msk.f32.vlgmr.msrb.gmra.mxu2 %vm109_vm0, %v12892_v44 }
 0x31f   :  { %10581 = vrot.lane.b32.xlu0 %v10580_v63, %s11435_s1 }
 0x320   :  { %10586 = vrot.lane.b32.xlu1 %v12934_v8, %s11435_s1 }
 0x321   :  { %10576 = vrot.lane.b32.xlu2 %v10575_v54, %s11435_s1 }
 0x327   :  { %10596 = vrot.lane.b32.xlu0 %v12944_v6, %s11435_s1 }
 0x328   :  { %10601 = vrot.lane.b32.xlu1 %v12948_v46, %s11435_s1 }
 0x329   :  { %10591 = vrot.lane.b32.xlu2 %v10590_v27, %s11435_s1 }
 0x32b   :  { %v10447_v50 = vpop.permute.xlu0 %10446 }
 0x32c   :  { %v10449_v5 = vunpack.i.h.bf16 %v10447_v50  ;;  %v10448_v22 = vunpack.i.l.bf16 %v10447_v50 }
 0x32e   :  { %v1462_v10 = vsel %vm1454_vm10, %v10444_v0, %v10448_v22  ;;  %v1463_v4 = vsel %vm1454_vm10, %v10448_v22, %v10449_v5 }
 0x32f   :  { %10606 = vrot.lane.b32.xlu0 %v12916_v14, %s11447_s26  ;;  %1642 = vmatpush.msrb.mxu3 %v1462_v10 }
 0x330   :  { %1662 = vmatpush.msra.mxu0 %v1463_v4  ;;  %10611 = vrot.lane.b32.xlu1 %v10575_v54, %s11447_s26 }
 0x331   :  { %3294 = vrot.lane.b32.xlu2 %v12902_v45, %s11435_s1  ;;  %10114 = vmatmul.msk.f32.vlgmr.msrb.gmra.mxu3 %vm109_vm0, %v12892_v44 }
 0x332   :  { %10115 = vmatmul.msk.f32.vlgmr.msra.gmra.mxu0 %vm109_vm0, %v12892_v44 }
 0x333   :  { %v10457_v38 = vpop.permute.xlu2 %10456 }
 0x334   :  { %v10459_v3 = vunpack.i.h.bf16 %v10457_v38  ;;  %v10458_v52 = vunpack.i.l.bf16 %v10457_v38 }
 0x336   :  { %v1467_v23 = vsel %vm1454_vm10, %v10458_v52, %v10459_v3 }
 0x337   :  { %10621 = vrot.lane.b32.xlu0 %v12934_v8, %s11447_s26  ;;  %1742 = vmatpush.msrb.mxu0 %v1467_v23 }
 0x338   :  { %10626 = vrot.lane.b32.xlu1 %v10590_v27, %s11447_s26 }
 0x339   :  { %10616 = vrot.lane.b32.xlu2 %v10580_v63, %s11447_s26 }
 0x33a   :  { %10119 = vmatmul.msk.f32.vlgmr.msrb.gmra.mxu0 %vm109_vm0, %v12892_v44 }
 0x33b   :  { %v10467_v53 = vpop.permute.xlu2 %10466 }
 0x33c   :  { %v10469_v51 = vunpack.i.h.bf16 %v10467_v53  ;;  %v10468_v30 = vunpack.i.l.bf16 %v10467_v53 }
 0x33e   :  { %v1819_v37 = vsel %vm1346_vm9, %v10468_v30, %v10469_v51 }
 0x33f   :  { %10636 = vrot.lane.b32.xlu0 %v12948_v46, %s11447_s26 }
 0x340   :  { %3673 = vrot.lane.b32.xlu1 %v12902_v45, %s11447_s26 }
 0x341   :  { %10631 = vrot.lane.b32.xlu2 %v12944_v6, %s11447_s26 }
 0x342   :  { %v10452_v12 = vpop.permute.xlu1 %10451 }
 0x343   :  { %v10454_v26 = vunpack.i.h.bf16 %v10452_v12  ;;  %v10453_v60 = vunpack.i.l.bf16 %v10452_v12  ;;  %v10482_v32 = vpop.permute.xlu2 %10481 }
 0x344   :  { %v10484_v62 = vunpack.i.h.bf16 %v10482_v32  ;;  %v10483_v20 = vunpack.i.l.bf16 %v10482_v32 }
 0x345   :  { %v1464_v18 = vsel %vm1454_vm10, %v10449_v5, %v10453_v60  ;;  %v1465_v29 = vsel %vm1454_vm10, %v10453_v60, %v10454_v26  ;;  %v1466_v1 = vsel %vm1454_vm10, %v10454_v26, %v10458_v52 }
 0x346   :  { %1682 = vmatpush.msra.mxu1 %v1464_v18  ;;  %1702 = vmatpush.msra.mxu2 %v1465_v29 }
 0x347   :  { %10646 = vrot.lane.b32.xlu0 %v10575_v54, %s11437_s21  ;;  %1722 = vmatpush.msra.mxu3 %v1466_v1 }
 0x348   :  { %10116 = vmatmul.msk.f32.vlgmr.msra.gmra.mxu1 %vm109_vm0, %v12892_v44  ;;  %10117 = vmatmul.msk.f32.vlgmr.msra.gmra.mxu2 %vm109_vm0, %v12892_v44 }
 0x349   :  { %10118 = vmatmul.msk.f32.vlgmr.msra.gmra.mxu3 %vm109_vm0, %v12892_v44  ;;  %v1453_v61 = vpop.permute.xlu0 %1452  ;;  %10651 = vrot.lane.b32.xlu1 %v10580_v63, %s11437_s21 }
 0x34a   :  { %10641 = vrot.lane.b32.xlu2 %v12916_v14, %s11437_s21  ;;  %1782 = vmatpush.msrb.mxu2 %v1453_v61  ;;  %v10462_v40 = vpop.permute.xlu1 %10461  ;;  %v1468_v17 = vsel %vm1454_vm10, %v10459_v3, %v1453_v61 }
 0x34b   :  { %v10464_v13 = vunpack.i.h.bf16 %v10462_v40  ;;  %v10463_v7 = vunpack.i.l.bf16 %v10462_v40  ;;  %1762 = vmatpush.msrb.mxu1 %v1468_v17 }
 0x34d   :  { %1904 = vmatpush.msra.mxu1 %v1819_v37  ;;  %v1817_v19 = vsel %vm1346_vm9, %v10463_v7, %v10464_v13  ;;  %v1818_v55 = vsel %vm1346_vm9, %v10464_v13, %v10468_v30 }
 0x34e   :  { %1864 = vmatpush.msrb.mxu3 %v1817_v19  ;;  %1884 = vmatpush.msra.mxu0 %v1818_v55 }
 0x34f   :  { %10661 = vrot.lane.b32.xlu0 %v10590_v27, %s11437_s21  ;;  %10123 = vmatmul.msk.f32.vlgmr.msra.gmra.mxu0 %vm109_vm0, %v12991_v56 }
 0x350   :  { %10120 = vmatmul.msk.f32.vlgmr.msrb.gmra.mxu1 %vm109_vm0, %v12892_v44  ;;  %10121 = vmatmul.msk.f32.vlgmr.msrb.gmra.mxu2 %vm109_vm0, %v12892_v44  ;;  %v1825_v44 = vsel %vm1346_vm9, %v10483_v20, %v10484_v62 }
 0x351   :  { %10122 = vmatmul.msk.f32.vlgmr.msrb.gmra.mxu3 %vm109_vm0, %v12991_v56  ;;  %v10472_v24 = vpop.permute.xlu0 %10471  ;;  %10666 = vrot.lane.b32.xlu1 %v12944_v6, %s11437_s21 }
 0x352   :  { %v10474_v0 = vunpack.i.h.bf16 %v10472_v24  ;;  %v10473_v28 = vunpack.i.l.bf16 %v10472_v24  ;;  %10656 = vrot.lane.b32.xlu2 %v12934_v8, %s11437_s21  ;;  %v10477_v34 = vpop.permute.xlu1 %10476  ;;  %v1816_v8 = vpop.permute.xlu2 %1815 }
 0x353   :  { %v10479_v43 = vunpack.i.h.bf16 %v10477_v34  ;;  %v10478_v63 = vunpack.i.l.bf16 %v10477_v34 }
 0x354   :  { %v1820_v54 = vsel %vm1346_vm9, %v10469_v51, %v10473_v28  ;;  %v1821_v27 = vsel %vm1346_vm9, %v10473_v28, %v10474_v0  ;;  %v4781_v28 = vld [vmem:[%s15695_s4] sm:$0xff] }
 0x355   :  { %1924 = vmatpush.msra.mxu2 %v1820_v54  ;;  %1944 = vmatpush.msra.mxu3 %v1821_v27  ;;  %v1822_v50 = vsel %vm1346_vm9, %v10474_v0, %v10478_v63  ;;  %v1823_v6 = vsel %vm1346_vm9, %v10478_v63, %v10479_v43  ;;  %v1824_v5 = vsel %vm1346_vm9, %v10479_v43, %v10483_v20 }
 0x356   :  { %1964 = vmatpush.msrb.mxu0 %v1822_v50  ;;  %1984 = vmatpush.msrb.mxu1 %v1823_v6 }
 0x357   :  { %2024 = vmatpush.msrb.mxu3 %v1825_v44  ;;  %4053 = vrot.lane.b32.xlu0 %v12902_v45, %s11437_s21 }
 0x358   :  { %2004 = vmatpush.msrb.mxu2 %v1824_v5  ;;  %10124 = vmatmul.msk.f32.vlgmr.msra.gmra.mxu1 %vm109_vm0, %v12991_v56 }
 0x359   :  { %10125 = vmatmul.msk.f32.vlgmr.msra.gmra.mxu2 %vm109_vm0, %v12991_v56  ;;  %10126 = vmatmul.msk.f32.vlgmr.msra.gmra.mxu3 %vm109_vm0, %v12991_v56  ;;  %v10487_v22 = vpop.permute.xlu0 %10486 }
 0x35a   :  { %10127 = vmatmul.msk.f32.vlgmr.msrb.gmra.mxu0 %vm109_vm0, %v12991_v56  ;;  %v10489_v10 = vunpack.i.h.bf16 %v10487_v22  ;;  %v10488_v4 = vunpack.i.l.bf16 %v10487_v22  ;;  %10676 = vrot.lane.b32.xlu1 %v12916_v14, %s11438_s24  ;;  %v10492_v38 = vpop.permute.xlu1 %10491  ;;  %v10507_v14 = vpop.permute.xlu2 %10506 }
 0x35b   :  { %10671 = vrot.lane.b32.xlu2 %v12948_v46, %s11437_s21  ;;  %v10494_v3 = vunpack.i.h.bf16 %v10492_v38  ;;  %v10493_v52 = vunpack.i.l.bf16 %v10492_v38  ;;  %v10508_v61 = vunpack.i.l.bf16 %v10507_v14  ;;  %v10509_v13 = vunpack.i.h.bf16 %v10507_v14 }
 0x35c   :  { %v1826_v23 = vsel %vm1346_vm9, %v10484_v62, %v10488_v4  ;;  %v1827_v12 = vsel %vm1346_vm9, %v10488_v4, %v10489_v10 }
 0x35d   :  { %2044 = vmatpush.msra.mxu0 %v1826_v23  ;;  %2064 = vmatpush.msra.mxu1 %v1827_v12  ;;  %v1828_v53 = vsel %vm1346_vm9, %v10489_v10, %v10493_v52  ;;  %v1829_v26 = vsel %vm1346_vm9, %v10493_v52, %v10494_v3  ;;  %v1830_v60 = vsel %vm1346_vm9, %v10494_v3, %v1816_v8 }
 0x35e   :  { %2084 = vmatpush.msra.mxu2 %v1828_v53  ;;  %2104 = vmatpush.msra.mxu3 %v1829_v26  ;;  %v2186_v37 = vsel %vm2181_vm11, %v10508_v61, %v10509_v13 }
 0x35f   :  { %10681 = vrot.lane.b32.xlu0 %v12794_v41, %s11438_s24  ;;  %2124 = vmatpush.msrb.mxu0 %v1830_v60 }
 0x360   :  { %10128 = vmatmul.msk.f32.vlgmr.msrb.gmra.mxu1 %vm109_vm0, %v12991_v56 }
 0x361   :  { %10129 = vmatmul.msk.f32.vlgmr.msrb.gmra.mxu2 %vm109_vm0, %v12991_v56  ;;  %10130 = vmatmul.msk.f32.vlgmr.msrb.gmra.mxu3 %vm109_vm0, %v12991_v56  ;;  %v10497_v46 = vpop.permute.xlu0 %10496 }
 0x362   :  { %10131 = vmatmul.msk.f32.vlgmr.msra.gmra.mxu0 %vm109_vm0, %v12991_v56  ;;  %2144 = vmatpush.msrb.mxu1 %v1816_v8  ;;  %v10499_v18 = vunpack.i.h.bf16 %v10497_v46  ;;  %v10498_v29 = vunpack.i.l.bf16 %v10497_v46  ;;  %v10502_v1 = vpop.permute.xlu1 %10501  ;;  %v10522_v55 = vpop.permute.xlu2 %10521 }
 0x363   :  { %10686 = vrot.lane.b32.xlu1 %v12816_v47, %s11438_s24  ;;  %4408 = vrot.lane.b32.xlu2 %v12767_v2, %s11438_s24  ;;  %v10504_v41 = vunpack.i.h.bf16 %v10502_v1  ;;  %v10503_v51 = vunpack.i.l.bf16 %v10502_v1  ;;  %v10523_v34 = vunpack.i.l.bf16 %v10522_v55  ;;  %v10524_v43 = vunpack.i.h.bf16 %v10522_v55 }
 0x364   :  { %v2182_v30 = vsel %vm2181_vm11, %v10498_v29, %v10499_v18 }
 0x365   :  { %2229 = vmatpush.msrb.mxu2 %v2182_v30  ;;  %v2183_v40 = vsel %vm2181_vm11, %v10499_v18, %v10503_v51  ;;  %v2184_v17 = vsel %vm2181_vm11, %v10503_v51, %v10504_v41  ;;  %v2185_v47 = vsel %vm2181_vm11, %v10504_v41, %v10508_v61 }
 0x366   :  { %2249 = vmatpush.msrb.mxu3 %v2183_v40  ;;  %2269 = vmatpush.msra.mxu0 %v2184_v17 }
 0x367   :  { %10696 = vrot.lane.b32.xlu0 %v12834_v9, %s11438_s24 }
 0x368   :  { %10132 = vmatmul.msk.f32.vlgmr.msra.gmra.mxu1 %vm109_vm0, %v12991_v56 }
 0x369   :  { %10133 = vmatmul.msk.f32.vlgmr.msra.gmra.mxu2 %vm109_vm0, %v12991_v56  ;;  %10134 = vmatmul.msk.f32.vlgmr.msra.gmra.mxu3 %vm109_vm0, %v12991_v56  ;;  %v10512_v7 = vpop.permute.xlu0 %10511 }
 0x36a   :  { %10135 = vmatmul.msk.f32.vlgmr.msrb.gmra.mxu0 %vm109_vm0, %v12991_v56  ;;  %2289 = vmatpush.msra.mxu1 %v2185_v47  ;;  %v10514_v32 = vunpack.i.h.bf16 %v10512_v7  ;;  %v10513_v9 = vunpack.i.l.bf16 %v10512_v7  ;;  %v10517_v19 = vpop.permute.xlu1 %10516  ;;  %v10532_v5 = vpop.permute.xlu2 %10531  ;;  %v10153_v7 = vld [vmem:[%s15694_s3 + $0x18] sm:$0xff] }
 0x36b   :  { %2309 = vmatpush.msra.mxu2 %v2186_v37  ;;  %10701 = vrot.lane.b32.xlu1 %v12849_v42, %s11438_s24  ;;  %v10518_v62 = vunpack.i.l.bf16 %v10517_v19  ;;  %v10519_v20 = vunpack.i.h.bf16 %v10517_v19  ;;  %v13074_v42 = vld [vmem:[%s15694_s3 + $0x10] sm:$0xff]  ;;  %v10534_v38 = vunpack.i.h.bf16 %v10532_v5  ;;  %v10533_v3 = vunpack.i.l.bf16 %v10532_v5 }
 0x36c   :  { %10691 = vrot.lane.b32.xlu2 %v12812_v35, %s11438_s24  ;;  %v2187_v24 = vsel %vm2181_vm11, %v10509_v13, %v10513_v9  ;;  %v2188_v0 = vsel %vm2181_vm11, %v10513_v9, %v10514_v32 }
 0x36d   :  { %2329 = vmatpush.msra.mxu3 %v2187_v24  ;;  %2349 = vmatpush.msrb.mxu0 %v2188_v0  ;;  %v2189_v35 = vsel %vm2181_vm11, %v10514_v32, %v10518_v62  ;;  %v2190_v63 = vsel %vm2181_vm11, %v10518_v62, %v10519_v20  ;;  %v2191_v54 = vsel %vm2181_vm11, %v10519_v20, %v10523_v34 }
 0x36e   :  { %v2596_v53 = vsel %vm2595_vm12, %v10533_v3, %v10534_v38 }
 0x36f   :  { %4784 = vperm.xlu0 %10422, %v4781_v28  }
 0x370   :  { %10136 = vmatmul.msk.f32.vlgmr.msrb.gmra.mxu1 %vm109_vm0, %v12991_v56  ;;  %v2192_v56 = vsel %vm2181_vm11, %v10523_v34, %v10524_v43 }
 0x371   :  { %10138 = vmatmul.msk.f32.vlgmr.msrb.gmra.mxu2 %vm109_vm0, %v13074_v42  ;;  %10139 = vmatmul.msk.f32.vlgmr.msrb.gmra.mxu3 %vm109_vm0, %v13074_v42  ;;  %v10527_v27 = vpop.permute.xlu0 %10526 }
 0x372   :  { %10140 = vmatmul.msk.f32.vlgmr.msra.gmra.mxu0 %vm109_vm0, %v13074_v42  ;;  %2369 = vmatpush.msrb.mxu1 %v2189_v35  ;;  %v2180_v44 = vpop.permute.xlu1 %2179  ;;  %v10528_v50 = vunpack.i.l.bf16 %v10527_v27  ;;  %v10529_v6 = vunpack.i.h.bf16 %v10527_v27  ;;  %v10547_v46 = vpop.permute.xlu2 %10546 }
 0x373   :  { %2389 = vmatpush.msrb.mxu2 %v2190_v63  ;;  %2409 = vmatpush.msrb.mxu3 %v2191_v54  ;;  %v10549_v1 = vunpack.i.h.bf16 %v10547_v46  ;;  %v10548_v41 = vunpack.i.l.bf16 %v10547_v46  ;;  %v13152_v54 = vpop.f32.mrf.mxu0 }
 0x374   :  { %2429 = vmatpush.msra.mxu0 %v2192_v56  ;;  %10706 = vrot.lane.b32.xlu2 %v12910_v36, %s11438_s24  ;;  %v2193_v8 = vsel %vm2181_vm11, %v10524_v43, %v10528_v50  ;;  %v2195_v22 = vsel %vm2181_vm11, %v10529_v6, %v2180_v44  ;;  %v2194_v36 = vsel %vm2181_vm11, %v10528_v50, %v10529_v6 }
 0x375   :  { %v2602_v40 = vsel %vm2595_vm12, %v10548_v41, %v10549_v1 }
 0x378   :  { %10141 = vmatmul.msk.f32.vlgmr.msra.gmra.mxu1 %vm109_vm0, %v13074_v42 }
 0x379   :  { %10142 = vmatmul.msk.f32.vlgmr.msra.gmra.mxu2 %vm109_vm0, %v13074_v42  ;;  %10143 = vmatmul.msk.f32.vlgmr.msra.gmra.mxu3 %vm109_vm0, %v13074_v42  ;;  %v10537_v10 = vpop.permute.xlu0 %10536 }
 0x37a   :  { %10144 = vmatmul.msk.f32.vlgmr.msrb.gmra.mxu0 %vm109_vm0, %v13074_v42  ;;  %2449 = vmatpush.msra.mxu1 %v2193_v8  ;;  %v10542_v4 = vpop.permute.xlu1 %10541  ;;  %v10539_v23 = vunpack.i.h.bf16 %v10537_v10  ;;  %v10538_v12 = vunpack.i.l.bf16 %v10537_v10  ;;  %v10562_v37 = vpop.permute.xlu2 %10561 }
 0x37b   :  { %2469 = vmatpush.msra.mxu2 %v2194_v36  ;;  %2489 = vmatpush.msra.mxu3 %v2195_v22  ;;  %v10543_v52 = vunpack.i.l.bf16 %v10542_v4  ;;  %v10544_v29 = vunpack.i.h.bf16 %v10542_v4  ;;  %v10563_v19 = vunpack.i.l.bf16 %v10562_v37  ;;  %v10564_v28 = vunpack.i.h.bf16 %v10562_v37 }
 0x37c   :  { %2509 = vmatpush.msrb.mxu0 %v2180_v44  ;;  %v2597_v60 = vsel %vm2595_vm12, %v10534_v38, %v10538_v12  ;;  %v2598_v14 = vsel %vm2595_vm12, %v10538_v12, %v10539_v23 }
 0x37d   :  { %v2599_v26 = vsel %vm2595_vm12, %v10539_v23, %v10543_v52  ;;  %v2600_v30 = vsel %vm2595_vm12, %v10543_v52, %v10544_v29  ;;  %v2601_v61 = vsel %vm2595_vm12, %v10544_v29, %v10548_v41  ;;  %v2608_v43 = vsel %vm2595_vm12, %v10563_v19, %v10564_v28 }
 0x380   :  { %10145 = vmatmul.msk.f32.vlgmr.msrb.gmra.mxu1 %vm109_vm0, %v13074_v42 }
 0x381   :  { %10146 = vmatmul.msk.f32.vlgmr.msrb.gmra.mxu2 %vm109_vm0, %v13074_v42  ;;  %10147 = vmatmul.msk.f32.vlgmr.msrb.gmra.mxu3 %vm109_vm0, %v13074_v42  ;;  %v10552_v18 = vpop.permute.xlu0 %10551 }
 0x382   :  { %10148 = vmatmul.msk.f32.vlgmr.msra.gmra.mxu0 %vm109_vm0, %v13074_v42  ;;  %2644 = vmatpush.msrb.mxu1 %v2596_v53  ;;  %v10553_v51 = vunpack.i.l.bf16 %v10552_v18  ;;  %v10557_v17 = vpop.permute.xlu1 %10556  ;;  %v10554_v47 = vunpack.i.h.bf16 %v10552_v18 }
 0x383   :  { %2664 = vmatpush.msrb.mxu2 %v2597_v60  ;;  %2684 = vmatpush.msrb.mxu3 %v2598_v14  ;;  %v10559_v32 = vunpack.i.h.bf16 %v10557_v17  ;;  %v10558_v9 = vunpack.i.l.bf16 %v10557_v17  ;;  %v13227_v60 = vld [vmem:[%s15694_s3 + $0x28] sm:$0xff] }
 0x384   :  { %2704 = vmatpush.msra.mxu0 %v2599_v26  ;;  %v2603_v13 = vsel %vm2595_vm12, %v10549_v1, %v10553_v51  ;;  %v2604_v55 = vsel %vm2595_vm12, %v10553_v51, %v10554_v47 }
 0x385   :  { %v2605_v62 = vsel %vm2595_vm12, %v10554_v47, %v10558_v9  ;;  %v2606_v20 = vsel %vm2595_vm12, %v10558_v9, %v10559_v32  ;;  %v2607_v0 = vsel %vm2595_vm12, %v10559_v32, %v10563_v19 }
 0x388   :  { %10149 = vmatmul.msk.f32.vlgmr.msra.gmra.mxu1 %vm109_vm0, %v13074_v42 }
 0x389   :  { %10150 = vmatmul.msk.f32.vlgmr.msra.gmra.mxu2 %vm109_vm0, %v13074_v42  ;;  %10151 = vmatmul.msk.f32.vlgmr.msra.gmra.mxu3 %vm109_vm0, %v13074_v42  ;;  %v10567_v24 = vpop.permute.xlu0 %10566 }
 0x38a   :  { %10152 = vmatmul.msk.f32.vlgmr.msrb.gmra.mxu0 %vm109_vm0, %v13074_v42  ;;  %2724 = vmatpush.msra.mxu1 %v2600_v30  ;;  %v10569_v34 = vunpack.i.h.bf16 %v10567_v24  ;;  %v10568_v42 = vunpack.i.l.bf16 %v10567_v24 }
 0x38b   :  { %2744 = vmatpush.msra.mxu2 %v2601_v61  ;;  %2764 = vmatpush.msra.mxu3 %v2602_v40 }
 0x38c   :  { %2784 = vmatpush.msrb.mxu0 %v2603_v13  ;;  %v2609_v35 = vsel %vm2595_vm12, %v10564_v28, %v10568_v42  ;;  %v2610_v63 = vsel %vm2595_vm12, %v10568_v42, %v10569_v34 }
 0x390   :  { %10154 = vmatmul.msk.f32.vlgmr.msrb.gmra.mxu1 %vm109_vm0, %v10153_v7 }
 0x391   :  { %10155 = vmatmul.msk.f32.vlgmr.msrb.gmra.mxu2 %vm109_vm0, %v10153_v7  ;;  %10156 = vmatmul.msk.f32.vlgmr.msrb.gmra.mxu3 %vm109_vm0, %v10153_v7 }
 0x392   :  { %10157 = vmatmul.msk.f32.vlgmr.msra.gmra.mxu0 %vm109_vm0, %v10153_v7  ;;  %2804 = vmatpush.msrb.mxu1 %v2604_v55 }
 0x393   :  { %2824 = vmatpush.msrb.mxu2 %v2605_v62  ;;  %2844 = vmatpush.msrb.mxu3 %v2606_v20 }
 0x394   :  { %2864 = vmatpush.msra.mxu0 %v2607_v0 }
 0x398   :  { %10158 = vmatmul.msk.f32.vlgmr.msra.gmra.mxu1 %vm109_vm0, %v10153_v7 }
 0x399   :  { %10159 = vmatmul.msk.f32.vlgmr.msra.gmra.mxu2 %vm109_vm0, %v10153_v7  ;;  %10160 = vmatmul.msk.f32.vlgmr.msra.gmra.mxu3 %vm109_vm0, %v10153_v7 }
 0x39a   :  { %10161 = vmatmul.msk.f32.vlgmr.msrb.gmra.mxu0 %vm109_vm0, %v10153_v7  ;;  %2884 = vmatpush.msra.mxu1 %v2608_v43 }
 0x39b   :  { %2904 = vmatpush.msra.mxu2 %v2609_v35  ;;  %2924 = vmatpush.msra.mxu3 %v2610_v63 }
 0x39c   :  { %2964 = vmatpush.msrb.mxu0 %v12770_v58  ;;  %v13157_v58 = vld [vmem:[%s15694_s3 + $0x20] sm:$0xff] }
 0x3a0   :  { %10162 = vmatmul.msk.f32.vlgmr.msrb.gmra.mxu1 %vm109_vm0, %v10153_v7 }
 0x3a1   :  { %10163 = vmatmul.msk.f32.vlgmr.msrb.gmra.mxu2 %vm109_vm0, %v10153_v7  ;;  %10164 = vmatmul.msk.f32.vlgmr.msrb.gmra.mxu3 %vm109_vm0, %v10153_v7 }
 0x3a2   :  { %10165 = vmatmul.msk.f32.vlgmr.msra.gmra.mxu0 %vm109_vm0, %v10153_v7  ;;  %2984 = vmatpush.msrb.mxu1 %v12773_v11  ;;  %v13176_v11 = vpop.f32.mrf.mxu1 }
 0x3a3   :  { %3004 = vmatpush.msrb.mxu2 %v12767_v2  ;;  %3024 = vmatpush.msrb.mxu3 %v12787_v59  ;;  %v13168_v2 = vpop.f32.mrf.mxu0  ;;  %v10572_v59 = vpop.permute.xlu1 %10571 }
 0x3a4   :  { %3044 = vmatpush.msra.mxu0 %v12790_v21  ;;  %v10577_v21 = vpop.permute.xlu2 %10576 }
 0x3a5   :  { %v10578_v27 = vunpack.i.l.bf16 %v10577_v21  ;;  %v10579_v50 = vunpack.i.h.bf16 %v10577_v21 }
 0x3a8   :  { %10166 = vmatmul.msk.f32.vlgmr.msra.gmra.mxu1 %vm109_vm0, %v10153_v7 }
 0x3a9   :  { %10167 = vmatmul.msk.f32.vlgmr.msra.gmra.mxu2 %vm109_vm0, %v10153_v7  ;;  %10168 = vmatmul.msk.f32.vlgmr.msra.gmra.mxu3 %vm109_vm0, %v10153_v7 }
 0x3aa   :  { %10170 = vmatmul.msk.f32.vlgmr.msrb.gmra.mxu0 %vm109_vm0, %v13157_v58  ;;  %3064 = vmatpush.msra.mxu1 %v12799_v49  ;;  %v10574_v49 = vunpack.i.h.bf16 %v10572_v59  ;;  %v13202_v44 = vpop.f32.mrf.mxu1 }
 0x3ab   :  { %3084 = vmatpush.msra.mxu2 %v12805_v15  ;;  %3104 = vmatpush.msra.mxu3 %v12808_v33  ;;  %v13184_v15 = vpop.f32.mrf.mxu2  ;;  %v13188_v33 = vpop.f32.mrf.mxu3 }
 0x3ac   :  { %3124 = vmatpush.msrb.mxu0 %v12802_v16  ;;  %v10573_v16 = vunpack.i.l.bf16 %v10572_v59  ;;  %v10587_v56 = vpop.permute.xlu1 %10586  ;;  %v10592_v4 = vpop.permute.xlu2 %10591 }
 0x3ad   :  { %v10588_v8 = vunpack.i.l.bf16 %v10587_v56  ;;  %v10589_v23 = vunpack.i.h.bf16 %v10587_v56  ;;  %v10594_v53 = vunpack.i.h.bf16 %v10592_v4  ;;  %v10593_v26 = vunpack.i.l.bf16 %v10592_v4 }
 0x3af   :  { %v3302_v18 = vsel %vm268_vm1, %v10588_v8, %v10589_v23  ;;  %v3303_v29 = vsel %vm268_vm1, %v10589_v23, %v10593_v26  ;;  %v3304_v1 = vsel %vm268_vm1, %v10593_v26, %v10594_v53 }
 0x3b0   :  { %10171 = vmatmul.msk.f32.vlgmr.msrb.gmra.mxu1 %vm109_vm0, %v13157_v58 }
 0x3b1   :  { %10172 = vmatmul.msk.f32.vlgmr.msrb.gmra.mxu2 %vm109_vm0, %v13157_v58  ;;  %10173 = vmatmul.msk.f32.vlgmr.msrb.gmra.mxu3 %vm109_vm0, %v13157_v58 }
 0x3b2   :  { %10174 = vmatmul.msk.f32.vlgmr.msra.gmra.mxu0 %vm109_vm0, %v13157_v58  ;;  %3144 = vmatpush.msrb.mxu1 %v12823_v57  ;;  %v13194_v57 = vpop.f32.mrf.mxu0 }
 0x3b3   :  { %3164 = vmatpush.msrb.mxu2 %v12827_v48  ;;  %3184 = vmatpush.msrb.mxu3 %v12830_v39  ;;  %v10582_v48 = vpop.permute.xlu0 %10581  ;;  %v3296_v39 = vsel %vm268_vm1, %v10573_v16, %v10574_v49 }
 0x3b4   :  { %3204 = vmatpush.msra.mxu0 %v12840_v31  ;;  %v3297_v31 = vsel %vm268_vm1, %v10574_v49, %v10578_v27  ;;  %v10584_v6 = vunpack.i.h.bf16 %v10582_v48  ;;  %v10583_v5 = vunpack.i.l.bf16 %v10582_v48  ;;  %v13217_v10 = vpop.f32.mrf.mxu3  ;;  %v10602_v46 = vpop.permute.xlu1 %10601 }
 0x3b5   :  { %v10604_v13 = vunpack.i.h.bf16 %v10602_v46  ;;  %v10603_v47 = vunpack.i.l.bf16 %v10602_v46  ;;  %v3295_v7 = vpop.permute.xlu2 %3294  ;;  %v13310_v46 = vld [vmem:[%s15694_s3 + $0x30] sm:$0xff] }
 0x3b6   :  { %v3299_v22 = vsel %vm268_vm1, %v10579_v50, %v10583_v5  ;;  %v3300_v36 = vsel %vm268_vm1, %v10583_v5, %v10584_v6  ;;  %v3301_v38 = vsel %vm268_vm1, %v10584_v6, %v10588_v8 }
 0x3b7   :  { %v3308_v19 = vsel %vm268_vm1, %v10603_v47, %v10604_v13  ;;  %v3309_v62 = vsel %vm268_vm1, %v10604_v13, %v3295_v7 }
 0x3b8   :  { %10175 = vmatmul.msk.f32.vlgmr.msra.gmra.mxu1 %vm109_vm0, %v13157_v58 }
 0x3b9   :  { %10176 = vmatmul.msk.f32.vlgmr.msra.gmra.mxu2 %vm109_vm0, %v13157_v58  ;;  %10177 = vmatmul.msk.f32.vlgmr.msra.gmra.mxu3 %vm109_vm0, %v13157_v58 }
 0x3ba   :  { %10178 = vmatmul.msk.f32.vlgmr.msrb.gmra.mxu0 %vm109_vm0, %v13157_v58  ;;  %3224 = vmatpush.msra.mxu1 %v12843_v25  ;;  %v3298_v25 = vsel %vm268_vm1, %v10578_v27, %v10579_v50  ;;  %v13220_v3 = vpop.f32.mrf.mxu0 }
 0x3bb   :  { %3244 = vmatpush.msra.mxu2 %v12902_v45  ;;  %3343 = vmatpush.msra.mxu3 %v3296_v39  ;;  %v13211_v45 = vpop.f32.mrf.mxu2  ;;  %v10597_v52 = vpop.permute.xlu0 %10596 }
 0x3bc   :  { %3363 = vmatpush.msrb.mxu0 %v3297_v31  ;;  %v10598_v14 = vunpack.i.l.bf16 %v10597_v52  ;;  %v10599_v61 = vunpack.i.h.bf16 %v10597_v52  ;;  %v10612_v55 = vpop.permute.xlu1 %10611 }
 0x3bd   :  { %v10613_v42 = vunpack.i.l.bf16 %v10612_v55  ;;  %v10614_v43 = vunpack.i.h.bf16 %v10612_v55  ;;  %v10617_v63 = vpop.permute.xlu2 %10616 }
 0x3be   :  { %v3305_v41 = vsel %vm268_vm1, %v10594_v53, %v10598_v14  ;;  %v3306_v32 = vsel %vm268_vm1, %v10598_v14, %v10599_v61  ;;  %v3307_v9 = vsel %vm268_vm1, %v10599_v61, %v10603_v47  ;;  %v10619_v39 = vunpack.i.h.bf16 %v10617_v63 }
 0x3bf   :  { %v3678_v49 = vsel %vm3675_vm13, %v10613_v42, %v10614_v43  ;;  %v10618_v31 = vunpack.i.l.bf16 %v10617_v63 }
 0x3c0   :  { %10179 = vmatmul.msk.f32.vlgmr.msrb.gmra.mxu1 %vm109_vm0, %v13157_v58 }
 0x3c1   :  { %10180 = vmatmul.msk.f32.vlgmr.msrb.gmra.mxu2 %vm109_vm0, %v13157_v58  ;;  %10181 = vmatmul.msk.f32.vlgmr.msrb.gmra.mxu3 %vm109_vm0, %v13157_v58  ;;  %v3679_v8 = vsel %vm3675_vm13, %v10614_v43, %v10618_v31 }
 0x3c2   :  { %10182 = vmatmul.msk.f32.vlgmr.msra.gmra.mxu0 %vm109_vm0, %v13157_v58  ;;  %3383 = vmatpush.msrb.mxu1 %v3298_v25  ;;  %v3680_v25 = vsel %vm3675_vm13, %v10618_v31, %v10619_v39 }
 0x3c3   :  { %3403 = vmatpush.msrb.mxu2 %v3299_v22  ;;  %3423 = vmatpush.msrb.mxu3 %v3300_v36  ;;  %v10607_v37 = vpop.permute.xlu0 %10606 }
 0x3c4   :  { %3443 = vmatpush.msra.mxu0 %v3301_v38  ;;  %v10609_v28 = vunpack.i.h.bf16 %v10607_v37  ;;  %v10608_v34 = vunpack.i.l.bf16 %v10607_v37  ;;  %v10627_v6 = vpop.permute.xlu1 %10626 }
 0x3c5   :  { %v13222_v12 = vpop.f32.mrf.mxu1  ;;  %v10632_v36 = vpop.permute.xlu2 %10631  ;;  %v10628_v23 = vunpack.i.l.bf16 %v10627_v6  ;;  %v10629_v14 = vunpack.i.h.bf16 %v10627_v6 }
 0x3c6   :  { %v3677_v59 = vsel %vm3675_vm13, %v10609_v28, %v10613_v42 }
 0x3c7   :  { %v3684_v13 = vsel %vm3675_vm13, %v10628_v23, %v10629_v14 }
 0x3c8   :  { %10183 = vmatmul.msk.f32.vlgmr.msra.gmra.mxu1 %vm109_vm0, %v13157_v58 }
 0x3c9   :  { %10184 = vmatmul.msk.f32.vlgmr.msra.gmra.mxu2 %vm109_vm0, %v13157_v58  ;;  %10186 = vmatmul.msk.f32.vlgmr.msra.gmra.mxu3 %vm109_vm0, %v13227_v60  ;;  %v3676_v58 = vsel %vm3675_vm13, %v10608_v34, %v10609_v28 }
 0x3ca   :  { %10187 = vmatmul.msk.f32.vlgmr.msrb.gmra.mxu0 %vm109_vm0, %v13227_v60  ;;  %3463 = vmatpush.msra.mxu1 %v3302_v18  ;;  %v10634_v18 = vunpack.i.h.bf16 %v10632_v36 }
 0x3cb   :  { %3483 = vmatpush.msra.mxu2 %v3303_v29  ;;  %3503 = vmatpush.msra.mxu3 %v3304_v1  ;;  %v13241_v51 = vpop.f32.mrf.mxu2  ;;  %v10622_v21 = vpop.permute.xlu0 %10621  ;;  %v10633_v29 = vunpack.i.l.bf16 %v10632_v36 }
 0x3cc   :  { %3523 = vmatpush.msrb.mxu0 %v3305_v41  ;;  %v13243_v30 = vpop.f32.mrf.mxu3  ;;  %v13247_v17 = vpop.f32.mrf.mxu0  ;;  %v10623_v56 = vunpack.i.l.bf16 %v10622_v21  ;;  %v10624_v50 = vunpack.i.h.bf16 %v10622_v21 }
 0x3cd   :  { %v13245_v40 = vpop.f32.mrf.mxu1  ;;  %v3674_v61 = vpop.permute.xlu1 %3673  ;;  %v3685_v47 = vsel %vm3675_vm13, %v10629_v14, %v10633_v29 }
 0x3ce   :  { %v3681_v22 = vsel %vm3675_vm13, %v10619_v39, %v10623_v56  ;;  %v3682_v4 = vsel %vm3675_vm13, %v10623_v56, %v10624_v50  ;;  %v10642_v34 = vpop.permute.xlu2 %10641 }
 0x3cf   :  { %v10643_v39 = vunpack.i.l.bf16 %v10642_v34 }
 0x3d0   :  { %10188 = vmatmul.msk.f32.vlgmr.msrb.gmra.mxu1 %vm109_vm0, %v13227_v60 }
 0x3d1   :  { %10189 = vmatmul.msk.f32.vlgmr.msrb.gmra.mxu2 %vm109_vm0, %v13227_v60  ;;  %10190 = vmatmul.msk.f32.vlgmr.msrb.gmra.mxu3 %vm109_vm0, %v13227_v60 }
 0x3d2   :  { %10191 = vmatmul.msk.f32.vlgmr.msra.gmra.mxu0 %vm109_vm0, %v13227_v60  ;;  %3543 = vmatpush.msrb.mxu1 %v3306_v32 }
 0x3d3   :  { %3563 = vmatpush.msrb.mxu2 %v3307_v9  ;;  %3583 = vmatpush.msrb.mxu3 %v3308_v19  ;;  %v13261_v20 = vpop.f32.mrf.mxu2  ;;  %v10637_v1 = vpop.permute.xlu0 %10636 }
 0x3d4   :  { %3603 = vmatpush.msra.mxu0 %v3309_v62  ;;  %v13263_v24 = vpop.f32.mrf.mxu3  ;;  %v10638_v32 = vunpack.i.l.bf16 %v10637_v1  ;;  %v10639_v62 = vunpack.i.h.bf16 %v10637_v1 }
 0x3d5   :  { %v13265_v0 = vpop.f32.mrf.mxu1  ;;  %v10652_v63 = vpop.permute.xlu1 %10651 }
 0x3d6   :  { %v3688_v43 = vsel %vm3675_vm13, %v10638_v32, %v10639_v62  ;;  %v10657_v36 = vpop.permute.xlu2 %10656  ;;  %v10654_v1 = vunpack.i.h.bf16 %v10652_v63 }
 0x3d7   :  { %v13267_v35 = vpop.f32.mrf.mxu0 }
 0x3d8   :  { %10192 = vmatmul.msk.f32.vlgmr.msra.gmra.mxu1 %vm109_vm0, %v13227_v60 }
 0x3d9   :  { %10193 = vmatmul.msk.f32.vlgmr.msra.gmra.mxu2 %vm109_vm0, %v13227_v60  ;;  %10194 = vmatmul.msk.f32.vlgmr.msra.gmra.mxu3 %vm109_vm0, %v13227_v60 }
 0x3da   :  { %10195 = vmatmul.msk.f32.vlgmr.msrb.gmra.mxu0 %vm109_vm0, %v13227_v60  ;;  %3623 = vmatpush.msra.mxu1 %v3295_v7 }
 0x3db   :  { %3723 = vmatpush.msra.mxu2 %v3676_v58  ;;  %3743 = vmatpush.msra.mxu3 %v3677_v59  ;;  %v10647_v42 = vpop.permute.xlu0 %10646  ;;  %v1867_v58 = vadd.f32 %v13263_v24, %v13152_v54 }
 0x3dc   :  { %3763 = vmatpush.msrb.mxu0 %v3678_v49  ;;  %v13280_v16 = vpop.f32.mrf.mxu2  ;;  %v13282_v27 = vpop.f32.mrf.mxu3  ;;  %v10644_v49 = vunpack.i.h.bf16 %v10642_v34  ;;  %v10648_v6 = vunpack.i.l.bf16 %v10647_v42 }
 0x3dd   :  { %v13284_v48 = vpop.f32.mrf.mxu1 }
 0x3de   :  { %v4055_v54 = vsel %vm532_vm3, %v10643_v39, %v10644_v49  ;;  %v4056_v24 = vsel %vm532_vm3, %v10644_v49, %v10648_v6 }
 0x3df   :  { %v13286_v5 = vpop.f32.mrf.mxu0 }
 0x3e0   :  { %10196 = vmatmul.msk.f32.vlgmr.msrb.gmra.mxu1 %vm109_vm0, %v13227_v60 }
 0x3e1   :  { %10197 = vmatmul.msk.f32.vlgmr.msrb.gmra.mxu2 %vm109_vm0, %v13227_v60  ;;  %10198 = vmatmul.msk.f32.vlgmr.msrb.gmra.mxu3 %vm109_vm0, %v13227_v60 }
 0x3e2   :  { %10199 = vmatmul.msk.f32.vlgmr.msra.gmra.mxu0 %vm109_vm0, %v13227_v60  ;;  %3783 = vmatpush.msrb.mxu1 %v3679_v8  ;;  %v10653_v8 = vunpack.i.l.bf16 %v10652_v63  ;;  %v10672_v63 = vpop.permute.xlu2 %10671 }
 0x3e3   :  { %3803 = vmatpush.msrb.mxu2 %v3680_v25  ;;  %3823 = vmatpush.msrb.mxu3 %v3681_v22  ;;  %v10673_v49 = vunpack.i.l.bf16 %v10672_v63 }
 0x3e4   :  { %3843 = vmatpush.msra.mxu0 %v3682_v4  ;;  %v2006_v38 = vpop.f32.mrf.mxu2  ;;  %v13300_v52 = vpop.f32.mrf.mxu3 }
 0x3e5   :  { %v13303_v53 = vadd.f32 %v2006_v38, %v13217_v10  ;;  %v13305_v26 = vpop.f32.mrf.mxu1  ;;  %v3683_v10 = vsel %vm3675_vm13, %v10624_v50, %v10628_v23  ;;  %v10649_v50 = vunpack.i.h.bf16 %v10647_v42  ;;  %v10662_v4 = vpop.permute.xlu0 %10661  ;;  %v1967_v38 = vadd.f32 %v13267_v35, %v13202_v44 }
 0x3e6   :  { %v1947_v23 = vadd.f32 %v13282_v27, %v13168_v2  ;;  %v10663_v44 = vunpack.i.l.bf16 %v10662_v4  ;;  %v10667_v35 = vpop.permute.xlu1 %10666  ;;  %v4059_v2 = vsel %vm532_vm3, %v10653_v8, %v10654_v1 }
 0x3e7   :  { %v13312_v41 = vpop.f32.mrf.mxu0  ;;  %v4057_v22 = vsel %vm532_vm3, %v10648_v6, %v10649_v50  ;;  %v4058_v14 = vsel %vm532_vm3, %v10649_v50, %v10653_v8 }
 0x3e8   :  { %10200 = vmatmul.msk.f32.vlgmr.msra.gmra.mxu1 %vm109_vm0, %v13227_v60  ;;  %v3686_v60 = vsel %vm3675_vm13, %v10633_v29, %v10634_v18 }
 0x3e9   :  { %10202 = vmatmul.msk.f32.vlgmr.msra.gmra.mxu2 %vm109_vm0, %v13310_v46  ;;  %10203 = vmatmul.msk.f32.vlgmr.msra.gmra.mxu3 %vm109_vm0, %v13310_v46 }
 0x3ea   :  { %10204 = vmatmul.msk.f32.vlgmr.msrb.gmra.mxu0 %vm109_vm0, %v13310_v46  ;;  %3863 = vmatpush.msra.mxu1 %v3683_v10 }
 0x3eb   :  { %3883 = vmatpush.msra.mxu2 %v3684_v13  ;;  %3903 = vmatpush.msra.mxu3 %v3685_v47  ;;  %v10659_v47 = vunpack.i.h.bf16 %v10657_v36 }
 0x3ec   :  { %3923 = vmatpush.msrb.mxu0 %v3686_v60  ;;  %v2086_v7 = vpop.f32.mrf.mxu2  ;;  %v2106_v37 = vpop.f32.mrf.mxu3  ;;  %v10658_v60 = vunpack.i.l.bf16 %v10657_v36  ;;  %v10674_v36 = vunpack.i.h.bf16 %v10672_v63 }
 0x3ed   :  { %v13327_v9 = vadd.f32 %v2086_v7, %v13243_v30  ;;  %v13330_v19 = vadd.f32 %v2106_v37, %v13220_v3  ;;  %v13332_v55 = vpop.f32.mrf.mxu1  ;;  %v3687_v30 = vsel %vm3675_vm13, %v10634_v18, %v10638_v32  ;;  %v3689_v3 = vsel %vm3675_vm13, %v10639_v62, %v3674_v61 }
 0x3ee   :  { %v4060_v27 = vsel %vm532_vm3, %v10654_v1, %v10658_v60  ;;  %v4061_v37 = vsel %vm532_vm3, %v10658_v60, %v10659_v47  ;;  %v2027_v32 = vadd.f32 %v13300_v52, %v13194_v57  ;;  %v4062_v62 = vsel %vm532_vm3, %v10659_v47, %v10663_v44  ;;  %v10677_v39 = vpop.permute.xlu1 %10676 }
 0x3ef   :  { %v13334_v28 = vpop.f32.mrf.mxu0  ;;  %v10669_v57 = vunpack.i.h.bf16 %v10667_v35  ;;  %v10668_v52 = vunpack.i.l.bf16 %v10667_v35  ;;  %v4067_v1 = vsel %vm532_vm3, %v10673_v49, %v10674_v36 }
 0x3f0   :  { %10205 = vmatmul.msk.f32.vlgmr.msrb.gmra.mxu1 %vm109_vm0, %v13310_v46 }
 0x3f1   :  { %10206 = vmatmul.msk.f32.vlgmr.msrb.gmra.mxu2 %vm109_vm0, %v13310_v46  ;;  %10207 = vmatmul.msk.f32.vlgmr.msrb.gmra.mxu3 %vm109_vm0, %v13310_v46  ;;  %v4065_v8 = vsel %vm532_vm3, %v10668_v52, %v10669_v57 }
 0x3f2   :  { %10208 = vmatmul.msk.f32.vlgmr.msra.gmra.mxu0 %vm109_vm0, %v13310_v46  ;;  %3943 = vmatpush.msrb.mxu1 %v3687_v30  ;;  %v10664_v30 = vunpack.i.h.bf16 %v10662_v4 }
 0x3f3   :  { %3963 = vmatpush.msrb.mxu2 %v3688_v43  ;;  %3983 = vmatpush.msrb.mxu3 %v3689_v3  ;;  %v13404_v43 = vld [vmem:[%s15694_s3 + $0x38] sm:$0xff] }
 0x3f4   :  { %4003 = vmatpush.msra.mxu0 %v3674_v61  ;;  %v2231_v59 = vpop.f32.mrf.mxu2  ;;  %v13349_v21 = vpop.f32.mrf.mxu3  ;;  %v4063_v50 = vsel %vm532_vm3, %v10663_v44, %v10664_v30  ;;  %v4064_v6 = vsel %vm532_vm3, %v10664_v30, %v10668_v52 }
 0x3f5   :  { %v13351_v31 = vadd.f32 %v2231_v59, %v1867_v58  ;;  %v13353_v56 = vpop.f32.mrf.mxu1  ;;  %v4054_v58 = vpop.permute.xlu0 %4053 }
 0x3f6   :  { %v4068_v47 = vsel %vm532_vm3, %v10674_v36, %v4054_v58  ;;  %v10687_v60 = vpop.permute.xlu1 %10686 }
 0x3f7   :  { %v13355_v25 = vpop.f32.mrf.mxu0 }
 0x3f8   :  { %10209 = vmatmul.msk.f32.vlgmr.msra.gmra.mxu1 %vm109_vm0, %v13310_v46 }
 0x3f9   :  { %10210 = vmatmul.msk.f32.vlgmr.msra.gmra.mxu2 %vm109_vm0, %v13310_v46  ;;  %10211 = vmatmul.msk.f32.vlgmr.msra.gmra.mxu3 %vm109_vm0, %v13310_v46 }
 0x3fa   :  { %10212 = vmatmul.msk.f32.vlgmr.msrb.gmra.mxu0 %vm109_vm0, %v13310_v46  ;;  %4102 = vmatpush.msra.mxu1 %v4055_v54  ;;  %v4066_v54 = vsel %vm532_vm3, %v10669_v57, %v10673_v49 }
 0x3fb   :  { %4122 = vmatpush.msra.mxu2 %v4056_v24  ;;  %4142 = vmatpush.msra.mxu3 %v4057_v22 }
 0x3fc   :  { %4162 = vmatpush.msrb.mxu0 %v4058_v14  ;;  %v2311_v18 = vpop.f32.mrf.mxu2  ;;  %v2331_v29 = vpop.f32.mrf.mxu3 }
 0x3fd   :  { %v13373_v61 = vadd.f32 %v2311_v18, %v1947_v23  ;;  %v13375_v10 = vadd.f32 %v2331_v29, %v1967_v38  ;;  %v13377_v13 = vpop.f32.mrf.mxu1  ;;  %v10679_v38 = vunpack.i.h.bf16 %v10677_v39  ;;  %v10678_v23 = vunpack.i.l.bf16 %v10677_v39  ;;  %v4409_v18 = vpop.permute.xlu2 %4408 }
 0x3fe   :  { %v10682_v29 = vpop.permute.xlu0 %10681 }
 0x3ff   :  { %v13379_v7 = vpop.f32.mrf.mxu0  ;;  %v4434_v44 = vsel %vm679_vm4, %v10678_v23, %v10679_v38  ;;  %v4435_v30 = vsel %vm679_vm4, %v10679_v38, %v4409_v18 }
 0x400   :  { %10213 = vmatmul.msk.f32.vlgmr.msrb.gmra.mxu1 %vm109_vm0, %v13310_v46 }
 0x401   :  { %10214 = vmatmul.msk.f32.vlgmr.msrb.gmra.mxu2 %vm109_vm0, %v13310_v46  ;;  %10215 = vmatmul.msk.f32.vlgmr.msrb.gmra.mxu3 %vm109_vm0, %v13310_v46 }
 0x402   :  { %10216 = vmatmul.msk.f32.vlgmr.msra.gmra.mxu0 %vm109_vm0, %v13310_v46  ;;  %4182 = vmatpush.msrb.mxu1 %v4059_v2 }
 0x403   :  { %4202 = vmatpush.msrb.mxu2 %v4060_v27  ;;  %4222 = vmatpush.msrb.mxu3 %v4061_v37  ;;  %v10684_v37 = vunpack.i.h.bf16 %v10682_v29 }
 0x404   :  { %4242 = vmatpush.msra.mxu0 %v4062_v62  ;;  %v2391_v34 = vpop.f32.mrf.mxu2  ;;  %v13395_v42 = vpop.f32.mrf.mxu3  ;;  %v10688_v62 = vunpack.i.l.bf16 %v10687_v60 }
 0x405   :  { %v13397_v3 = vadd.f32 %v2391_v34, %v2027_v32  ;;  %v13399_v46 = vpop.f32.mrf.mxu1  ;;  %v10683_v32 = vunpack.i.l.bf16 %v10682_v29  ;;  %v10692_v52 = vpop.permute.xlu2 %10691 }
 0x406   :  { %v4438_v49 = vsel %vm679_vm4, %v10684_v37, %v10688_v62  ;;  %v10693_v36 = vunpack.i.l.bf16 %v10692_v52 }
 0x407   :  { %v13406_v59 = vpop.f32.mrf.mxu0  ;;  %v4436_v63 = vsel %vm679_vm4, %v4409_v18, %v10683_v32  ;;  %v4437_v57 = vsel %vm679_vm4, %v10683_v32, %v10684_v37  ;;  %v10233_v18 = vld [vmem:[%s15694_s3 + $0x40] sm:$0xff]  ;;  %s11448_s3 = smov 17  }
 0x408   :  { %15901 = vst [vmem:[#allocation22_spill] sm:$0xff] %v13406_v59  ;;  %10218 = vmatmul.msk.f32.vlgmr.msra.gmra.mxu1 %vm109_vm0, %v13404_v43 }
 0x409   :  { %10219 = vmatmul.msk.f32.vlgmr.msra.gmra.mxu2 %vm109_vm0, %v13404_v43  ;;  %10220 = vmatmul.msk.f32.vlgmr.msra.gmra.mxu3 %vm109_vm0, %v13404_v43 }
 0x40a   :  { %10221 = vmatmul.msk.f32.vlgmr.msrb.gmra.mxu0 %vm109_vm0, %v13404_v43  ;;  %4262 = vmatpush.msra.mxu1 %v4063_v50 }
 0x40b   :  { %4282 = vmatpush.msra.mxu2 %v4064_v6  ;;  %4302 = vmatpush.msra.mxu3 %v4065_v8  ;;  %v10689_v6 = vunpack.i.h.bf16 %v10687_v60  ;;  %v10702_v60 = vpop.permute.xlu1 %10701 }
 0x40c   :  { %4322 = vmatpush.msrb.mxu0 %v4066_v54  ;;  %v13420_v24 = vpop.f32.mrf.mxu2  ;;  %v13422_v22 = vpop.f32.mrf.mxu3  ;;  %v10694_v54 = vunpack.i.h.bf16 %v10692_v52 }
 0x40d   :  { %15902 = vst [vmem:[#allocation32_spill] sm:$0xff] %v13422_v22  ;;  %v13424_v4 = vpop.f32.mrf.mxu1  ;;  %v4439_v29 = vsel %vm679_vm4, %v10688_v62, %v10689_v6  ;;  %v10707_v62 = vpop.permute.xlu2 %10706 }
 0x40f   :  { %v13426_v14 = vpop.f32.mrf.mxu0 }
 0x410   :  { %10222 = vmatmul.msk.f32.vlgmr.msrb.gmra.mxu1 %vm109_vm0, %v13404_v43 }
 0x411   :  { %10223 = vmatmul.msk.f32.vlgmr.msrb.gmra.mxu2 %vm109_vm0, %v13404_v43  ;;  %10224 = vmatmul.msk.f32.vlgmr.msrb.gmra.mxu3 %vm109_vm0, %v13404_v43 }
 0x412   :  { %10225 = vmatmul.msk.f32.vlgmr.msra.gmra.mxu0 %vm109_vm0, %v13404_v43  ;;  %4342 = vmatpush.msrb.mxu1 %v4067_v1  ;;  %v4440_v1 = vsel %vm679_vm4, %v10689_v6, %v10693_v36 }
 0x413   :  { %4362 = vmatpush.msrb.mxu2 %v4068_v47  ;;  %4382 = vmatpush.msrb.mxu3 %v4054_v58  ;;  %v10697_v58 = vpop.permute.xlu0 %10696  ;;  %v4441_v47 = vsel %vm679_vm4, %v10693_v36, %v10694_v54 }
 0x414   :  { %4481 = vmatpush.msra.mxu0 %v4434_v44  ;;  %v13439_v35 = vpop.f32.mrf.mxu2  ;;  %v13441_v2 = vpop.f32.mrf.mxu3  ;;  %v10698_v38 = vunpack.i.l.bf16 %v10697_v58 }
 0x415   :  { %v13443_v27 = vpop.f32.mrf.mxu1 }
 0x416   :  { %v4442_v44 = vsel %vm679_vm4, %v10694_v54, %v10698_v38 }
 0x417   :  { %v13445_v34 = vpop.f32.mrf.mxu0 }
 0x418   :  { %15903 = vst [vmem:[#allocation28_spill] sm:$0xff] %v13445_v34  ;;  %10226 = vmatmul.msk.f32.vlgmr.msra.gmra.mxu1 %vm109_vm0, %v13404_v43 }
 0x419   :  { %10227 = vmatmul.msk.f32.vlgmr.msra.gmra.mxu2 %vm109_vm0, %v13404_v43  ;;  %10228 = vmatmul.msk.f32.vlgmr.msra.gmra.mxu3 %vm109_vm0, %v13404_v43 }
 0x41a   :  { %10229 = vmatmul.msk.f32.vlgmr.msrb.gmra.mxu0 %vm109_vm0, %v13404_v43  ;;  %4501 = vmatpush.msra.mxu1 %v4435_v30 }
 0x41b   :  { %4521 = vmatpush.msra.mxu2 %v4436_v63  ;;  %4541 = vmatpush.msra.mxu3 %v4437_v57  ;;  %v10704_v63 = vunpack.i.h.bf16 %v10702_v60  ;;  %v10703_v57 = vunpack.i.l.bf16 %v10702_v60 }
 0x41c   :  { %4561 = vmatpush.msrb.mxu0 %v4438_v49  ;;  %v13459_v39 = vpop.f32.mrf.mxu2  ;;  %v13461_v50 = vpop.f32.mrf.mxu3  ;;  %v10708_v49 = vunpack.i.l.bf16 %v10707_v62 }
 0x41d   :  { %15904 = vst [vmem:[#allocation26_spill] sm:$0xff] %v13461_v50  ;;  %v13463_v8 = vpop.f32.mrf.mxu1  ;;  %v4445_v54 = vsel %vm679_vm4, %v10703_v57, %v10704_v63 }
 0x41e   :  { %v4446_v36 = vsel %vm679_vm4, %v10704_v63, %v10708_v49 }
 0x41f   :  { %v13465_v23 = vpop.f32.mrf.mxu0 }
 0x420   :  { %15905 = vst [vmem:[#allocation30_spill] sm:$0xff] %v13465_v23  ;;  %10230 = vmatmul.msk.f32.vlgmr.msrb.gmra.mxu1 %vm109_vm0, %v13404_v43 }
 0x421   :  { %10231 = vmatmul.msk.f32.vlgmr.msrb.gmra.mxu2 %vm109_vm0, %v13404_v43  ;;  %10232 = vmatmul.msk.f32.vlgmr.msrb.gmra.mxu3 %vm109_vm0, %v13404_v43  ;;  %v10699_v43 = vunpack.i.h.bf16 %v10697_v58 }
 0x422   :  { %10234 = vmatmul.msk.f32.vlgmr.msra.gmra.mxu0 %vm109_vm0, %v10233_v18  ;;  %4581 = vmatpush.msrb.mxu1 %v4439_v29 }
 0x423   :  { %4601 = vmatpush.msrb.mxu2 %v4440_v1  ;;  %4621 = vmatpush.msrb.mxu3 %v4441_v47  ;;  %v4443_v6 = vsel %vm679_vm4, %v10698_v38, %v10699_v43  ;;  %v4444_v58 = vsel %vm679_vm4, %v10699_v43, %v10703_v57  ;;  %v10709_v47 = vunpack.i.h.bf16 %v10707_v62 }
 0x424   :  { %4641 = vmatpush.msra.mxu0 %v4442_v44  ;;  %v13481_v37 = vpop.f32.mrf.mxu2  ;;  %v13483_v32 = vpop.f32.mrf.mxu3 }
 0x425   :  { %15906 = vst [vmem:[#allocation31_spill] sm:$0xff] %v13481_v37  ;;  %v13485_v30 = vpop.f32.mrf.mxu1  ;;  %v4447_v44 = vsel %vm679_vm4, %v10708_v49, %v10709_v47 }
 0x426   :  { %15907 = vst [vmem:[#allocation38_spill] sm:$0xff] %v13483_v32 }
 0x427   :  { %15908 = vst [vmem:[#allocation37_spill] sm:$0xff] %v13485_v30  ;;  %v13487_v52 = vpop.f32.mrf.mxu0 }
 0x428   :  { %10235 = vmatmul.msk.f32.vlgmr.msra.gmra.mxu1 %vm109_vm0, %v10233_v18 }
 0x429   :  { %10236 = vmatmul.msk.f32.vlgmr.msra.gmra.mxu2 %vm109_vm0, %v10233_v18  ;;  %10237 = vmatmul.msk.f32.vlgmr.msra.gmra.mxu3 %vm109_vm0, %v10233_v18 }
 0x42a   :  { %10238 = vmatmul.msk.f32.vlgmr.msrb.gmra.mxu0 %vm109_vm0, %v10233_v18  ;;  %4661 = vmatpush.msra.mxu1 %v4443_v6 }
 0x42b   :  { %4681 = vmatpush.msra.mxu2 %v4444_v58  ;;  %4701 = vmatpush.msra.mxu3 %v4445_v54 }
 0x42c   :  { %4721 = vmatpush.msrb.mxu0 %v4446_v36  ;;  %v13497_v29 = vpop.f32.mrf.mxu2  ;;  %v13499_v1 = vpop.f32.mrf.mxu3 }
 0x42d   :  { %15909 = vst [vmem:[#allocation45_spill] sm:$0xff] %v13497_v29  ;;  %v13501_v60 = vpop.f32.mrf.mxu1 }
 0x42e   :  { %15910 = vst [vmem:[#allocation43_spill] sm:$0xff] %v13499_v1 }
 0x42f   :  { %v13503_v38 = vpop.f32.mrf.mxu0 }
 0x430   :  { %10239 = vmatmul.msk.f32.vlgmr.msrb.gmra.mxu1 %vm109_vm0, %v10233_v18 }
 0x431   :  { %10240 = vmatmul.msk.f32.vlgmr.msrb.gmra.mxu2 %vm109_vm0, %v10233_v18  ;;  %10241 = vmatmul.msk.f32.vlgmr.msrb.gmra.mxu3 %vm109_vm0, %v10233_v18 }
 0x432   :  { %10242 = vmatmul.msk.f32.vlgmr.msra.gmra.mxu0 %vm109_vm0, %v10233_v18  ;;  %4741 = vmatpush.msrb.mxu1 %v4447_v44 }
 0x433   :  { %4761 = vmatpush.msrb.mxu2 %v10709_v47 }
 0x434   :  { %v13510_v43 = vpop.f32.mrf.mxu2  ;;  %v13512_v63 = vpop.f32.mrf.mxu3 }
 0x435   :  { %v13514_v62 = vpop.f32.mrf.mxu1 }
 0x436   :  { %15911 = vst [vmem:[#allocation47_spill] sm:$0xff] %v13514_v62 }
 0x437   :  { %v13516_v57 = vpop.f32.mrf.mxu0 }
 0x438   :  { %15912 = vst [vmem:[#allocation48_spill] sm:$0xff] %v13516_v57  ;;  %10243 = vmatmul.msk.f32.vlgmr.msra.gmra.mxu1 %vm109_vm0, %v10233_v18 }
 0x439   :  { %10244 = vmatmul.msk.f32.vlgmr.msra.gmra.mxu2 %vm109_vm0, %v10233_v18  ;;  %10245 = vmatmul.msk.f32.vlgmr.msra.gmra.mxu3 %vm109_vm0, %v10233_v18 }
 0x43a   :  { %10246 = vmatmul.msk.f32.vlgmr.msrb.gmra.mxu0 %vm109_vm0, %v10233_v18 }
 0x43c   :  { %v13522_v49 = vpop.f32.mrf.mxu2  ;;  %v13524_v6 = vpop.f32.mrf.mxu3 }
 0x43d   :  { %15913 = vst [vmem:[#allocation51_spill] sm:$0xff] %v13522_v49  ;;  %v13526_v58 = vpop.f32.mrf.mxu1 }
 0x43e   :  { %15914 = vst [vmem:[#allocation53_spill] sm:$0xff] %v13524_v6 }
 0x43f   :  { %15915 = vst [vmem:[#allocation20_spill] sm:$0xff] %v13526_v58  ;;  %v13528_v54 = vpop.f32.mrf.mxu0 }
 0x440   :  { %15916 = vst [vmem:[#allocation14_spill] sm:$0xff] %v13528_v54  ;;  %10247 = vmatmul.msk.f32.vlgmr.msrb.gmra.mxu1 %vm109_vm0, %v10233_v18 }
 0x441   :  { %10248 = vmatmul.msk.f32.vlgmr.msrb.gmra.mxu2 %vm109_vm0, %v10233_v18 }
 0x444   :  { %v13532_v36 = vpop.f32.mrf.mxu2  ;;  %v13534_v47 = vpop.f32.mrf.mxu3 }
 0x445   :  { %15917 = vst [vmem:[#allocation23_spill] sm:$0xff] %v13532_v36  ;;  %v13536_v44 = vpop.f32.mrf.mxu1 }
 0x446   :  { %15918 = vst [vmem:[#allocation21_spill] sm:$0xff] %v13534_v47 }
 0x447   :  { %15919 = vst [vmem:[#allocation25_spill] sm:$0xff] %v13536_v44  ;;  %v3365_v1 = vpop.f32.mrf.mxu0 }
 0x44c   :  { %v13538_v59 = vpop.f32.mrf.mxu2  ;;  %v3345_v29 = vpop.f32.mrf.mxu3 }
 0x44d   :  { %15920 = vst [vmem:[#allocation44_spill] sm:$0xff] %v13538_v59  ;;  %v13540_v32 = vpop.f32.mrf.mxu1 }
 0x44e   :  { %15921 = vst [vmem:[#allocation52_spill] sm:$0xff] %v13540_v32 }
 0x44f   :  { %v13542_v6 = vpop.f32.mrf.mxu0 }
 0x450   :  { %15922 = vst [vmem:[#allocation59_spill] sm:$0xff] %v13542_v6 }
 0x454   :  { %v13544_v58 = vpop.f32.mrf.mxu2  ;;  %v13546_v54 = vpop.f32.mrf.mxu3 }
 0x455   :  { %15923 = vst [vmem:[#allocation24_spill] sm:$0xff] %v13544_v58  ;;  %v13548_v49 = vpop.f32.mrf.mxu1 }
 0x456   :  { %15924 = vst [vmem:[#allocation15_spill] sm:$0xff] %v13548_v49 }
 0x457   :  { %v13550_v18 = vpop.f32.mrf.mxu0 }
 0x458   :  { %15925 = vst [vmem:[#allocation36_spill] sm:$0xff] %v13550_v18 }
 0x45c   :  { %v13552_v36 = vpop.f32.mrf.mxu2  ;;  %v13554_v47 = vpop.f32.mrf.mxu3 }
 0x45d   :  { %15926 = vst [vmem:[#allocation41_spill] sm:$0xff] %v13552_v36  ;;  %v13556_v44 = vpop.f32.mrf.mxu1 }
 0x45e   :  { %15927 = vst [vmem:[#allocation16_spill] sm:$0xff] %v13554_v47 }
 0x45f   :  { %15928 = vst [vmem:[#allocation35_spill] sm:$0xff] %v13556_v44  ;;  %v13558_v59 = vpop.f32.mrf.mxu0 }
 0x460   :  { %15929 = vst [vmem:[#allocation49_spill] sm:$0xff] %v13558_v59 }
 0x464   :  { %v13560_v30 = vpop.f32.mrf.mxu2  ;;  %v13562_v37 = vpop.f32.mrf.mxu3 }
 0x465   :  { %15930 = vst [vmem:[#allocation40_spill] sm:$0xff] %v13560_v30  ;;  %v13564_v23 = vpop.f32.mrf.mxu1 }
 0x466   :  { %15931 = vst [vmem:[#allocation57_spill] sm:$0xff] %v13562_v37 }
 0x467   :  { %15932 = vst [vmem:[#allocation56_spill] sm:$0xff] %v13564_v23  ;;  %v13566_v50 = vpop.f32.mrf.mxu0 }
 0x468   :  { %15933 = vst [vmem:[#allocation58_spill] sm:$0xff] %v13566_v50 }
 0x46c   :  { %v3725_v6 = vpop.f32.mrf.mxu2  ;;  %v3745_v49 = vpop.f32.mrf.mxu3 }
 0x46d   :  { %v13568_v57 = vpop.f32.mrf.mxu1 }
 0x46e   :  { %15934 = vst [vmem:[#allocation64_spill] sm:$0xff] %v13568_v57 }
 0x46f   :  { %v13570_v18 = vpop.f32.mrf.mxu0 }
 0x470   :  { %15935 = vst [vmem:[#allocation33_spill] sm:$0xff] %v13570_v18 }
 0x474   :  { %v3805_v36 = vpop.f32.mrf.mxu2  ;;  %v13572_v47 = vpop.f32.mrf.mxu3 }
 0x475   :  { %15936 = vst [vmem:[#allocation17_spill] sm:$0xff] %v13572_v47  ;;  %v13574_v44 = vpop.f32.mrf.mxu1 }
 0x476   :  { %15937 = vst [vmem:[#allocation39_spill] sm:$0xff] %v13574_v44 }
 0x477   :  { %v13576_v59 = vpop.f32.mrf.mxu0 }
 0x478   :  { %15938 = vst [vmem:[#allocation42_spill] sm:$0xff] %v13576_v59 }
 0x47c   :  { %v13578_v30 = vpop.f32.mrf.mxu2  ;;  %v13580_v37 = vpop.f32.mrf.mxu3 }
 0x47d   :  { %15939 = vst [vmem:[#allocation18_spill] sm:$0xff] %v13578_v30  ;;  %v13582_v23 = vpop.f32.mrf.mxu1 }
 0x47e   :  { %15940 = vst [vmem:[#allocation50_spill] sm:$0xff] %v13580_v37 }
 0x47f   :  { %15941 = vst [vmem:[#allocation54_spill] sm:$0xff] %v13582_v23  ;;  %v13584_v50 = vpop.f32.mrf.mxu0 }
 0x480   :  { %15942 = vst [vmem:[#allocation19_spill] sm:$0xff] %v13584_v50  ;;  %v2929_v50 = vadd.f32 %v13424_v4, %v13351_v31  ;;  %v1907_v31 = vadd.f32 %v13265_v0, %v13184_v15  ;;  %v2127_v15 = vadd.f32 %v13312_v41, %v13245_v40 }
 0x484   :  { %v13586_v58 = vpop.f32.mrf.mxu2  ;;  %v13588_v57 = vpop.f32.mrf.mxu3 }
 0x485   :  { %15943 = vst [vmem:[#allocation46_spill] sm:$0xff] %v13586_v58  ;;  %v4104_v18 = vpop.f32.mrf.mxu1 }
 0x486   :  { %15944 = vst [vmem:[#allocation55_spill] sm:$0xff] %v13588_v57  ;;  %v1887_v57 = vadd.f32 %v13247_v17, %v13176_v11  ;;  %v2933_v11 = vadd.f32 %v13443_v27, %v13373_v61  ;;  %v13633_v27 = vpop.permute.xlu0 %4784 }
 0x487   :  { %v13590_v32 = vpop.f32.mrf.mxu0 }
 0x488   :  { %15945 = vst [vmem:[#allocation29_spill] sm:$0xff] %v13590_v32  ;;  %v3249_v32 = vadd.f32 %v13487_v52, %v2929_v50  ;;  %v3253_v0 = vadd.f32 %v13503_v38, %v2933_v11  ;;  %v15960_v11 = vld [vmem:[#allocation58_spill] sm:$0xff] }
 0x48a   :  { %v3628_v22 = vadd.f32 %v3345_v29, %v3249_v32  ;;  %v3632_v40 = vadd.f32 %v13546_v54, %v3253_v0  ;;  %v15957_v54 = vld [vmem:[#allocation59_spill] sm:$0xff] }
 0x48c   :  { %v4124_v47 = vpop.f32.mrf.mxu2  ;;  %v13592_v34 = vpop.f32.mrf.mxu3 }
 0x48d   :  { %15946 = vst [vmem:[#allocation63_spill] sm:$0xff] %v13592_v34  ;;  %v4184_v44 = vpop.f32.mrf.mxu1  ;;  %v2515_v34 = vadd.f32 %v13349_v21, %v1887_v57  ;;  %v1927_v21 = vadd.f32 %v13280_v16, %v13188_v33  ;;  %v13637_v33 = vadd.f32 %v13332_v55, %v13261_v20  ;;  %v2521_v16 = vadd.f32 %v13377_v13, %v13303_v53  ;;  %v15953_v57 = vld [vmem:[#allocation28_spill] sm:$0xff] }
 0x48f   :  { %v13594_v59 = vpop.f32.mrf.mxu0 }
 0x490   :  { %15947 = vst [vmem:[#allocation61_spill] sm:$0xff] %v13594_v59  ;;  %v2930_v59 = vadd.f32 %v13439_v35, %v2515_v34  ;;  %v2047_v35 = vadd.f32 %v13286_v5, %v13222_v12  ;;  %v2067_v34 = vadd.f32 %v13305_v26, %v13241_v51  ;;  %v2517_v12 = vadd.f32 %v13353_v56, %v1927_v21 }
 0x491   :  { %v4012_v56 = vadd.f32 %v3805_v36, %v3632_v40 }
 0x492   :  { %v3250_v17 = vadd.f32 %v13501_v60, %v2930_v59  ;;  %v13647_v26 = vadd.f32 %v13379_v7, %v2067_v34  ;;  %v2523_v20 = vadd.f32 %v13395_v42, %v2047_v35  ;;  %v2932_v41 = vadd.f32 %v13426_v14, %v2517_v12  ;;  %v15952_v60 = vld [vmem:[#allocation32_spill] sm:$0xff]  ;;  %v15963_v34 = vld [vmem:[#allocation17_spill] sm:$0xff] }
 0x493   :  { %v2525_v7 = vadd.f32 %v13399_v46, %v13327_v9  ;;  %v2526_v42 = vadd.f32 %v13420_v24, %v13330_v19  ;;  %v4391_v29 = vadd.f32 %v4184_v44, %v4012_v56  ;;  %v2527_v38 = vadd.f32 %v15952_v60, %v2127_v15  ;;  %v15954_v46 = vld [vmem:[#allocation52_spill] sm:$0xff] }
 0x494   :  { %v13596_v30 = vpop.f32.mrf.mxu2  ;;  %v13598_v37 = vpop.f32.mrf.mxu3  ;;  %v3629_v61 = vadd.f32 %v3365_v1, %v3250_v17  ;;  %v2936_v9 = vadd.f32 %v15953_v57, %v2521_v16  ;;  %v15955_v19 = vld [vmem:[#allocation24_spill] sm:$0xff]  ;;  %v15966_v16 = vld [vmem:[#allocation29_spill] sm:$0xff]  ;;  %v15967_v40 = vld [vmem:[#allocation63_spill] sm:$0xff] }
 0x495   :  { %15948 = vst [vmem:[#allocation62_spill] sm:$0xff] %v13596_v30  ;;  %v13600_v23 = vpop.f32.mrf.mxu1  ;;  %v4008_v30 = vadd.f32 %v3725_v6, %v3628_v22  ;;  %v1987_v22 = vadd.f32 %v13284_v48, %v13211_v45  ;;  %v2516_v45 = vadd.f32 %v13334_v28, %v1907_v31  ;;  %v2934_v28 = vadd.f32 %v13459_v39, %v13375_v10  ;;  %v15951_v39 = vld [vmem:[#allocation47_spill] sm:$0xff]  ;;  %v15956_v6 = vld [vmem:[#allocation48_spill] sm:$0xff] }
 0x496   :  { %15949 = vst [vmem:[#allocation65_spill] sm:$0xff] %v13598_v37  ;;  %v4009_v48 = vadd.f32 %v3745_v49, %v3629_v61  ;;  %v2937_v10 = vadd.f32 %v13463_v8, %v13397_v3  ;;  %v15964_v61 = vld [vmem:[#allocation31_spill] sm:$0xff] }
 0x497   :  { %15950 = vst [vmem:[#allocation34_spill] sm:$0xff] %v13600_v23  ;;  %v13604_v58 = vpop.f32.mrf.mxu0  ;;  %v4387_v4 = vadd.f32 %v4104_v18, %v4008_v30  ;;  %v2520_v51 = vadd.f32 %v13355_v25, %v1987_v22  ;;  %v2931_v55 = vadd.f32 %v13441_v2, %v2516_v45  ;;  %v3252_v2 = vadd.f32 %v13512_v63, %v2932_v41  ;;  %v15959_v18 = vld [vmem:[#allocation30_spill] sm:$0xff]  ;;  %v15962_v22 = vld [vmem:[#allocation16_spill] sm:$0xff]  ;;  %v15965_v45 = vld [vmem:[#allocation37_spill] sm:$0xff] }
 0x498   :  { %v4388_v25 = vadd.f32 %v4124_v47, %v4009_v48  ;;  %v3254_v52 = vadd.f32 %v15951_v39, %v2934_v28  ;;  %v3257_v63 = vadd.f32 %v15956_v6, %v2937_v10  ;;  %v15958_v47 = vld [vmem:[#allocation26_spill] sm:$0xff]  ;;  %v2940_v31 = vadd.f32 %v15959_v18, %v2525_v7  ;;  %v15971_v10 = vld [vmem:[#allocation53_spill] sm:$0xff] }
 0x499   :  { %v3251_v14 = vadd.f32 %v13510_v43, %v2931_v55  ;;  %v3631_v24 = vadd.f32 %v15955_v19, %v3252_v2  ;;  %v2935_v44 = vadd.f32 %v15958_v47, %v2520_v51  ;;  %v2941_v12 = vadd.f32 %v15965_v45, %v2526_v42  ;;  %v15970_v2 = vld [vmem:[#allocation51_spill] sm:$0xff]  ;;  %v15975_v19 = vld [vmem:[#allocation41_spill] sm:$0xff] }
 0x49a   :  { %v3633_v36 = vadd.f32 %v15957_v54, %v3254_v52  ;;  %v3636_v35 = vadd.f32 %v15962_v22, %v3257_v63  ;;  %v15976_v63 = vld [vmem:[#allocation14_spill] sm:$0xff]  ;;  %v15980_v22 = vld [vmem:[#allocation57_spill] sm:$0xff] }
 0x49b   :  { %v3630_v49 = vadd.f32 %v15954_v46, %v3251_v14  ;;  %v3261_v54 = vadd.f32 %v15976_v63, %v2941_v12  ;;  %v15983_v12 = vld [vmem:[#allocation45_spill] sm:$0xff] }
 0x49c   :  { %v13611_v62 = vpop.f32.mrf.mxu2  ;;  %v13613_v37 = vpop.f32.mrf.mxu3  ;;  %v15969_v55 = vld [vmem:[#allocation62_spill] sm:$0xff] }
 0x49d   :  { %v13615_v23 = vpop.f32.mrf.mxu1  ;;  %v4010_v17 = vadd.f32 %v15960_v11, %v3630_v49  ;;  %v15979_v11 = vld [vmem:[#allocation39_spill] sm:$0xff] }
 0x49e   :  { %v15973_v60 = vld [vmem:[#allocation34_spill] sm:$0xff] }
 0x49f   :  { %v4483_v50 = vpop.f32.mrf.mxu0  ;;  %v4389_v48 = vadd.f32 %v15967_v40, %v4010_v17 }
 0x4a0   :  { %v4766_v59 = vadd.f32 %v4483_v50, %v4387_v4  ;;  %v15961_v4 = vld [vmem:[#allocation64_spill] sm:$0xff]  ;;  %v4013_v50 = vadd.f32 %v15963_v34, %v3633_v36  ;;  %v15981_v34 = vld [vmem:[#allocation50_spill] sm:$0xff] }
 0x4a1   :  { %v4011_v21 = vadd.f32 %v15961_v4, %v3631_v24  ;;  %v15977_v36 = vld [vmem:[#allocation36_spill] sm:$0xff] }
 0x4a2   :  { %v4787_v5 = vadd.f32 %v13633_v27, %v4766_v59  ;;  %v2938_v59 = vadd.f32 %v15964_v61, %v2523_v20  ;;  %v4392_v28 = vadd.f32 %v15969_v55, %v4013_v50  ;;  %v3256_v20 = vadd.f32 %v15971_v10, %v2936_v9 }
 0x4a3   :  { %v4390_v51 = vadd.f32 %v15966_v16, %v4011_v21  ;;  %v2942_v16 = vadd.f32 %v15983_v12, %v2527_v38 }
 0x4a4   :  { %v4802_v53 = vmax.f32 %v4787_v5, 0.0  ;;  %v13654_v13 = vpop.f32.mrf.mxu2  ;;  %v13656_v32 = vpop.f32.mrf.mxu3  ;;  %v15968_v5 = vld [vmem:[#allocation18_spill] sm:$0xff]  ;;  %v3635_v24 = vadd.f32 %v15975_v19, %v3256_v20 }
 0x4a5   :  { %v4503_v30 = vpop.f32.mrf.mxu1  ;;  %v4016_v41 = vadd.f32 %v15968_v5, %v3636_v35  ;;  %v3640_v35 = vadd.f32 %v15980_v22, %v3261_v54  ;;  %v15994_v54 = vld [vmem:[#allocation42_spill] sm:$0xff] }
 0x4a6   :  { %4817 = vst [vmem:[#allocation3 + $0x8] sm:$0xff] %v4802_v53  ;;  %v4767_v1 = vadd.f32 %v4503_v30, %v4388_v25  ;;  %v3255_v30 = vadd.f32 %v15970_v2, %v2935_v44  ;;  %v15978_v44 = vld [vmem:[#allocation33_spill] sm:$0xff]  ;;  %v4015_v17 = vadd.f32 %v15979_v11, %v3635_v24 }
 0x4a7   :  { %v4563_v43 = vpop.f32.mrf.mxu0  ;;  %v4395_v57 = vadd.f32 %v15973_v60, %v4016_v41  ;;  %v15986_v41 = vld [vmem:[#allocation46_spill] sm:$0xff]  ;;  %v15990_v60 = vld [vmem:[#allocation35_spill] sm:$0xff] }
 0x4a8   :  { %v4788_v3 = vadd.f32 %v13633_v27, %v4767_v1  ;;  %v4770_v8 = vadd.f32 %v4563_v43, %v4391_v29  ;;  %v15972_v29 = vld [vmem:[#allocation20_spill] sm:$0xff]  ;;  %v4020_v55 = vadd.f32 %v15986_v41, %v3640_v35 }
 0x4a9   :  { %v3258_v1 = vadd.f32 %v15972_v29, %v2938_v59  ;;  %v15982_v59 = vld [vmem:[#allocation38_spill] sm:$0xff] }
 0x4aa   :  { %v4803_v15 = vmax.f32 %v4788_v3, 0.0  ;;  %v13681_v0 = vadd.f32 %v13633_v27, %v4770_v8  ;;  %v2939_v45 = vadd.f32 %v15982_v59, %v13647_v26  ;;  %v15988_v26 = vld [vmem:[#allocation21_spill] sm:$0xff] }
 0x4ab   :  { %v3637_v3 = vadd.f32 %v15977_v36, %v3258_v1  ;;  %v3260_v20 = vadd.f32 %v15988_v26, %v2940_v31  ;;  %v4399_v1 = vadd.f32 %v13615_v23, %v4020_v55  ;;  %v15992_v23 = vld [vmem:[#allocation22_spill] sm:$0xff] }
 0x4ac   :  { %4818 = vst [vmem:[#allocation3 + $0x10] sm:$0xff] %v4803_v15  ;;  %v4806_v56 = vmax.f32 %v13681_v0, 0.0  ;;  %v4523_v25 = vpop.f32.mrf.mxu2  ;;  %v4543_v7 = vpop.f32.mrf.mxu3  ;;  %v10720_v14 = vpack.i.bf16 %v4803_v15, %v4802_v53  ;;  %v15974_v53 = vld [vmem:[#allocation15_spill] sm:$0xff]  ;;  %v2528_v24 = vadd.f32 %v15992_v23, %v13637_v33  ;;  %v5140_v23 = vld [vmem:[#allocation11 + $0x1c0] sm:$0xff] }
 0x4ad   :  { %v4768_v39 = vadd.f32 %v4523_v25, %v4389_v48  ;;  %v4769_v42 = vadd.f32 %v4543_v7, %v4390_v51  ;;  %v4583_v52 = vpop.f32.mrf.mxu1  ;;  %v3634_v49 = vadd.f32 %v15974_v53, %v3255_v30  ;;  %v4017_v50 = vadd.f32 %v15981_v34, %v3637_v3  ;;  %v15984_v51 = vld [vmem:[#allocation61_spill] sm:$0xff]  ;;  %v15987_v30 = vld [vmem:[#allocation23_spill] sm:$0xff]  ;;  %v15995_v3 = vld [vmem:[#allocation54_spill] sm:$0xff] }
 0x4ae   :  { %4821 = vst [vmem:[#allocation3 + $0x28] sm:$0xff] %v4806_v56  ;;  %v4771_v46 = vadd.f32 %v4583_v52, %v4392_v28  ;;  %10721 = vrot.lane.b32.xlu0 %v10720_v14, %s11438_s24  ;;  %10716 = vrot.lane.b32.xlu2 %v10720_v14, %s11437_s21  ;;  %v4394_v40 = vadd.f32 %v15984_v51, %v4015_v17  ;;  %v15985_v48 = vld [vmem:[#allocation65_spill] sm:$0xff] }
 0x4af   :  { %v4789_v9 = vadd.f32 %v13633_v27, %v4768_v39  ;;  %v4790_v43 = vadd.f32 %v13633_v27, %v4769_v42  ;;  %v4643_v6 = vpop.f32.mrf.mxu0  ;;  %10711 = vrot.lane.b32.xlu1 %v10720_v14, %s11435_s1  ;;  %v4014_v18 = vadd.f32 %v15978_v44, %v3634_v49  ;;  %v4396_v28 = vadd.f32 %v13611_v62, %v4017_v50  ;;  %v15989_v52 = vld [vmem:[#allocation25_spill] sm:$0xff] }
 0x4b0   :  { %v4792_v8 = vadd.f32 %v13633_v27, %v4771_v46  ;;  %v4774_v47 = vadd.f32 %v4643_v6, %v4395_v57  ;;  %v3259_v10 = vadd.f32 %v15987_v30, %v2939_v45  ;;  %v3262_v29 = vadd.f32 %v15989_v52, %v2942_v16  ;;  %v15991_v46 = vld [vmem:[#allocation40_spill] sm:$0xff] }
 0x4b1   :  { %v4804_v4 = vmax.f32 %v4789_v9, 0.0  ;;  %v4805_v21 = vmax.f32 %v4790_v43, 0.0  ;;  %v4393_v5 = vadd.f32 %v15985_v48, %v4014_v18  ;;  %v3639_v31 = vadd.f32 %v15991_v46, %v3260_v20  ;;  %v15993_v9 = vld [vmem:[#allocation49_spill] sm:$0xff]  ;;  %v15996_v18 = vld [vmem:[#allocation55_spill] sm:$0xff]  ;;  %v15998_v16 = vld [vmem:[#allocation44_spill] sm:$0xff] }
 0x4b2   :  { %v4807_v15 = vmax.f32 %v4792_v8, 0.0  ;;  %v13711_v61 = vadd.f32 %v13633_v27, %v4774_v47  ;;  %v3638_v57 = vadd.f32 %v15990_v60, %v3259_v10  ;;  %v3641_v43 = vadd.f32 %v15993_v9, %v3262_v29  ;;  %v5110_v29 = vld [vmem:[#allocation11 + $0xd0] sm:$0xff]  ;;  %v5144_v60 = vld [vmem:[#allocation11 + $0x1e0] sm:$0xff] }
 0x4b3   :  { %4819 = vst [vmem:[#allocation3 + $0x18] sm:$0xff] %v4804_v4  ;;  %v10735_v2 = vpack.i.bf16 %v4805_v21, %v4804_v4  ;;  %v4019_v8 = vadd.f32 %v15995_v3, %v3639_v31  ;;  %v5654_v31 = vunpack.c.l.bf16 %v5144_v60  ;;  %v5104_v3 = vld [vmem:[#allocation11 + $0xa0] sm:$0xff] }
 0x4b4   :  { %4820 = vst [vmem:[#allocation3 + $0x20] sm:$0xff] %v4805_v21  ;;  %v4810_v25 = vmax.f32 %v13711_v61, 0.0  ;;  %v4603_v7 = vpop.f32.mrf.mxu2  ;;  %v4623_v14 = vpop.f32.mrf.mxu3  ;;  %v4018_v36 = vadd.f32 %v15994_v54, %v3638_v57  ;;  %v4021_v11 = vadd.f32 %v15996_v18, %v3641_v43  ;;  %v15997_v21 = vld [vmem:[#allocation43_spill] sm:$0xff]  ;;  %v10750_v12 = vpack.i.bf16 %v4807_v15, %v4806_v56  ;;  %v5108_v57 = vld [vmem:[#allocation11 + $0xc0] sm:$0xff]  ;;  %v5138_v54 = vld [vmem:[#allocation11 + $0x1b0] sm:$0xff] }
 0x4b5   :  { %4822 = vst [vmem:[#allocation3 + $0x30] sm:$0xff] %v4807_v15  ;;  %v4772_v38 = vadd.f32 %v4603_v7, %v4393_v5  ;;  %v4773_v39 = vadd.f32 %v4623_v14, %v4394_v40  ;;  %v4663_v42 = vpop.f32.mrf.mxu1  ;;  %v2943_v22 = vadd.f32 %v15997_v21, %v2528_v24  ;;  %v4398_v33 = vadd.f32 %v13604_v58, %v4019_v8  ;;  %v15999_v58 = vld [vmem:[#allocation56_spill] sm:$0xff]  ;;  %v16000_v15 = vld [vmem:[#allocation19_spill] sm:$0xff]  ;;  %v5106_v24 = vld [vmem:[#allocation11 + $0xb0] sm:$0xff] }
 0x4b6   :  { %4825 = vst [vmem:[#allocation3 + $0x48] sm:$0xff] %v4810_v25  ;;  %v4775_v62 = vadd.f32 %v4663_v42, %v4396_v28  ;;  %10736 = vrot.lane.b32.xlu0 %v10735_v2, %s11438_s24  ;;  %10731 = vrot.lane.b32.xlu2 %v10735_v2, %s11437_s21  ;;  %v4397_v35 = vadd.f32 %v13613_v37, %v4018_v36  ;;  %v5210_v36 = vld [vmem:[#allocation11 + $0x3f0] sm:$0xff]  ;;  %v5208_v18 = vld [vmem:[#allocation11 + $0x3e0] sm:$0xff] }
 0x4b7   :  { %v4793_v53 = vadd.f32 %v13633_v27, %v4772_v38  ;;  %v4794_v49 = vadd.f32 %v13633_v27, %v4773_v39  ;;  %v4723_v19 = vpop.f32.mrf.mxu0  ;;  %10726 = vrot.lane.b32.xlu1 %v10735_v2, %s11435_s1  ;;  %v4400_v34 = vadd.f32 %v13654_v13, %v4021_v11  ;;  %v3263_v51 = vadd.f32 %v15998_v16, %v2943_v22  ;;  %v5114_v38 = vld [vmem:[#allocation11 + $0xf0] sm:$0xff]  ;;  %v5112_v39 = vld [vmem:[#allocation11 + $0xe0] sm:$0xff] }
 0x4b8   :  { %v4796_v6 = vadd.f32 %v13633_v27, %v4775_v62  ;;  %v4778_v63 = vadd.f32 %v4723_v19, %v4399_v1  ;;  %v5594_v42 = vunpack.c.l.bf16 %v5114_v38  ;;  %v5590_v52 = vunpack.c.l.bf16 %v5112_v39  ;;  %v5146_v1 = vld [vmem:[#allocation11 + $0x1f0] sm:$0xff]  ;;  %v5100_v16 = vld [vmem:[#allocation11 + $0x80] sm:$0xff] }
 0x4b9   :  { %v4808_v47 = vmax.f32 %v4793_v53, 0.0  ;;  %v4809_v44 = vmax.f32 %v4794_v49, 0.0  ;;  %v3642_v13 = vadd.f32 %v15999_v58, %v3263_v51  ;;  %v5178_v62 = vld [vmem:[#allocation11 + $0x2f0] sm:$0xff]  ;;  %v5176_v53 = vld [vmem:[#allocation11 + $0x2e0] sm:$0xff]  ;;  %v5578_v11 = vunpack.c.l.bf16 %v5106_v24 }
 0x4ba   :  { %v4811_v17 = vmax.f32 %v4796_v6, 0.0  ;;  %v13742_v4 = vadd.f32 %v13633_v27, %v4778_v63  ;;  %6437 = vmatpush.msrb.mxu3 %v5594_v42  ;;  %v5722_v46 = vunpack.c.l.bf16 %v5178_v62  ;;  %v5142_v49 = vld [vmem:[#allocation11 + $0x1d0] sm:$0xff]  ;;  %v5718_v9 = vunpack.c.l.bf16 %v5176_v53  ;;  %v5172_v63 = vld [vmem:[#allocation11 + $0x2c0] sm:$0xff] }
 0x4bb   :  { %4823 = vst [vmem:[#allocation3 + $0x38] sm:$0xff] %v4808_v47  ;;  %v4022_v55 = vadd.f32 %v16000_v15, %v3642_v13  ;;  %v10755_v10 = vpack.i.bf16 %v4809_v44, %v4808_v47  ;;  %v5174_v19 = vld [vmem:[#allocation11 + $0x2d0] sm:$0xff]  ;;  %v5650_v43 = vunpack.c.l.bf16 %v5142_v49  ;;  %v5582_v6 = vunpack.c.l.bf16 %v5108_v57  ;;  %v5204_v51 = vld [vmem:[#allocation11 + $0x3c0] sm:$0xff] }
 0x4bc   :  { %4824 = vst [vmem:[#allocation3 + $0x40] sm:$0xff] %v4809_v44  ;;  %v4814_v50 = vmax.f32 %v13742_v4, 0.0  ;;  %v4683_v59 = vpop.f32.mrf.mxu2  ;;  %v4703_v45 = vpop.f32.mrf.mxu3  ;;  %v10765_v26 = vpack.i.bf16 %v4811_v17, %v4810_v25  ;;  %v5658_v25 = vunpack.c.l.bf16 %v5146_v1  ;;  %6438 = vmatpush.msrb.mxu3 %v5590_v52  ;;  %6477 = vmatpush.msra.mxu1 %v5722_v46  ;;  %v5714_v8 = vunpack.c.l.bf16 %v5174_v19  ;;  %v5102_v21 = vld [vmem:[#allocation11 + $0x90] sm:$0xff]  ;;  %v5128_v46 = vld [vmem:[#allocation11 + $0x160] sm:$0xff] }
 0x4bd   :  { %4826 = vst [vmem:[#allocation3 + $0x50] sm:$0xff] %v4811_v17  ;;  %v4776_v40 = vadd.f32 %v4683_v59, %v4397_v35  ;;  %v4777_v48 = vadd.f32 %v4703_v45, %v4398_v33  ;;  %v4743_v5 = vpop.f32.mrf.mxu1  ;;  %v4401_v2 = vadd.f32 %v13656_v32, %v4022_v55  ;;  %v5646_v47 = vunpack.c.l.bf16 %v5140_v23  ;;  %v5206_v35 = vld [vmem:[#allocation11 + $0x3d0] sm:$0xff]  ;;  %v5136_v45 = vld [vmem:[#allocation11 + $0x1a0] sm:$0xff] }
 0x4be   :  { %4829 = vst [vmem:[#allocation3 + $0x68] sm:$0xff] %v4814_v50  ;;  %v4779_v37 = vadd.f32 %v4743_v5, %v4400_v34  ;;  %10751 = vrot.lane.b32.xlu0 %v10750_v12, %s11438_s24  ;;  %10746 = vrot.lane.b32.xlu2 %v10750_v12, %s11437_s21  ;;  %v5786_v44 = vunpack.c.l.bf16 %v5210_v36  ;;  %v5782_v17 = vunpack.c.l.bf16 %v5208_v18  ;;  %v5710_v22 = vunpack.c.l.bf16 %v5172_v63  ;;  %v5170_v59 = vld [vmem:[#allocation11 + $0x2b0] sm:$0xff]  ;;  %v5160_v23 = vld [vmem:[#allocation11 + $0x260] sm:$0xff] }
 0x4bf   :  { %v13758_v41 = vadd.f32 %v13633_v27, %v4776_v40  ;;  %v13761_v0 = vadd.f32 %v13633_v27, %v4777_v48  ;;  %10741 = vrot.lane.b32.xlu1 %v10750_v12, %s11435_s1  ;;  %6457 = vmatpush.msra.mxu0 %v5658_v25  ;;  %v5642_v33 = vunpack.c.l.bf16 %v5138_v54  ;;  %v5574_v34 = vunpack.c.l.bf16 %v5104_v3  ;;  %v5168_v48 = vld [vmem:[#allocation11 + $0x2a0] sm:$0xff]  ;;  %v5134_v5 = vld [vmem:[#allocation11 + $0x190] sm:$0xff] }
 0x4c0   :  { %v13765_v56 = vadd.f32 %v13633_v27, %v4779_v37  ;;  %6478 = vmatpush.msra.mxu1 %v5718_v9  ;;  %6497 = vmatpush.msra.mxu2 %v5786_v44  ;;  %v5778_v12 = vunpack.c.l.bf16 %v5206_v35  ;;  %v5570_v40 = vunpack.c.l.bf16 %v5102_v21  ;;  %v5098_v58 = vld [vmem:[#allocation11 + $0x70] sm:$0xff]  ;;  %v5706_v13 = vunpack.c.l.bf16 %v5170_v59  ;;  %v5092_v25 = vld [vmem:[#allocation11 + $0x40] sm:$0xff] }
 0x4c1   :  { %v4812_v28 = vmax.f32 %v13758_v41, 0.0  ;;  %v4813_v7 = vmax.f32 %v13761_v0, 0.0  ;;  %6458 = vmatpush.msra.mxu0 %v5654_v31  ;;  %v5638_v15 = vunpack.c.l.bf16 %v5136_v45  ;;  %v5202_v55 = vld [vmem:[#allocation11 + $0x3b0] sm:$0xff]  ;;  %v5096_v41 = vld [vmem:[#allocation11 + $0x60] sm:$0xff]  ;;  %v5634_v0 = vunpack.c.l.bf16 %v5134_v5 }
 0x4c2   :  { %v4815_v14 = vmax.f32 %v13765_v56, 0.0  ;;  %6479 = vmatpush.msra.mxu1 %v5714_v8  ;;  %6498 = vmatpush.msra.mxu2 %v5782_v17  ;;  %v5094_v38 = vld [vmem:[#allocation11 + $0x50] sm:$0xff]  ;;  %v5558_v52 = vunpack.c.l.bf16 %v5096_v41  ;;  %v5550_v19 = vunpack.c.l.bf16 %v5092_v25  ;;  %v5088_v4 = vld [vmem:[#allocation11 + $0x20] sm:$0xff]  ;;  %v5686_v56 = vunpack.c.l.bf16 %v5160_v23 }
 0x4c3   :  { %4827 = vst [vmem:[#allocation3 + $0x58] sm:$0xff] %v4812_v28  ;;  %6459 = vmatpush.msra.mxu0 %v5650_v43  ;;  %v10795_v37 = vpack.i.bf16 %v4813_v7, %v4812_v28  ;;  %v5200_v28 = vld [vmem:[#allocation11 + $0x3a0] sm:$0xff]  ;;  %v5130_v1 = vld [vmem:[#allocation11 + $0x170] sm:$0xff]  ;;  %v5554_v60 = vunpack.c.l.bf16 %v5094_v38  ;;  %v5542_v54 = vunpack.c.l.bf16 %v5088_v4 }
 0x4c4   :  { %4828 = vst [vmem:[#allocation3 + $0x60] sm:$0xff] %v4813_v7  ;;  %v4763_v30 = vpop.f32.mrf.mxu2  ;;  %6480 = vmatpush.msra.mxu1 %v5710_v22  ;;  %6499 = vmatpush.msra.mxu2 %v5778_v12  ;;  %v5562_v7 = vunpack.c.l.bf16 %v5098_v58  ;;  %v5198_v62 = vld [vmem:[#allocation11 + $0x390] sm:$0xff]  ;;  %v10810_v31 = vpack.i.bf16 %v4815_v14, %v4814_v50  ;;  %v5084_v44 = vld [vmem:[#allocation11] sm:$0xff] }
 0x4c5   :  { %4830 = vst [vmem:[#allocation3 + $0x70] sm:$0xff] %v4815_v14  ;;  %v4780_v20 = vadd.f32 %v4763_v30, %v4401_v2  ;;  %6460 = vmatpush.msra.mxu0 %v5646_v47  ;;  %v5566_v2 = vunpack.c.l.bf16 %v5100_v16  ;;  %v5166_v30 = vld [vmem:[#allocation11 + $0x290] sm:$0xff]  ;;  %v5762_v9 = vunpack.c.l.bf16 %v5198_v62  ;;  %v5124_v18 = vld [vmem:[#allocation11 + $0x140] sm:$0xff]  ;;  %v5534_v17 = vunpack.c.l.bf16 %v5084_v44 }
 0x4c6   :  { %10756 = vrot.lane.b32.xlu0 %v10755_v10, %s11435_s1  ;;  %10766 = vrot.lane.b32.xlu2 %v10765_v26, %s11437_s21  ;;  %v5698_v39 = vunpack.c.l.bf16 %v5166_v30  ;;  %v5162_v57 = vld [vmem:[#allocation11 + $0x270] sm:$0xff]  ;;  %v5614_v21 = vunpack.c.l.bf16 %v5124_v18  ;;  %v5120_v58 = vld [vmem:[#allocation11 + $0x120] sm:$0xff] }
 0x4c7   :  { %v4801_v32 = vadd.f32 %v13633_v27, %v4780_v20  ;;  %10761 = vrot.lane.b32.xlu1 %v10765_v26, %s11435_s1  ;;  %v5586_v27 = vunpack.c.l.bf16 %v5110_v29  ;;  %6461 = vmatpush.msra.mxu0 %v5642_v33  ;;  %v5702_v20 = vunpack.c.l.bf16 %v5168_v48  ;;  %v5164_v29 = vld [vmem:[#allocation11 + $0x280] sm:$0xff]  ;;  %v5090_v49 = vld [vmem:[#allocation11 + $0x30] sm:$0xff]  ;;  %v5690_v43 = vunpack.c.l.bf16 %v5162_v57 }
 0x4c8   :  { %6481 = vmatpush.msra.mxu1 %v5706_v13  ;;  %v5694_v53 = vunpack.c.l.bf16 %v5164_v29  ;;  %v5126_v24 = vld [vmem:[#allocation11 + $0x150] sm:$0xff]  ;;  %v5546_v50 = vunpack.c.l.bf16 %v5090_v49  ;;  %v5196_v33 = vld [vmem:[#allocation11 + $0x380] sm:$0xff] }
 0x4c9   :  { %v4816_v61 = vmax.f32 %v4801_v32, 0.0  ;;  %6439 = vmatpush.msrb.mxu3 %v5586_v27  ;;  %v5770_v32 = vunpack.c.l.bf16 %v5202_v55  ;;  %6462 = vmatpush.msra.mxu0 %v5638_v15  ;;  %v5626_v27 = vunpack.c.l.bf16 %v5130_v1  ;;  %v5086_v14 = vld [vmem:[#allocation11 + $0x10] sm:$0xff]  ;;  %v5618_v63 = vunpack.c.l.bf16 %v5126_v24  ;;  %v5152_v13 = vld [vmem:[#allocation11 + $0x220] sm:$0xff] }
 0x4ca   :  { %6482 = vmatpush.msra.mxu1 %v5702_v20  ;;  %v5158_v36 = vld [vmem:[#allocation11 + $0x250] sm:$0xff]  ;;  %v5538_v3 = vunpack.c.l.bf16 %v5086_v14  ;;  %v5758_v59 = vunpack.c.l.bf16 %v5196_v33  ;;  %v5192_v15 = vld [vmem:[#allocation11 + $0x360] sm:$0xff]  ;;  %v5606_v55 = vunpack.c.l.bf16 %v5120_v58 }
 0x4cb   :  { %4831 = vst.msk [vmem:[#allocation3 + $0x78] sm:$0xff] %vm109_vm0, %v4816_v61  ;;  %6440 = vmatpush.msrb.mxu3 %v5582_v6  ;;  %v5766_v61 = vunpack.c.l.bf16 %v5200_v28  ;;  %6463 = vmatpush.msra.mxu0 %v5634_v0  ;;  %v5622_v6 = vunpack.c.l.bf16 %v5128_v46  ;;  %v5682_v8 = vunpack.c.l.bf16 %v5158_v36  ;;  %v5242_v35 = vld [vmem:[#allocation11 + $0x4f0] sm:$0xff]  ;;  %v5750_v30 = vunpack.c.l.bf16 %v5192_v15  ;;  %v5236_v38 = vld [vmem:[#allocation11 + $0x4c0] sm:$0xff] }
 0x4cc   :  { %6483 = vmatpush.msra.mxu1 %v5698_v39  ;;  %v5850_v45 = vunpack.c.l.bf16 %v5242_v35  ;;  %v5154_v16 = vld [vmem:[#allocation11 + $0x230] sm:$0xff]  ;;  %v5116_v39 = vld [vmem:[#allocation11 + $0x100] sm:$0xff] }
 0x4cd   :  { %6441 = vmatpush.msrb.mxu3 %v5578_v11  ;;  %v5156_v11 = vld [vmem:[#allocation11 + $0x240] sm:$0xff]  ;;  %v5674_v48 = vunpack.c.l.bf16 %v5154_v16  ;;  %v5150_v41 = vld [vmem:[#allocation11 + $0x210] sm:$0xff]  ;;  %v5598_v29 = vunpack.c.l.bf16 %v5116_v39 }
 0x4ce   :  { %10776 = vrot.lane.b32.xlu0 %v10755_v10, %s11438_s24  ;;  %10771 = vrot.lane.b32.xlu2 %v10755_v10, %s11437_s21  ;;  %v5132_v10 = vld [vmem:[#allocation11 + $0x180] sm:$0xff]  ;;  %v5678_v22 = vunpack.c.l.bf16 %v5156_v11  ;;  %v5190_v28 = vld [vmem:[#allocation11 + $0x350] sm:$0xff] }
 0x4cf   :  { %10781 = vrot.lane.b32.xlu1 %v10765_v26, %s11438_s24  ;;  %6442 = vmatpush.msrb.mxu3 %v5574_v34  ;;  %v5774_v26 = vunpack.c.l.bf16 %v5204_v51  ;;  %v5630_v42 = vunpack.c.l.bf16 %v5132_v10  ;;  %v5122_v34 = vld [vmem:[#allocation11 + $0x130] sm:$0xff]  ;;  %v5232_v49 = vld [vmem:[#allocation11 + $0x4a0] sm:$0xff] }
 0x4d0   :  { %6484 = vmatpush.msra.mxu1 %v5694_v53  ;;  %v5610_v12 = vunpack.c.l.bf16 %v5122_v34  ;;  %v5194_v51 = vld [vmem:[#allocation11 + $0x370] sm:$0xff]  ;;  %v5830_v23 = vunpack.c.l.bf16 %v5232_v49  ;;  %v5272_v24 = vld [vmem:[#allocation11 + $0x5e0] sm:$0xff] }
 0x4d1   :  { %6443 = vmatpush.msrb.mxu3 %v5570_v40  ;;  %6500 = vmatpush.msra.mxu2 %v5774_v26  ;;  %v5240_v40 = vld [vmem:[#allocation11 + $0x4e0] sm:$0xff]  ;;  %v5754_v5 = vunpack.c.l.bf16 %v5194_v51  ;;  %v5238_v10 = vld [vmem:[#allocation11 + $0x4d0] sm:$0xff]  ;;  %v5910_v4 = vunpack.c.l.bf16 %v5272_v24 }
 0x4d2   :  { %6464 = vmatpush.msra.mxu0 %v5630_v42  ;;  %6485 = vmatpush.msra.mxu1 %v5690_v43  ;;  %v4846_v47 = vld [vmem:[#allocation3 + $0x78] sm:$0xff]  ;;  %v5118_v26 = vld [vmem:[#allocation11 + $0x110] sm:$0xff]  ;;  %v5842_v20 = vunpack.c.l.bf16 %v5238_v10 }
 0x4d3   :  { %6444 = vmatpush.msrb.mxu3 %v5566_v2  ;;  %6501 = vmatpush.msra.mxu2 %v5770_v32  ;;  %v5670_v2 = vunpack.c.l.bf16 %v5152_v13  ;;  %v5602_v0 = vunpack.c.l.bf16 %v5118_v26  ;;  %v5746_v32 = vunpack.c.l.bf16 %v5190_v28  ;;  %v5148_v42 = vld [vmem:[#allocation11 + $0x200] sm:$0xff]  ;;  %v5234_v25 = vld [vmem:[#allocation11 + $0x4b0] sm:$0xff] }
 0x4d4   :  { %6465 = vmatpush.msra.mxu0 %v5626_v27  ;;  %6486 = vmatpush.msra.mxu1 %v5686_v56  ;;  %v5662_v1 = vunpack.c.l.bf16 %v5148_v42  ;;  %v5274_v62 = vld [vmem:[#allocation11 + $0x5f0] sm:$0xff]  ;;  %v5834_v57 = vunpack.c.l.bf16 %v5234_v25  ;;  %v5184_v43 = vld [vmem:[#allocation11 + $0x320] sm:$0xff] }
 0x4d5   :  { %6445 = vmatpush.msrb.mxu3 %v5562_v7  ;;  %6502 = vmatpush.msra.mxu2 %v5766_v61  ;;  %v5666_v7 = vunpack.c.l.bf16 %v5150_v41  ;;  %v5188_v61 = vld [vmem:[#allocation11 + $0x340] sm:$0xff]  ;;  %v5914_v46 = vunpack.c.l.bf16 %v5274_v62  ;;  %v5186_v53 = vld [vmem:[#allocation11 + $0x330] sm:$0xff] }
 0x4d6   :  { %10796 = vrot.lane.b32.xlu0 %v10795_v37, %s11438_s24  ;;  %10791 = vrot.lane.b32.xlu2 %v10795_v37, %s11437_s21  ;;  %v5230_v56 = vld [vmem:[#allocation11 + $0x490] sm:$0xff]  ;;  %v5228_v44 = vld [vmem:[#allocation11 + $0x480] sm:$0xff] }
 0x4d7   :  { %10786 = vrot.lane.b32.xlu1 %v10795_v37, %s11435_s1  ;;  %6446 = vmatpush.msrb.mxu3 %v5558_v52  ;;  %v5846_v37 = vunpack.c.l.bf16 %v5240_v40  ;;  %v5838_v52 = vunpack.c.l.bf16 %v5236_v38  ;;  %v5270_v14 = vld [vmem:[#allocation11 + $0x5d0] sm:$0xff]  ;;  %v5268_v18 = vld [vmem:[#allocation11 + $0x5c0] sm:$0xff] }
 0x4d8   :  { %6503 = vmatpush.msra.mxu2 %v5762_v9  ;;  %6466 = vmatpush.msra.mxu0 %v5622_v6  ;;  %v5304_v9 = vld [vmem:[#allocation11 + $0x6e0] sm:$0xff]  ;;  %v5906_v36 = vunpack.c.l.bf16 %v5270_v14  ;;  %v5226_v35 = vld [vmem:[#allocation11 + $0x470] sm:$0xff] }
 0x4d9   :  { %6447 = vmatpush.msrb.mxu3 %v5554_v60  ;;  %6487 = vmatpush.msra.mxu1 %v5682_v8  ;;  %v5742_v60 = vunpack.c.l.bf16 %v5188_v61  ;;  %v5974_v6 = vunpack.c.l.bf16 %v5304_v9  ;;  %v5300_v11 = vld [vmem:[#allocation11 + $0x6c0] sm:$0xff]  ;;  %v5266_v34 = vld [vmem:[#allocation11 + $0x5b0] sm:$0xff] }
 0x4da   :  { %6467 = vmatpush.msra.mxu0 %v5618_v63  ;;  %6504 = vmatpush.msra.mxu2 %v5758_v59  ;;  %v5302_v63 = vld [vmem:[#allocation11 + $0x6d0] sm:$0xff]  ;;  %v5180_v33 = vld [vmem:[#allocation11 + $0x300] sm:$0xff] }
 0x4db   :  { %6448 = vmatpush.msrb.mxu3 %v5550_v19  ;;  %6488 = vmatpush.msra.mxu1 %v5678_v22  ;;  %v5738_v19 = vunpack.c.l.bf16 %v5186_v53  ;;  %v5970_v8 = vunpack.c.l.bf16 %v5302_v63  ;;  %v5966_v22 = vunpack.c.l.bf16 %v5300_v11  ;;  %v5726_v59 = vunpack.c.l.bf16 %v5180_v33  ;;  %v5298_v16 = vld [vmem:[#allocation11 + $0x6b0] sm:$0xff]  ;;  %v5224_v40 = vld [vmem:[#allocation11 + $0x460] sm:$0xff] }
 0x4dc   :  { %6468 = vmatpush.msra.mxu0 %v5614_v21  ;;  %6505 = vmatpush.msra.mxu2 %v5754_v5  ;;  %v5902_v21 = vunpack.c.l.bf16 %v5268_v18  ;;  %v5338_v51 = vld [vmem:[#allocation11 + $0x7f0] sm:$0xff]  ;;  %v5264_v58 = vld [vmem:[#allocation11 + $0x5a0] sm:$0xff] }
 0x4dd   :  { %6449 = vmatpush.msrb.mxu3 %v5546_v50  ;;  %6489 = vmatpush.msra.mxu1 %v5674_v48  ;;  %v5734_v50 = vunpack.c.l.bf16 %v5184_v43  ;;  %v5962_v48 = vunpack.c.l.bf16 %v5298_v16  ;;  %v6042_v5 = vunpack.c.l.bf16 %v5338_v51  ;;  %v5296_v13 = vld [vmem:[#allocation11 + $0x6a0] sm:$0xff]  ;;  %v5222_v10 = vld [vmem:[#allocation11 + $0x450] sm:$0xff] }
 0x4de   :  { %10811 = vrot.lane.b32.xlu0 %v10810_v31, %s11438_s24  ;;  %10806 = vrot.lane.b32.xlu2 %v10810_v31, %s11437_s21  ;;  %v5336_v15 = vld [vmem:[#allocation11 + $0x7e0] sm:$0xff]  ;;  %v5262_v26 = vld [vmem:[#allocation11 + $0x590] sm:$0xff] }
 0x4df   :  { %10801 = vrot.lane.b32.xlu1 %v10810_v31, %s11435_s1  ;;  %6450 = vmatpush.msrb.mxu3 %v5542_v54  ;;  %v5306_v31 = vld [vmem:[#allocation11 + $0x6f0] sm:$0xff]  ;;  %v5826_v54 = vunpack.c.l.bf16 %v5230_v56  ;;  %v5220_v38 = vld [vmem:[#allocation11 + $0x440] sm:$0xff] }
 0x4e0   :  { %6469 = vmatpush.msra.mxu0 %v5610_v12  ;;  %6490 = vmatpush.msra.mxu1 %v5670_v2  ;;  %v5978_v27 = vunpack.c.l.bf16 %v5306_v31  ;;  %v5898_v12 = vunpack.c.l.bf16 %v5266_v34  ;;  %v5958_v2 = vunpack.c.l.bf16 %v5296_v13  ;;  %v5294_v41 = vld [vmem:[#allocation11 + $0x690] sm:$0xff]  ;;  %v5260_v39 = vld [vmem:[#allocation11 + $0x580] sm:$0xff] }
 0x4e1   :  { %6451 = vmatpush.msrb.mxu3 %v5538_v3  ;;  %6506 = vmatpush.msra.mxu2 %v5750_v30  ;;  %v5182_v3 = vld [vmem:[#allocation11 + $0x310] sm:$0xff]  ;;  %v6038_v30 = vunpack.c.l.bf16 %v5336_v15  ;;  %v5292_v42 = vld [vmem:[#allocation11 + $0x680] sm:$0xff] }
 0x4e2   :  { %6470 = vmatpush.msra.mxu0 %v5606_v55  ;;  %6491 = vmatpush.msra.mxu1 %v5666_v7  ;;  %v5894_v55 = vunpack.c.l.bf16 %v5264_v58  ;;  %v5334_v28 = vld [vmem:[#allocation11 + $0x7d0] sm:$0xff]  ;;  %v5954_v7 = vunpack.c.l.bf16 %v5294_v41  ;;  %v5332_v61 = vld [vmem:[#allocation11 + $0x7c0] sm:$0xff] }
 0x4e3   :  { %6452 = vmatpush.msrb.mxu3 %v5534_v17  ;;  %6507 = vmatpush.msra.mxu2 %v5746_v32  ;;  %v5822_v17 = vunpack.c.l.bf16 %v5228_v44  ;;  %v6034_v32 = vunpack.c.l.bf16 %v5334_v28  ;;  %v6030_v25 = vunpack.c.l.bf16 %v5332_v61  ;;  %v5218_v62 = vld [vmem:[#allocation11 + $0x430] sm:$0xff]  ;;  %v5288_v24 = vld [vmem:[#allocation11 + $0x660] sm:$0xff] }
 0x4e4   :  { %6471 = vmatpush.msra.mxu0 %v5602_v0  ;;  %6492 = vmatpush.msra.mxu1 %v5662_v1  ;;  %v5890_v0 = vunpack.c.l.bf16 %v5262_v26  ;;  %v5950_v1 = vunpack.c.l.bf16 %v5292_v42  ;;  %v5330_v49 = vld [vmem:[#allocation11 + $0x7b0] sm:$0xff]  ;;  %v5942_v56 = vunpack.c.l.bf16 %v5288_v24  ;;  %v5212_v44 = vld [vmem:[#allocation11 + $0x400] sm:$0xff] }
 0x4e5   :  { %6517 = vmatpush.msra.mxu3 %v5850_v45  ;;  %6508 = vmatpush.msra.mxu2 %v5742_v60  ;;  %v5818_v45 = vunpack.c.l.bf16 %v5226_v35  ;;  %v5258_v60 = vld [vmem:[#allocation11 + $0x570] sm:$0xff]  ;;  %v5252_v18 = vld [vmem:[#allocation11 + $0x540] sm:$0xff] }
 0x4e6   :  { %5038 = vrot.lane.b32.xlu0 %v4846_v47, %s11438_s24  ;;  %4964 = vrot.lane.b32.xlu2 %v4846_v47, %s11437_s21  ;;  %v5882_v31 = vunpack.c.l.bf16 %v5258_v60  ;;  %v5284_v11 = vld [vmem:[#allocation11 + $0x640] sm:$0xff]  ;;  %v5250_v34 = vld [vmem:[#allocation11 + $0x530] sm:$0xff]  ;;  %s11449_s21 = smov 15   ;;  %s11450_s24 = smov 113  }
 0x4e7   :  { %4890 = vrot.lane.b32.xlu1 %v4846_v47, %s11435_s1  ;;  %6518 = vmatpush.msra.mxu3 %v5846_v37  ;;  %v5730_v47 = vunpack.c.l.bf16 %v5182_v3  ;;  %v5814_v37 = vunpack.c.l.bf16 %v5224_v40  ;;  %v5326_v3 = vld [vmem:[#allocation11 + $0x790] sm:$0xff]  ;;  %v5324_v33 = vld [vmem:[#allocation11 + $0x780] sm:$0xff] }
 0x4e8   :  { %6472 = vmatpush.msra.mxu0 %v5598_v29  ;;  %6557 = vmatpush.msrb.mxu1 %v5978_v27  ;;  %v5886_v29 = vunpack.c.l.bf16 %v5260_v39  ;;  %v6026_v27 = vunpack.c.l.bf16 %v5330_v49  ;;  %v6014_v35 = vunpack.c.l.bf16 %v5324_v33  ;;  %v5248_v40 = vld [vmem:[#allocation11 + $0x520] sm:$0xff]  ;;  %v5246_v13 = vld [vmem:[#allocation11 + $0x510] sm:$0xff] }
 0x4e9   :  { %6519 = vmatpush.msra.mxu3 %v5842_v20  ;;  %6509 = vmatpush.msra.mxu2 %v5738_v19  ;;  %v5810_v20 = vunpack.c.l.bf16 %v5222_v10  ;;  %v5216_v19 = vld [vmem:[#allocation11 + $0x420] sm:$0xff]  ;;  %v5278_v15 = vld [vmem:[#allocation11 + $0x610] sm:$0xff] }
 0x4ea   :  { %6537 = vmatpush.msrb.mxu0 %v5914_v46  ;;  %6558 = vmatpush.msrb.mxu1 %v5974_v6  ;;  %v5802_v46 = vunpack.c.l.bf16 %v5218_v62  ;;  %v5798_v9 = vunpack.c.l.bf16 %v5216_v19  ;;  %v5214_v6 = vld [vmem:[#allocation11 + $0x410] sm:$0xff]  ;;  %v5316_v28 = vld [vmem:[#allocation11 + $0x740] sm:$0xff] }
 0x4eb   :  { %6520 = vmatpush.msra.mxu3 %v5838_v52  ;;  %6510 = vmatpush.msra.mxu2 %v5734_v50  ;;  %v5806_v52 = vunpack.c.l.bf16 %v5220_v38  ;;  %v5254_v50 = vld [vmem:[#allocation11 + $0x550] sm:$0xff]  ;;  %v5794_v63 = vunpack.c.l.bf16 %v5214_v6  ;;  %v5998_v38 = vunpack.c.l.bf16 %v5316_v28  ;;  %v5364_v33 = vld [vmem:[#allocation11 + $0x8c0] sm:$0xff] }
 0x4ec   :  { %6538 = vmatpush.msrb.mxu0 %v5910_v4  ;;  %6559 = vmatpush.msrb.mxu1 %v5970_v8  ;;  %v5328_v4 = vld [vmem:[#allocation11 + $0x7a0] sm:$0xff]  ;;  %v5318_v10 = vld [vmem:[#allocation11 + $0x750] sm:$0xff] }
 0x4ed   :  { %6521 = vmatpush.msra.mxu3 %v5834_v57  ;;  %6511 = vmatpush.msra.mxu2 %v5730_v47  ;;  %v5290_v57 = vld [vmem:[#allocation11 + $0x670] sm:$0xff]  ;;  %v6022_v14 = vunpack.c.l.bf16 %v5328_v4  ;;  %v6018_v47 = vunpack.c.l.bf16 %v5326_v3  ;;  %v6002_v41 = vunpack.c.l.bf16 %v5318_v10  ;;  %v5400_v28 = vld [vmem:[#allocation11 + $0x9e0] sm:$0xff] }
 0x4ee   :  { %6539 = vmatpush.msrb.mxu0 %v5906_v36  ;;  %6560 = vmatpush.msrb.mxu1 %v5966_v22  ;;  %v5946_v53 = vunpack.c.l.bf16 %v5290_v57  ;;  %v5286_v36 = vld [vmem:[#allocation11 + $0x650] sm:$0xff]  ;;  %v5934_v22 = vunpack.c.l.bf16 %v5284_v11 }
 0x4ef   :  { %6522 = vmatpush.msra.mxu3 %v5830_v23  ;;  %6512 = vmatpush.msra.mxu2 %v5726_v59  ;;  %v5256_v23 = vld [vmem:[#allocation11 + $0x560] sm:$0xff]  ;;  %v5938_v8 = vunpack.c.l.bf16 %v5286_v36  ;;  %v5282_v59 = vld [vmem:[#allocation11 + $0x630] sm:$0xff] }
 0x4f0   :  { %6540 = vmatpush.msrb.mxu0 %v5902_v21  ;;  %6561 = vmatpush.msrb.mxu1 %v5962_v48  ;;  %v5878_v43 = vunpack.c.l.bf16 %v5256_v23  ;;  %v5870_v21 = vunpack.c.l.bf16 %v5252_v18  ;;  %v5930_v16 = vunpack.c.l.bf16 %v5282_v59  ;;  %v5280_v48 = vld [vmem:[#allocation11 + $0x620] sm:$0xff]  ;;  %v5314_v39 = vld [vmem:[#allocation11 + $0x730] sm:$0xff] }
 0x4f1   :  { %6523 = vmatpush.msra.mxu3 %v5826_v54  ;;  %6577 = vmatpush.msrb.mxu2 %v6042_v5  ;;  %v5874_v54 = vunpack.c.l.bf16 %v5254_v50  ;;  %v5320_v5 = vld [vmem:[#allocation11 + $0x760] sm:$0xff]  ;;  %v5926_v58 = vunpack.c.l.bf16 %v5280_v48  ;;  %v5994_v42 = vunpack.c.l.bf16 %v5314_v39  ;;  %v5370_v4 = vld [vmem:[#allocation11 + $0x8f0] sm:$0xff] }
 0x4f2   :  { %6541 = vmatpush.msrb.mxu0 %v5898_v12  ;;  %6562 = vmatpush.msrb.mxu1 %v5958_v2  ;;  %v5866_v12 = vunpack.c.l.bf16 %v5250_v34  ;;  %v5858_v2 = vunpack.c.l.bf16 %v5246_v13  ;;  %v5368_v50 = vld [vmem:[#allocation11 + $0x8e0] sm:$0xff]  ;;  %v6106_v36 = vunpack.c.l.bf16 %v5370_v4  ;;  %v5366_v3 = vld [vmem:[#allocation11 + $0x8d0] sm:$0xff]  ;;  %v6094_v13 = vunpack.c.l.bf16 %v5364_v33 }
 0x4f3   :  { %6524 = vmatpush.msra.mxu3 %v5822_v17  ;;  %6578 = vmatpush.msrb.mxu2 %v6038_v30  ;;  %v5790_v17 = vunpack.c.l.bf16 %v5212_v44  ;;  %v5922_v30 = vunpack.c.l.bf16 %v5278_v15  ;;  %v6102_v44 = vunpack.c.l.bf16 %v5368_v50  ;;  %v5362_v48 = vld [vmem:[#allocation11 + $0x8b0] sm:$0xff]  ;;  %v5396_v4 = vld [vmem:[#allocation11 + $0x9c0] sm:$0xff] }
 0x4f4   :  { %6542 = vmatpush.msrb.mxu0 %v5894_v55  ;;  %6563 = vmatpush.msrb.mxu1 %v5954_v7  ;;  %v6006_v55 = vunpack.c.l.bf16 %v5320_v5  ;;  %v5402_v5 = vld [vmem:[#allocation11 + $0x9f0] sm:$0xff]  ;;  %v10979_v50 = vld [vmem:[#allocation3 + $0x20] sm:$0xff] }
 0x4f5   :  { %6525 = vmatpush.msra.mxu3 %v5818_v45  ;;  %6579 = vmatpush.msrb.mxu2 %v6034_v32  ;;  %v5322_v45 = vld [vmem:[#allocation11 + $0x770] sm:$0xff] }
 0x4f6   :  { %6543 = vmatpush.msrb.mxu0 %v5890_v0  ;;  %6564 = vmatpush.msrb.mxu1 %v5950_v1  ;;  %v6010_v51 = vunpack.c.l.bf16 %v5322_v45  ;;  %v5276_v0 = vld [vmem:[#allocation11 + $0x600] sm:$0xff]  ;;  %v5310_v1 = vld [vmem:[#allocation11 + $0x710] sm:$0xff] }
 0x4f7   :  { %6526 = vmatpush.msra.mxu3 %v5814_v37  ;;  %6580 = vmatpush.msrb.mxu2 %v6030_v25  ;;  %v5862_v37 = vunpack.c.l.bf16 %v5248_v40  ;;  %v5918_v32 = vunpack.c.l.bf16 %v5276_v0  ;;  %v5986_v61 = vunpack.c.l.bf16 %v5310_v1  ;;  %v5308_v25 = vld [vmem:[#allocation11 + $0x700] sm:$0xff]  ;;  %v5434_v15 = vld [vmem:[#allocation11 + $0xaf0] sm:$0xff]  ;;  %v6170_v0 = vunpack.c.l.bf16 %v5402_v5 }
 0x4f8   :  { %6544 = vmatpush.msrb.mxu0 %v5886_v29  ;;  %6565 = vmatpush.msrb.mxu1 %v5946_v53  ;;  %v5982_v60 = vunpack.c.l.bf16 %v5308_v25  ;;  %v5392_v5 = vld [vmem:[#allocation11 + $0x9a0] sm:$0xff] }
 0x4f9   :  { %6527 = vmatpush.msra.mxu3 %v5810_v20  ;;  %6581 = vmatpush.msrb.mxu2 %v6026_v27  ;;  %v5244_v20 = vld [vmem:[#allocation11 + $0x500] sm:$0xff] }
 0x4fa   :  { %6545 = vmatpush.msrb.mxu0 %v5882_v31  ;;  %6566 = vmatpush.msrb.mxu1 %v5942_v56  ;;  %v5854_v7 = vunpack.c.l.bf16 %v5244_v20  ;;  %v6090_v20 = vunpack.c.l.bf16 %v5362_v48 }
 0x4fb   :  { %6528 = vmatpush.msra.mxu3 %v5806_v52  ;;  %6582 = vmatpush.msrb.mxu2 %v6022_v14  ;;  %v5312_v52 = vld [vmem:[#allocation11 + $0x720] sm:$0xff] }
 0x4fc   :  { %6546 = vmatpush.msrb.mxu0 %v5878_v43  ;;  %6567 = vmatpush.msrb.mxu1 %v5938_v8  ;;  %v5990_v29 = vunpack.c.l.bf16 %v5312_v52 }
 0x4fd   :  { %6529 = vmatpush.msra.mxu3 %v5802_v46  ;;  %6583 = vmatpush.msrb.mxu2 %v6018_v47 }
 0x4fe   :  { %6547 = vmatpush.msrb.mxu0 %v5874_v54  ;;  %6568 = vmatpush.msrb.mxu1 %v5934_v22  ;;  %v6098_v22 = vunpack.c.l.bf16 %v5366_v3 }
 0x4ff   :  { %6530 = vmatpush.msra.mxu3 %v5798_v9  ;;  %6584 = vmatpush.msrb.mxu2 %v6014_v35  ;;  %v10976_v9 = vld [vmem:[#allocation3 + $0x8] sm:$0xff] }
 0x500   :  { %6548 = vmatpush.msrb.mxu0 %v5870_v21  ;;  %6569 = vmatpush.msrb.mxu1 %v5930_v16 }
 0x501   :  { %6531 = vmatpush.msra.mxu3 %v5794_v63  ;;  %6585 = vmatpush.msrb.mxu2 %v6010_v51  ;;  %v10978_v51 = vld [vmem:[#allocation3 + $0x18] sm:$0xff] }
 0x502   :  { %6549 = vmatpush.msrb.mxu0 %v5866_v12  ;;  %6570 = vmatpush.msrb.mxu1 %v5926_v58  ;;  %v10977_v12 = vld [vmem:[#allocation3 + $0x10] sm:$0xff] }
 0x503   :  { %6532 = vmatpush.msra.mxu3 %v5790_v17  ;;  %6586 = vmatpush.msrb.mxu2 %v6006_v55  ;;  %v5360_v55 = vld [vmem:[#allocation11 + $0x8a0] sm:$0xff] }
 0x504   :  { %6550 = vmatpush.msrb.mxu0 %v5862_v37  ;;  %6571 = vmatpush.msrb.mxu1 %v5922_v30  ;;  %v6086_v1 = vunpack.c.l.bf16 %v5360_v55 }
 0x505   :  { %6587 = vmatpush.msrb.mxu2 %v6002_v41 }
 0x506   :  { %6551 = vmatpush.msrb.mxu0 %v5858_v2  ;;  %6572 = vmatpush.msrb.mxu1 %v5918_v32  ;;  %v5358_v32 = vld [vmem:[#allocation11 + $0x890] sm:$0xff] }
 0x507   :  { %6588 = vmatpush.msrb.mxu2 %v5998_v38 }
 0x508   :  { %v13805_v26 = vpop.permute.xlu2 %10716  ;;  %6552 = vmatpush.msrb.mxu0 %v5854_v7  ;;  %v5432_v7 = vld [vmem:[#allocation11 + $0xae0] sm:$0xff] }
 0x509   :  { %6589 = vmatpush.msrb.mxu2 %v5994_v42  ;;  %v10719_v31 = vunpack.i.h.bf16 %v13805_v26  ;;  %v10718_v53 = vunpack.i.l.bf16 %v13805_v26 }
 0x50b   :  { %6590 = vmatpush.msrb.mxu2 %v5990_v29  ;;  %v4966_v6 = vsel %vm532_vm3, %v10718_v53, %v10719_v31  ;;  %v6234_v29 = vunpack.c.l.bf16 %v5434_v15  ;;  %v6166_v53 = vunpack.c.l.bf16 %v5400_v28 }
 0x50d   :  { %6591 = vmatpush.msrb.mxu2 %v5986_v61 }
 0x50f   :  { %6592 = vmatpush.msrb.mxu2 %v5982_v60 }
 0x510   :  { %v13807_v62 = vpop.permute.xlu2 %10731 }
 0x511   :  { %v10734_v18 = vunpack.i.h.bf16 %v13807_v62  ;;  %v10733_v11 = vunpack.i.l.bf16 %v13807_v62 }
 0x513   :  { %v4967_v37 = vsel %vm532_vm3, %v10719_v31, %v10733_v11  ;;  %v4968_v58 = vsel %vm532_vm3, %v10733_v11, %v10734_v18  ;;  %v5430_v31 = vld [vmem:[#allocation11 + $0xad0] sm:$0xff] }
 0x518   :  { %v13813_v56 = vpop.permute.xlu2 %10746 }
 0x519   :  { %v10749_v61 = vunpack.i.h.bf16 %v13813_v56  ;;  %v10748_v25 = vunpack.i.l.bf16 %v13813_v56 }
 0x51b   :  { %v4969_v11 = vsel %vm532_vm3, %v10734_v18, %v10748_v25 }
 0x520   :  { %v10722_v57 = vpop.permute.xlu0 %10721  ;;  %v13837_v38 = vpop.permute.xlu2 %10766 }
 0x521   :  { %v10712_v46 = vpop.permute.xlu1 %10711  ;;  %v10724_v19 = vunpack.i.h.bf16 %v10722_v57  ;;  %v10723_v23 = vunpack.i.l.bf16 %v10722_v57 }
 0x522   :  { %v10714_v49 = vunpack.i.h.bf16 %v10712_v46  ;;  %v10713_v27 = vunpack.i.l.bf16 %v10712_v46  ;;  %v5398_v46 = vld [vmem:[#allocation11 + $0x9d0] sm:$0xff] }
 0x523   :  { %v5040_v63 = vsel %vm679_vm4, %v10723_v23, %v10724_v19  ;;  %v6162_v3 = vunpack.c.l.bf16 %v5398_v46 }
 0x524   :  { %v4892_v24 = vsel %vm268_vm1, %v10713_v27, %v10714_v49  ;;  %v6082_v27 = vunpack.c.l.bf16 %v5358_v32  ;;  %v13891_v32 = vld [vmem:[#allocation11 + $0x840] sm:$0xff] }
 0x525   :  { %v4921_v43 = vmax.f32 %v10976_v9, %v4892_v24 }
 0x527   :  { %v4995_v14 = vmax.f32 %v4921_v43, %v4966_v6  ;;  %v5428_v6 = vld [vmem:[#allocation11 + $0xac0] sm:$0xff] }
 0x528   :  { %v13816_v54 = vpop.permute.xlu0 %10736 }
 0x529   :  { %v13818_v8 = vmax.f32 %v4995_v14, %v5040_v63  ;;  %v10727_v47 = vpop.permute.xlu1 %10726  ;;  %v10739_v35 = vunpack.i.h.bf16 %v13816_v54  ;;  %v10738_v34 = vunpack.i.l.bf16 %v13816_v54  ;;  %v10980_v63 = vld [vmem:[#allocation3 + $0x28] sm:$0xff] }
 0x52a   :  { %v10729_v17 = vunpack.i.h.bf16 %v10727_v47  ;;  %v10728_v21 = vunpack.i.l.bf16 %v10727_v47  ;;  %v6226_v47 = vunpack.c.l.bf16 %v5430_v31  ;;  %v5388_v31 = vld [vmem:[#allocation11 + $0x980] sm:$0xff] }
 0x52b   :  { %6453 = vmatmul.f32.vlgmr.msrb.gmra.mxu3 %v13818_v8  ;;  %v5041_v10 = vsel %vm679_vm4, %v10724_v19, %v10738_v34  ;;  %v5042_v26 = vsel %vm679_vm4, %v10738_v34, %v10739_v35  ;;  %v5356_v19 = vld [vmem:[#allocation11 + $0x880] sm:$0xff] }
 0x52c   :  { %v4893_v59 = vsel %vm268_vm1, %v10714_v49, %v10728_v21  ;;  %v4894_v45 = vsel %vm268_vm1, %v10728_v21, %v10729_v17  ;;  %6597 = vmatpush.msrb.mxu3 %v6106_v36  ;;  %v6230_v49 = vunpack.c.l.bf16 %v5432_v7  ;;  %v6078_v21 = vunpack.c.l.bf16 %v5356_v19  ;;  %v13889_v7 = vld [vmem:[#allocation11 + $0xbd0] sm:$0xff] }
 0x52d   :  { %v4922_v16 = vmax.f32 %v10977_v12, %v4893_v59  ;;  %v4923_v40 = vmax.f32 %v10978_v51, %v4894_v45  ;;  %v6158_v59 = vunpack.c.l.bf16 %v5396_v4  ;;  %v6222_v45 = vunpack.c.l.bf16 %v5428_v6  ;;  %v5426_v12 = vld [vmem:[#allocation11 + $0xab0] sm:$0xff]  ;;  %v13865_v51 = vld [vmem:[#allocation11 + $0x860] sm:$0xff] }
 0x52e   :  { %6598 = vmatpush.msrb.mxu3 %v6102_v44  ;;  %v5394_v44 = vld [vmem:[#allocation11 + $0x9b0] sm:$0xff] }
 0x52f   :  { %v4996_v2 = vmax.f32 %v4922_v16, %v4967_v37  ;;  %v4997_v30 = vmax.f32 %v4923_v40, %v4968_v58  ;;  %v5466_v16 = vld [vmem:[#allocation11 + $0xbf0] sm:$0xff]  ;;  %v6154_v48 = vunpack.c.l.bf16 %v5394_v44  ;;  %v13873_v37 = vld [vmem:[#allocation11 + $0xaa0] sm:$0xff] }
 0x530   :  { %6599 = vmatpush.msrb.mxu3 %v6098_v22  ;;  %v13835_v41 = vpop.permute.xlu0 %10751  ;;  %v13863_v22 = vld [vmem:[#allocation11 + $0x870] sm:$0xff]  ;;  %v13875_v58 = vld [vmem:[#allocation11 + $0xbe0] sm:$0xff]  ;;  %v6298_v28 = vunpack.c.l.bf16 %v5466_v16  ;;  %v6214_v46 = vunpack.c.l.bf16 %v13873_v37 }
 0x531   :  { %v13839_v39 = vmax.f32 %v4996_v2, %v5041_v10  ;;  %v13841_v42 = vmax.f32 %v4997_v30, %v5042_v26  ;;  %v13843_v52 = vpop.permute.xlu1 %10741  ;;  %v10754_v23 = vunpack.i.h.bf16 %v13835_v41  ;;  %v10753_v24 = vunpack.i.l.bf16 %v13835_v41  ;;  %v13883_v2 = vld [vmem:[#allocation11 + $0x850] sm:$0xff] }
 0x532   :  { %v10744_v60 = vunpack.i.h.bf16 %v13843_v52  ;;  %v10743_v57 = vunpack.i.l.bf16 %v13843_v52  ;;  %6600 = vmatpush.msrb.mxu3 %v6094_v13  ;;  %v5390_v30 = vld [vmem:[#allocation11 + $0x990] sm:$0xff]  ;;  %v10769_v41 = vunpack.i.h.bf16 %v13837_v38 }
 0x533   :  { %6473 = vmatmul.f32.vlgmr.msra.gmra.mxu0 %v13839_v39  ;;  %6493 = vmatmul.f32.vlgmr.msra.gmra.mxu1 %v13841_v42  ;;  %v5043_v62 = vsel %vm679_vm4, %v10739_v35, %v10753_v24  ;;  %v5044_v18 = vsel %vm679_vm4, %v10753_v24, %v10754_v23  ;;  %v13885_v10 = vld [vmem:[#allocation11 + $0xa90] sm:$0xff]  ;;  %v6146_v19 = vunpack.c.l.bf16 %v5390_v30 }
 0x534   :  { %v4895_v9 = vsel %vm268_vm1, %v10729_v17, %v10743_v57  ;;  %v4896_v43 = vsel %vm268_vm1, %v10743_v57, %v10744_v60  ;;  %6601 = vmatpush.msrb.mxu3 %v6090_v20  ;;  %6617 = vmatpush.msra.mxu0 %v6170_v0  ;;  %v4970_v17 = vsel %vm532_vm3, %v10748_v25, %v10749_v61  ;;  %v6074_v20 = vunpack.c.l.bf16 %v13863_v22  ;;  %v13908_v4 = vld [vmem:[#allocation11 + $0x970] sm:$0xff] }
 0x535   :  { %v4924_v14 = vmax.f32 %v10979_v50, %v4895_v9  ;;  %v4925_v36 = vmax.f32 %v10980_v63, %v4896_v43  ;;  %6637 = vmatpush.msra.mxu1 %v6234_v29  ;;  %v6218_v0 = vunpack.c.l.bf16 %v5426_v12  ;;  %v10768_v29 = vunpack.i.l.bf16 %v13837_v38  ;;  %v13904_v9 = vld [vmem:[#allocation11 + $0xbc0] sm:$0xff]  ;;  %v13906_v43 = vld [vmem:[#allocation11 + $0x830] sm:$0xff] }
 0x536   :  { %6602 = vmatpush.msrb.mxu3 %v6086_v1  ;;  %6618 = vmatpush.msra.mxu0 %v6166_v53  ;;  %v13894_v1 = vpop.permute.xlu2 %10771  ;;  %v6070_v25 = vunpack.c.l.bf16 %v13865_v51  ;;  %v6150_v57 = vunpack.c.l.bf16 %v5392_v5  ;;  %v13898_v53 = vld [vmem:[#allocation11 + $0xa80] sm:$0xff]  ;;  %v6210_v24 = vunpack.c.l.bf16 %v13885_v10  ;;  %v6062_v63 = vunpack.c.l.bf16 %v13891_v32  ;;  %v13924_v44 = vld [vmem:[#allocation11 + $0xbb0] sm:$0xff] }
 0x537   :  { %v4998_v33 = vmax.f32 %v4924_v14, %v4969_v11  ;;  %v4999_v34 = vmax.f32 %v4925_v36, %v4970_v17  ;;  %6638 = vmatpush.msra.mxu1 %v6230_v49  ;;  %v6294_v49 = vunpack.c.l.bf16 %v13875_v58  ;;  %v6290_v14 = vunpack.c.l.bf16 %v13889_v7  ;;  %v13917_v36 = vld [vmem:[#allocation11 + $0xa70] sm:$0xff] }
 0x538   :  { %6603 = vmatpush.msrb.mxu3 %v6082_v27  ;;  %v10757_v40 = vpop.permute.xlu0 %10756  ;;  %6619 = vmatpush.msra.mxu0 %v6162_v3  ;;  %v6066_v27 = vunpack.c.l.bf16 %v13883_v2  ;;  %v10774_v3 = vunpack.i.h.bf16 %v13894_v1  ;;  %v6206_v11 = vunpack.c.l.bf16 %v13898_v53  ;;  %v6286_v17 = vunpack.c.l.bf16 %v13904_v9  ;;  %v5454_v9 = vld [vmem:[#allocation11 + $0xb90] sm:$0xff] }
 0x539   :  { %v13877_v13 = vmax.f32 %v4998_v33, %v5043_v62  ;;  %v13879_v15 = vmax.f32 %v4999_v34, %v5044_v18  ;;  %6639 = vmatpush.msra.mxu1 %v6226_v47  ;;  %v10759_v54 = vunpack.i.h.bf16 %v10757_v40  ;;  %v10758_v35 = vunpack.i.l.bf16 %v10757_v40  ;;  %v13881_v55 = vpop.permute.xlu1 %10761  ;;  %v13930_v33 = vld [vmem:[#allocation11 + $0x820] sm:$0xff]  ;;  %v10981_v34 = vld [vmem:[#allocation3 + $0x30] sm:$0xff] }
 0x53a   :  { %v10763_v26 = vunpack.i.l.bf16 %v13881_v55  ;;  %6604 = vmatpush.msrb.mxu3 %v6078_v21  ;;  %6620 = vmatpush.msra.mxu0 %v6158_v59  ;;  %v10773_v47 = vunpack.i.l.bf16 %v13894_v1  ;;  %v6058_v21 = vunpack.c.l.bf16 %v13906_v43  ;;  %v6138_v22 = vunpack.c.l.bf16 %v13908_v4  ;;  %v5384_v18 = vld [vmem:[#allocation11 + $0x960] sm:$0xff] }
 0x53b   :  { %6640 = vmatpush.msra.mxu1 %v6222_v45  ;;  %6513 = vmatmul.f32.vlgmr.msra.gmra.mxu2 %v13877_v13  ;;  %v4897_v6 = vsel %vm268_vm1, %v10744_v60, %v10758_v35  ;;  %v4898_v50 = vsel %vm268_vm1, %v10758_v35, %v10759_v54  ;;  %v6142_v60 = vunpack.c.l.bf16 %v5388_v31  ;;  %v10982_v45 = vld [vmem:[#allocation3 + $0x38] sm:$0xff]  ;;  %v10764_v16 = vunpack.i.h.bf16 %v13881_v55  ;;  %v10983_v40 = vld [vmem:[#allocation3 + $0x40] sm:$0xff]  ;;  %v5494_v55 = vld [vmem:[#allocation11 + $0xcd0] sm:$0xff] }
 0x53c   :  { %6533 = vmatmul.f32.vlgmr.msra.gmra.mxu3 %v13879_v15  ;;  %6621 = vmatpush.msra.mxu0 %v6154_v48  ;;  %v4899_v52 = vsel %vm268_vm1, %v10759_v54, %v10763_v26  ;;  %v4926_v59 = vmax.f32 %v10981_v34, %v4897_v6  ;;  %v4927_v12 = vmax.f32 %v10982_v45, %v4898_v50  ;;  %v6202_v62 = vunpack.c.l.bf16 %v13917_v36  ;;  %v5340_v43 = vld [vmem:[#allocation11 + $0x800] sm:$0xff]  ;;  %v10984_v6 = vld [vmem:[#allocation3 + $0x48] sm:$0xff] }
 0x53d   :  { %6605 = vmatpush.msrb.mxu3 %v6074_v20  ;;  %6641 = vmatpush.msra.mxu1 %v6218_v0  ;;  %v4928_v48 = vmax.f32 %v10983_v40, %v4899_v52  ;;  %v6282_v54 = vunpack.c.l.bf16 %v13924_v44  ;;  %v4971_v35 = vsel %vm532_vm3, %v10749_v61, %v10773_v47  ;;  %v4973_v2 = vsel %vm532_vm3, %v10774_v3, %v10768_v29  ;;  %v5416_v20 = vld [vmem:[#allocation11 + $0xa60] sm:$0xff]  ;;  %v5498_v44 = vld [vmem:[#allocation11 + $0xcf0] sm:$0xff] }
 0x53e   :  { %6657 = vmatpush.msra.mxu2 %v6298_v28  ;;  %6622 = vmatpush.msra.mxu0 %v6150_v57  ;;  %v6054_v10 = vunpack.c.l.bf16 %v13930_v33  ;;  %v5456_v0 = vld [vmem:[#allocation11 + $0xba0] sm:$0xff]  ;;  %v4972_v28 = vsel %vm532_vm3, %v10773_v47, %v10774_v3  ;;  %v6134_v7 = vunpack.c.l.bf16 %v5384_v18  ;;  %v4900_v32 = vsel %vm268_vm1, %v10763_v26, %v10764_v16  ;;  %v13964_v3 = vpop.permute.xlu2 %10791  ;;  %v5378_v34 = vld [vmem:[#allocation11 + $0x930] sm:$0xff] }
 0x53f   :  { %6606 = vmatpush.msrb.mxu3 %v6070_v25  ;;  %6642 = vmatpush.msra.mxu1 %v6214_v46  ;;  %v5000_v1 = vmax.f32 %v4926_v59, %v4971_v35  ;;  %v5001_v25 = vmax.f32 %v4927_v12, %v4972_v28  ;;  %v5342_v46 = vld [vmem:[#allocation11 + $0x810] sm:$0xff]  ;;  %v5002_v31 = vmax.f32 %v4928_v48, %v4973_v2  ;;  %v6278_v53 = vunpack.c.l.bf16 %v5456_v0  ;;  %v5380_v4 = vld [vmem:[#allocation11 + $0x940] sm:$0xff] }
 0x540   :  { %v10777_v51 = vpop.permute.xlu0 %10776  ;;  %6658 = vmatpush.msra.mxu2 %v6294_v49  ;;  %6623 = vmatpush.msra.mxu0 %v6146_v19  ;;  %v5382_v49 = vld [vmem:[#allocation11 + $0x950] sm:$0xff]  ;;  %v4929_v50 = vmax.f32 %v10984_v6, %v4900_v32  ;;  %v5412_v36 = vld [vmem:[#allocation11 + $0xa40] sm:$0xff]  ;;  %v6126_v33 = vunpack.c.l.bf16 %v5380_v4  ;;  %v10793_v18 = vunpack.i.l.bf16 %v13964_v3  ;;  %v10794_v35 = vunpack.i.h.bf16 %v13964_v3 }
 0x541   :  { %v10779_v5 = vunpack.i.h.bf16 %v10777_v51  ;;  %v10778_v37 = vunpack.i.l.bf16 %v10777_v51  ;;  %v13934_v58 = vpop.permute.xlu1 %10781  ;;  %6607 = vmatpush.msrb.mxu3 %v6066_v27  ;;  %6643 = vmatpush.msra.mxu1 %v6210_v24  ;;  %v5414_v27 = vld [vmem:[#allocation11 + $0xa50] sm:$0xff]  ;;  %v6130_v47 = vunpack.c.l.bf16 %v5382_v49  ;;  %v6190_v12 = vunpack.c.l.bf16 %v5412_v36  ;;  %v5448_v0 = vld [vmem:[#allocation11 + $0xb60] sm:$0xff] }
 0x542   :  { %v10783_v30 = vunpack.i.l.bf16 %v13934_v58  ;;  %6659 = vmatpush.msra.mxu2 %v6290_v14  ;;  %6624 = vmatpush.msra.mxu0 %v6142_v60  ;;  %v10784_v26 = vunpack.i.h.bf16 %v13934_v58  ;;  %v6194_v52 = vunpack.c.l.bf16 %v5414_v27  ;;  %v5452_v60 = vld [vmem:[#allocation11 + $0xb80] sm:$0xff]  ;;  %v5410_v51 = vld [vmem:[#allocation11 + $0xa30] sm:$0xff]  ;;  %v4975_v49 = vsel %vm532_vm3, %v10769_v41, %v10793_v18 }
 0x543   :  { %v5045_v56 = vsel %vm679_vm4, %v10754_v23, %v10778_v37  ;;  %v5046_v61 = vsel %vm679_vm4, %v10778_v37, %v10779_v5  ;;  %6608 = vmatpush.msrb.mxu3 %v6062_v63  ;;  %6644 = vmatpush.msra.mxu1 %v6206_v11  ;;  %v6198_v23 = vunpack.c.l.bf16 %v5416_v20  ;;  %v6050_v63 = vunpack.c.l.bf16 %v5342_v46  ;;  %v5496_v37 = vld [vmem:[#allocation11 + $0xce0] sm:$0xff]  ;;  %v14055_v3 = vld [vmem:[#allocation11 + $0xdb0] sm:$0xff] }
 0x544   :  { %v5047_v57 = vsel %vm679_vm4, %v10779_v5, %v10783_v30  ;;  %6660 = vmatpush.msra.mxu2 %v6286_v17  ;;  %v13957_v19 = vmax.f32 %v5000_v1, %v5045_v56  ;;  %v13959_v24 = vmax.f32 %v5001_v25, %v5046_v61  ;;  %6625 = vmatpush.msra.mxu0 %v6138_v22  ;;  %v6274_v17 = vunpack.c.l.bf16 %v5454_v9  ;;  %v5408_v20 = vld [vmem:[#allocation11 + $0xa20] sm:$0xff]  ;;  %v10985_v61 = vld [vmem:[#allocation3 + $0x50] sm:$0xff] }
 0x545   :  { %6609 = vmatpush.msrb.mxu3 %v6058_v21  ;;  %v13962_v14 = vmax.f32 %v5002_v31, %v5047_v57  ;;  %6645 = vmatpush.msra.mxu1 %v6202_v62  ;;  %v4974_v11 = vsel %vm532_vm3, %v10768_v29, %v10769_v41  ;;  %v6046_v22 = vunpack.c.l.bf16 %v5340_v43  ;;  %v5048_v59 = vsel %vm679_vm4, %v10783_v30, %v10784_v26  ;;  %v5450_v62 = vld [vmem:[#allocation11 + $0xb70] sm:$0xff]  ;;  %v5492_v43 = vld [vmem:[#allocation11 + $0xcc0] sm:$0xff] }
 0x546   :  { %16001 = vst [vmem:[#allocation27_spill] sm:$0xff] %v13959_v24  ;;  %6661 = vmatpush.msra.mxu2 %v6282_v54  ;;  %6626 = vmatpush.msra.mxu0 %v6134_v7  ;;  %v5003_v40 = vmax.f32 %v4929_v50, %v4974_v11  ;;  %v6270_v48 = vunpack.c.l.bf16 %v5452_v60  ;;  %v6362_v5 = vunpack.c.l.bf16 %v5498_v44  ;;  %v13982_v54 = vld [vmem:[#allocation11 + $0x920] sm:$0xff]  ;;  %v6186_v32 = vunpack.c.l.bf16 %v5410_v51  ;;  %v13995_v25 = vld [vmem:[#allocation11 + $0x910] sm:$0xff]  ;;  %v14016_v51 = vpop.permute.xlu2 %10806 }
 0x547   :  { %16002 = vst [vmem:[#allocation60_spill] sm:$0xff] %v13962_v14  ;;  %6610 = vmatpush.msrb.mxu3 %v6054_v10  ;;  %6646 = vmatpush.msra.mxu1 %v6198_v23  ;;  %v6122_v10 = vunpack.c.l.bf16 %v5378_v34  ;;  %v6266_v1 = vunpack.c.l.bf16 %v5450_v62  ;;  %v6358_v46 = vunpack.c.l.bf16 %v5496_v37  ;;  %v6118_v31 = vunpack.c.l.bf16 %v13982_v54  ;;  %v5406_v23 = vld [vmem:[#allocation11 + $0xa10] sm:$0xff]  ;;  %v14002_v4 = vld [vmem:[#allocation11 + $0x900] sm:$0xff] }
 0x548   :  { %6662 = vmatpush.msra.mxu2 %v6278_v53  ;;  %6553 = vmatmul.f32.vlgmr.msrb.gmra.mxu0 %v13957_v19  ;;  %v13991_v28 = vmax.f32 %v5003_v40, %v5048_v59  ;;  %v13993_v56 = vpop.permute.xlu0 %10796  ;;  %v5446_v53 = vld [vmem:[#allocation11 + $0xb50] sm:$0xff]  ;;  %v6182_v27 = vunpack.c.l.bf16 %v5408_v20  ;;  %v6262_v9 = vunpack.c.l.bf16 %v5448_v0  ;;  %v4976_v6 = vsel %vm532_vm3, %v10793_v18, %v10794_v35  ;;  %v5404_v41 = vld [vmem:[#allocation11 + $0xa00] sm:$0xff] }
 0x549   :  { %v13971_v21 = vpop.permute.xlu1 %10786  ;;  %6573 = vmatmul.f32.vlgmr.msrb.gmra.mxu1 %v13959_v24  ;;  %6593 = vmatmul.f32.vlgmr.msrb.gmra.mxu2 %v13962_v14  ;;  %v10798_v50 = vunpack.i.l.bf16 %v13993_v56  ;;  %v6114_v38 = vunpack.c.l.bf16 %v13995_v25  ;;  %v5444_v36 = vld [vmem:[#allocation11 + $0xb40] sm:$0xff]  ;;  %v6178_v60 = vunpack.c.l.bf16 %v5406_v23  ;;  %v6258_v44 = vunpack.c.l.bf16 %v5446_v53  ;;  %v5442_v40 = vld [vmem:[#allocation11 + $0xb30] sm:$0xff] }
 0x54a   :  { %v10789_v45 = vunpack.i.h.bf16 %v13971_v21  ;;  %v10788_v29 = vunpack.i.l.bf16 %v13971_v21  ;;  %6611 = vmatpush.msrb.mxu3 %v6050_v63  ;;  %6627 = vmatpush.msra.mxu0 %v6130_v47  ;;  %16003 = vst [vmem:[#allocation66_spill] sm:$0xff] %v13991_v28  ;;  %v6354_v63 = vunpack.c.l.bf16 %v5494_v55  ;;  %v10799_v47 = vunpack.i.h.bf16 %v13993_v56  ;;  %v5440_v0 = vld [vmem:[#allocation11 + $0xb20] sm:$0xff]  ;;  %v5438_v23 = vld [vmem:[#allocation11 + $0xb10] sm:$0xff] }
 0x54b   :  { %6647 = vmatpush.msra.mxu1 %v6194_v52  ;;  %6663 = vmatpush.msra.mxu2 %v6274_v17  ;;  %v5490_v17 = vld [vmem:[#allocation11 + $0xcb0] sm:$0xff]  ;;  %v6350_v34 = vunpack.c.l.bf16 %v5492_v43  ;;  %v6174_v62 = vunpack.c.l.bf16 %v5404_v41  ;;  %v6254_v18 = vunpack.c.l.bf16 %v5444_v36  ;;  %v10808_v21 = vunpack.i.l.bf16 %v14016_v51 }
 0x54c   :  { %v4901_v2 = vsel %vm268_vm1, %v10764_v16, %v10788_v29  ;;  %v4902_v30 = vsel %vm268_vm1, %v10788_v29, %v10789_v45  ;;  %6612 = vmatpush.msrb.mxu3 %v6046_v22  ;;  %v10986_v16 = vld [vmem:[#allocation3 + $0x58] sm:$0xff]  ;;  %6628 = vmatpush.msra.mxu0 %v6126_v33  ;;  %v14012_v22 = vld [vmem:[#allocation11 + $0xdf0] sm:$0xff]  ;;  %v6110_v29 = vunpack.c.l.bf16 %v14002_v4  ;;  %v6346_v37 = vunpack.c.l.bf16 %v5490_v17 }
 0x54d   :  { %v4930_v7 = vmax.f32 %v10985_v61, %v4901_v2  ;;  %v4931_v57 = vmax.f32 %v10986_v16, %v4902_v30  ;;  %6648 = vmatpush.msra.mxu1 %v6190_v12  ;;  %6664 = vmatpush.msra.mxu2 %v6270_v48  ;;  %v5532_v12 = vld [vmem:[#allocation11 + $0xe00] sm:$0xff]  ;;  %v5049_v48 = vsel %vm679_vm4, %v10784_v26, %v10798_v50  ;;  %v6426_v2 = vunpack.c.l.bf16 %v14012_v22  ;;  %v10988_v16 = vld [vmem:[#allocation11 + $0x1f0] sm:$0xff] }
 0x54e   :  { %6613 = vmatmul.f32.vlgmr.msrb.gmra.mxu3 %v13991_v28  ;;  %6629 = vmatpush.msra.mxu0 %v6122_v10  ;;  %v5488_v30 = vld [vmem:[#allocation11 + $0xca0] sm:$0xff]  ;;  %v5050_v10 = vsel %vm679_vm4, %v10798_v50, %v10799_v47  ;;  %v6430_v58 = vunpack.c.l.bf16 %v5532_v12 }
 0x54f   :  { %6677 = vmatpush.msra.mxu3 %v6362_v5  ;;  %v5004_v52 = vmax.f32 %v4930_v7, %v4975_v49  ;;  %6649 = vmatpush.msra.mxu1 %v6186_v32  ;;  %v5005_v33 = vmax.f32 %v4931_v57, %v4976_v6  ;;  %v14032_v26 = vld [vmem:[#allocation11 + $0xde0] sm:$0xff]  ;;  %v5486_v7 = vld [vmem:[#allocation11 + $0xc90] sm:$0xff]  ;;  %v5659_v57 = vunpack.c.h.bf16 %v10988_v16  ;;  %v6246_v49 = vunpack.c.l.bf16 %v5440_v0 }
 0x550   :  { %6665 = vmatpush.msra.mxu2 %v6266_v1  ;;  %6630 = vmatpush.msra.mxu0 %v6118_v31  ;;  %v14037_v32 = vpop.permute.xlu0 %10811  ;;  %v10987_v1 = vld [vmem:[#allocation3 + $0x60] sm:$0xff]  ;;  %v14039_v31 = vld [vmem:[#allocation11 + $0xdd0] sm:$0xff]  ;;  %v6422_v53 = vunpack.c.l.bf16 %v14032_v26  ;;  %v6338_v6 = vunpack.c.l.bf16 %v5486_v7 }
 0x551   :  { %v14010_v11 = vpop.permute.xlu1 %10801  ;;  %6678 = vmatpush.msra.mxu3 %v6358_v46  ;;  %6650 = vmatpush.msra.mxu1 %v6182_v27  ;;  %v14030_v20 = vmax.f32 %v5004_v52, %v5049_v48  ;;  %v14035_v61 = vmax.f32 %v5005_v33, %v5050_v10  ;;  %v6342_v46 = vunpack.c.l.bf16 %v5488_v30  ;;  %v5484_v27 = vld [vmem:[#allocation11 + $0xc80] sm:$0xff]  ;;  %v10813_v41 = vunpack.i.l.bf16 %v14037_v32  ;;  %v10990_v33 = vld [vmem:[#allocation11 + $0x1d0] sm:$0xff] }
 0x552   :  { %v10803_v59 = vunpack.i.l.bf16 %v14010_v11  ;;  %6666 = vmatpush.msra.mxu2 %v6262_v9  ;;  %6631 = vmatpush.msra.mxu0 %v6114_v38  ;;  %v10989_v9 = vld [vmem:[#allocation11 + $0x1e0] sm:$0xff]  ;;  %v4977_v38 = vsel %vm532_vm3, %v10794_v35, %v10808_v21  ;;  %v6418_v36 = vunpack.c.l.bf16 %v14039_v31  ;;  %v6242_v52 = vunpack.c.l.bf16 %v5438_v23  ;;  %v10994_v7 = vld [vmem:[#allocation11 + $0x1b0] sm:$0xff] }
 0x553   :  { %6679 = vmatpush.msra.mxu3 %v6354_v63  ;;  %16004 = vst [vmem:[#allocation47_spill] sm:$0xff] %v14030_v20  ;;  %6651 = vmatpush.msra.mxu1 %v6178_v60  ;;  %v5655_v43 = vunpack.c.h.bf16 %v10989_v9  ;;  %v14043_v50 = vld [vmem:[#allocation11 + $0xdc0] sm:$0xff]  ;;  %v5051_v30 = vsel %vm679_vm4, %v10799_v47, %v10813_v41  ;;  %v6410_v10 = vunpack.c.l.bf16 %v14055_v3  ;;  %v14069_v16 = vld [vmem:[#allocation11 + $0xd90] sm:$0xff] }
 0x554   :  { %v4903_v5 = vsel %vm268_vm1, %v10789_v45, %v10803_v59  ;;  %6667 = vmatpush.msra.mxu2 %v6258_v44  ;;  %16005 = vst [vmem:[#allocation32_spill] sm:$0xff] %v14035_v61  ;;  %6632 = vmatpush.msra.mxu0 %v6110_v29  ;;  %v6250_v45 = vunpack.c.l.bf16 %v5442_v40  ;;  %v5436_v63 = vld [vmem:[#allocation11 + $0xb00] sm:$0xff]  ;;  %v5482_v44 = vld [vmem:[#allocation11 + $0xc70] sm:$0xff]  ;;  %v6334_v29 = vunpack.c.l.bf16 %v5484_v27  ;;  %v6414_v35 = vunpack.c.l.bf16 %v14043_v50 }
 0x555   :  { %6680 = vmatpush.msra.mxu3 %v6350_v34  ;;  %v4932_v55 = vmax.f32 %v10987_v1, %v4903_v5  ;;  %6652 = vmatpush.msra.mxu1 %v6174_v62  ;;  %v5651_v34 = vunpack.c.h.bf16 %v10990_v33  ;;  %v6238_v12 = vunpack.c.l.bf16 %v5436_v63  ;;  %v10991_v62 = vld [vmem:[#allocation3 + $0x78] sm:$0xff]  ;;  %v6330_v5 = vunpack.c.l.bf16 %v5482_v44  ;;  %v10998_v44 = vld [vmem:[#allocation11 + $0x190] sm:$0xff] }
 0x556   :  { %6668 = vmatpush.msra.mxu2 %v6254_v18  ;;  %6697 = vmatpush.msrb.mxu0 %v6426_v2  ;;  %v10992_v40 = vld [vmem:[#allocation11 + $0x1c0] sm:$0xff]  ;;  %v5643_v1 = vunpack.c.h.bf16 %v10994_v7  ;;  %v5474_v33 = vld [vmem:[#allocation11 + $0xc30] sm:$0xff] }
 0x557   :  { %6681 = vmatpush.msra.mxu3 %v6346_v37  ;;  %6732 = vmatpush.msrb.mxu1 %v6430_v58  ;;  %v5006_v17 = vmax.f32 %v4932_v55, %v4977_v38  ;;  %v5647_v48 = vunpack.c.h.bf16 %v10992_v40  ;;  %v5480_v37 = vld [vmem:[#allocation11 + $0xc60] sm:$0xff]  ;;  %v10993_v58 = vld [vmem:[#allocation11 + $0xf0] sm:$0xff]  ;;  %v6402_v38 = vunpack.c.l.bf16 %v14069_v16 }
 0x558   :  { %6633 = vmatmul.f32.vlgmr.msra.gmra.mxu0 %v14030_v20  ;;  %6653 = vmatmul.f32.vlgmr.msra.gmra.mxu1 %v14035_v61  ;;  %v14059_v2 = vld [vmem:[#allocation11 + $0xda0] sm:$0xff]  ;;  %v5595_v0 = vunpack.c.h.bf16 %v10993_v58  ;;  %v5478_v55 = vld [vmem:[#allocation11 + $0xc50] sm:$0xff]  ;;  %v6326_v56 = vunpack.c.l.bf16 %v5480_v37 }
 0x559   :  { %6669 = vmatpush.msra.mxu2 %v6250_v45  ;;  %v14053_v60 = vpop.permute.xlu1 %4890  ;;  %6757 = vmatpush.msra.mxu1 %v5659_v57  ;;  %v14067_v45 = vmax.f32 %v5006_v17, %v5051_v30  ;;  %v14071_v57 = vpop.permute.xlu2 %4964  ;;  %v6406_v47 = vunpack.c.l.bf16 %v14059_v2  ;;  %v10996_v27 = vld [vmem:[#allocation11 + $0x1a0] sm:$0xff]  ;;  %v6322_v63 = vunpack.c.l.bf16 %v5478_v55  ;;  %v5635_v17 = vunpack.c.h.bf16 %v10998_v44  ;;  %v11001_v7 = vld [vmem:[#allocation11 + $0xb0] sm:$0xff] }
 0x55a   :  { %6682 = vmatpush.msra.mxu3 %v6342_v46  ;;  %6698 = vmatpush.msrb.mxu0 %v6422_v53  ;;  %v4935_v18 = vmax.f32 %v10991_v62, %v14053_v60  ;;  %v10804_v46 = vunpack.i.h.bf16 %v14010_v11  ;;  %v10995_v53 = vld [vmem:[#allocation11 + $0xe0] sm:$0xff]  ;;  %v5639_v9 = vunpack.c.h.bf16 %v10996_v27  ;;  %v5470_v55 = vld [vmem:[#allocation11 + $0xc10] sm:$0xff] }
 0x55b   :  { %6670 = vmatpush.msra.mxu2 %v6246_v49  ;;  %6758 = vmatpush.msra.mxu1 %v5655_v43  ;;  %16006 = vst [vmem:[#allocation28_spill] sm:$0xff] %v14067_v45  ;;  %v5591_v49 = vunpack.c.h.bf16 %v10995_v53  ;;  %v5476_v43 = vld [vmem:[#allocation11 + $0xc40] sm:$0xff]  ;;  %v14097_v27 = vld [vmem:[#allocation11 + $0xd50] sm:$0xff]  ;;  %v6306_v44 = vunpack.c.l.bf16 %v5470_v55 }
 0x55c   :  { %6683 = vmatpush.msra.mxu3 %v6338_v6  ;;  %6699 = vmatpush.msrb.mxu0 %v6418_v36  ;;  %v5009_v23 = vmax.f32 %v4935_v18, %v14071_v57  ;;  %v14076_v6 = vld [vmem:[#allocation11 + $0xd80] sm:$0xff]  ;;  %v10997_v36 = vld [vmem:[#allocation11 + $0xd0] sm:$0xff]  ;;  %v4904_v62 = vsel %vm268_vm1, %v10803_v59, %v10804_v46 }
 0x55d   :  { %6671 = vmatpush.msra.mxu2 %v6242_v52  ;;  %6759 = vmatpush.msra.mxu1 %v5651_v34  ;;  %v5587_v52 = vunpack.c.h.bf16 %v10997_v36  ;;  %v14080_v34 = vpop.permute.xlu0 %5038  ;;  %v10999_v40 = vld [vmem:[#allocation11 + $0xc0] sm:$0xff] }
 0x55e   :  { %6684 = vmatpush.msra.mxu3 %v6334_v29  ;;  %6700 = vmatpush.msrb.mxu0 %v6414_v35  ;;  %v6318_v29 = vunpack.c.l.bf16 %v5476_v43  ;;  %v6398_v35 = vunpack.c.l.bf16 %v14076_v6  ;;  %v14091_v18 = vmax.f32 %v5009_v23, %v14080_v34  ;;  %v11000_v37 = vld [vmem:[#allocation11 + $0x180] sm:$0xff]  ;;  %v11003_v23 = vld [vmem:[#allocation11 + $0x170] sm:$0xff] }
 0x55f   :  { %6672 = vmatpush.msra.mxu2 %v6238_v12  ;;  %6760 = vmatpush.msra.mxu1 %v5647_v48  ;;  %v14083_v12 = vld [vmem:[#allocation11 + $0xd70] sm:$0xff]  ;;  %v5583_v48 = vunpack.c.h.bf16 %v10999_v40  ;;  %v5631_v30 = vunpack.c.h.bf16 %v11000_v37  ;;  %v14093_v58 = vld [vmem:[#allocation11 + $0xd60] sm:$0xff]  ;;  %v5627_v53 = vunpack.c.h.bf16 %v11003_v23 }
 0x560   :  { %6685 = vmatpush.msra.mxu3 %v6330_v5  ;;  %6701 = vmatpush.msrb.mxu0 %v6410_v10  ;;  %16007 = vst [vmem:[#allocation52_spill] sm:$0xff] %v14091_v18  ;;  %v5472_v5 = vld [vmem:[#allocation11 + $0xc20] sm:$0xff]  ;;  %v6314_v10 = vunpack.c.l.bf16 %v5474_v33  ;;  %v6394_v59 = vunpack.c.l.bf16 %v14083_v12 }
 0x561   :  { %6737 = vmatpush.msrb.mxu2 %v5595_v0  ;;  %6761 = vmatpush.msra.mxu1 %v5643_v1  ;;  %v10809_v0 = vunpack.i.h.bf16 %v14016_v51  ;;  %v5579_v1 = vunpack.c.h.bf16 %v11001_v7  ;;  %v11004_v43 = vld [vmem:[#allocation11 + $0xa0] sm:$0xff] }
 0x562   :  { %6673 = vmatmul.f32.vlgmr.msra.gmra.mxu2 %v14067_v45  ;;  %6686 = vmatpush.msra.mxu3 %v6326_v56  ;;  %v11002_v56 = vld [vmem:[#allocation3 + $0x68] sm:$0xff]  ;;  %v11005_v36 = vld [vmem:[#allocation11 + $0x160] sm:$0xff] }
 0x563   :  { %6702 = vmatpush.msrb.mxu0 %v6406_v47  ;;  %6738 = vmatpush.msrb.mxu2 %v5591_v49  ;;  %v4933_v47 = vmax.f32 %v11002_v56, %v4904_v62  ;;  %v6310_v49 = vunpack.c.l.bf16 %v5472_v5  ;;  %v4978_v33 = vsel %vm532_vm3, %v10808_v21, %v10809_v0  ;;  %v11006_v62 = vld [vmem:[#allocation11 + $0x90] sm:$0xff]  ;;  %v4905_v21 = vsel %vm268_vm1, %v10804_v46, %v14053_v60  ;;  %v11008_v7 = vld [vmem:[#allocation11 + $0x80] sm:$0xff] }
 0x564   :  { %6762 = vmatpush.msra.mxu1 %v5639_v9  ;;  %6687 = vmatpush.msra.mxu3 %v6322_v63  ;;  %v6390_v9 = vunpack.c.l.bf16 %v14093_v58  ;;  %v5575_v63 = vunpack.c.h.bf16 %v11004_v43  ;;  %v5571_v40 = vunpack.c.h.bf16 %v11006_v62  ;;  %v11007_v5 = vld [vmem:[#allocation11 + $0x150] sm:$0xff]  ;;  %v11009_v55 = vld [vmem:[#allocation11 + $0x140] sm:$0xff] }
 0x565   :  { %6703 = vmatpush.msrb.mxu0 %v6402_v38  ;;  %6739 = vmatpush.msrb.mxu2 %v5587_v52  ;;  %v5468_v38 = vld [vmem:[#allocation11 + $0xc00] sm:$0xff]  ;;  %v5623_v52 = vunpack.c.h.bf16 %v11005_v36  ;;  %v5619_v37 = vunpack.c.h.bf16 %v11007_v5  ;;  %v5615_v56 = vunpack.c.h.bf16 %v11009_v55  ;;  %v11010_v60 = vld [vmem:[#allocation11 + $0x2f0] sm:$0xff] }
 0x566   :  { %6763 = vmatpush.msra.mxu1 %v5635_v17  ;;  %6688 = vmatpush.msra.mxu3 %v6318_v29  ;;  %v14102_v17 = vld [vmem:[#allocation11 + $0xd40] sm:$0xff]  ;;  %v10814_v29 = vunpack.i.h.bf16 %v14037_v32  ;;  %v5723_v46 = vunpack.c.h.bf16 %v11010_v60  ;;  %v11012_v43 = vld [vmem:[#allocation11 + $0x70] sm:$0xff] }
 0x567   :  { %6704 = vmatpush.msrb.mxu0 %v6398_v35  ;;  %10249 = vmatmul.msk.f32.vlgmr.msrb.gmra.mxu1 %vm109_vm0, %v14091_v18  ;;  %v6386_v35 = vunpack.c.l.bf16 %v14097_v27  ;;  %v14132_v5 = vld [vmem:[#allocation11 + $0xd00] sm:$0xff] }
 0x568   :  { %6740 = vmatpush.msrb.mxu2 %v5583_v48  ;;  %6764 = vmatpush.msra.mxu1 %v5631_v30  ;;  %v5007_v48 = vmax.f32 %v4933_v47, %v4978_v33  ;;  %v6302_v30 = vunpack.c.l.bf16 %v5468_v38  ;;  %v14118_v47 = vld [vmem:[#allocation11 + $0xd20] sm:$0xff]  ;;  %v5052_v11 = vsel %vm679_vm4, %v10813_v41, %v10814_v29  ;;  %v11013_v38 = vld [vmem:[#allocation11 + $0x130] sm:$0xff]  ;;  %v6366_v51 = vunpack.c.l.bf16 %v14132_v5 }
 0x569   :  { %6689 = vmatpush.msra.mxu3 %v6314_v10  ;;  %6705 = vmatpush.msrb.mxu0 %v6394_v59  ;;  %v14111_v10 = vld [vmem:[#allocation11 + $0xd30] sm:$0xff]  ;;  %v6382_v59 = vunpack.c.l.bf16 %v14102_v17  ;;  %v5611_v36 = vunpack.c.h.bf16 %v11013_v38  ;;  %v11014_v41 = vld [vmem:[#allocation11 + $0x2e0] sm:$0xff]  ;;  %v6374_v33 = vunpack.c.l.bf16 %v14118_v47 }
 0x56a   :  { %6741 = vmatpush.msrb.mxu2 %v5579_v1  ;;  %6765 = vmatpush.msra.mxu1 %v5627_v53  ;;  %v5567_v1 = vunpack.c.h.bf16 %v11008_v7  ;;  %v6378_v23 = vunpack.c.l.bf16 %v14111_v10  ;;  %v14126_v53 = vmax.f32 %v5007_v48, %v5052_v11  ;;  %v11020_v60 = vld [vmem:[#allocation11 + $0x2c0] sm:$0xff] }
 0x56b   :  { %6690 = vmatpush.msra.mxu3 %v6310_v49  ;;  %6706 = vmatpush.msrb.mxu0 %v6390_v9  ;;  %v11011_v49 = vld [vmem:[#allocation3 + $0x70] sm:$0xff] }
 0x56c   :  { %6742 = vmatpush.msrb.mxu2 %v5575_v63  ;;  %6766 = vmatpush.msra.mxu1 %v5623_v52  ;;  %16008 = vst [vmem:[#allocation24_spill] sm:$0xff] %v14126_v53  ;;  %v4934_v9 = vmax.f32 %v11011_v49, %v4905_v21  ;;  %v5563_v63 = vunpack.c.h.bf16 %v11012_v43  ;;  %v14128_v52 = vld [vmem:[#allocation11 + $0xd10] sm:$0xff]  ;;  %v5711_v49 = vunpack.c.h.bf16 %v11020_v60  ;;  %v11034_v60 = vld [vmem:[#allocation11 + $0x280] sm:$0xff] }
 0x56d   :  { %6691 = vmatpush.msra.mxu3 %v6306_v44  ;;  %6707 = vmatpush.msrb.mxu0 %v6386_v35  ;;  %v5719_v44 = vunpack.c.h.bf16 %v11014_v41  ;;  %v11015_v35 = vld [vmem:[#allocation11 + $0x60] sm:$0xff]  ;;  %v11023_v43 = vld [vmem:[#allocation11 + $0x2b0] sm:$0xff] }
 0x56e   :  { %6743 = vmatpush.msrb.mxu2 %v5571_v40  ;;  %6767 = vmatpush.msra.mxu1 %v5619_v37  ;;  %v5559_v62 = vunpack.c.h.bf16 %v11015_v35  ;;  %v11016_v40 = vld [vmem:[#allocation11 + $0x120] sm:$0xff]  ;;  %v4979_v37 = vsel %vm532_vm3, %v10809_v0, %v14071_v57  ;;  %vm8291_vm3 = vcmask 924672  }
 0x56f   :  { %6692 = vmatpush.msra.mxu3 %v6302_v30  ;;  %6708 = vmatpush.msrb.mxu0 %v6382_v59  ;;  %v5607_v48 = vunpack.c.h.bf16 %v11016_v40  ;;  %v11017_v30 = vld [vmem:[#allocation11 + $0x2d0] sm:$0xff]  ;;  %v6370_v59 = vunpack.c.l.bf16 %v14128_v52  ;;  %v5008_v7 = vmax.f32 %v4934_v9, %v4979_v37  ;;  %v11021_v57 = vld [vmem:[#allocation11 + $0x40] sm:$0xff] }
 0x570   :  { %6744 = vmatpush.msrb.mxu2 %v5567_v1  ;;  %6693 = vmatmul.f32.vlgmr.msra.gmra.mxu3 %v14126_v53  ;;  %v5715_v21 = vunpack.c.h.bf16 %v11017_v30  ;;  %v11018_v1 = vld [vmem:[#allocation11 + $0x50] sm:$0xff]  ;;  %v5551_v0 = vunpack.c.h.bf16 %v11021_v57  ;;  %v11026_v35 = vld [vmem:[#allocation11 + $0x2a0] sm:$0xff] }
 0x571   :  { %6768 = vmatpush.msra.mxu1 %v5615_v56  ;;  %6777 = vmatpush.msrb.mxu3 %v5723_v46  ;;  %v5555_v55 = vunpack.c.h.bf16 %v11018_v1  ;;  %v11019_v56 = vld [vmem:[#allocation11 + $0x110] sm:$0xff]  ;;  %v5053_v46 = vsel %vm679_vm4, %v10814_v29, %v14080_v34  ;;  %v5703_v32 = vunpack.c.h.bf16 %v11026_v35  ;;  %vm8399_vm4 = vcmask 916480  }
 0x572   :  { %6709 = vmatpush.msrb.mxu0 %v6378_v23  ;;  %6745 = vmatpush.msrb.mxu2 %v5563_v63  ;;  %v5603_v11 = vunpack.c.h.bf16 %v11019_v56  ;;  %v11022_v23 = vld [vmem:[#allocation11 + $0x100] sm:$0xff]  ;;  %v5707_v63 = vunpack.c.h.bf16 %v11023_v43  ;;  %v14144_v38 = vmax.f32 %v5008_v7, %v5053_v46  ;;  %v11027_v34 = vld [vmem:[#allocation11 + $0x5f0] sm:$0xff] }
 0x573   :  { %6769 = vmatpush.msra.mxu1 %v5611_v36  ;;  %6778 = vmatpush.msrb.mxu3 %v5719_v44  ;;  %v5599_v9 = vunpack.c.h.bf16 %v11022_v23  ;;  %v11024_v36 = vld [vmem:[#allocation11 + $0x3f0] sm:$0xff]  ;;  %v5915_v29 = vunpack.c.h.bf16 %v11027_v34  ;;  %v11037_v23 = vld [vmem:[#allocation11] sm:$0xff] }
 0x574   :  { %6710 = vmatpush.msrb.mxu0 %v6374_v33  ;;  %6746 = vmatpush.msrb.mxu2 %v5559_v62  ;;  %v5787_v41 = vunpack.c.h.bf16 %v11024_v36  ;;  %v11025_v44 = vld [vmem:[#allocation11 + $0x30] sm:$0xff]  ;;  %v11028_v62 = vld [vmem:[#allocation11 + $0x3e0] sm:$0xff] }
 0x575   :  { %6770 = vmatpush.msra.mxu1 %v5607_v48  ;;  %6779 = vmatpush.msrb.mxu3 %v5715_v21  ;;  %v5547_v33 = vunpack.c.h.bf16 %v11025_v44  ;;  %v5783_v40 = vunpack.c.h.bf16 %v11028_v62  ;;  %v11029_v48 = vld [vmem:[#allocation11 + $0x20] sm:$0xff]  ;;  %v11030_v30 = vld [vmem:[#allocation11 + $0x290] sm:$0xff] }
 0x576   :  { %6711 = vmatpush.msrb.mxu0 %v6370_v59  ;;  %6747 = vmatpush.msrb.mxu2 %v5555_v55  ;;  %v5543_v37 = vunpack.c.h.bf16 %v11029_v48  ;;  %v5699_v21 = vunpack.c.h.bf16 %v11030_v30  ;;  %v11031_v59 = vld [vmem:[#allocation11 + $0x5e0] sm:$0xff]  ;;  %v11032_v1 = vld [vmem:[#allocation11 + $0x3d0] sm:$0xff] }
 0x577   :  { %6771 = vmatpush.msra.mxu1 %v5603_v11  ;;  %6780 = vmatpush.msrb.mxu3 %v5711_v49  ;;  %v5911_v7 = vunpack.c.h.bf16 %v11031_v59  ;;  %v5779_v55 = vunpack.c.h.bf16 %v11032_v1  ;;  %v11033_v56 = vld [vmem:[#allocation11 + $0x10] sm:$0xff]  ;;  %v5695_v49 = vunpack.c.h.bf16 %v11034_v60  ;;  %v11039_v36 = vld [vmem:[#allocation11 + $0x5c0] sm:$0xff] }
 0x578   :  { %6712 = vmatpush.msrb.mxu0 %v6366_v51  ;;  %6748 = vmatpush.msrb.mxu2 %v5551_v0  ;;  %v5539_v11 = vunpack.c.h.bf16 %v11033_v56  ;;  %v11035_v51 = vld [vmem:[#allocation11 + $0x5d0] sm:$0xff]  ;;  %v11036_v0 = vld [vmem:[#allocation11 + $0x3c0] sm:$0xff] }
 0x579   :  { %6713 = vmatmul.f32.vlgmr.msrb.gmra.mxu0 %v14144_v38  ;;  %6772 = vmatpush.msra.mxu1 %v5599_v9  ;;  %v5907_v57 = vunpack.c.h.bf16 %v11035_v51  ;;  %v5775_v46 = vunpack.c.h.bf16 %v11036_v0  ;;  %v5535_v9 = vunpack.c.h.bf16 %v11037_v23  ;;  %v11038_v43 = vld [vmem:[#allocation11 + $0x270] sm:$0xff]  ;;  %v11043_v62 = vld [vmem:[#allocation11 + $0x260] sm:$0xff] }
 0x57a   :  { %6781 = vmatpush.msrb.mxu3 %v5707_v63  ;;  %6797 = vmatpush.msra.mxu0 %v5787_v41  ;;  %v5691_v63 = vunpack.c.h.bf16 %v11038_v43  ;;  %v5903_v41 = vunpack.c.h.bf16 %v11039_v36  ;;  %v11040_v44 = vld [vmem:[#allocation11 + $0x3b0] sm:$0xff]  ;;  %v11044_v48 = vld [vmem:[#allocation11 + $0x3a0] sm:$0xff] }
 0x57b   :  { %6749 = vmatpush.msrb.mxu2 %v5547_v33  ;;  %6773 = vmatmul.f32.vlgmr.msra.gmra.mxu1 %v13839_v39  ;;  %v5771_v33 = vunpack.c.h.bf16 %v11040_v44  ;;  %v11041_v35 = vld [vmem:[#allocation11 + $0x4f0] sm:$0xff]  ;;  %v11045_v30 = vld [vmem:[#allocation11 + $0x4e0] sm:$0xff] }
 0x57c   :  { %6782 = vmatpush.msrb.mxu3 %v5703_v32  ;;  %6837 = vmatpush.msrb.mxu1 %v5915_v29  ;;  %v5851_v32 = vunpack.c.h.bf16 %v11041_v35  ;;  %v11042_v34 = vld [vmem:[#allocation11 + $0x5b0] sm:$0xff]  ;;  %v11046_v59 = vld [vmem:[#allocation11 + $0x5a0] sm:$0xff] }
 0x57d   :  { %6798 = vmatpush.msra.mxu0 %v5783_v40  ;;  %6750 = vmatpush.msrb.mxu2 %v5543_v37  ;;  %v5899_v29 = vunpack.c.h.bf16 %v11042_v34  ;;  %v5687_v40 = vunpack.c.h.bf16 %v11043_v62  ;;  %v5767_v37 = vunpack.c.h.bf16 %v11044_v48  ;;  %v11047_v1 = vld [vmem:[#allocation11 + $0x250] sm:$0xff]  ;;  %v11051_v0 = vld [vmem:[#allocation11 + $0x240] sm:$0xff] }
 0x57e   :  { %6783 = vmatpush.msrb.mxu3 %v5699_v21  ;;  %6838 = vmatpush.msrb.mxu1 %v5911_v7  ;;  %v5847_v21 = vunpack.c.h.bf16 %v11045_v30  ;;  %v5895_v7 = vunpack.c.h.bf16 %v11046_v59  ;;  %v11048_v56 = vld [vmem:[#allocation11 + $0x390] sm:$0xff]  ;;  %v11052_v23 = vld [vmem:[#allocation11 + $0x380] sm:$0xff] }
 0x57f   :  { %6799 = vmatpush.msra.mxu0 %v5779_v55  ;;  %6751 = vmatpush.msrb.mxu2 %v5539_v11  ;;  %v5683_v55 = vunpack.c.h.bf16 %v11047_v1  ;;  %v5763_v11 = vunpack.c.h.bf16 %v11048_v56  ;;  %v11049_v60 = vld [vmem:[#allocation11 + $0x4d0] sm:$0xff]  ;;  %v11053_v43 = vld [vmem:[#allocation11 + $0x4c0] sm:$0xff] }
 0x580   :  { %6784 = vmatpush.msrb.mxu3 %v5695_v49  ;;  %6839 = vmatpush.msrb.mxu1 %v5907_v57  ;;  %v5843_v49 = vunpack.c.h.bf16 %v11049_v60  ;;  %v11050_v51 = vld [vmem:[#allocation11 + $0x590] sm:$0xff]  ;;  %v11054_v36 = vld [vmem:[#allocation11 + $0x580] sm:$0xff] }
 0x581   :  { %6800 = vmatpush.msra.mxu0 %v5775_v46  ;;  %6752 = vmatpush.msrb.mxu2 %v5535_v9  ;;  %v5891_v57 = vunpack.c.h.bf16 %v11050_v51  ;;  %v5679_v46 = vunpack.c.h.bf16 %v11051_v0  ;;  %v5759_v9 = vunpack.c.h.bf16 %v11052_v23  ;;  %v11055_v44 = vld [vmem:[#allocation11 + $0x230] sm:$0xff]  ;;  %v11059_v48 = vld [vmem:[#allocation11 + $0x220] sm:$0xff] }
 0x582   :  { %6785 = vmatpush.msrb.mxu3 %v5691_v63  ;;  %6840 = vmatpush.msrb.mxu1 %v5903_v41  ;;  %v5839_v63 = vunpack.c.h.bf16 %v11053_v43  ;;  %v5887_v41 = vunpack.c.h.bf16 %v11054_v36  ;;  %v11056_v35 = vld [vmem:[#allocation11 + $0x370] sm:$0xff]  ;;  %v11060_v30 = vld [vmem:[#allocation11 + $0x360] sm:$0xff] }
 0x583   :  { %6753 = vmatmul.f32.vlgmr.msrb.gmra.mxu2 %v13818_v8  ;;  %6801 = vmatpush.msra.mxu0 %v5771_v33  ;;  %v5675_v33 = vunpack.c.h.bf16 %v11055_v44  ;;  %v11057_v34 = vld [vmem:[#allocation11 + $0x4b0] sm:$0xff]  ;;  %v11061_v59 = vld [vmem:[#allocation11 + $0x4a0] sm:$0xff] }
 0x584   :  { %6817 = vmatpush.msra.mxu2 %v5851_v32  ;;  %6841 = vmatpush.msrb.mxu1 %v5899_v29  ;;  %v5755_v32 = vunpack.c.h.bf16 %v11056_v35  ;;  %v5835_v29 = vunpack.c.h.bf16 %v11057_v34  ;;  %v11058_v62 = vld [vmem:[#allocation11 + $0x570] sm:$0xff]  ;;  %v11062_v1 = vld [vmem:[#allocation11 + $0x560] sm:$0xff] }
 0x585   :  { %6786 = vmatpush.msrb.mxu3 %v5687_v40  ;;  %6802 = vmatpush.msra.mxu0 %v5767_v37  ;;  %v5883_v40 = vunpack.c.h.bf16 %v11058_v62  ;;  %v5671_v37 = vunpack.c.h.bf16 %v11059_v48  ;;  %v11063_v56 = vld [vmem:[#allocation11 + $0x210] sm:$0xff]  ;;  %v11067_v23 = vld [vmem:[#allocation11 + $0x200] sm:$0xff] }
 0x586   :  { %6818 = vmatpush.msra.mxu2 %v5847_v21  ;;  %6842 = vmatpush.msrb.mxu1 %v5895_v7  ;;  %v5751_v21 = vunpack.c.h.bf16 %v11060_v30  ;;  %v5831_v7 = vunpack.c.h.bf16 %v11061_v59  ;;  %v11064_v60 = vld [vmem:[#allocation11 + $0x350] sm:$0xff]  ;;  %v11068_v43 = vld [vmem:[#allocation11 + $0x340] sm:$0xff] }
 0x587   :  { %6787 = vmatpush.msrb.mxu3 %v5683_v55  ;;  %6803 = vmatpush.msra.mxu0 %v5763_v11  ;;  %v5879_v55 = vunpack.c.h.bf16 %v11062_v1  ;;  %v5667_v11 = vunpack.c.h.bf16 %v11063_v56  ;;  %v11065_v51 = vld [vmem:[#allocation11 + $0x490] sm:$0xff]  ;;  %v11069_v36 = vld [vmem:[#allocation11 + $0x480] sm:$0xff] }
 0x588   :  { %6819 = vmatpush.msra.mxu2 %v5843_v49  ;;  %6843 = vmatpush.msrb.mxu1 %v5891_v57  ;;  %v5747_v49 = vunpack.c.h.bf16 %v11064_v60  ;;  %v5827_v57 = vunpack.c.h.bf16 %v11065_v51  ;;  %v11066_v0 = vld [vmem:[#allocation11 + $0x550] sm:$0xff]  ;;  %v11070_v44 = vld [vmem:[#allocation11 + $0x540] sm:$0xff] }
 0x589   :  { %6788 = vmatpush.msrb.mxu3 %v5679_v46  ;;  %6804 = vmatpush.msra.mxu0 %v5759_v9  ;;  %v5875_v46 = vunpack.c.h.bf16 %v11066_v0  ;;  %v5663_v9 = vunpack.c.h.bf16 %v11067_v23  ;;  %v11071_v35 = vld [vmem:[#allocation11 + $0x6f0] sm:$0xff]  ;;  %v11075_v30 = vld [vmem:[#allocation11 + $0x6e0] sm:$0xff] }
 0x58a   :  { %6820 = vmatpush.msra.mxu2 %v5839_v63  ;;  %6844 = vmatpush.msrb.mxu1 %v5887_v41  ;;  %v5743_v63 = vunpack.c.h.bf16 %v11068_v43  ;;  %v5823_v41 = vunpack.c.h.bf16 %v11069_v36  ;;  %v11072_v34 = vld [vmem:[#allocation11 + $0x330] sm:$0xff]  ;;  %v11076_v59 = vld [vmem:[#allocation11 + $0x320] sm:$0xff] }
 0x58b   :  { %6789 = vmatpush.msrb.mxu3 %v5675_v33  ;;  %6805 = vmatpush.msra.mxu0 %v5755_v32  ;;  %v5871_v33 = vunpack.c.h.bf16 %v11070_v44  ;;  %v5979_v32 = vunpack.c.h.bf16 %v11071_v35  ;;  %v11073_v62 = vld [vmem:[#allocation11 + $0x470] sm:$0xff]  ;;  %v11077_v1 = vld [vmem:[#allocation11 + $0x460] sm:$0xff] }
 0x58c   :  { %6821 = vmatpush.msra.mxu2 %v5835_v29  ;;  %6845 = vmatpush.msrb.mxu1 %v5883_v40  ;;  %v5739_v29 = vunpack.c.h.bf16 %v11072_v34  ;;  %v5819_v40 = vunpack.c.h.bf16 %v11073_v62  ;;  %v11074_v48 = vld [vmem:[#allocation11 + $0x530] sm:$0xff]  ;;  %v11078_v56 = vld [vmem:[#allocation11 + $0x520] sm:$0xff] }
 0x58d   :  { %6790 = vmatpush.msrb.mxu3 %v5671_v37  ;;  %6806 = vmatpush.msra.mxu0 %v5751_v21  ;;  %v5867_v37 = vunpack.c.h.bf16 %v11074_v48  ;;  %v5975_v21 = vunpack.c.h.bf16 %v11075_v30  ;;  %v11079_v60 = vld [vmem:[#allocation11 + $0x6d0] sm:$0xff]  ;;  %v11083_v43 = vld [vmem:[#allocation11 + $0x6c0] sm:$0xff] }
 0x58e   :  { %6822 = vmatpush.msra.mxu2 %v5831_v7  ;;  %6846 = vmatpush.msrb.mxu1 %v5879_v55  ;;  %v5735_v7 = vunpack.c.h.bf16 %v11076_v59  ;;  %v5815_v55 = vunpack.c.h.bf16 %v11077_v1  ;;  %v11080_v51 = vld [vmem:[#allocation11 + $0x310] sm:$0xff]  ;;  %v11084_v36 = vld [vmem:[#allocation11 + $0x300] sm:$0xff] }
 0x58f   :  { %6791 = vmatpush.msrb.mxu3 %v5667_v11  ;;  %6807 = vmatpush.msra.mxu0 %v5747_v49  ;;  %v5863_v11 = vunpack.c.h.bf16 %v11078_v56  ;;  %v5971_v49 = vunpack.c.h.bf16 %v11079_v60  ;;  %v11081_v0 = vld [vmem:[#allocation11 + $0x450] sm:$0xff]  ;;  %v11085_v44 = vld [vmem:[#allocation11 + $0x440] sm:$0xff] }
 0x590   :  { %6823 = vmatpush.msra.mxu2 %v5827_v57  ;;  %6847 = vmatpush.msrb.mxu1 %v5875_v46  ;;  %v5731_v57 = vunpack.c.h.bf16 %v11080_v51  ;;  %v5811_v46 = vunpack.c.h.bf16 %v11081_v0  ;;  %v11082_v23 = vld [vmem:[#allocation11 + $0x510] sm:$0xff]  ;;  %v11086_v35 = vld [vmem:[#allocation11 + $0x500] sm:$0xff] }
 0x591   :  { %6792 = vmatpush.msrb.mxu3 %v5663_v9  ;;  %6808 = vmatpush.msra.mxu0 %v5743_v63  ;;  %v5859_v9 = vunpack.c.h.bf16 %v11082_v23  ;;  %v5967_v63 = vunpack.c.h.bf16 %v11083_v43  ;;  %v11087_v34 = vld [vmem:[#allocation11 + $0x6b0] sm:$0xff]  ;;  %v11090_v30 = vld [vmem:[#allocation11 + $0x6a0] sm:$0xff] }
 0x592   :  { %6824 = vmatpush.msra.mxu2 %v5823_v41  ;;  %6793 = vmatmul.f32.vlgmr.msrb.gmra.mxu3 %v13841_v42  ;;  %v5727_v41 = vunpack.c.h.bf16 %v11084_v36  ;;  %v11088_v62 = vld [vmem:[#allocation11 + $0x7f0] sm:$0xff]  ;;  %v11092_v1 = vld [vmem:[#allocation11 + $0x7e0] sm:$0xff] }
 0x593   :  { %6848 = vmatpush.msrb.mxu1 %v5871_v33  ;;  %6857 = vmatpush.msra.mxu3 %v5979_v32  ;;  %v5807_v33 = vunpack.c.h.bf16 %v11085_v44  ;;  %v5855_v32 = vunpack.c.h.bf16 %v11086_v35  ;;  %v11089_v48 = vld [vmem:[#allocation11 + $0x430] sm:$0xff]  ;;  %v11093_v56 = vld [vmem:[#allocation11 + $0x420] sm:$0xff] }
 0x594   :  { %6809 = vmatpush.msra.mxu0 %v5739_v29  ;;  %6825 = vmatpush.msra.mxu2 %v5819_v40  ;;  %v5963_v29 = vunpack.c.h.bf16 %v11087_v34  ;;  %v6043_v40 = vunpack.c.h.bf16 %v11088_v62  ;;  %v11091_v59 = vld [vmem:[#allocation11 + $0x9f0] sm:$0xff]  ;;  %v11095_v51 = vld [vmem:[#allocation11 + $0x9e0] sm:$0xff] }
 0x595   :  { %6849 = vmatpush.msrb.mxu1 %v5867_v37  ;;  %6858 = vmatpush.msra.mxu3 %v5975_v21  ;;  %v5803_v37 = vunpack.c.h.bf16 %v11089_v48  ;;  %v5959_v21 = vunpack.c.h.bf16 %v11090_v30  ;;  %v11094_v60 = vld [vmem:[#allocation11 + $0x690] sm:$0xff]  ;;  %v11098_v43 = vld [vmem:[#allocation11 + $0x680] sm:$0xff] }
 0x596   :  { %6810 = vmatpush.msra.mxu0 %v5735_v7  ;;  %6826 = vmatpush.msra.mxu2 %v5815_v55  ;;  %v6171_v7 = vunpack.c.h.bf16 %v11091_v59  ;;  %v6039_v55 = vunpack.c.h.bf16 %v11092_v1  ;;  %v11096_v0 = vld [vmem:[#allocation11 + $0x7d0] sm:$0xff]  ;;  %v11100_v44 = vld [vmem:[#allocation11 + $0x7c0] sm:$0xff] }
 0x597   :  { %6850 = vmatpush.msrb.mxu1 %v5863_v11  ;;  %6859 = vmatpush.msra.mxu3 %v5971_v49  ;;  %v5799_v11 = vunpack.c.h.bf16 %v11093_v56  ;;  %v5955_v49 = vunpack.c.h.bf16 %v11094_v60  ;;  %v11097_v23 = vld [vmem:[#allocation11 + $0x410] sm:$0xff]  ;;  %v11101_v35 = vld [vmem:[#allocation11 + $0x400] sm:$0xff] }
 0x598   :  { %6811 = vmatpush.msra.mxu0 %v5731_v57  ;;  %6827 = vmatpush.msra.mxu2 %v5811_v46  ;;  %v6167_v57 = vunpack.c.h.bf16 %v11095_v51  ;;  %v6035_v46 = vunpack.c.h.bf16 %v11096_v0  ;;  %v11099_v36 = vld [vmem:[#allocation11 + $0x9d0] sm:$0xff]  ;;  %v11103_v62 = vld [vmem:[#allocation11 + $0x9c0] sm:$0xff] }
 0x599   :  { %6851 = vmatpush.msrb.mxu1 %v5859_v9  ;;  %6860 = vmatpush.msra.mxu3 %v5967_v63  ;;  %v5795_v9 = vunpack.c.h.bf16 %v11097_v23  ;;  %v5951_v63 = vunpack.c.h.bf16 %v11098_v43  ;;  %v11102_v34 = vld [vmem:[#allocation11 + $0x670] sm:$0xff]  ;;  %v11107_v1 = vld [vmem:[#allocation11 + $0x660] sm:$0xff] }
 0x59a   :  { %6812 = vmatpush.msra.mxu0 %v5727_v41  ;;  %6828 = vmatpush.msra.mxu2 %v5807_v33  ;;  %v6163_v41 = vunpack.c.h.bf16 %v11099_v36  ;;  %v6031_v33 = vunpack.c.h.bf16 %v11100_v44  ;;  %v11104_v48 = vld [vmem:[#allocation11 + $0x7b0] sm:$0xff]  ;;  %v11108_v56 = vld [vmem:[#allocation11 + $0x7a0] sm:$0xff] }
 0x59b   :  { %6813 = vmatmul.f32.vlgmr.msra.gmra.mxu0 %v13877_v13  ;;  %6852 = vmatpush.msrb.mxu1 %v5855_v32  ;;  %v5791_v32 = vunpack.c.h.bf16 %v11101_v35  ;;  %v11105_v30 = vld [vmem:[#allocation11 + $0x8f0] sm:$0xff]  ;;  %v11109_v60 = vld [vmem:[#allocation11 + $0x8e0] sm:$0xff] }
 0x59c   :  { %6861 = vmatpush.msra.mxu3 %v5963_v29  ;;  %6877 = vmatpush.msrb.mxu0 %v6043_v40  ;;  %v5947_v29 = vunpack.c.h.bf16 %v11102_v34  ;;  %v6159_v40 = vunpack.c.h.bf16 %v11103_v62  ;;  %v11106_v59 = vld [vmem:[#allocation11 + $0x9b0] sm:$0xff]  ;;  %v11110_v51 = vld [vmem:[#allocation11 + $0x9a0] sm:$0xff] }
 0x59d   :  { %6829 = vmatpush.msra.mxu2 %v5803_v37  ;;  %6853 = vmatmul.f32.vlgmr.msrb.gmra.mxu1 %v13957_v19  ;;  %v6027_v37 = vunpack.c.h.bf16 %v11104_v48  ;;  %v11111_v0 = vld [vmem:[#allocation11 + $0x650] sm:$0xff]  ;;  %v11115_v44 = vld [vmem:[#allocation11 + $0x640] sm:$0xff] }
 0x59e   :  { %6862 = vmatpush.msra.mxu3 %v5959_v21  ;;  %6917 = vmatpush.msra.mxu1 %v6171_v7  ;;  %v6107_v21 = vunpack.c.h.bf16 %v11105_v30  ;;  %v6155_v7 = vunpack.c.h.bf16 %v11106_v59  ;;  %v11112_v23 = vld [vmem:[#allocation11 + $0x790] sm:$0xff]  ;;  %v11116_v35 = vld [vmem:[#allocation11 + $0x780] sm:$0xff] }
 0x59f   :  { %6878 = vmatpush.msrb.mxu0 %v6039_v55  ;;  %6830 = vmatpush.msra.mxu2 %v5799_v11  ;;  %v5943_v55 = vunpack.c.h.bf16 %v11107_v1  ;;  %v6023_v11 = vunpack.c.h.bf16 %v11108_v56  ;;  %v11113_v43 = vld [vmem:[#allocation11 + $0x8d0] sm:$0xff]  ;;  %v11117_v34 = vld [vmem:[#allocation11 + $0x8c0] sm:$0xff] }
 0x5a0   :  { %6863 = vmatpush.msra.mxu3 %v5955_v49  ;;  %6918 = vmatpush.msra.mxu1 %v6167_v57  ;;  %v6103_v49 = vunpack.c.h.bf16 %v11109_v60  ;;  %v6151_v57 = vunpack.c.h.bf16 %v11110_v51  ;;  %v11114_v36 = vld [vmem:[#allocation11 + $0x990] sm:$0xff]  ;;  %v11118_v62 = vld [vmem:[#allocation11 + $0x980] sm:$0xff] }
 0x5a1   :  { %6879 = vmatpush.msrb.mxu0 %v6035_v46  ;;  %6831 = vmatpush.msra.mxu2 %v5795_v9  ;;  %v5939_v46 = vunpack.c.h.bf16 %v11111_v0  ;;  %v6019_v9 = vunpack.c.h.bf16 %v11112_v23  ;;  %v11119_v48 = vld [vmem:[#allocation11 + $0x630] sm:$0xff]  ;;  %v11123_v56 = vld [vmem:[#allocation11 + $0x620] sm:$0xff] }
 0x5a2   :  { %6864 = vmatpush.msra.mxu3 %v5951_v63  ;;  %6919 = vmatpush.msra.mxu1 %v6163_v41  ;;  %v6099_v63 = vunpack.c.h.bf16 %v11113_v43  ;;  %v6147_v41 = vunpack.c.h.bf16 %v11114_v36  ;;  %v11120_v30 = vld [vmem:[#allocation11 + $0x770] sm:$0xff]  ;;  %v11124_v60 = vld [vmem:[#allocation11 + $0x760] sm:$0xff] }
 0x5a3   :  { %6880 = vmatpush.msrb.mxu0 %v6031_v33  ;;  %6832 = vmatpush.msra.mxu2 %v5791_v32  ;;  %v5935_v33 = vunpack.c.h.bf16 %v11115_v44  ;;  %v6015_v32 = vunpack.c.h.bf16 %v11116_v35  ;;  %v11121_v59 = vld [vmem:[#allocation11 + $0x8b0] sm:$0xff]  ;;  %v11125_v51 = vld [vmem:[#allocation11 + $0x8a0] sm:$0xff] }
 0x5a4   :  { %6865 = vmatpush.msra.mxu3 %v5947_v29  ;;  %6920 = vmatpush.msra.mxu1 %v6159_v40  ;;  %v6095_v29 = vunpack.c.h.bf16 %v11117_v34  ;;  %v6143_v40 = vunpack.c.h.bf16 %v11118_v62  ;;  %v11122_v1 = vld [vmem:[#allocation11 + $0x970] sm:$0xff]  ;;  %v11126_v0 = vld [vmem:[#allocation11 + $0x960] sm:$0xff] }
 0x5a5   :  { %6833 = vmatmul.f32.vlgmr.msra.gmra.mxu2 %v13879_v15  ;;  %6881 = vmatpush.msrb.mxu0 %v6027_v37  ;;  %v5931_v37 = vunpack.c.h.bf16 %v11119_v48  ;;  %v11127_v23 = vld [vmem:[#allocation11 + $0x610] sm:$0xff]  ;;  %v11131_v35 = vld [vmem:[#allocation11 + $0x600] sm:$0xff] }
 0x5a6   :  { %6897 = vmatpush.msrb.mxu2 %v6107_v21  ;;  %6921 = vmatpush.msra.mxu1 %v6155_v7  ;;  %v6011_v21 = vunpack.c.h.bf16 %v11120_v30  ;;  %v6091_v7 = vunpack.c.h.bf16 %v11121_v59  ;;  %v11128_v43 = vld [vmem:[#allocation11 + $0x750] sm:$0xff]  ;;  %v11132_v34 = vld [vmem:[#allocation11 + $0x740] sm:$0xff] }
 0x5a7   :  { %6866 = vmatpush.msra.mxu3 %v5943_v55  ;;  %6882 = vmatpush.msrb.mxu0 %v6023_v11  ;;  %v6139_v55 = vunpack.c.h.bf16 %v11122_v1  ;;  %v5927_v11 = vunpack.c.h.bf16 %v11123_v56  ;;  %v11129_v36 = vld [vmem:[#allocation11 + $0x890] sm:$0xff]  ;;  %v11133_v62 = vld [vmem:[#allocation11 + $0x880] sm:$0xff] }
 0x5a8   :  { %6898 = vmatpush.msrb.mxu2 %v6103_v49  ;;  %6922 = vmatpush.msra.mxu1 %v6151_v57  ;;  %v6007_v49 = vunpack.c.h.bf16 %v11124_v60  ;;  %v6087_v57 = vunpack.c.h.bf16 %v11125_v51  ;;  %v11130_v44 = vld [vmem:[#allocation11 + $0x950] sm:$0xff]  ;;  %v11134_v48 = vld [vmem:[#allocation11 + $0x940] sm:$0xff] }
 0x5a9   :  { %6867 = vmatpush.msra.mxu3 %v5939_v46  ;;  %6883 = vmatpush.msrb.mxu0 %v6019_v9  ;;  %v6135_v46 = vunpack.c.h.bf16 %v11126_v0  ;;  %v5923_v9 = vunpack.c.h.bf16 %v11127_v23  ;;  %v11135_v30 = vld [vmem:[#allocation11 + $0xaf0] sm:$0xff]  ;;  %v11139_v60 = vld [vmem:[#allocation11 + $0xae0] sm:$0xff]  ;;  %v6119_v23 = vunpack.c.h.bf16 %v13982_v54 }
 0x5aa   :  { %6899 = vmatpush.msrb.mxu2 %v6099_v63  ;;  %6923 = vmatpush.msra.mxu1 %v6147_v41  ;;  %v6003_v63 = vunpack.c.h.bf16 %v11128_v43  ;;  %v6083_v41 = vunpack.c.h.bf16 %v11129_v36  ;;  %v11136_v59 = vld [vmem:[#allocation11 + $0x730] sm:$0xff]  ;;  %v11140_v51 = vld [vmem:[#allocation11 + $0x720] sm:$0xff] }
 0x5ab   :  { %6868 = vmatpush.msra.mxu3 %v5935_v33  ;;  %6884 = vmatpush.msrb.mxu0 %v6015_v32  ;;  %v6131_v33 = vunpack.c.h.bf16 %v11130_v44  ;;  %v5919_v32 = vunpack.c.h.bf16 %v11131_v35  ;;  %v11137_v1 = vld [vmem:[#allocation11 + $0x870] sm:$0xff]  ;;  %v11141_v0 = vld [vmem:[#allocation11 + $0x860] sm:$0xff] }
 0x5ac   :  { %6900 = vmatpush.msrb.mxu2 %v6095_v29  ;;  %6924 = vmatpush.msra.mxu1 %v6143_v40  ;;  %v5999_v29 = vunpack.c.h.bf16 %v11132_v34  ;;  %v6079_v40 = vunpack.c.h.bf16 %v11133_v62  ;;  %v11138_v56 = vld [vmem:[#allocation11 + $0x930] sm:$0xff]  ;;  %v11145_v35 = vld [vmem:[#allocation11 + $0xac0] sm:$0xff] }
 0x5ad   :  { %6869 = vmatpush.msra.mxu3 %v5931_v37  ;;  %6885 = vmatpush.msrb.mxu0 %v6011_v21  ;;  %v6127_v37 = vunpack.c.h.bf16 %v11134_v48  ;;  %v6235_v21 = vunpack.c.h.bf16 %v11135_v30  ;;  %v11146_v34 = vld [vmem:[#allocation11 + $0x700] sm:$0xff]  ;;  %v11148_v48 = vld [vmem:[#allocation11 + $0xab0] sm:$0xff] }
 0x5ae   :  { %6901 = vmatpush.msrb.mxu2 %v6091_v7  ;;  %6925 = vmatpush.msra.mxu1 %v6139_v55  ;;  %v5995_v7 = vunpack.c.h.bf16 %v11136_v59  ;;  %v6075_v55 = vunpack.c.h.bf16 %v11137_v1  ;;  %v11147_v54 = vld [vmem:[#allocation11 + $0x840] sm:$0xff]  ;;  %v11149_v30 = vld [vmem:[#allocation11 + $0xbf0] sm:$0xff] }
 0x5af   :  { %6870 = vmatpush.msra.mxu3 %v5927_v11  ;;  %6886 = vmatpush.msrb.mxu0 %v6007_v49  ;;  %v6123_v11 = vunpack.c.h.bf16 %v11138_v56  ;;  %v6231_v49 = vunpack.c.h.bf16 %v11139_v60  ;;  %v6063_v62 = vunpack.c.h.bf16 %v11147_v54  ;;  %v11152_v56 = vld [vmem:[#allocation11 + $0xbe0] sm:$0xff]  ;;  %v11162_v54 = vld [vmem:[#allocation11 + $0xcf0] sm:$0xff] }
 0x5b0   :  { %6902 = vmatpush.msrb.mxu2 %v6087_v57  ;;  %6926 = vmatpush.msra.mxu1 %v6135_v46  ;;  %v5991_v57 = vunpack.c.h.bf16 %v11140_v51  ;;  %v6071_v46 = vunpack.c.h.bf16 %v11141_v0  ;;  %v11155_v0 = vld [vmem:[#allocation11 + $0xbd0] sm:$0xff] }
 0x5b1   :  { %6871 = vmatpush.msra.mxu3 %v5923_v9  ;;  %6887 = vmatpush.msrb.mxu0 %v6003_v63  ;;  %v11142_v9 = vld [vmem:[#allocation11 + $0xad0] sm:$0xff] }
 0x5b2   :  { %6903 = vmatpush.msrb.mxu2 %v6083_v41  ;;  %6927 = vmatpush.msra.mxu1 %v6131_v33  ;;  %v6227_v43 = vunpack.c.h.bf16 %v11142_v9  ;;  %v11143_v63 = vld [vmem:[#allocation11 + $0x710] sm:$0xff]  ;;  %v6115_v33 = vunpack.c.h.bf16 %v13995_v25  ;;  %v6299_v25 = vunpack.c.h.bf16 %v11149_v30 }
 0x5b3   :  { %6872 = vmatpush.msra.mxu3 %v5919_v32  ;;  %6888 = vmatpush.msrb.mxu0 %v5999_v29  ;;  %v5987_v36 = vunpack.c.h.bf16 %v11143_v63  ;;  %v11144_v41 = vld [vmem:[#allocation11 + $0x850] sm:$0xff]  ;;  %v6223_v32 = vunpack.c.h.bf16 %v11145_v35  ;;  %v5983_v29 = vunpack.c.h.bf16 %v11146_v34  ;;  %v6419_v63 = vunpack.c.h.bf16 %v14039_v31 }
 0x5b4   :  { %6904 = vmatpush.msrb.mxu2 %v6079_v40  ;;  %6873 = vmatmul.f32.vlgmr.msra.gmra.mxu3 %v13959_v24  ;;  %v6067_v44 = vunpack.c.h.bf16 %v11144_v41  ;;  %v6111_v40 = vunpack.c.h.bf16 %v14002_v4  ;;  %v11153_v4 = vld [vmem:[#allocation11 + $0x820] sm:$0xff]  ;;  %v11161_v34 = vld [vmem:[#allocation11 + $0xbb0] sm:$0xff]  ;;  %v6411_v31 = vunpack.c.h.bf16 %v14055_v3 }
 0x5b5   :  { %6928 = vmatpush.msra.mxu1 %v6127_v37  ;;  %6937 = vmatpush.msrb.mxu3 %v6235_v21  ;;  %v6219_v37 = vunpack.c.h.bf16 %v11148_v48  ;;  %v11150_v21 = vld [vmem:[#allocation11 + $0x830] sm:$0xff]  ;;  %v6055_v60 = vunpack.c.h.bf16 %v11153_v4  ;;  %v11169_v4 = vld [vmem:[#allocation11 + $0xa40] sm:$0xff] }
 0x5b6   :  { %6889 = vmatpush.msrb.mxu0 %v5995_v7  ;;  %6905 = vmatpush.msrb.mxu2 %v6075_v55  ;;  %v6059_v59 = vunpack.c.h.bf16 %v11150_v21  ;;  %v11151_v7 = vld [vmem:[#allocation11 + $0xaa0] sm:$0xff]  ;;  %v6427_v55 = vunpack.c.h.bf16 %v14012_v22  ;;  %v11168_v3 = vld [vmem:[#allocation11 + $0xcd0] sm:$0xff] }
 0x5b7   :  { %6929 = vmatpush.msra.mxu1 %v6123_v11  ;;  %6938 = vmatpush.msrb.mxu3 %v6231_v49  ;;  %v6215_v1 = vunpack.c.h.bf16 %v11151_v7  ;;  %v6295_v11 = vunpack.c.h.bf16 %v11152_v56  ;;  %v11154_v49 = vld [vmem:[#allocation11 + $0xa90] sm:$0xff]  ;;  %v11157_v22 = vld [vmem:[#allocation11 + $0xa80] sm:$0xff]  ;;  %v6355_v56 = vunpack.c.h.bf16 %v11168_v3 }
 0x5b8   :  { %6890 = vmatpush.msrb.mxu0 %v5991_v57  ;;  %6906 = vmatpush.msrb.mxu2 %v6071_v46  ;;  %v6211_v51 = vunpack.c.h.bf16 %v11154_v49  ;;  %v6423_v57 = vunpack.c.h.bf16 %v14032_v26  ;;  %v6291_v46 = vunpack.c.h.bf16 %v11155_v0  ;;  %v11160_v26 = vld [vmem:[#allocation11 + $0xa70] sm:$0xff]  ;;  %v11170_v49 = vld [vmem:[#allocation11 + $0xb80] sm:$0xff]  ;;  %v6399_v0 = vunpack.c.h.bf16 %v14076_v6 }
 0x5b9   :  { %6930 = vmatpush.msra.mxu1 %v6119_v23  ;;  %6939 = vmatpush.msrb.mxu3 %v6227_v43  ;;  %v11156_v23 = vld [vmem:[#allocation11 + $0x810] sm:$0xff]  ;;  %v6207_v43 = vunpack.c.h.bf16 %v11157_v22  ;;  %v6203_v35 = vunpack.c.h.bf16 %v11160_v26  ;;  %v11177_v26 = vld [vmem:[#allocation11 + $0xca0] sm:$0xff] }
 0x5ba   :  { %6891 = vmatpush.msrb.mxu0 %v5987_v36  ;;  %6907 = vmatpush.msrb.mxu2 %v6067_v44  ;;  %v6051_v9 = vunpack.c.h.bf16 %v11156_v23  ;;  %v11158_v36 = vld [vmem:[#allocation11 + $0xbc0] sm:$0xff]  ;;  %v6343_v6 = vunpack.c.h.bf16 %v11177_v26  ;;  %v11186_v3 = vld [vmem:[#allocation11 + $0xc70] sm:$0xff] }
 0x5bb   :  { %6931 = vmatpush.msra.mxu1 %v6115_v33  ;;  %6940 = vmatpush.msrb.mxu3 %v6223_v32  ;;  %v6287_v41 = vunpack.c.h.bf16 %v11158_v36  ;;  %v11159_v44 = vld [vmem:[#allocation11 + $0x800] sm:$0xff]  ;;  %v6415_v32 = vunpack.c.h.bf16 %v14043_v50  ;;  %v6407_v50 = vunpack.c.h.bf16 %v14059_v2 }
 0x5bc   :  { %6892 = vmatpush.msrb.mxu0 %v5983_v29  ;;  %6908 = vmatpush.msrb.mxu2 %v6063_v62  ;;  %v6047_v33 = vunpack.c.h.bf16 %v11159_v44  ;;  %v6283_v29 = vunpack.c.h.bf16 %v11161_v34  ;;  %v6363_v62 = vunpack.c.h.bf16 %v11162_v54  ;;  %v11175_v36 = vld [vmem:[#allocation11 + $0xa20] sm:$0xff] }
 0x5bd   :  { %6893 = vmatmul.f32.vlgmr.msrb.gmra.mxu0 %v13962_v14  ;;  %6932 = vmatpush.msra.mxu1 %v6111_v40  ;;  %v11163_v40 = vld [vmem:[#allocation11 + $0xa60] sm:$0xff] }
 0x5be   :  { %6941 = vmatpush.msrb.mxu3 %v6219_v37  ;;  %6957 = vmatpush.msra.mxu0 %v6299_v25  ;;  %v6199_v48 = vunpack.c.h.bf16 %v11163_v40  ;;  %v11164_v37 = vld [vmem:[#allocation11 + $0xba0] sm:$0xff] }
 0x5bf   :  { %6909 = vmatpush.msrb.mxu2 %v6059_v59  ;;  %6933 = vmatmul.f32.vlgmr.msra.gmra.mxu1 %v14030_v20  ;;  %v6279_v30 = vunpack.c.h.bf16 %v11164_v37  ;;  %v11165_v25 = vld [vmem:[#allocation11 + $0xce0] sm:$0xff]  ;;  %v11166_v59 = vld [vmem:[#allocation11 + $0xa50] sm:$0xff] }
 0x5c0   :  { %6942 = vmatpush.msrb.mxu3 %v6215_v1  ;;  %6997 = vmatpush.msrb.mxu1 %v6427_v55  ;;  %v6359_v21 = vunpack.c.h.bf16 %v11165_v25  ;;  %v6195_v7 = vunpack.c.h.bf16 %v11166_v59  ;;  %v11167_v1 = vld [vmem:[#allocation11 + $0xb90] sm:$0xff]  ;;  %v11176_v44 = vld [vmem:[#allocation11 + $0xb60] sm:$0xff] }
 0x5c1   :  { %6958 = vmatpush.msra.mxu0 %v6295_v11  ;;  %6910 = vmatpush.msrb.mxu2 %v6055_v60  ;;  %v6275_v55 = vunpack.c.h.bf16 %v11167_v1  ;;  %v6403_v11 = vunpack.c.h.bf16 %v14069_v16  ;;  %v6191_v60 = vunpack.c.h.bf16 %v11169_v4  ;;  %v11181_v40 = vld [vmem:[#allocation11 + $0xa00] sm:$0xff]  ;;  %v11185_v1 = vld [vmem:[#allocation11 + $0xb30] sm:$0xff]  ;;  %v6379_v4 = vunpack.c.h.bf16 %v14111_v10 }
 0x5c2   :  { %6943 = vmatpush.msrb.mxu3 %v6211_v51  ;;  %6998 = vmatpush.msrb.mxu1 %v6423_v57  ;;  %v6271_v51 = vunpack.c.h.bf16 %v11170_v49  ;;  %v11171_v57 = vld [vmem:[#allocation11 + $0xcc0] sm:$0xff]  ;;  %v11190_v10 = vld [vmem:[#allocation11 + $0xc50] sm:$0xff] }
 0x5c3   :  { %6959 = vmatpush.msra.mxu0 %v6291_v46  ;;  %6911 = vmatpush.msrb.mxu2 %v6051_v9  ;;  %v6351_v2 = vunpack.c.h.bf16 %v11171_v57  ;;  %v11172_v46 = vld [vmem:[#allocation11 + $0xa30] sm:$0xff]  ;;  %v11182_v37 = vld [vmem:[#allocation11 + $0xb40] sm:$0xff] }
 0x5c4   :  { %6944 = vmatpush.msrb.mxu3 %v6207_v43  ;;  %6999 = vmatpush.msrb.mxu1 %v6419_v63  ;;  %v6187_v23 = vunpack.c.h.bf16 %v11172_v46  ;;  %v11173_v9 = vld [vmem:[#allocation11 + $0xb70] sm:$0xff]  ;;  %v6395_v63 = vunpack.c.h.bf16 %v14083_v12  ;;  %v11183_v25 = vld [vmem:[#allocation11 + $0xc80] sm:$0xff]  ;;  %v6375_v46 = vunpack.c.h.bf16 %v14118_v47 }
 0x5c5   :  { %6960 = vmatpush.msra.mxu0 %v6287_v41  ;;  %6912 = vmatpush.msrb.mxu2 %v6047_v33  ;;  %v6267_v22 = vunpack.c.h.bf16 %v11173_v9  ;;  %v11174_v43 = vld [vmem:[#allocation11 + $0xcb0] sm:$0xff]  ;;  %v6183_v41 = vunpack.c.h.bf16 %v11175_v36  ;;  %v6263_v33 = vunpack.c.h.bf16 %v11176_v44  ;;  %v11184_v59 = vld [vmem:[#allocation11 + $0xe00] sm:$0xff]  ;;  %v6371_v36 = vunpack.c.h.bf16 %v14128_v52  ;;  %v6494_v52 = vpop.f32.mrf.mxu1 }
 0x5c6   :  { %6945 = vmatpush.msrb.mxu3 %v6203_v35  ;;  %7000 = vmatpush.msrb.mxu1 %v6415_v32  ;;  %v6347_v16 = vunpack.c.h.bf16 %v11174_v43  ;;  %v6391_v35 = vunpack.c.h.bf16 %v14093_v58  ;;  %v11178_v32 = vld [vmem:[#allocation11 + $0xa10] sm:$0xff]  ;;  %v6335_v58 = vunpack.c.h.bf16 %v11183_v25  ;;  %v6323_v43 = vunpack.c.h.bf16 %v11190_v10  ;;  %v11192_v47 = vld [vmem:[#allocation11 + $0xc40] sm:$0xff]  ;;  %v5147_v10 = vld [vmem:[#allocation11 + $0x1f8] sm:$0xff] }
 0x5c7   :  { %6913 = vmatmul.f32.vlgmr.msrb.gmra.mxu2 %v13991_v28  ;;  %6961 = vmatpush.msra.mxu0 %v6283_v29  ;;  %v6179_v34 = vunpack.c.h.bf16 %v11178_v32  ;;  %v11179_v29 = vld [vmem:[#allocation11 + $0xb50] sm:$0xff]  ;;  %v6367_v32 = vunpack.c.h.bf16 %v14132_v5  ;;  %v5111_v5 = vld [vmem:[#allocation11 + $0xd8] sm:$0xff] }
 0x5c8   :  { %6977 = vmatpush.msra.mxu2 %v6363_v62  ;;  %7001 = vmatpush.msrb.mxu1 %v6411_v31  ;;  %v6259_v54 = vunpack.c.h.bf16 %v11179_v29  ;;  %v11180_v62 = vld [vmem:[#allocation11 + $0xc90] sm:$0xff]  ;;  %v6387_v31 = vunpack.c.h.bf16 %v14097_v27  ;;  %v5177_v27 = vld [vmem:[#allocation11 + $0x2e8] sm:$0xff]  ;;  %v5211_v29 = vld [vmem:[#allocation11 + $0x3f8] sm:$0xff] }
 0x5c9   :  { %6946 = vmatpush.msrb.mxu3 %v6199_v48  ;;  %6962 = vmatpush.msra.mxu0 %v6279_v30  ;;  %v6339_v12 = vunpack.c.h.bf16 %v11180_v62  ;;  %v6175_v48 = vunpack.c.h.bf16 %v11181_v40  ;;  %v6255_v30 = vunpack.c.h.bf16 %v11182_v37  ;;  %v5113_v62 = vld [vmem:[#allocation11 + $0xe8] sm:$0xff] }
 0x5ca   :  { %6978 = vmatpush.msra.mxu2 %v6359_v21  ;;  %7002 = vmatpush.msrb.mxu1 %v6407_v50  ;;  %v5179_v21 = vld [vmem:[#allocation11 + $0x2f8] sm:$0xff]  ;;  %v6383_v50 = vunpack.c.h.bf16 %v14102_v17  ;;  %v11188_v17 = vld [vmem:[#allocation11 + $0xc60] sm:$0xff]  ;;  %v5209_v37 = vld [vmem:[#allocation11 + $0x3e8] sm:$0xff] }
 0x5cb   :  { %6947 = vmatpush.msrb.mxu3 %v6195_v7  ;;  %6963 = vmatpush.msra.mxu0 %v6275_v55  ;;  %v6431_v7 = vunpack.c.h.bf16 %v11184_v59  ;;  %v6251_v55 = vunpack.c.h.bf16 %v11185_v1  ;;  %v6327_v57 = vunpack.c.h.bf16 %v11188_v17  ;;  %v5207_v1 = vld [vmem:[#allocation11 + $0x3d8] sm:$0xff] }
 0x5cc   :  { %6979 = vmatpush.msra.mxu2 %v6355_v56  ;;  %7003 = vmatpush.msrb.mxu1 %v6403_v11  ;;  %v6331_v56 = vunpack.c.h.bf16 %v11186_v3  ;;  %v5724_v11 = vunpack.c.l.bf16 %v5179_v21  ;;  %v5592_v21 = vunpack.c.l.bf16 %v5113_v62  ;;  %v5784_v3 = vunpack.c.l.bf16 %v5209_v37  ;;  %v5101_v37 = vld [vmem:[#allocation11 + $0x88] sm:$0xff] }
 0x5cd   :  { %6948 = vmatpush.msrb.mxu3 %v6191_v60  ;;  %6964 = vmatpush.msra.mxu0 %v6271_v51  ;;  %v11187_v60 = vld [vmem:[#allocation11 + $0xb20] sm:$0xff]  ;;  %v5175_v51 = vld [vmem:[#allocation11 + $0x2d8] sm:$0xff] }
 0x5ce   :  { %6980 = vmatpush.msra.mxu2 %v6351_v2  ;;  %7004 = vmatpush.msrb.mxu1 %v6399_v0  ;;  %v6247_v49 = vunpack.c.h.bf16 %v11187_v60  ;;  %v5720_v2 = vunpack.c.l.bf16 %v5177_v27  ;;  %v6474_v0 = vpop.f32.mrf.mxu0 }
 0x5cf   :  { %6949 = vmatpush.msrb.mxu3 %v6187_v23  ;;  %6965 = vmatpush.msra.mxu0 %v6267_v22  ;;  %v11189_v23 = vld [vmem:[#allocation11 + $0xb10] sm:$0xff]  ;;  %v5173_v22 = vld [vmem:[#allocation11 + $0x2c8] sm:$0xff] }
 0x5d0   :  { %6981 = vmatpush.msra.mxu2 %v6347_v16  ;;  %7005 = vmatpush.msrb.mxu1 %v6395_v63  ;;  %v6243_v9 = vunpack.c.h.bf16 %v11189_v23  ;;  %v5716_v16 = vunpack.c.l.bf16 %v5175_v51  ;;  %v6454_v63 = vpop.f32.mrf.mxu3  ;;  %v5205_v51 = vld [vmem:[#allocation11 + $0x3c8] sm:$0xff] }
 0x5d1   :  { %6950 = vmatpush.msrb.mxu3 %v6183_v41  ;;  %6966 = vmatpush.msra.mxu0 %v6263_v33  ;;  %v11191_v41 = vld [vmem:[#allocation11 + $0xb00] sm:$0xff]  ;;  %v5115_v33 = vld [vmem:[#allocation11 + $0xf8] sm:$0xff]  ;;  %v6475_v26 = vadd.f32 %v6474_v0, %v6454_v63 }
 0x5d2   :  { %6982 = vmatpush.msra.mxu2 %v6343_v6  ;;  %7006 = vmatpush.msrb.mxu1 %v6391_v35  ;;  %v6239_v44 = vunpack.c.h.bf16 %v11191_v41  ;;  %v6319_v6 = vunpack.c.h.bf16 %v11192_v47  ;;  %v5712_v35 = vunpack.c.l.bf16 %v5173_v22  ;;  %v5203_v41 = vld [vmem:[#allocation11 + $0x3b8] sm:$0xff]  ;;  %v5161_v47 = vld [vmem:[#allocation11 + $0x268] sm:$0xff] }
 0x5d3   :  { %6951 = vmatpush.msrb.mxu3 %v6179_v34  ;;  %6967 = vmatpush.msra.mxu0 %v6259_v54  ;;  %v5171_v34 = vld [vmem:[#allocation11 + $0x2b8] sm:$0xff]  ;;  %v5596_v54 = vunpack.c.l.bf16 %v5115_v33 }
 0x5d4   :  { %6983 = vmatpush.msra.mxu2 %v6339_v12  ;;  %7007 = vmatpush.msrb.mxu1 %v6387_v31  ;;  %v6514_v12 = vpop.f32.mrf.mxu2  ;;  %v11193_v31 = vld [vmem:[#allocation11 + $0xc30] sm:$0xff]  ;;  %v5708_v25 = vunpack.c.l.bf16 %v5171_v34  ;;  %v5201_v34 = vld [vmem:[#allocation11 + $0x3a8] sm:$0xff] }
 0x5d5   :  { %6952 = vmatpush.msrb.mxu3 %v6175_v48  ;;  %6968 = vmatpush.msra.mxu0 %v6255_v30  ;;  %v6315_v40 = vunpack.c.h.bf16 %v11193_v31  ;;  %v5169_v48 = vld [vmem:[#allocation11 + $0x2a8] sm:$0xff]  ;;  %v6495_v30 = vadd.f32 %v6494_v52, %v6475_v26  ;;  %v5143_v52 = vld [vmem:[#allocation11 + $0x1d8] sm:$0xff] }
 0x5d6   :  { %6984 = vmatpush.msra.mxu2 %v6335_v58  ;;  %6953 = vmatmul.f32.vlgmr.msrb.gmra.mxu3 %v14035_v61  ;;  %v5788_v58 = vunpack.c.l.bf16 %v5211_v29  ;;  %v5704_v27 = vunpack.c.l.bf16 %v5169_v48  ;;  %v5145_v26 = vld [vmem:[#allocation11 + $0x1e8] sm:$0xff]  ;;  %v5103_v29 = vld [vmem:[#allocation11 + $0x98] sm:$0xff] }
 0x5d7   :  { %7008 = vmatpush.msrb.mxu1 %v6383_v50  ;;  %7032 = vmatpush.msra.mxu3 %v6431_v7  ;;  %v11194_v50 = vld [vmem:[#allocation11 + $0xc20] sm:$0xff]  ;;  %v5167_v7 = vld [vmem:[#allocation11 + $0x298] sm:$0xff]  ;;  %v5656_v31 = vunpack.c.l.bf16 %v5145_v26 }
 0x5d8   :  { %6969 = vmatpush.msra.mxu0 %v6251_v55  ;;  %6985 = vmatpush.msra.mxu2 %v6331_v56  ;;  %v6311_v59 = vunpack.c.h.bf16 %v11194_v50  ;;  %v6515_v55 = vadd.f32 %v6514_v12, %v6495_v30  ;;  %v5109_v56 = vld [vmem:[#allocation11 + $0xc8] sm:$0xff]  ;;  %v5700_v17 = vunpack.c.l.bf16 %v5167_v7  ;;  %v6534_v0 = vpop.f32.mrf.mxu3  ;;  %v5159_v12 = vld [vmem:[#allocation11 + $0x258] sm:$0xff]  ;;  %v6574_v30 = vpop.f32.mrf.mxu1  ;;  %v5652_v7 = vunpack.c.l.bf16 %v5143_v52 }
 0x5d9   :  { %7077 = vmatpush.msrb.mxu3 %v5724_v11  ;;  %7009 = vmatpush.msrb.mxu1 %v6379_v4  ;;  %v5588_v11 = vunpack.c.l.bf16 %v5111_v5  ;;  %v11195_v4 = vld [vmem:[#allocation11 + $0xc10] sm:$0xff]  ;;  %v5584_v23 = vunpack.c.l.bf16 %v5109_v56  ;;  %v5199_v48 = vld [vmem:[#allocation11 + $0x398] sm:$0xff]  ;;  %v5572_v5 = vunpack.c.l.bf16 %v5103_v29  ;;  %v5157_v50 = vld [vmem:[#allocation11 + $0x248] sm:$0xff]  ;;  %v5568_v56 = vunpack.c.l.bf16 %v5101_v37 }
 0x5da   :  { %6970 = vmatpush.msra.mxu0 %v6247_v49  ;;  %6986 = vmatpush.msra.mxu2 %v6327_v57  ;;  %v6307_v60 = vunpack.c.h.bf16 %v11195_v4  ;;  %v5165_v49 = vld [vmem:[#allocation11 + $0x288] sm:$0xff]  ;;  %v5780_v57 = vunpack.c.l.bf16 %v5207_v1  ;;  %v5684_v1 = vunpack.c.l.bf16 %v5159_v12  ;;  %v5155_v4 = vld [vmem:[#allocation11 + $0x238] sm:$0xff] }
 0x5db   :  { %7078 = vmatpush.msrb.mxu3 %v5720_v2  ;;  %7010 = vmatpush.msrb.mxu1 %v6375_v46  ;;  %v5107_v2 = vld [vmem:[#allocation11 + $0xb8] sm:$0xff]  ;;  %v6554_v46 = vpop.f32.mrf.mxu0  ;;  %v5696_v63 = vunpack.c.l.bf16 %v5165_v49 }
 0x5dc   :  { %6971 = vmatpush.msra.mxu0 %v6243_v9  ;;  %6987 = vmatpush.msra.mxu2 %v6323_v43  ;;  %v11196_v9 = vld [vmem:[#allocation11 + $0xc00] sm:$0xff]  ;;  %v5163_v43 = vld [vmem:[#allocation11 + $0x278] sm:$0xff]  ;;  %v5580_v33 = vunpack.c.l.bf16 %v5107_v2 }
 0x5dd   :  { %7079 = vmatpush.msrb.mxu3 %v5716_v16  ;;  %7011 = vmatpush.msrb.mxu1 %v6371_v36  ;;  %v6303_v22 = vunpack.c.h.bf16 %v11196_v9  ;;  %v6535_v16 = vadd.f32 %v6534_v0, %v6515_v55  ;;  %v5776_v36 = vunpack.c.l.bf16 %v5205_v51  ;;  %v5197_v55 = vld [vmem:[#allocation11 + $0x388] sm:$0xff]  ;;  %v5680_v51 = vunpack.c.l.bf16 %v5157_v50  ;;  %v5187_v50 = vld [vmem:[#allocation11 + $0x338] sm:$0xff] }
 0x5de   :  { %6972 = vmatpush.msra.mxu0 %v6239_v44  ;;  %6988 = vmatpush.msra.mxu2 %v6319_v6  ;;  %v5105_v44 = vld [vmem:[#allocation11 + $0xa8] sm:$0xff]  ;;  %v5760_v0 = vunpack.c.l.bf16 %v5197_v55 }
 0x5df   :  { %7080 = vmatpush.msrb.mxu3 %v5712_v35  ;;  %6973 = vmatmul.f32.vlgmr.msra.gmra.mxu0 %v14067_v45  ;;  %v6555_v6 = vadd.f32 %v6554_v46, %v6535_v16  ;;  %v5660_v35 = vunpack.c.l.bf16 %v5147_v10  ;;  %v5576_v62 = vunpack.c.l.bf16 %v5105_v44  ;;  %v5153_v9 = vld [vmem:[#allocation11 + $0x228] sm:$0xff]  ;;  %v5676_v10 = vunpack.c.l.bf16 %v5155_v4  ;;  %v5095_v16 = vld [vmem:[#allocation11 + $0x58] sm:$0xff] }
 0x5e0   :  { %7012 = vmatpush.msrb.mxu1 %v6367_v32  ;;  %10250 = vmatmul.msk.f32.vlgmr.msra.gmra.mxu3 %vm109_vm0, %v14091_v18  ;;  %v5692_v32 = vunpack.c.l.bf16 %v5163_v43  ;;  %v6614_v2 = vpop.f32.mrf.mxu3  ;;  %v5193_v43 = vld [vmem:[#allocation11 + $0x368] sm:$0xff]  ;;  %v5151_v44 = vld [vmem:[#allocation11 + $0x218] sm:$0xff]  ;;  %v5556_v29 = vunpack.c.l.bf16 %v5095_v16 }
 0x5e1   :  { %7037 = vmatpush.msrb.mxu0 %v5596_v54  ;;  %6989 = vmatpush.msra.mxu2 %v6315_v40  ;;  %v5772_v54 = vunpack.c.l.bf16 %v5203_v41  ;;  %v5688_v40 = vunpack.c.l.bf16 %v5161_v47  ;;  %v5135_v41 = vld [vmem:[#allocation11 + $0x198] sm:$0xff]  ;;  %v5672_v47 = vunpack.c.l.bf16 %v5153_v9  ;;  %v5668_v12 = vunpack.c.l.bf16 %v5151_v44  ;;  %v5129_v55 = vld [vmem:[#allocation11 + $0x168] sm:$0xff] }
 0x5e2   :  { %7013 = vmatmul.f32.vlgmr.msrb.gmra.mxu1 %v14144_v38  ;;  %7081 = vmatpush.msrb.mxu3 %v5708_v25  ;;  %v6594_v25 = vpop.f32.mrf.mxu2  ;;  %v5636_v52 = vunpack.c.l.bf16 %v5135_v41  ;;  %v5125_v16 = vld [vmem:[#allocation11 + $0x148] sm:$0xff] }
 0x5e3   :  { %7097 = vmatpush.msra.mxu1 %v5788_v58  ;;  %7038 = vmatpush.msrb.mxu0 %v5592_v21  ;;  %v5768_v58 = vunpack.c.l.bf16 %v5201_v34  ;;  %v5141_v21 = vld [vmem:[#allocation11 + $0x1c8] sm:$0xff]  ;;  %v5752_v34 = vunpack.c.l.bf16 %v5193_v43 }
 0x5e4   :  { %6990 = vmatpush.msra.mxu2 %v6311_v59  ;;  %7082 = vmatpush.msrb.mxu3 %v5704_v27  ;;  %v6575_v59 = vadd.f32 %v6574_v30, %v6555_v6  ;;  %v5099_v27 = vld [vmem:[#allocation11 + $0x78] sm:$0xff]  ;;  %v5648_v49 = vunpack.c.l.bf16 %v5141_v21  ;;  %v5085_v43 = vld [vmem:[#allocation11 + $0x8] sm:$0xff] }
 0x5e5   :  { %7098 = vmatpush.msra.mxu1 %v5784_v3  ;;  %7039 = vmatpush.msrb.mxu0 %v5588_v11  ;;  %v5764_v3 = vunpack.c.l.bf16 %v5199_v48  ;;  %v5139_v11 = vld [vmem:[#allocation11 + $0x1b8] sm:$0xff]  ;;  %v5564_v46 = vunpack.c.l.bf16 %v5099_v27  ;;  %v5301_v44 = vld [vmem:[#allocation11 + $0x6c8] sm:$0xff] }
 0x5e6   :  { %6991 = vmatpush.msra.mxu2 %v6307_v60  ;;  %7083 = vmatpush.msrb.mxu3 %v5700_v17  ;;  %v6595_v60 = vadd.f32 %v6594_v25, %v6575_v59  ;;  %v5195_v17 = vld [vmem:[#allocation11 + $0x378] sm:$0xff] }
 0x5e7   :  { %7099 = vmatpush.msra.mxu1 %v5780_v57  ;;  %7040 = vmatpush.msrb.mxu0 %v5584_v23  ;;  %v5097_v57 = vld [vmem:[#allocation11 + $0x68] sm:$0xff]  ;;  %v5191_v6 = vld [vmem:[#allocation11 + $0x358] sm:$0xff] }
 0x5e8   :  { %6992 = vmatpush.msra.mxu2 %v6303_v22  ;;  %7084 = vmatpush.msrb.mxu3 %v5696_v63  ;;  %v5137_v23 = vld [vmem:[#allocation11 + $0x1a8] sm:$0xff]  ;;  %v5644_v22 = vunpack.c.l.bf16 %v5139_v11  ;;  %v5756_v63 = vunpack.c.l.bf16 %v5195_v17  ;;  %v5748_v48 = vunpack.c.l.bf16 %v5191_v6  ;;  %v5131_v30 = vld [vmem:[#allocation11 + $0x178] sm:$0xff]  ;;  %v6654_v11 = vpop.f32.mrf.mxu1 }
 0x5e9   :  { %7100 = vmatpush.msra.mxu1 %v5776_v36  ;;  %6993 = vmatmul.f32.vlgmr.msra.gmra.mxu2 %v14126_v53  ;;  %v5560_v36 = vunpack.c.l.bf16 %v5097_v57  ;;  %v5640_v26 = vunpack.c.l.bf16 %v5137_v23  ;;  %v5307_v21 = vld [vmem:[#allocation11 + $0x6f8] sm:$0xff]  ;;  %v5628_v27 = vunpack.c.l.bf16 %v5131_v30 }
 0x5ea   :  { %7041 = vmatpush.msrb.mxu0 %v5580_v33  ;;  %7057 = vmatpush.msrb.mxu2 %v5660_v35  ;;  %v6615_v33 = vadd.f32 %v6614_v2, %v6595_v60  ;;  %v5093_v35 = vld [vmem:[#allocation11 + $0x48] sm:$0xff]  ;;  %v6674_v4 = vpop.f32.mrf.mxu2  ;;  %v5980_v60 = vunpack.c.l.bf16 %v5307_v21  ;;  %v5127_v17 = vld [vmem:[#allocation11 + $0x158] sm:$0xff] }
 0x5eb   :  { %7085 = vmatpush.msrb.mxu3 %v5692_v32  ;;  %7101 = vmatpush.msra.mxu1 %v5772_v54  ;;  %v6634_v32 = vpop.f32.mrf.mxu0  ;;  %v5133_v54 = vld [vmem:[#allocation11 + $0x188] sm:$0xff]  ;;  %v5552_v37 = vunpack.c.l.bf16 %v5093_v35  ;;  %v5183_v23 = vld [vmem:[#allocation11 + $0x318] sm:$0xff]  ;;  %v5620_v41 = vunpack.c.l.bf16 %v5127_v17 }
 0x5ec   :  { %7042 = vmatpush.msrb.mxu0 %v5576_v62  ;;  %7058 = vmatpush.msrb.mxu2 %v5656_v31  ;;  %v5149_v62 = vld [vmem:[#allocation11 + $0x208] sm:$0xff]  ;;  %v6635_v25 = vadd.f32 %v6634_v32, %v6615_v33  ;;  %v5243_v6 = vld [vmem:[#allocation11 + $0x4f8] sm:$0xff]  ;;  %v5536_v32 = vunpack.c.l.bf16 %v5085_v43 }
 0x5ed   :  { %7086 = vmatpush.msrb.mxu3 %v5688_v40  ;;  %7102 = vmatpush.msra.mxu1 %v5768_v58  ;;  %v5189_v31 = vld [vmem:[#allocation11 + $0x348] sm:$0xff]  ;;  %v5091_v40 = vld [vmem:[#allocation11 + $0x38] sm:$0xff]  ;;  %v5632_v58 = vunpack.c.l.bf16 %v5133_v54  ;;  %v5968_v54 = vunpack.c.l.bf16 %v5301_v44 }
 0x5ee   :  { %7043 = vmatpush.msrb.mxu0 %v5572_v5  ;;  %7059 = vmatpush.msrb.mxu2 %v5652_v7  ;;  %v5664_v5 = vunpack.c.l.bf16 %v5149_v62  ;;  %v5744_v59 = vunpack.c.l.bf16 %v5189_v31  ;;  %v5548_v7 = vunpack.c.l.bf16 %v5091_v40  ;;  %v6655_v57 = vadd.f32 %v6654_v11, %v6635_v25  ;;  %v5297_v25 = vld [vmem:[#allocation11 + $0x6a8] sm:$0xff]  ;;  %v14196_v43 = vld [vmem:[#allocation11 + $0x5f8] sm:$0xff] }
 0x5ef   :  { %7087 = vmatpush.msrb.mxu3 %v5684_v1  ;;  %7103 = vmatpush.msra.mxu1 %v5764_v3  ;;  %v5089_v1 = vld [vmem:[#allocation11 + $0x28] sm:$0xff]  ;;  %v5852_v40 = vunpack.c.l.bf16 %v5243_v6  ;;  %v5331_v44 = vld [vmem:[#allocation11 + $0x7b8] sm:$0xff] }
 0x5f0   :  { %7044 = vmatpush.msrb.mxu0 %v5568_v56  ;;  %7060 = vmatpush.msrb.mxu2 %v5648_v49  ;;  %v5305_v3 = vld [vmem:[#allocation11 + $0x6e8] sm:$0xff]  ;;  %v5740_v49 = vunpack.c.l.bf16 %v5187_v50  ;;  %v5544_v2 = vunpack.c.l.bf16 %v5089_v1 }
 0x5f1   :  { %7088 = vmatpush.msrb.mxu3 %v5680_v51  ;;  %7104 = vmatpush.msra.mxu1 %v5760_v0  ;;  %v5185_v56 = vld [vmem:[#allocation11 + $0x328] sm:$0xff]  ;;  %v5087_v51 = vld [vmem:[#allocation11 + $0x18] sm:$0xff]  ;;  %v5624_v0 = vunpack.c.l.bf16 %v5129_v55  ;;  %v5976_v9 = vunpack.c.l.bf16 %v5305_v3 }
 0x5f2   :  { %7045 = vmatpush.msrb.mxu0 %v5564_v46  ;;  %7061 = vmatpush.msrb.mxu2 %v5644_v22  ;;  %v5303_v46 = vld [vmem:[#allocation11 + $0x6d8] sm:$0xff]  ;;  %v5736_v22 = vunpack.c.l.bf16 %v5185_v56  ;;  %v5960_v56 = vunpack.c.l.bf16 %v5297_v25  ;;  %v5229_v25 = vld [vmem:[#allocation11 + $0x488] sm:$0xff] }
 0x5f3   :  { %7089 = vmatpush.msrb.mxu3 %v5676_v10  ;;  %7105 = vmatpush.msra.mxu1 %v5756_v63  ;;  %v6694_v10 = vpop.f32.mrf.mxu3  ;;  %v6675_v63 = vadd.f32 %v6674_v4, %v6655_v57  ;;  %v5972_v33 = vunpack.c.l.bf16 %v5303_v46  ;;  %v5335_v3 = vld [vmem:[#allocation11 + $0x7d8] sm:$0xff]  ;;  %v5237_v4 = vld [vmem:[#allocation11 + $0x4c8] sm:$0xff] }
 0x5f4   :  { %7046 = vmatpush.msrb.mxu0 %v5560_v36  ;;  %7062 = vmatpush.msrb.mxu2 %v5640_v26  ;;  %v5540_v36 = vunpack.c.l.bf16 %v5087_v51  ;;  %v5732_v26 = vunpack.c.l.bf16 %v5183_v23  ;;  %v5293_v57 = vld [vmem:[#allocation11 + $0x688] sm:$0xff]  ;;  %v6036_v23 = vunpack.c.l.bf16 %v5335_v3 }
 0x5f5   :  { %7090 = vmatpush.msrb.mxu3 %v5672_v47  ;;  %7106 = vmatpush.msra.mxu1 %v5752_v34  ;;  %v5181_v47 = vld [vmem:[#allocation11 + $0x308] sm:$0xff]  ;;  %v6695_v35 = vadd.f32 %v6694_v10, %v6675_v63  ;;  %v5616_v34 = vunpack.c.l.bf16 %v5125_v16  ;;  %v5952_v16 = vunpack.c.l.bf16 %v5293_v57 }
 0x5f6   :  { %7047 = vmatpush.msrb.mxu0 %v5556_v29  ;;  %7063 = vmatpush.msrb.mxu2 %v5636_v52  ;;  %v5123_v29 = vld [vmem:[#allocation11 + $0x138] sm:$0xff]  ;;  %v6714_v62 = vpop.f32.mrf.mxu0  ;;  %v5728_v31 = vunpack.c.l.bf16 %v5181_v47  ;;  %v11197_v47 = vld [vmem:[#allocation3] sm:$0xff] }
 0x5f7   :  { %7091 = vmatpush.msrb.mxu3 %v5668_v12  ;;  %7107 = vmatpush.msra.mxu1 %v5748_v48  ;;  %v5299_v52 = vld [vmem:[#allocation11 + $0x6b8] sm:$0xff]  ;;  %v5241_v48 = vld [vmem:[#allocation11 + $0x4e8] sm:$0xff]  ;;  %v5612_v30 = vunpack.c.l.bf16 %v5123_v29 }
 0x5f8   :  { %7048 = vmatpush.msrb.mxu0 %v5552_v37  ;;  %7064 = vmatpush.msrb.mxu2 %v5632_v58  ;;  %v5339_v12 = vld [vmem:[#allocation11 + $0x7f8] sm:$0xff]  ;;  %v14183_v37 = vld [vmem:[#allocation11 + $0x128] sm:$0xff]  ;;  %v5964_v21 = vunpack.c.l.bf16 %v5299_v52  ;;  %v5848_v1 = vunpack.c.l.bf16 %v5241_v48 }
 0x5f9   :  { %7092 = vmatpush.msrb.mxu3 %v5664_v5  ;;  %7108 = vmatpush.msra.mxu1 %v5744_v59  ;;  %v5337_v58 = vld [vmem:[#allocation11 + $0x7e8] sm:$0xff]  ;;  %v6715_v5 = vadd.f32 %v6714_v62, %v6695_v35  ;;  %v6044_v50 = vunpack.c.l.bf16 %v5339_v12  ;;  %v5239_v59 = vld [vmem:[#allocation11 + $0x4d8] sm:$0xff]  ;;  %v5608_v55 = vunpack.c.l.bf16 %v14183_v37  ;;  %v6028_v62 = vunpack.c.l.bf16 %v5331_v44 }
 0x5fa   :  { %7049 = vmatpush.msrb.mxu0 %v5548_v7  ;;  %7065 = vmatpush.msrb.mxu2 %v5628_v27  ;;  %v14185_v7 = vld [vmem:[#allocation11 + $0x118] sm:$0xff]  ;;  %v6040_v11 = vunpack.c.l.bf16 %v5337_v58  ;;  %v5844_v51 = vunpack.c.l.bf16 %v5239_v59  ;;  %v14202_v35 = vld [vmem:[#allocation11 + $0x5e8] sm:$0xff] }
 0x5fb   :  { %7093 = vmatmul.f32.vlgmr.msrb.gmra.mxu3 %v13841_v42  ;;  %7109 = vmatpush.msra.mxu1 %v5740_v49  ;;  %v5295_v27 = vld [vmem:[#allocation11 + $0x698] sm:$0xff]  ;;  %v6734_v49 = vpop.f32.mrf.mxu1  ;;  %v5604_v17 = vunpack.c.l.bf16 %v14185_v7  ;;  %v5329_v29 = vld [vmem:[#allocation11 + $0x7a8] sm:$0xff] }
 0x5fc   :  { %7157 = vmatpush.msra.mxu3 %v5980_v60  ;;  %7050 = vmatpush.msrb.mxu0 %v5544_v2  ;;  %v14189_v60 = vld [vmem:[#allocation11 + $0x108] sm:$0xff]  ;;  %v5956_v46 = vunpack.c.l.bf16 %v5295_v27  ;;  %v14204_v12 = vld [vmem:[#allocation11 + $0x5d8] sm:$0xff]  ;;  %v6024_v58 = vunpack.c.l.bf16 %v5329_v29 }
 0x5fd   :  { %7066 = vmatpush.msrb.mxu2 %v5624_v0  ;;  %7110 = vmatpush.msra.mxu1 %v5736_v22  ;;  %v5333_v2 = vld [vmem:[#allocation11 + $0x7c8] sm:$0xff]  ;;  %v14193_v0 = vadd.f32 %v6734_v49, %v6715_v5  ;;  %v5840_v22 = vunpack.c.l.bf16 %v5237_v4  ;;  %v5600_v10 = vunpack.c.l.bf16 %v14189_v60  ;;  %v5908_v59 = vunpack.c.l.bf16 %v14204_v12  ;;  %v5227_v27 = vld [vmem:[#allocation11 + $0x478] sm:$0xff] }
 0x5fe   :  { %7158 = vmatpush.msra.mxu3 %v5976_v9  ;;  %7051 = vmatpush.msrb.mxu0 %v5540_v36  ;;  %v5235_v9 = vld [vmem:[#allocation11 + $0x4b8] sm:$0xff]  ;;  %v6032_v63 = vunpack.c.l.bf16 %v5333_v2  ;;  %v5820_v2 = vunpack.c.l.bf16 %v5227_v27  ;;  %v5221_v29 = vld [vmem:[#allocation11 + $0x448] sm:$0xff] }
 0x5ff   :  { %7067 = vmatpush.msrb.mxu2 %v5620_v41  ;;  %7111 = vmatpush.msra.mxu1 %v5732_v26  ;;  %v5291_v36 = vld [vmem:[#allocation11 + $0x678] sm:$0xff]  ;;  %v5836_v41 = vunpack.c.l.bf16 %v5235_v9  ;;  %v5916_v26 = vunpack.c.l.bf16 %v14196_v43  ;;  %v14200_v6 = vpack.i.bf16 %v14193_v0, %v11197_v47 }
 0x600   :  { %7159 = vmatpush.msra.mxu3 %v5972_v33  ;;  %7052 = vmatpush.msrb.mxu0 %v5536_v32  ;;  %v5233_v33 = vld [vmem:[#allocation11 + $0x4a8] sm:$0xff]  ;;  %v5319_v47 = vld [vmem:[#allocation11 + $0x758] sm:$0xff] }
 0x601   :  { %7068 = vmatpush.msrb.mxu2 %v5616_v34  ;;  %7053 = vmatmul.f32.vlgmr.msrb.gmra.mxu0 %v13818_v8  ;;  %v5289_v32 = vld [vmem:[#allocation11 + $0x668] sm:$0xff]  ;;  %v5948_v34 = vunpack.c.l.bf16 %v5291_v36  ;;  %v5832_v52 = vunpack.c.l.bf16 %v5233_v33  ;;  %v5223_v36 = vld [vmem:[#allocation11 + $0x458] sm:$0xff] }
 0x602   :  { %7160 = vmatpush.msra.mxu3 %v5968_v54  ;;  %7112 = vmatpush.msra.mxu1 %v5728_v31  ;;  %v5231_v54 = vld [vmem:[#allocation11 + $0x498] sm:$0xff]  ;;  %v5944_v48 = vunpack.c.l.bf16 %v5289_v32 }
 0x603   :  { %7117 = vmatpush.msra.mxu0 %v5852_v40  ;;  %7069 = vmatpush.msrb.mxu2 %v5612_v30  ;;  %v5287_v31 = vld [vmem:[#allocation11 + $0x658] sm:$0xff]  ;;  %v5912_v40 = vunpack.c.l.bf16 %v14202_v35  ;;  %v5828_v5 = vunpack.c.l.bf16 %v5231_v54  ;;  %v14224_v54 = vld [vmem:[#allocation11 + $0x588] sm:$0xff] }
 0x604   :  { %7113 = vmatmul.f32.vlgmr.msra.gmra.mxu1 %v13877_v13  ;;  %7161 = vmatpush.msra.mxu3 %v5964_v21  ;;  %v5327_v30 = vld [vmem:[#allocation11 + $0x798] sm:$0xff]  ;;  %v14210_v21 = vld [vmem:[#allocation11 + $0x5c8] sm:$0xff] }
 0x605   :  { %7177 = vmatpush.msrb.mxu1 %v6044_v50  ;;  %7118 = vmatpush.msra.mxu0 %v5848_v1  ;;  %v5285_v50 = vld [vmem:[#allocation11 + $0x648] sm:$0xff]  ;;  %v5940_v1 = vunpack.c.l.bf16 %v5287_v31  ;;  %v6020_v3 = vunpack.c.l.bf16 %v5327_v30  ;;  %v5904_v4 = vunpack.c.l.bf16 %v14210_v21  ;;  %v6004_v30 = vunpack.c.l.bf16 %v5319_v47  ;;  %v5315_v27 = vld [vmem:[#allocation11 + $0x738] sm:$0xff] }
 0x606   :  { %7070 = vmatpush.msrb.mxu2 %v5608_v55  ;;  %7162 = vmatpush.msra.mxu3 %v5960_v56  ;;  %v5325_v55 = vld [vmem:[#allocation11 + $0x788] sm:$0xff]  ;;  %v5824_v56 = vunpack.c.l.bf16 %v5229_v25  ;;  %v5936_v49 = vunpack.c.l.bf16 %v5285_v50  ;;  %v5219_v25 = vld [vmem:[#allocation11 + $0x438] sm:$0xff]  ;;  %v5888_v50 = vunpack.c.l.bf16 %v14224_v54 }
 0x607   :  { %7178 = vmatpush.msrb.mxu1 %v6040_v11  ;;  %7119 = vmatpush.msra.mxu0 %v5844_v51  ;;  %v14215_v11 = vld [vmem:[#allocation11 + $0x5b8] sm:$0xff]  ;;  %v6016_v57 = vunpack.c.l.bf16 %v5325_v55  ;;  %v5277_v31 = vld [vmem:[#allocation11 + $0x608] sm:$0xff] }
 0x608   :  { %7071 = vmatpush.msrb.mxu2 %v5604_v17  ;;  %7163 = vmatpush.msra.mxu3 %v5956_v46  ;;  %v5283_v51 = vld [vmem:[#allocation11 + $0x638] sm:$0xff]  ;;  %v5225_v46 = vld [vmem:[#allocation11 + $0x468] sm:$0xff]  ;;  %v5900_v9 = vunpack.c.l.bf16 %v14215_v11 }
 0x609   :  { %7179 = vmatpush.msrb.mxu1 %v6036_v23  ;;  %7120 = vmatpush.msra.mxu0 %v5840_v22  ;;  %v5323_v17 = vld [vmem:[#allocation11 + $0x778] sm:$0xff]  ;;  %v14218_v23 = vld [vmem:[#allocation11 + $0x5a8] sm:$0xff]  ;;  %v5816_v44 = vunpack.c.l.bf16 %v5225_v46 }
 0x60a   :  { %7072 = vmatpush.msrb.mxu2 %v5600_v10  ;;  %7164 = vmatpush.msra.mxu3 %v5952_v16  ;;  %v5281_v22 = vld [vmem:[#allocation11 + $0x628] sm:$0xff]  ;;  %v5932_v16 = vunpack.c.l.bf16 %v5283_v51  ;;  %v5896_v33 = vunpack.c.l.bf16 %v14218_v23  ;;  %v5435_v55 = vld [vmem:[#allocation11 + $0xaf8] sm:$0xff] }
 0x60b   :  { %7180 = vmatpush.msrb.mxu1 %v6032_v63  ;;  %7073 = vmatmul.f32.vlgmr.msrb.gmra.mxu2 %v13839_v39  ;;  %v5321_v10 = vld [vmem:[#allocation11 + $0x768] sm:$0xff]  ;;  %v6012_v63 = vunpack.c.l.bf16 %v5323_v17  ;;  %v5928_v32 = vunpack.c.l.bf16 %v5281_v22  ;;  %v5215_v46 = vld [vmem:[#allocation11 + $0x418] sm:$0xff] }
 0x60c   :  { %7121 = vmatpush.msra.mxu0 %v5836_v41  ;;  %7137 = vmatpush.msra.mxu2 %v5916_v26  ;;  %v14221_v41 = vld [vmem:[#allocation11 + $0x598] sm:$0xff]  ;;  %v5433_v51 = vld [vmem:[#allocation11 + $0xae8] sm:$0xff]  ;;  %v5796_v47 = vunpack.c.l.bf16 %v5215_v46 }
 0x60d   :  { %10821 = vrot.lane.b32.xlu0 %v14200_v6, %s11448_s3  ;;  %10816 = vrot.lane.b32.xlu1 %v14200_v6, %s11432_s18  ;;  %v5279_v26 = vld [vmem:[#allocation11 + $0x618] sm:$0xff]  ;;  %v5313_v17 = vld [vmem:[#allocation11 + $0x728] sm:$0xff] }
 0x60e   :  { %7165 = vmatpush.msra.mxu3 %v5948_v34  ;;  %7181 = vmatpush.msrb.mxu1 %v6028_v62  ;;  %v6008_v34 = vunpack.c.l.bf16 %v5321_v10  ;;  %v5812_v62 = vunpack.c.l.bf16 %v5223_v36  ;;  %v6232_v36 = vunpack.c.l.bf16 %v5433_v51 }
 0x60f   :  { %7122 = vmatpush.msra.mxu0 %v5832_v52  ;;  %7138 = vmatpush.msra.mxu2 %v5912_v40  ;;  %v5892_v52 = vunpack.c.l.bf16 %v14221_v41  ;;  %v5317_v40 = vld [vmem:[#allocation11 + $0x748] sm:$0xff] }
 0x610   :  { %7166 = vmatpush.msra.mxu3 %v5944_v48  ;;  %7182 = vmatpush.msrb.mxu1 %v6024_v58  ;;  %v5924_v48 = vunpack.c.l.bf16 %v5279_v26  ;;  %v14229_v58 = vld [vmem:[#allocation11 + $0x578] sm:$0xff]  ;;  %v14238_v26 = vld [vmem:[#allocation11 + $0x548] sm:$0xff] }
 0x611   :  { %7123 = vmatpush.msra.mxu0 %v5828_v5  ;;  %7139 = vmatpush.msra.mxu2 %v5908_v59  ;;  %v5808_v5 = vunpack.c.l.bf16 %v5221_v29  ;;  %v5920_v59 = vunpack.c.l.bf16 %v5277_v31  ;;  %v5371_v31 = vld [vmem:[#allocation11 + $0x8f8] sm:$0xff] }
 0x612   :  { %7167 = vmatpush.msra.mxu3 %v5940_v1  ;;  %7183 = vmatpush.msrb.mxu1 %v6020_v3  ;;  %v6000_v1 = vunpack.c.l.bf16 %v5317_v40  ;;  %v5804_v3 = vunpack.c.l.bf16 %v5219_v25  ;;  %v5427_v25 = vld [vmem:[#allocation11 + $0xab8] sm:$0xff] }
 0x613   :  { %7124 = vmatpush.msra.mxu0 %v5824_v56  ;;  %7140 = vmatpush.msra.mxu2 %v5904_v4  ;;  %v5884_v56 = vunpack.c.l.bf16 %v14229_v58  ;;  %v5217_v4 = vld [vmem:[#allocation11 + $0x428] sm:$0xff] }
 0x614   :  { %7168 = vmatpush.msra.mxu3 %v5936_v49  ;;  %7184 = vmatpush.msrb.mxu1 %v6016_v57  ;;  %v14233_v49 = vld [vmem:[#allocation11 + $0x568] sm:$0xff]  ;;  %v6236_v57 = vunpack.c.l.bf16 %v5435_v55  ;;  %v5800_v22 = vunpack.c.l.bf16 %v5217_v4  ;;  %v6220_v4 = vunpack.c.l.bf16 %v5427_v25 }
 0x615   :  { %7125 = vmatpush.msra.mxu0 %v5820_v2  ;;  %7141 = vmatpush.msra.mxu2 %v5900_v9  ;;  %v5996_v2 = vunpack.c.l.bf16 %v5315_v27  ;;  %v14235_v9 = vld [vmem:[#allocation11 + $0x558] sm:$0xff]  ;;  %v5880_v10 = vunpack.c.l.bf16 %v14233_v49  ;;  %v14247_v55 = vld [vmem:[#allocation11 + $0x528] sm:$0xff] }
 0x616   :  { %10826 = vrot.lane.b32.xlu0 %v14200_v6, %s11449_s21  ;;  %7169 = vmatpush.msra.mxu3 %v5932_v16  ;;  %v5431_v16 = vld [vmem:[#allocation11 + $0xad8] sm:$0xff]  ;;  %v5864_v46 = vunpack.c.l.bf16 %v14247_v55 }
 0x617   :  { %7185 = vmatpush.msrb.mxu1 %v6012_v63  ;;  %7126 = vmatpush.msra.mxu0 %v5816_v44  ;;  %v5311_v63 = vld [vmem:[#allocation11 + $0x718] sm:$0xff]  ;;  %v5992_v44 = vunpack.c.l.bf16 %v5313_v17  ;;  %v6228_v29 = vunpack.c.l.bf16 %v5431_v16 }
 0x618   :  { %7142 = vmatpush.msra.mxu2 %v5896_v33  ;;  %7170 = vmatpush.msra.mxu3 %v5928_v32  ;;  %v5213_v33 = vld [vmem:[#allocation11 + $0x408] sm:$0xff]  ;;  %v5876_v32 = vunpack.c.l.bf16 %v14235_v9  ;;  %v5367_v17 = vld [vmem:[#allocation11 + $0x8d8] sm:$0xff] }
 0x619   :  { %7186 = vmatpush.msrb.mxu1 %v6008_v34  ;;  %7127 = vmatpush.msra.mxu0 %v5812_v62  ;;  %v5429_v34 = vld [vmem:[#allocation11 + $0xac8] sm:$0xff]  ;;  %v5988_v62 = vunpack.c.l.bf16 %v5311_v63  ;;  %v5792_v40 = vunpack.c.l.bf16 %v5213_v33  ;;  %v6100_v33 = vunpack.c.l.bf16 %v5367_v17  ;;  %v5359_v17 = vld [vmem:[#allocation11 + $0x898] sm:$0xff] }
 0x61a   :  { %7143 = vmatpush.msra.mxu2 %v5892_v52  ;;  %7171 = vmatpush.msra.mxu3 %v5924_v48  ;;  %v5309_v52 = vld [vmem:[#allocation11 + $0x708] sm:$0xff]  ;;  %v5872_v48 = vunpack.c.l.bf16 %v14238_v26 }
 0x61b   :  { %7187 = vmatpush.msrb.mxu1 %v6004_v30  ;;  %7128 = vmatpush.msra.mxu0 %v5808_v5  ;;  %v14245_v30 = vld [vmem:[#allocation11 + $0x538] sm:$0xff] }
 0x61c   :  { %7144 = vmatpush.msra.mxu2 %v5888_v50  ;;  %7172 = vmatpush.msra.mxu3 %v5920_v59  ;;  %v5467_v5 = vld [vmem:[#allocation11 + $0xbf8] sm:$0xff]  ;;  %v5984_v50 = vunpack.c.l.bf16 %v5309_v52  ;;  %v6108_v59 = vunpack.c.l.bf16 %v5371_v31  ;;  %v5868_v27 = vunpack.c.l.bf16 %v14245_v30 }
 0x61d   :  { %7188 = vmatpush.msrb.mxu1 %v6000_v1  ;;  %7129 = vmatpush.msra.mxu0 %v5804_v3  ;;  %v5369_v1 = vld [vmem:[#allocation11 + $0x8e8] sm:$0xff]  ;;  %v6300_v51 = vunpack.c.l.bf16 %v5467_v5  ;;  %v5363_v52 = vld [vmem:[#allocation11 + $0x8b8] sm:$0xff] }
 0x61e   :  { %7145 = vmatpush.msra.mxu2 %v5884_v56  ;;  %7173 = vmatmul.f32.vlgmr.msra.gmra.mxu3 %v13959_v24  ;;  %v5425_v3 = vld [vmem:[#allocation11 + $0xaa8] sm:$0xff] }
 0x61f   :  { %10831 = vrot.lane.b32.xlu0 %v14200_v6, %s11446_s22  ;;  %7237 = vmatpush.msrb.mxu3 %v6236_v57  ;;  %v6224_v6 = vunpack.c.l.bf16 %v5429_v34  ;;  %v5465_v56 = vld [vmem:[#allocation11 + $0xbe8] sm:$0xff]  ;;  %v14250_v57 = vld [vmem:[#allocation11 + $0x518] sm:$0xff]  ;;  %v6216_v16 = vunpack.c.l.bf16 %v5425_v3 }
 0x620   :  { %7189 = vmatpush.msrb.mxu1 %v5996_v2  ;;  %7130 = vmatpush.msra.mxu0 %v5800_v22  ;;  %v6104_v2 = vunpack.c.l.bf16 %v5369_v1  ;;  %v5423_v22 = vld [vmem:[#allocation11 + $0xa98] sm:$0xff]  ;;  %v6296_v63 = vunpack.c.l.bf16 %v5465_v56  ;;  %v5461_v34 = vld [vmem:[#allocation11 + $0xbc8] sm:$0xff]  ;;  %v6092_v1 = vunpack.c.l.bf16 %v5363_v52 }
 0x621   :  { %7146 = vmatpush.msra.mxu2 %v5880_v10  ;;  %7238 = vmatpush.msrb.mxu3 %v6232_v36  ;;  %v5463_v10 = vld [vmem:[#allocation11 + $0xbd8] sm:$0xff]  ;;  %v5365_v36 = vld [vmem:[#allocation11 + $0x8c8] sm:$0xff]  ;;  %v6288_v5 = vunpack.c.l.bf16 %v5461_v34 }
 0x622   :  { %7190 = vmatpush.msrb.mxu1 %v5992_v44  ;;  %7131 = vmatpush.msra.mxu0 %v5796_v47  ;;  %v14254_v44 = vld [vmem:[#allocation11 + $0x508] sm:$0xff]  ;;  %v5860_v47 = vunpack.c.l.bf16 %v14250_v57  ;;  %v6096_v31 = vunpack.c.l.bf16 %v5365_v36  ;;  %v5455_v36 = vld [vmem:[#allocation11 + $0xb98] sm:$0xff] }
 0x623   :  { %7147 = vmatpush.msra.mxu2 %v5876_v32  ;;  %7239 = vmatpush.msrb.mxu3 %v6228_v29  ;;  %v5421_v32 = vld [vmem:[#allocation11 + $0xa88] sm:$0xff]  ;;  %v6212_v29 = vunpack.c.l.bf16 %v5423_v22  ;;  %v14264_v22 = vld [vmem:[#allocation11 + $0x9d8] sm:$0xff] }
 0x624   :  { %7191 = vmatpush.msrb.mxu1 %v5988_v62  ;;  %7132 = vmatpush.msra.mxu0 %v5792_v40  ;;  %v6292_v62 = vunpack.c.l.bf16 %v5463_v10  ;;  %v5856_v40 = vunpack.c.l.bf16 %v14254_v44  ;;  %v6208_v25 = vunpack.c.l.bf16 %v5421_v32  ;;  %v5417_v3 = vld [vmem:[#allocation11 + $0xa68] sm:$0xff]  ;;  %v5415_v10 = vld [vmem:[#allocation11 + $0xa58] sm:$0xff]  ;;  %v6084_v32 = vunpack.c.l.bf16 %v5359_v17 }
 0x625   :  { %7148 = vmatpush.msra.mxu2 %v5872_v48  ;;  %7240 = vmatpush.msrb.mxu3 %v6224_v6  ;;  %v14259_v48 = vld [vmem:[#allocation11 + $0x9f8] sm:$0xff]  ;;  %v14268_v34 = vld [vmem:[#allocation11 + $0x9c8] sm:$0xff]  ;;  %v6196_v52 = vunpack.c.l.bf16 %v5415_v10 }
 0x626   :  { %7133 = vmatmul.f32.vlgmr.msra.gmra.mxu0 %v13879_v15  ;;  %7192 = vmatpush.msrb.mxu1 %v5984_v50  ;;  %v5419_v6 = vld [vmem:[#allocation11 + $0xa78] sm:$0xff]  ;;  %v6172_v56 = vunpack.c.l.bf16 %v14259_v48  ;;  %v14274_v17 = vld [vmem:[#allocation11 + $0x9a8] sm:$0xff] }
 0x627   :  { %7197 = vmatpush.msrb.mxu0 %v6108_v59  ;;  %7149 = vmatpush.msra.mxu2 %v5868_v27  ;;  %v5459_v50 = vld [vmem:[#allocation11 + $0xbb8] sm:$0xff]  ;;  %v5361_v59 = vld [vmem:[#allocation11 + $0x8a8] sm:$0xff] }
 0x628   :  { %7193 = vmatmul.f32.vlgmr.msrb.gmra.mxu1 %v13962_v14  ;;  %7241 = vmatpush.msrb.mxu3 %v6220_v4  ;;  %v14261_v27 = vld [vmem:[#allocation11 + $0x9e8] sm:$0xff]  ;;  %v6204_v4 = vunpack.c.l.bf16 %v5419_v6  ;;  %v6276_v6 = vunpack.c.l.bf16 %v5455_v36 }
 0x629   :  { %7257 = vmatpush.msra.mxu1 %v6300_v51  ;;  %7198 = vmatpush.msrb.mxu0 %v6104_v2  ;;  %v5457_v51 = vld [vmem:[#allocation11 + $0xba8] sm:$0xff]  ;;  %v6284_v2 = vunpack.c.l.bf16 %v5459_v50  ;;  %v5411_v50 = vld [vmem:[#allocation11 + $0xa38] sm:$0xff] }
 0x62a   :  { %7150 = vmatpush.msra.mxu2 %v5864_v46  ;;  %7242 = vmatpush.msrb.mxu3 %v6216_v16  ;;  %v6088_v46 = vunpack.c.l.bf16 %v5361_v59  ;;  %v6168_v16 = vunpack.c.l.bf16 %v14261_v27  ;;  %v6160_v59 = vunpack.c.l.bf16 %v14268_v34  ;;  %v6188_v10 = vunpack.c.l.bf16 %v5411_v50  ;;  %v5449_v36 = vld [vmem:[#allocation11 + $0xb68] sm:$0xff] }
 0x62b   :  { %7258 = vmatpush.msra.mxu1 %v6296_v63  ;;  %7199 = vmatpush.msrb.mxu0 %v6100_v33  ;;  %v6200_v63 = vunpack.c.l.bf16 %v5417_v3  ;;  %v5357_v33 = vld [vmem:[#allocation11 + $0x888] sm:$0xff]  ;;  %v5451_v3 = vld [vmem:[#allocation11 + $0xb78] sm:$0xff] }
 0x62c   :  { %7151 = vmatpush.msra.mxu2 %v5860_v47  ;;  %7243 = vmatpush.msrb.mxu3 %v6212_v29  ;;  %v6280_v47 = vunpack.c.l.bf16 %v5457_v51  ;;  %v5413_v29 = vld [vmem:[#allocation11 + $0xa48] sm:$0xff] }
 0x62d   :  { %7259 = vmatpush.msra.mxu1 %v6292_v62  ;;  %7200 = vmatpush.msrb.mxu0 %v6096_v31  ;;  %v6164_v62 = vunpack.c.l.bf16 %v14264_v22  ;;  %v5453_v31 = vld [vmem:[#allocation11 + $0xb88] sm:$0xff] }
 0x62e   :  { %7152 = vmatpush.msra.mxu2 %v5856_v40  ;;  %7244 = vmatpush.msrb.mxu3 %v6208_v25  ;;  %v5355_v40 = vld [vmem:[#allocation11 + $0x878] sm:$0xff]  ;;  %v6080_v25 = vunpack.c.l.bf16 %v5357_v33  ;;  %v14282_v14 = vld [vmem:[#allocation11 + $0x988] sm:$0xff] }
 0x62f   :  { %7260 = vmatpush.msra.mxu1 %v6288_v5  ;;  %7153 = vmatmul.f32.vlgmr.msra.gmra.mxu2 %v13957_v19  ;;  %v14271_v5 = vld [vmem:[#allocation11 + $0x9b8] sm:$0xff]  ;;  %v6076_v51 = vunpack.c.l.bf16 %v5355_v40  ;;  %v14292_v24 = vld [vmem:[#allocation11 + $0x828] sm:$0xff] }
 0x630   :  { %7201 = vmatpush.msrb.mxu0 %v6092_v1  ;;  %7217 = vmatpush.msrb.mxu2 %v6172_v56  ;;  %v6192_v1 = vunpack.c.l.bf16 %v5413_v29  ;;  %v5353_v56 = vld [vmem:[#allocation11 + $0x868] sm:$0xff]  ;;  %v14277_v29 = vld [vmem:[#allocation11 + $0x998] sm:$0xff]  ;;  %16011 = vst [vmem:[#allocation26_spill] sm:$0xff] %v14292_v24 }
 0x631   :  { %7245 = vmatpush.msrb.mxu3 %v6204_v4  ;;  %7261 = vmatpush.msra.mxu1 %v6284_v2  ;;  %v6272_v4 = vunpack.c.l.bf16 %v5453_v31  ;;  %v5409_v2 = vld [vmem:[#allocation11 + $0xa28] sm:$0xff]  ;;  %v6072_v33 = vunpack.c.l.bf16 %v5353_v56  ;;  %v5447_v40 = vld [vmem:[#allocation11 + $0xb58] sm:$0xff] }
 0x632   :  { %7202 = vmatpush.msrb.mxu0 %v6088_v46  ;;  %7218 = vmatpush.msrb.mxu2 %v6168_v16  ;;  %v6156_v46 = vunpack.c.l.bf16 %v14271_v5  ;;  %v5351_v16 = vld [vmem:[#allocation11 + $0x858] sm:$0xff]  ;;  %v6184_v31 = vunpack.c.l.bf16 %v5409_v2  ;;  %v6260_v56 = vunpack.c.l.bf16 %v5447_v40 }
 0x633   :  { %7246 = vmatpush.msrb.mxu3 %v6200_v63  ;;  %7262 = vmatpush.msra.mxu1 %v6280_v47  ;;  %v6268_v63 = vunpack.c.l.bf16 %v5451_v3  ;;  %v5407_v47 = vld [vmem:[#allocation11 + $0xa18] sm:$0xff]  ;;  %v6068_v50 = vunpack.c.l.bf16 %v5351_v16 }
 0x634   :  { %7203 = vmatpush.msrb.mxu0 %v6084_v32  ;;  %7219 = vmatpush.msrb.mxu2 %v6164_v62  ;;  %v6152_v32 = vunpack.c.l.bf16 %v14274_v17  ;;  %v14280_v62 = vld [vmem:[#allocation11 + $0x848] sm:$0xff]  ;;  %v6180_v3 = vunpack.c.l.bf16 %v5407_v47 }
 0x635   :  { %7247 = vmatpush.msrb.mxu3 %v6196_v52  ;;  %7263 = vmatpush.msra.mxu1 %v6276_v6  ;;  %16009 = vst [vmem:[#allocation48_spill] sm:$0xff] %v14280_v62  ;;  %v6264_v52 = vunpack.c.l.bf16 %v5449_v36  ;;  %v5405_v6 = vld [vmem:[#allocation11 + $0xa08] sm:$0xff]  ;;  %v6064_v2 = vunpack.c.l.bf16 %v14280_v62 }
 0x636   :  { %7204 = vmatpush.msrb.mxu0 %v6080_v25  ;;  %7220 = vmatpush.msrb.mxu2 %v6160_v59  ;;  %v6148_v25 = vunpack.c.l.bf16 %v14277_v29  ;;  %v5445_v59 = vld [vmem:[#allocation11 + $0xb48] sm:$0xff]  ;;  %v6176_v36 = vunpack.c.l.bf16 %v5405_v6  ;;  %v14297_v6 = vld [vmem:[#allocation11 + $0x818] sm:$0xff] }
 0x637   :  { %7248 = vmatpush.msrb.mxu3 %v6192_v1  ;;  %7264 = vmatpush.msra.mxu1 %v6272_v4  ;;  %v14285_v1 = vld [vmem:[#allocation11 + $0x838] sm:$0xff]  ;;  %v6256_v16 = vunpack.c.l.bf16 %v5445_v59  ;;  %16012 = vst [vmem:[#allocation30_spill] sm:$0xff] %v14297_v6  ;;  %v6056_v59 = vunpack.c.l.bf16 %v14292_v24 }
 0x638   :  { %7205 = vmatpush.msrb.mxu0 %v6076_v51  ;;  %7221 = vmatpush.msrb.mxu2 %v6156_v46  ;;  %16010 = vst [vmem:[#allocation59_spill] sm:$0xff] %v14285_v1  ;;  %v14288_v4 = vld [vmem:[#allocation11 + $0x978] sm:$0xff]  ;;  %v6144_v51 = vunpack.c.l.bf16 %v14282_v14  ;;  %v5533_v46 = vld [vmem:[#allocation11 + $0xe08] sm:$0xff]  ;;  %v6060_v47 = vunpack.c.l.bf16 %v14285_v1 }
 0x639   :  { %7249 = vmatpush.msrb.mxu3 %v6188_v10  ;;  %7265 = vmatpush.msra.mxu1 %v6268_v63  ;;  %v5443_v10 = vld [vmem:[#allocation11 + $0xb38] sm:$0xff]  ;;  %v6140_v63 = vunpack.c.l.bf16 %v14288_v4 }
 0x63a   :  { %7206 = vmatpush.msrb.mxu0 %v6072_v33  ;;  %7222 = vmatpush.msrb.mxu2 %v6152_v32  ;;  %v14295_v33 = vld [vmem:[#allocation11 + $0x968] sm:$0xff]  ;;  %v6252_v40 = vunpack.c.l.bf16 %v5443_v10  ;;  %v14300_v1 = vld [vmem:[#allocation11 + $0x958] sm:$0xff] }
 0x63b   :  { %7250 = vmatpush.msrb.mxu3 %v6184_v31  ;;  %7266 = vmatpush.msra.mxu1 %v6264_v52  ;;  %v5441_v32 = vld [vmem:[#allocation11 + $0xb28] sm:$0xff]  ;;  %v6432_v31 = vunpack.c.l.bf16 %v5533_v46  ;;  %v11198_v52 = vld [vmem:[#allocation11 + $0x1f8] sm:$0xff]  ;;  %v6132_v10 = vunpack.c.l.bf16 %v14300_v1 }
 0x63c   :  { %7207 = vmatpush.msrb.mxu0 %v6068_v50  ;;  %7223 = vmatpush.msrb.mxu2 %v6148_v25  ;;  %v5661_v50 = vunpack.c.h.bf16 %v11198_v52  ;;  %v5439_v25 = vld [vmem:[#allocation11 + $0xb18] sm:$0xff]  ;;  %v6248_v62 = vunpack.c.l.bf16 %v5441_v32  ;;  %v14307_v46 = vld [vmem:[#allocation11 + $0x948] sm:$0xff] }
 0x63d   :  { %7251 = vmatpush.msrb.mxu3 %v6180_v3  ;;  %7267 = vmatpush.msra.mxu1 %v6260_v56  ;;  %v6136_v3 = vunpack.c.l.bf16 %v14295_v33  ;;  %v14303_v56 = vld [vmem:[#allocation11 + $0x808] sm:$0xff]  ;;  %v14310_v52 = vld [vmem:[#allocation11 + $0xcf8] sm:$0xff] }
 0x63e   :  { %7208 = vmatpush.msrb.mxu0 %v6064_v2  ;;  %7224 = vmatpush.msrb.mxu2 %v6144_v51  ;;  %16013 = vst [vmem:[#allocation58_spill] sm:$0xff] %v14303_v56  ;;  %v11199_v2 = vld [vmem:[#allocation11 + $0x1e8] sm:$0xff]  ;;  %v11200_v32 = vld [vmem:[#allocation11 + $0x1d8] sm:$0xff] }
 0x63f   :  { %7252 = vmatpush.msrb.mxu3 %v6176_v36  ;;  %7268 = vmatpush.msra.mxu1 %v6256_v16  ;;  %v5657_v51 = vunpack.c.h.bf16 %v11199_v2  ;;  %v6052_v36 = vunpack.c.l.bf16 %v14297_v6  ;;  %v6244_v16 = vunpack.c.l.bf16 %v5439_v25  ;;  %16014 = vst [vmem:[#allocation64_spill] sm:$0xff] %v14310_v52  ;;  %v14313_v24 = vld [vmem:[#allocation11 + $0x938] sm:$0xff]  ;;  %v6128_v2 = vunpack.c.l.bf16 %v14307_v46  ;;  %v14317_v25 = vld [vmem:[#allocation11 + $0xce8] sm:$0xff] }
 0x640   :  { %7209 = vmatpush.msrb.mxu0 %v6060_v47  ;;  %7225 = vmatpush.msrb.mxu2 %v6140_v63  ;;  %v5437_v47 = vld [vmem:[#allocation11 + $0xb08] sm:$0xff]  ;;  %v5653_v63 = vunpack.c.h.bf16 %v11200_v32  ;;  %16015 = vst [vmem:[#allocation16_spill] sm:$0xff] %v14313_v24  ;;  %v6124_v32 = vunpack.c.l.bf16 %v14313_v24  ;;  %v14377_v24 = vld [vmem:[#allocation11 + $0xd98] sm:$0xff] }
 0x641   :  { %7253 = vmatmul.f32.vlgmr.msrb.gmra.mxu3 %v14035_v61  ;;  %7269 = vmatpush.msra.mxu1 %v6252_v40  ;;  %v6048_v61 = vunpack.c.l.bf16 %v14303_v56  ;;  %v6364_v40 = vunpack.c.l.bf16 %v14310_v52  ;;  %16016 = vst [vmem:[#allocation17_spill] sm:$0xff] %v14317_v25  ;;  %v14320_v56 = vld [vmem:[#allocation11 + $0x928] sm:$0xff] }
 0x642   :  { %7332 = vmatpush.msra.mxu3 %v6432_v31  ;;  %7210 = vmatpush.msrb.mxu0 %v6056_v59  ;;  %v6240_v31 = vunpack.c.l.bf16 %v5437_v47  ;;  %16017 = vst [vmem:[#allocation31_spill] sm:$0xff] %v14320_v56  ;;  %v14326_v47 = vld [vmem:[#allocation11 + $0x918] sm:$0xff]  ;;  %v14329_v52 = vld [vmem:[#allocation11 + $0xcc8] sm:$0xff] }
 0x643   :  { %7226 = vmatpush.msrb.mxu2 %v6136_v3  ;;  %7270 = vmatpush.msra.mxu1 %v6248_v62  ;;  %v14322_v62 = vld [vmem:[#allocation11 + $0xcd8] sm:$0xff]  ;;  %16019 = vst [vmem:[#allocation29_spill] sm:$0xff] %v14326_v47 }
 0x644   :  { %7357 = vmatpush.msrb.mxu3 %v5661_v50  ;;  %7211 = vmatpush.msrb.mxu0 %v6052_v36  ;;  %v11201_v50 = vld [vmem:[#allocation11 + $0x1c8] sm:$0xff]  ;;  %16018 = vst [vmem:[#allocation37_spill] sm:$0xff] %v14322_v62  ;;  %v11202_v3 = vld [vmem:[#allocation11 + $0xf8] sm:$0xff]  ;;  %v6360_v36 = vunpack.c.l.bf16 %v14317_v25 }
 0x645   :  { %7227 = vmatpush.msrb.mxu2 %v6132_v10  ;;  %7271 = vmatpush.msra.mxu1 %v6244_v16  ;;  %v5649_v59 = vunpack.c.h.bf16 %v11201_v50  ;;  %v11203_v10 = vld [vmem:[#allocation11 + $0x1b8] sm:$0xff]  ;;  %v6120_v50 = vunpack.c.l.bf16 %v14320_v56  ;;  %16020 = vst [vmem:[#allocation63_spill] sm:$0xff] %v14329_v52  ;;  %v6794_v56 = vpop.f32.mrf.mxu3 }
 0x646   :  { %7358 = vmatpush.msrb.mxu3 %v5657_v51  ;;  %7212 = vmatpush.msrb.mxu0 %v6048_v61  ;;  %v5597_v51 = vunpack.c.h.bf16 %v11202_v3  ;;  %v5645_v16 = vunpack.c.h.bf16 %v11203_v10  ;;  %v11204_v61 = vld [vmem:[#allocation11 + $0xe8] sm:$0xff]  ;;  %v6116_v3 = vunpack.c.l.bf16 %v14326_v47  ;;  %v11206_v10 = vld [vmem:[#allocation11 + $0xd8] sm:$0xff]  ;;  %v6774_v47 = vpop.f32.mrf.mxu1 }
 0x647   :  { %7228 = vmatpush.msrb.mxu2 %v6128_v2  ;;  %7213 = vmatmul.f32.vlgmr.msrb.gmra.mxu0 %v13991_v28  ;;  %v6356_v2 = vunpack.c.l.bf16 %v14322_v62  ;;  %v14332_v28 = vld [vmem:[#allocation11 + $0x908] sm:$0xff]  ;;  %v14341_v62 = vld [vmem:[#allocation11 + $0xdf8] sm:$0xff] }
 0x648   :  { %7359 = vmatpush.msrb.mxu3 %v5653_v63  ;;  %7272 = vmatpush.msra.mxu1 %v6240_v31  ;;  %v5593_v63 = vunpack.c.h.bf16 %v11204_v61  ;;  %16021 = vst [vmem:[#allocation18_spill] sm:$0xff] %v14332_v28  ;;  %v11205_v31 = vld [vmem:[#allocation11 + $0x1a8] sm:$0xff]  ;;  %v14339_v61 = vld [vmem:[#allocation11 + $0xcb8] sm:$0xff] }
 0x649   :  { %7277 = vmatpush.msra.mxu0 %v6364_v40  ;;  %7229 = vmatpush.msrb.mxu2 %v6124_v32  ;;  %v5641_v40 = vunpack.c.h.bf16 %v11205_v31  ;;  %v6352_v32 = vunpack.c.l.bf16 %v14329_v52  ;;  %16022 = vst [vmem:[#allocation62_spill] sm:$0xff] %v14339_v61  ;;  %v11208_v31 = vld [vmem:[#allocation11 + $0xc8] sm:$0xff]  ;;  %v6428_v52 = vunpack.c.l.bf16 %v14341_v62 }
 0x64a   :  { %7360 = vmatpush.msrb.mxu3 %v5649_v59  ;;  %7273 = vmatmul.f32.vlgmr.msra.gmra.mxu1 %v14067_v45  ;;  %v5589_v59 = vunpack.c.h.bf16 %v11206_v10  ;;  %16023 = vst [vmem:[#allocation51_spill] sm:$0xff] %v14341_v62  ;;  %v11207_v45 = vld [vmem:[#allocation11 + $0x198] sm:$0xff]  ;;  %v5585_v6 = vunpack.c.h.bf16 %v11208_v31  ;;  %v6348_v10 = vunpack.c.l.bf16 %v14339_v61 }
 0x64b   :  { %10251 = vmatmul.msk.f32.vlgmr.msra.gmra.mxu3 %vm109_vm0, %v14091_v18  ;;  %7337 = vmatpush.msrb.mxu1 %v5597_v51  ;;  %v5637_v25 = vunpack.c.h.bf16 %v11207_v45  ;;  %v6112_v18 = vunpack.c.l.bf16 %v14332_v28  ;;  %v14344_v51 = vld [vmem:[#allocation11 + $0xca8] sm:$0xff]  ;;  %v14363_v62 = vld [vmem:[#allocation11 + $0xc78] sm:$0xff] }
 0x64c   :  { %7278 = vmatpush.msra.mxu0 %v6360_v36  ;;  %7361 = vmatpush.msrb.mxu3 %v5645_v16  ;;  %16024 = vst [vmem:[#allocation53_spill] sm:$0xff] %v14344_v51  ;;  %v14346_v36 = vld [vmem:[#allocation11 + $0xde8] sm:$0xff]  ;;  %v6344_v31 = vunpack.c.l.bf16 %v14344_v51 }
 0x64d   :  { %7230 = vmatpush.msrb.mxu2 %v6120_v50  ;;  %7338 = vmatpush.msrb.mxu1 %v5593_v63  ;;  %16025 = vst [vmem:[#allocation20_spill] sm:$0xff] %v14346_v36  ;;  %v11209_v16 = vld [vmem:[#allocation11 + $0x188] sm:$0xff]  ;;  %v11210_v50 = vld [vmem:[#allocation11 + $0xb8] sm:$0xff] }
 0x64e   :  { %7279 = vmatpush.msra.mxu0 %v6356_v2  ;;  %7362 = vmatpush.msrb.mxu3 %v5641_v40  ;;  %v5633_v45 = vunpack.c.h.bf16 %v11209_v16  ;;  %v5581_v28 = vunpack.c.h.bf16 %v11210_v50  ;;  %v14350_v63 = vld [vmem:[#allocation11 + $0xc98] sm:$0xff]  ;;  %v6424_v40 = vunpack.c.l.bf16 %v14346_v36  ;;  %v14357_v16 = vld [vmem:[#allocation11 + $0xc88] sm:$0xff]  ;;  %16030 = vst [vmem:[#allocation36_spill] sm:$0xff] %v14363_v62 }
 0x64f   :  { %7231 = vmatpush.msrb.mxu2 %v6116_v3  ;;  %7339 = vmatpush.msrb.mxu1 %v5589_v59  ;;  %16026 = vst [vmem:[#allocation34_spill] sm:$0xff] %v14350_v63  ;;  %v14352_v2 = vld [vmem:[#allocation11 + $0xdd8] sm:$0xff]  ;;  %v14359_v50 = vld [vmem:[#allocation11 + $0xdc8] sm:$0xff] }
 0x650   :  { %7280 = vmatpush.msra.mxu0 %v6352_v32  ;;  %16027 = vst [vmem:[#allocation15_spill] sm:$0xff] %v14352_v2  ;;  %7363 = vmatpush.msrb.mxu3 %v5637_v25  ;;  %v11211_v3 = vld [vmem:[#allocation11 + $0x178] sm:$0xff]  ;;  %v11212_v32 = vld [vmem:[#allocation11 + $0xa8] sm:$0xff]  ;;  %v6340_v25 = vunpack.c.l.bf16 %v14350_v63 }
 0x651   :  { %7232 = vmatpush.msrb.mxu2 %v6112_v18  ;;  %7340 = vmatpush.msrb.mxu1 %v5585_v6  ;;  %v5629_v59 = vunpack.c.h.bf16 %v11211_v3  ;;  %v5577_v61 = vunpack.c.h.bf16 %v11212_v32  ;;  %16028 = vst [vmem:[#allocation41_spill] sm:$0xff] %v14357_v16  ;;  %v6420_v18 = vunpack.c.l.bf16 %v14352_v2  ;;  %v11213_v51 = vld [vmem:[#allocation11 + $0x168] sm:$0xff]  ;;  %v11214_v36 = vld [vmem:[#allocation11 + $0x98] sm:$0xff]  ;;  %v6754_v32 = vpop.f32.mrf.mxu2 }
 0x652   :  { %7233 = vmatmul.f32.vlgmr.msrb.gmra.mxu2 %v14030_v20  ;;  %16029 = vst [vmem:[#allocation14_spill] sm:$0xff] %v14359_v50  ;;  %7281 = vmatpush.msra.mxu0 %v6348_v10  ;;  %v5625_v6 = vunpack.c.h.bf16 %v11213_v51  ;;  %v5573_v20 = vunpack.c.h.bf16 %v11214_v36  ;;  %v14365_v3 = vld [vmem:[#allocation11 + $0xdb8] sm:$0xff]  ;;  %v6336_v10 = vunpack.c.l.bf16 %v14357_v16  ;;  %v14369_v51 = vld [vmem:[#allocation11 + $0xc68] sm:$0xff]  ;;  %v6775_v16 = vadd.f32 %v6774_v47, %v6754_v32 }
 0x653   :  { %7297 = vmatpush.msra.mxu2 %v6428_v52  ;;  %7364 = vmatpush.msrb.mxu3 %v5633_v45  ;;  %16031 = vst [vmem:[#allocation33_spill] sm:$0xff] %v14365_v3  ;;  %v6416_v52 = vunpack.c.l.bf16 %v14359_v50  ;;  %v11215_v63 = vld [vmem:[#allocation11 + $0x158] sm:$0xff]  ;;  %v14371_v36 = vld [vmem:[#allocation11 + $0xda8] sm:$0xff] }
 0x654   :  { %7341 = vmatpush.msrb.mxu1 %v5581_v28  ;;  %7282 = vmatpush.msra.mxu0 %v6344_v31  ;;  %v5621_v45 = vunpack.c.h.bf16 %v11215_v63  ;;  %v11216_v28 = vld [vmem:[#allocation11 + $0x88] sm:$0xff]  ;;  %16032 = vst [vmem:[#allocation39_spill] sm:$0xff] %v14369_v51  ;;  %v6332_v31 = vunpack.c.l.bf16 %v14363_v62  ;;  %v11218_v63 = vld [vmem:[#allocation11 + $0x78] sm:$0xff]  ;;  %v6795_v62 = vadd.f32 %v6794_v56, %v6775_v16  ;;  %v5609_v56 = vunpack.c.h.bf16 %v14183_v37 }
 0x655   :  { %7298 = vmatpush.msra.mxu2 %v6424_v40  ;;  %7365 = vmatpush.msrb.mxu3 %v5629_v59  ;;  %v5569_v2 = vunpack.c.h.bf16 %v11216_v28  ;;  %v6412_v40 = vunpack.c.l.bf16 %v14365_v3  ;;  %v5565_v50 = vunpack.c.h.bf16 %v11218_v63  ;;  %v14375_v28 = vld [vmem:[#allocation11 + $0xc58] sm:$0xff]  ;;  %v14383_v63 = vld [vmem:[#allocation11 + $0xd88] sm:$0xff]  ;;  %v6814_v3 = vpop.f32.mrf.mxu0 }
 0x656   :  { %7342 = vmatpush.msrb.mxu1 %v5577_v61  ;;  %7283 = vmatpush.msra.mxu0 %v6340_v25  ;;  %v11217_v61 = vld [vmem:[#allocation11 + $0x148] sm:$0xff]  ;;  %16033 = vst [vmem:[#allocation57_spill] sm:$0xff] %v14375_v28  ;;  %v6328_v25 = vunpack.c.l.bf16 %v14369_v51  ;;  %v11219_v47 = vld [vmem:[#allocation11 + $0x138] sm:$0xff] }
 0x657   :  { %7299 = vmatpush.msra.mxu2 %v6420_v18  ;;  %7366 = vmatpush.msrb.mxu3 %v5625_v6  ;;  %v5617_v59 = vunpack.c.h.bf16 %v11217_v61  ;;  %v6408_v18 = vunpack.c.l.bf16 %v14371_v36  ;;  %v5613_v6 = vunpack.c.h.bf16 %v11219_v47  ;;  %v14381_v61 = vld [vmem:[#allocation11 + $0xc48] sm:$0xff]  ;;  %v14390_v47 = vld [vmem:[#allocation11 + $0xd78] sm:$0xff] }
 0x658   :  { %7343 = vmatpush.msrb.mxu1 %v5573_v20  ;;  %7284 = vmatpush.msra.mxu0 %v6336_v10  ;;  %v11220_v20 = vld [vmem:[#allocation11 + $0x68] sm:$0xff]  ;;  %16034 = vst [vmem:[#allocation50_spill] sm:$0xff] %v14381_v61  ;;  %v6324_v10 = vunpack.c.l.bf16 %v14375_v28  ;;  %v6815_v28 = vadd.f32 %v6814_v3, %v6795_v62  ;;  %v5601_v62 = vunpack.c.h.bf16 %v14189_v60  ;;  %v11223_v3 = vld [vmem:[#allocation11 + $0x38] sm:$0xff]  ;;  %v6874_v60 = vpop.f32.mrf.mxu3 }
 0x659   :  { %7300 = vmatpush.msra.mxu2 %v6416_v52  ;;  %7367 = vmatpush.msrb.mxu3 %v5621_v45  ;;  %v5561_v32 = vunpack.c.h.bf16 %v11220_v20  ;;  %v6404_v52 = vunpack.c.l.bf16 %v14377_v24  ;;  %v14388_v45 = vld [vmem:[#allocation11 + $0xc38] sm:$0xff]  ;;  %v6834_v20 = vpop.f32.mrf.mxu2  ;;  %v14395_v51 = vld [vmem:[#allocation11 + $0xc28] sm:$0xff] }
 0x65a   :  { %7344 = vmatpush.msrb.mxu1 %v5569_v2  ;;  %7285 = vmatpush.msra.mxu0 %v6332_v31  ;;  %v11221_v2 = vld [vmem:[#allocation11 + $0x58] sm:$0xff]  ;;  %v6320_v31 = vunpack.c.l.bf16 %v14381_v61  ;;  %16035 = vst [vmem:[#allocation38_spill] sm:$0xff] %v14395_v51  ;;  %v6835_v61 = vadd.f32 %v6834_v20, %v6815_v28  ;;  %v11224_v20 = vld [vmem:[#allocation11 + $0x28] sm:$0xff] }
 0x65b   :  { %7301 = vmatpush.msra.mxu2 %v6412_v40  ;;  %7368 = vmatpush.msrb.mxu3 %v5617_v59  ;;  %v5557_v16 = vunpack.c.h.bf16 %v11221_v2  ;;  %v6400_v40 = vunpack.c.l.bf16 %v14383_v63  ;;  %v11222_v59 = vld [vmem:[#allocation11 + $0x48] sm:$0xff]  ;;  %v6316_v2 = vunpack.c.l.bf16 %v14388_v45 }
 0x65c   :  { %7345 = vmatpush.msrb.mxu1 %v5565_v50  ;;  %7286 = vmatpush.msra.mxu0 %v6328_v25  ;;  %v5605_v50 = vunpack.c.h.bf16 %v14185_v7  ;;  %v5553_v37 = vunpack.c.h.bf16 %v11222_v59  ;;  %v6396_v25 = vunpack.c.l.bf16 %v14390_v47  ;;  %v14402_v7 = vld [vmem:[#allocation11 + $0xc18] sm:$0xff]  ;;  %v5545_v59 = vunpack.c.h.bf16 %v11224_v20 }
 0x65d   :  { %7302 = vmatpush.msra.mxu2 %v6408_v18  ;;  %7369 = vmatpush.msrb.mxu3 %v5613_v6  ;;  %v14399_v18 = vld [vmem:[#allocation11 + $0xd68] sm:$0xff]  ;;  %v5549_v6 = vunpack.c.h.bf16 %v11223_v3  ;;  %v5909_v20 = vunpack.c.h.bf16 %v14204_v12 }
 0x65e   :  { %7346 = vmatpush.msrb.mxu1 %v5561_v32  ;;  %7287 = vmatpush.msra.mxu0 %v6324_v10  ;;  %v6312_v32 = vunpack.c.l.bf16 %v14395_v51  ;;  %v14405_v10 = vld [vmem:[#allocation11 + $0xd58] sm:$0xff]  ;;  %v6392_v28 = vunpack.c.l.bf16 %v14399_v18 }
 0x65f   :  { %7303 = vmatpush.msra.mxu2 %v6404_v52  ;;  %7370 = vmatpush.msrb.mxu3 %v5609_v56  ;;  %v5917_v52 = vunpack.c.h.bf16 %v14196_v43  ;;  %v14409_v56 = vld [vmem:[#allocation11 + $0xc08] sm:$0xff]  ;;  %v6388_v43 = vunpack.c.l.bf16 %v14405_v10 }
 0x660   :  { %7347 = vmatpush.msrb.mxu1 %v5557_v16  ;;  %7288 = vmatpush.msra.mxu0 %v6320_v31  ;;  %v6854_v16 = vpop.f32.mrf.mxu1  ;;  %v6308_v31 = vunpack.c.l.bf16 %v14402_v7 }
 0x661   :  { %7304 = vmatpush.msra.mxu2 %v6400_v40  ;;  %7371 = vmatpush.msrb.mxu3 %v5605_v50  ;;  %v14412_v40 = vld [vmem:[#allocation11 + $0xd48] sm:$0xff]  ;;  %v6855_v3 = vadd.f32 %v6854_v16, %v6835_v61  ;;  %v5913_v50 = vunpack.c.h.bf16 %v14202_v35 }
 0x662   :  { %7348 = vmatpush.msrb.mxu1 %v5553_v37  ;;  %7289 = vmatpush.msra.mxu0 %v6316_v2  ;;  %v11225_v37 = vld [vmem:[#allocation11 + $0x18] sm:$0xff]  ;;  %v6304_v2 = vunpack.c.l.bf16 %v14409_v56  ;;  %v6384_v61 = vunpack.c.l.bf16 %v14412_v40  ;;  %v11226_v35 = vld [vmem:[#allocation11 + $0x8] sm:$0xff] }
 0x663   :  { %7305 = vmatpush.msra.mxu2 %v6396_v25  ;;  %7372 = vmatpush.msrb.mxu3 %v5601_v62  ;;  %v5541_v51 = vunpack.c.h.bf16 %v11225_v37  ;;  %v6875_v25 = vadd.f32 %v6874_v60, %v6855_v3  ;;  %v14420_v62 = vld [vmem:[#allocation11 + $0xd38] sm:$0xff]  ;;  %v5537_v16 = vunpack.c.h.bf16 %v11226_v35  ;;  %v5905_v37 = vunpack.c.h.bf16 %v14210_v21  ;;  %v14423_v60 = vld [vmem:[#allocation11 + $0xd28] sm:$0xff] }
 0x664   :  { %7349 = vmatpush.msrb.mxu1 %v5549_v6  ;;  %7373 = vmatmul.f32.vlgmr.msrb.gmra.mxu3 %v13839_v39  ;;  %v6894_v6 = vpop.f32.mrf.mxu0  ;;  %v11227_v39 = vld [vmem:[#allocation11 + $0x2f8] sm:$0xff]  ;;  %v6380_v12 = vunpack.c.l.bf16 %v14420_v62  ;;  %v11229_v3 = vld [vmem:[#allocation11 + $0x2e8] sm:$0xff]  ;;  %v5901_v21 = vunpack.c.h.bf16 %v14215_v11 }
 0x665   :  { %7290 = vmatpush.msra.mxu0 %v6312_v32  ;;  %7437 = vmatpush.msra.mxu3 %v5917_v52  ;;  %v5725_v32 = vunpack.c.h.bf16 %v11227_v39  ;;  %v6914_v52 = vpop.f32.mrf.mxu2  ;;  %v5721_v35 = vunpack.c.h.bf16 %v11229_v3  ;;  %v5897_v39 = vunpack.c.h.bf16 %v14218_v23  ;;  %v11232_v11 = vld [vmem:[#allocation11 + $0x4d8] sm:$0xff]  ;;  %v5893_v3 = vunpack.c.h.bf16 %v14221_v41 }
 0x666   :  { %7306 = vmatpush.msra.mxu2 %v6392_v28  ;;  %7350 = vmatpush.msrb.mxu1 %v5545_v59  ;;  %v6895_v28 = vadd.f32 %v6894_v6, %v6875_v25  ;;  %v11228_v59 = vld [vmem:[#allocation11 + $0x4f8] sm:$0xff]  ;;  %v14431_v6 = vld [vmem:[#allocation11 + $0xd08] sm:$0xff] }
 0x667   :  { %7291 = vmatpush.msra.mxu0 %v6308_v31  ;;  %7438 = vmatpush.msra.mxu3 %v5913_v50  ;;  %v5853_v31 = vunpack.c.h.bf16 %v11228_v59  ;;  %v14426_v50 = vld [vmem:[#allocation11 + $0xd18] sm:$0xff]  ;;  %v5845_v59 = vunpack.c.h.bf16 %v11232_v11 }
 0x668   :  { %7307 = vmatpush.msra.mxu2 %v6388_v43  ;;  %7351 = vmatpush.msrb.mxu1 %v5541_v51  ;;  %v6376_v43 = vunpack.c.l.bf16 %v14423_v60  ;;  %v6915_v51 = vadd.f32 %v6914_v52, %v6895_v28  ;;  %v11233_v52 = vld [vmem:[#allocation11 + $0x2c8] sm:$0xff]  ;;  %v6954_v28 = vpop.f32.mrf.mxu3 }
 0x669   :  { %7292 = vmatpush.msra.mxu0 %v6304_v2  ;;  %7439 = vmatpush.msra.mxu3 %v5909_v20  ;;  %v11230_v2 = vld [vmem:[#allocation11 + $0x4e8] sm:$0xff]  ;;  %v11231_v20 = vld [vmem:[#allocation11 + $0x2d8] sm:$0xff] }
 0x66a   :  { %7308 = vmatpush.msra.mxu2 %v6384_v61  ;;  %7293 = vmatmul.f32.vlgmr.msra.gmra.mxu0 %v14126_v53  ;;  %v5849_v25 = vunpack.c.h.bf16 %v11230_v2  ;;  %v5717_v61 = vunpack.c.h.bf16 %v11231_v20  ;;  %v11236_v20 = vld [vmem:[#allocation11 + $0x3f8] sm:$0xff] }
 0x66b   :  { %7352 = vmatpush.msrb.mxu1 %v5537_v16  ;;  %7377 = vmatpush.msrb.mxu0 %v5725_v32  ;;  %v6372_v16 = vunpack.c.l.bf16 %v14426_v50  ;;  %v5713_v32 = vunpack.c.h.bf16 %v11233_v52  ;;  %v5789_v11 = vunpack.c.h.bf16 %v11236_v20  ;;  %v11244_v20 = vld [vmem:[#allocation11 + $0x288] sm:$0xff] }
 0x66c   :  { %7440 = vmatpush.msra.mxu3 %v5905_v37  ;;  %7309 = vmatpush.msra.mxu2 %v6380_v12  ;;  %v6934_v37 = vpop.f32.mrf.mxu1  ;;  %v6368_v12 = vunpack.c.l.bf16 %v14431_v6  ;;  %v6974_v53 = vpop.f32.mrf.mxu0 }
 0x66d   :  { %7353 = vmatmul.f32.vlgmr.msrb.gmra.mxu1 %v13818_v8  ;;  %7378 = vmatpush.msrb.mxu0 %v5721_v35  ;;  %v6935_v2 = vadd.f32 %v6934_v37, %v6915_v51  ;;  %v11234_v8 = vld [vmem:[#allocation11 + $0x4c8] sm:$0xff] }
 0x66e   :  { %7417 = vmatpush.msra.mxu1 %v5853_v31  ;;  %7441 = vmatpush.msra.mxu3 %v5901_v21  ;;  %v5841_v23 = vunpack.c.h.bf16 %v11234_v8  ;;  %v11235_v31 = vld [vmem:[#allocation11 + $0x2b8] sm:$0xff]  ;;  %v5889_v21 = vunpack.c.h.bf16 %v14224_v54  ;;  %v11238_v51 = vld [vmem:[#allocation11 + $0x2a8] sm:$0xff]  ;;  %v6994_v8 = vpop.f32.mrf.mxu2 }
 0x66f   :  { %7310 = vmatpush.msra.mxu2 %v6376_v43  ;;  %7379 = vmatpush.msrb.mxu0 %v5717_v61  ;;  %v5709_v35 = vunpack.c.h.bf16 %v11235_v31  ;;  %v6955_v52 = vadd.f32 %v6954_v28, %v6935_v2  ;;  %v11237_v43 = vld [vmem:[#allocation11 + $0x4b8] sm:$0xff]  ;;  %v11239_v61 = vld [vmem:[#allocation11 + $0x3e8] sm:$0xff] }
 0x670   :  { %7418 = vmatpush.msra.mxu1 %v5849_v25  ;;  %7442 = vmatpush.msra.mxu3 %v5897_v39  ;;  %v5837_v41 = vunpack.c.h.bf16 %v11237_v43  ;;  %v5705_v25 = vunpack.c.h.bf16 %v11238_v51  ;;  %v5785_v37 = vunpack.c.h.bf16 %v11239_v61  ;;  %v5885_v39 = vunpack.c.h.bf16 %v14229_v58  ;;  %v11243_v31 = vld [vmem:[#allocation11 + $0x498] sm:$0xff]  ;;  %v11245_v43 = vld [vmem:[#allocation11 + $0x3c8] sm:$0xff] }
 0x671   :  { %7311 = vmatpush.msra.mxu2 %v6372_v16  ;;  %7380 = vmatpush.msrb.mxu0 %v5713_v32  ;;  %v11240_v16 = vld [vmem:[#allocation11 + $0x4a8] sm:$0xff]  ;;  %v11242_v32 = vld [vmem:[#allocation11 + $0x3d8] sm:$0xff]  ;;  %v5697_v58 = vunpack.c.h.bf16 %v11244_v20  ;;  %v5777_v51 = vunpack.c.h.bf16 %v11245_v43  ;;  %v5865_v20 = vunpack.c.h.bf16 %v14247_v55 }
 0x672   :  { %7419 = vmatpush.msra.mxu1 %v5845_v59  ;;  %7443 = vmatpush.msra.mxu3 %v5893_v3  ;;  %v5833_v28 = vunpack.c.h.bf16 %v11240_v16  ;;  %v11241_v59 = vld [vmem:[#allocation11 + $0x298] sm:$0xff]  ;;  %v5781_v2 = vunpack.c.h.bf16 %v11242_v32  ;;  %v6975_v3 = vadd.f32 %v6974_v53, %v6955_v52  ;;  %v11246_v61 = vld [vmem:[#allocation11 + $0x488] sm:$0xff] }
 0x673   :  { %7312 = vmatpush.msra.mxu2 %v6368_v12  ;;  %7381 = vmatpush.msrb.mxu0 %v5709_v35  ;;  %v5701_v54 = vunpack.c.h.bf16 %v11241_v59  ;;  %v5881_v12 = vunpack.c.h.bf16 %v14233_v49  ;;  %v5877_v35 = vunpack.c.h.bf16 %v14235_v9  ;;  %v5825_v16 = vunpack.c.h.bf16 %v11246_v61  ;;  %v11247_v53 = vld [vmem:[#allocation11 + $0x278] sm:$0xff] }
 0x674   :  { %7420 = vmatpush.msra.mxu1 %v5841_v23  ;;  %7313 = vmatmul.f32.vlgmr.msra.gmra.mxu2 %v14144_v38  ;;  %v5829_v23 = vunpack.c.h.bf16 %v11243_v31  ;;  %v5693_v52 = vunpack.c.h.bf16 %v11247_v53  ;;  %v11248_v49 = vld [vmem:[#allocation11 + $0x3b8] sm:$0xff]  ;;  %v7014_v59 = vpop.f32.mrf.mxu1  ;;  %v5861_v53 = vunpack.c.h.bf16 %v14250_v57  ;;  %v11262_v57 = vld [vmem:[#allocation11 + $0x228] sm:$0xff] }
 0x675   :  { %7397 = vmatpush.msrb.mxu2 %v5789_v11  ;;  %7444 = vmatpush.msra.mxu3 %v5889_v21  ;;  %v6995_v11 = vadd.f32 %v6994_v8, %v6975_v3  ;;  %v5773_v21 = vunpack.c.h.bf16 %v11248_v49  ;;  %v11252_v8 = vld [vmem:[#allocation11 + $0x468] sm:$0xff]  ;;  %v11254_v31 = vld [vmem:[#allocation11 + $0x398] sm:$0xff] }
 0x676   :  { %7421 = vmatpush.msra.mxu1 %v5837_v41  ;;  %7382 = vmatpush.msrb.mxu0 %v5705_v25  ;;  %v5873_v41 = vunpack.c.h.bf16 %v14238_v26  ;;  %v11249_v25 = vld [vmem:[#allocation11 + $0x478] sm:$0xff]  ;;  %v5817_v3 = vunpack.c.h.bf16 %v11252_v8 }
 0x677   :  { %7398 = vmatpush.msrb.mxu2 %v5785_v37  ;;  %7445 = vmatpush.msra.mxu3 %v5885_v39  ;;  %v5821_v37 = vunpack.c.h.bf16 %v11249_v25  ;;  %v11250_v39 = vld [vmem:[#allocation11 + $0x268] sm:$0xff]  ;;  %v11259_v55 = vld [vmem:[#allocation11 + $0x238] sm:$0xff] }
 0x678   :  { %7422 = vmatpush.msra.mxu1 %v5833_v28  ;;  %7383 = vmatpush.msrb.mxu0 %v5701_v54  ;;  %v5689_v9 = vunpack.c.h.bf16 %v11250_v39  ;;  %v11251_v28 = vld [vmem:[#allocation11 + $0x3a8] sm:$0xff]  ;;  %v7015_v54 = vadd.f32 %v7014_v59, %v6995_v11  ;;  %v11261_v59 = vld [vmem:[#allocation11 + $0x438] sm:$0xff] }
 0x679   :  { %7399 = vmatpush.msrb.mxu2 %v5781_v2  ;;  %7446 = vmatpush.msra.mxu3 %v5881_v12  ;;  %v5769_v32 = vunpack.c.h.bf16 %v11251_v28  ;;  %v5869_v2 = vunpack.c.h.bf16 %v14245_v30  ;;  %v11253_v12 = vld [vmem:[#allocation11 + $0x258] sm:$0xff]  ;;  %v11257_v30 = vld [vmem:[#allocation11 + $0x388] sm:$0xff]  ;;  %v5805_v39 = vunpack.c.h.bf16 %v11261_v59  ;;  %v6173_v28 = vunpack.c.h.bf16 %v14259_v48 }
 0x67a   :  { %7423 = vmatpush.msra.mxu1 %v5829_v23  ;;  %7384 = vmatpush.msrb.mxu0 %v5697_v58  ;;  %v5685_v26 = vunpack.c.h.bf16 %v11253_v12  ;;  %v5765_v23 = vunpack.c.h.bf16 %v11254_v31  ;;  %v11255_v58 = vld [vmem:[#allocation11 + $0x458] sm:$0xff]  ;;  %v5761_v61 = vunpack.c.h.bf16 %v11257_v30  ;;  %v6169_v12 = vunpack.c.h.bf16 %v14261_v27  ;;  %v11268_v48 = vld [vmem:[#allocation11 + $0x208] sm:$0xff] }
 0x67b   :  { %7400 = vmatpush.msrb.mxu2 %v5777_v51  ;;  %7447 = vmatpush.msra.mxu3 %v5877_v35  ;;  %v5813_v43 = vunpack.c.h.bf16 %v11255_v58  ;;  %v7034_v51 = vpop.f32.mrf.mxu3  ;;  %v11256_v35 = vld [vmem:[#allocation11 + $0x248] sm:$0xff]  ;;  %v11265_v8 = vld [vmem:[#allocation11 + $0x218] sm:$0xff]  ;;  %v5665_v58 = vunpack.c.h.bf16 %v11268_v48  ;;  %v6145_v48 = vunpack.c.h.bf16 %v14282_v14 }
 0x67c   :  { %7424 = vmatpush.msra.mxu1 %v5825_v16  ;;  %7385 = vmatpush.msrb.mxu0 %v5693_v52  ;;  %v5681_v11 = vunpack.c.h.bf16 %v11256_v35  ;;  %v14446_v16 = vadd.f32 %v7034_v51, %v7015_v54  ;;  %v11258_v52 = vld [vmem:[#allocation11 + $0x448] sm:$0xff]  ;;  %v11271_v30 = vld [vmem:[#allocation11 + $0x6f8] sm:$0xff] }
 0x67d   :  { %7401 = vmatpush.msrb.mxu2 %v5773_v21  ;;  %7448 = vmatpush.msra.mxu3 %v5873_v41  ;;  %v5809_v49 = vunpack.c.h.bf16 %v11258_v52  ;;  %v5677_v21 = vunpack.c.h.bf16 %v11259_v55  ;;  %v11260_v41 = vld [vmem:[#allocation11 + $0x378] sm:$0xff]  ;;  %v11269_v51 = vld [vmem:[#allocation11 + $0x348] sm:$0xff] }
 0x67e   :  { %7425 = vmatpush.msra.mxu1 %v5821_v37  ;;  %7386 = vmatpush.msrb.mxu0 %v5689_v9  ;;  %v5757_v25 = vunpack.c.h.bf16 %v11260_v41  ;;  %v5857_v37 = vunpack.c.h.bf16 %v14254_v44  ;;  %v5673_v9 = vunpack.c.h.bf16 %v11262_v57  ;;  %v5745_v35 = vunpack.c.h.bf16 %v11269_v51  ;;  %v11270_v27 = vld [vmem:[#allocation11 + $0x408] sm:$0xff]  ;;  %v11277_v57 = vld [vmem:[#allocation11 + $0x6d8] sm:$0xff] }
 0x67f   :  { %7402 = vmatpush.msrb.mxu2 %v5769_v32  ;;  %7449 = vmatpush.msra.mxu3 %v5869_v2  ;;  %v11263_v32 = vld [vmem:[#allocation11 + $0x368] sm:$0xff] }
 0x680   :  { %7426 = vmatpush.msra.mxu1 %v5817_v3  ;;  %7387 = vmatpush.msrb.mxu0 %v5685_v26  ;;  %v5753_v54 = vunpack.c.h.bf16 %v11263_v32  ;;  %v11264_v2 = vld [vmem:[#allocation11 + $0x428] sm:$0xff]  ;;  %v5669_v3 = vunpack.c.h.bf16 %v11265_v8  ;;  %v11266_v26 = vld [vmem:[#allocation11 + $0x358] sm:$0xff]  ;;  %v6149_v8 = vunpack.c.h.bf16 %v14277_v29 }
 0x681   :  { %7403 = vmatpush.msrb.mxu2 %v5765_v23  ;;  %7450 = vmatpush.msra.mxu3 %v5865_v20  ;;  %v5801_v44 = vunpack.c.h.bf16 %v11264_v2  ;;  %v5749_v31 = vunpack.c.h.bf16 %v11266_v26  ;;  %v11267_v23 = vld [vmem:[#allocation11 + $0x418] sm:$0xff]  ;;  %v11276_v59 = vld [vmem:[#allocation11 + $0x8e8] sm:$0xff] }
 0x682   :  { %7427 = vmatpush.msra.mxu1 %v5813_v43  ;;  %7388 = vmatpush.msrb.mxu0 %v5681_v11  ;;  %v5797_v20 = vunpack.c.h.bf16 %v11267_v23  ;;  %v6165_v43 = vunpack.c.h.bf16 %v14264_v22  ;;  %v5793_v11 = vunpack.c.h.bf16 %v11270_v27  ;;  %v11272_v22 = vld [vmem:[#allocation11 + $0x338] sm:$0xff]  ;;  %v11282_v26 = vld [vmem:[#allocation11 + $0x8c8] sm:$0xff] }
 0x683   :  { %7404 = vmatpush.msrb.mxu2 %v5761_v61  ;;  %7451 = vmatpush.msra.mxu3 %v5861_v53  ;;  %v5981_v61 = vunpack.c.h.bf16 %v11271_v30  ;;  %v6161_v53 = vunpack.c.h.bf16 %v14268_v34  ;;  %v5741_v52 = vunpack.c.h.bf16 %v11272_v22  ;;  %v6157_v34 = vunpack.c.h.bf16 %v14271_v5  ;;  %v11278_v32 = vld [vmem:[#allocation11 + $0x318] sm:$0xff]  ;;  %v11280_v5 = vld [vmem:[#allocation11 + $0x6c8] sm:$0xff] }
 0x684   :  { %7972 = vrot.lane.b32.xlu0 %v14446_v16, %s11446_s22  ;;  %7658 = vrot.lane.b32.xlu1 %v14446_v16, %s11432_s18  ;;  %v11284_v23 = vld [vmem:[#allocation11 + $0x7f8] sm:$0xff]  ;;  %v11288_v30 = vld [vmem:[#allocation11 + $0x8a8] sm:$0xff] }
 0x685   :  { %7428 = vmatpush.msra.mxu1 %v5809_v49  ;;  %7389 = vmatpush.msrb.mxu0 %v5677_v21  ;;  %v11273_v49 = vld [vmem:[#allocation11 + $0x8f8] sm:$0xff]  ;;  %v11274_v21 = vld [vmem:[#allocation11 + $0x6e8] sm:$0xff]  ;;  %v6089_v14 = vunpack.c.h.bf16 %v11288_v30 }
 0x686   :  { %7405 = vmatpush.msrb.mxu2 %v5757_v25  ;;  %7452 = vmatpush.msra.mxu3 %v5857_v37  ;;  %v6109_v55 = vunpack.c.h.bf16 %v11273_v49  ;;  %v5977_v41 = vunpack.c.h.bf16 %v11274_v21  ;;  %v11275_v25 = vld [vmem:[#allocation11 + $0x328] sm:$0xff]  ;;  %v11290_v22 = vld [vmem:[#allocation11 + $0x7d8] sm:$0xff]  ;;  %v6137_v49 = vunpack.c.h.bf16 %v14295_v33 }
 0x687   :  { %7429 = vmatpush.msra.mxu1 %v5805_v39  ;;  %7453 = vmatmul.f32.vlgmr.msra.gmra.mxu3 %v13957_v19  ;;  %v14460_v19 = vpack.i.bf16 %v14446_v16, %v14193_v0  ;;  %v5737_v37 = vunpack.c.h.bf16 %v11275_v25  ;;  %v6105_v39 = vunpack.c.h.bf16 %v11276_v59  ;;  %v6133_v25 = vunpack.c.h.bf16 %v14300_v1  ;;  %v11306_v30 = vld [vmem:[#allocation11 + $0x638] sm:$0xff] }
 0x688   :  { %7390 = vmatpush.msrb.mxu0 %v5673_v9  ;;  %7517 = vmatpush.msrb.mxu3 %v6173_v28  ;;  %v5973_v9 = vunpack.c.h.bf16 %v11277_v57  ;;  %v6153_v28 = vunpack.c.h.bf16 %v14274_v17  ;;  %v11283_v17 = vld [vmem:[#allocation11 + $0x6b8] sm:$0xff] }
 0x689   :  { %7406 = vmatpush.msrb.mxu2 %v5753_v54  ;;  %7430 = vmatpush.msra.mxu1 %v5801_v44  ;;  %v5733_v54 = vunpack.c.h.bf16 %v11278_v32  ;;  %v5969_v44 = vunpack.c.h.bf16 %v11280_v5  ;;  %v11296_v57 = vld [vmem:[#allocation11 + $0x7b8] sm:$0xff] }
 0x68a   :  { %7391 = vmatpush.msrb.mxu0 %v5669_v3  ;;  %7518 = vmatpush.msrb.mxu3 %v6169_v12  ;;  %v11281_v3 = vld [vmem:[#allocation11 + $0x308] sm:$0xff]  ;;  %v11297_v32 = vld [vmem:[#allocation11 + $0x878] sm:$0xff] }
 0x68b   :  { %7407 = vmatpush.msrb.mxu2 %v5749_v31  ;;  %7431 = vmatpush.msra.mxu1 %v5797_v20  ;;  %v5729_v12 = vunpack.c.h.bf16 %v11281_v3  ;;  %v5965_v31 = vunpack.c.h.bf16 %v11283_v17  ;;  %v6045_v20 = vunpack.c.h.bf16 %v11284_v23  ;;  %v11300_v3 = vld [vmem:[#allocation11 + $0x868] sm:$0xff] }
 0x68c   :  { %7392 = vmatpush.msrb.mxu0 %v5665_v58  ;;  %7519 = vmatpush.msrb.mxu3 %v6165_v43  ;;  %v11285_v58 = vld [vmem:[#allocation11 + $0x8b8] sm:$0xff]  ;;  %v11286_v43 = vld [vmem:[#allocation11 + $0x6a8] sm:$0xff] }
 0x68d   :  { %7408 = vmatpush.msrb.mxu2 %v5745_v35  ;;  %10861 = vrot.lane.b32.xlu0 %v14460_v19, %s11450_s24  ;;  %v6093_v29 = vunpack.c.h.bf16 %v11285_v58  ;;  %v5961_v51 = vunpack.c.h.bf16 %v11286_v43  ;;  %v11287_v35 = vld [vmem:[#allocation11 + $0x7e8] sm:$0xff] }
 0x68e   :  { %7760 = vrot.lane.b32.xlu1 %v14446_v16, %s11448_s3  ;;  %7393 = vmatmul.f32.vlgmr.msrb.gmra.mxu0 %v13841_v42  ;;  %v11279_v42 = vld [vmem:[#allocation11 + $0x8d8] sm:$0xff]  ;;  %v6041_v27 = vunpack.c.h.bf16 %v11287_v35  ;;  %v11304_v58 = vld [vmem:[#allocation11 + $0x648] sm:$0xff] }
 0x68f   :  { %7432 = vmatpush.msra.mxu1 %v5793_v11  ;;  %7457 = vmatpush.msra.mxu0 %v5981_v61  ;;  %v6101_v2 = vunpack.c.h.bf16 %v11279_v42  ;;  %v6141_v11 = vunpack.c.h.bf16 %v14288_v4  ;;  %v11289_v61 = vld [vmem:[#allocation11 + $0x698] sm:$0xff]  ;;  %v11298_v42 = vld [vmem:[#allocation11 + $0x668] sm:$0xff] }
 0x690   :  { %7520 = vmatpush.msrb.mxu3 %v6161_v53  ;;  %7409 = vmatpush.msrb.mxu2 %v5741_v52  ;;  %v5957_v53 = vunpack.c.h.bf16 %v11289_v61  ;;  %v6037_v52 = vunpack.c.h.bf16 %v11290_v22  ;;  %v5945_v1 = vunpack.c.h.bf16 %v11298_v42  ;;  %v11307_v61 = vld [vmem:[#allocation11 + $0x778] sm:$0xff]  ;;  %v16040_v22 = vld [vmem:[#allocation18_spill] sm:$0xff] }
 0x691   :  { %7433 = vmatmul.f32.vlgmr.msra.gmra.mxu1 %v13879_v15  ;;  %7458 = vmatpush.msra.mxu0 %v5977_v41  ;;  %v6097_v15 = vunpack.c.h.bf16 %v11282_v26  ;;  %v11292_v41 = vld [vmem:[#allocation11 + $0x688] sm:$0xff]  ;;  %v16046_v42 = vld [vmem:[#allocation30_spill] sm:$0xff] }
 0x692   :  { %7497 = vmatpush.msrb.mxu1 %v6109_v55  ;;  %7521 = vmatpush.msrb.mxu3 %v6157_v34  ;;  %v11291_v55 = vld [vmem:[#allocation11 + $0x898] sm:$0xff]  ;;  %v11293_v34 = vld [vmem:[#allocation11 + $0x7c8] sm:$0xff] }
 0x693   :  { %7410 = vmatpush.msrb.mxu2 %v5737_v37  ;;  %7459 = vmatpush.msra.mxu0 %v5973_v9  ;;  %v6085_v21 = vunpack.c.h.bf16 %v11291_v55  ;;  %v6033_v4 = vunpack.c.h.bf16 %v11293_v34  ;;  %v11294_v37 = vld [vmem:[#allocation11 + $0x888] sm:$0xff]  ;;  %v6029_v9 = vunpack.c.h.bf16 %v11296_v57  ;;  %v16044_v57 = vld [vmem:[#allocation20_spill] sm:$0xff] }
 0x694   :  { %7498 = vmatpush.msrb.mxu1 %v6105_v39  ;;  %7522 = vmatpush.msrb.mxu3 %v6153_v28  ;;  %v6081_v59 = vunpack.c.h.bf16 %v11294_v37  ;;  %v11295_v39 = vld [vmem:[#allocation11 + $0x678] sm:$0xff]  ;;  %v6129_v28 = vunpack.c.h.bf16 %v14307_v46  ;;  %v16043_v37 = vld [vmem:[#allocation26_spill] sm:$0xff] }
 0x695   :  { %7411 = vmatpush.msrb.mxu2 %v5733_v54  ;;  %7460 = vmatpush.msra.mxu0 %v5969_v44  ;;  %v5949_v33 = vunpack.c.h.bf16 %v11295_v39  ;;  %v6077_v54 = vunpack.c.h.bf16 %v11297_v32  ;;  %v16036_v44 = vld [vmem:[#allocation16_spill] sm:$0xff]  ;;  %v11301_v46 = vld [vmem:[#allocation11 + $0x658] sm:$0xff] }
 0x696   :  { %7499 = vmatpush.msrb.mxu1 %v6101_v2  ;;  %7523 = vmatpush.msrb.mxu3 %v6149_v8  ;;  %v11299_v2 = vld [vmem:[#allocation11 + $0x7a8] sm:$0xff]  ;;  %v6125_v8 = vunpack.c.h.bf16 %v16036_v44  ;;  %v5941_v26 = vunpack.c.h.bf16 %v11301_v46  ;;  %v11310_v39 = vld [vmem:[#allocation11 + $0x618] sm:$0xff]  ;;  %v16048_v46 = vld [vmem:[#allocation58_spill] sm:$0xff] }
 0x697   :  { %7412 = vmatpush.msrb.mxu2 %v5729_v12  ;;  %10866 = vrot.lane.b32.xlu0 %v14460_v19, %s11451_s28  ;;  %v6025_v5 = vunpack.c.h.bf16 %v11299_v2  ;;  %v6073_v12 = vunpack.c.h.bf16 %v11300_v3  ;;  %v11312_v2 = vld [vmem:[#allocation11 + $0x608] sm:$0xff]  ;;  %v16047_v44 = vld [vmem:[#allocation15_spill] sm:$0xff] }
 0x698   :  { %7500 = vmatpush.msrb.mxu1 %v6097_v15  ;;  %7864 = vrot.lane.b32.xlu1 %v14446_v16, %s11449_s21  ;;  %v11302_v15 = vld [vmem:[#allocation11 + $0x798] sm:$0xff]  ;;  %v11313_v3 = vld [vmem:[#allocation11 + $0x748] sm:$0xff] }
 0x699   :  { %7413 = vmatmul.f32.vlgmr.msrb.gmra.mxu2 %v13877_v13  ;;  %7461 = vmatpush.msra.mxu0 %v5965_v31  ;;  %v5953_v13 = vunpack.c.h.bf16 %v11292_v41  ;;  %v6021_v17 = vunpack.c.h.bf16 %v11302_v15  ;;  %v16037_v31 = vld [vmem:[#allocation31_spill] sm:$0xff] }
 0x69a   :  { %7477 = vmatpush.msra.mxu2 %v6045_v20  ;;  %7524 = vmatpush.msrb.mxu3 %v6145_v48  ;;  %v6121_v23 = vunpack.c.h.bf16 %v16037_v31  ;;  %v11303_v20 = vld [vmem:[#allocation11 + $0x858] sm:$0xff]  ;;  %v16049_v31 = vld [vmem:[#allocation14_spill] sm:$0xff] }
 0x69b   :  { %7501 = vmatpush.msrb.mxu1 %v6093_v29  ;;  %7462 = vmatpush.msra.mxu0 %v5961_v51  ;;  %v6069_v48 = vunpack.c.h.bf16 %v11303_v20  ;;  %v11305_v29 = vld [vmem:[#allocation11 + $0x788] sm:$0xff]  ;;  %v11314_v15 = vld [vmem:[#allocation11 + $0xaf8] sm:$0xff] }
 0x69c   :  { %7478 = vmatpush.msra.mxu2 %v6041_v27  ;;  %7525 = vmatpush.msrb.mxu3 %v6141_v11  ;;  %v6017_v43 = vunpack.c.h.bf16 %v11305_v29  ;;  %v16038_v51 = vld [vmem:[#allocation29_spill] sm:$0xff]  ;;  %v16039_v27 = vld [vmem:[#allocation48_spill] sm:$0xff]  ;;  %v11315_v20 = vld [vmem:[#allocation11 + $0x738] sm:$0xff] }
 0x69d   :  { %7502 = vmatpush.msrb.mxu1 %v6089_v14  ;;  %7463 = vmatpush.msra.mxu0 %v5957_v53  ;;  %v6117_v35 = vunpack.c.h.bf16 %v16038_v51  ;;  %v6065_v11 = vunpack.c.h.bf16 %v16039_v27  ;;  %v5933_v14 = vunpack.c.h.bf16 %v11306_v30  ;;  %v6013_v53 = vunpack.c.h.bf16 %v11307_v61  ;;  %v11316_v29 = vld [vmem:[#allocation11 + $0xae8] sm:$0xff]  ;;  %v16051_v51 = vld [vmem:[#allocation27_spill] sm:$0xff] }
 0x69e   :  { %7479 = vmatpush.msra.mxu2 %v6037_v52  ;;  %7526 = vmatpush.msrb.mxu3 %v6137_v49  ;;  %v6113_v52 = vunpack.c.h.bf16 %v16040_v22  ;;  %v16041_v49 = vld [vmem:[#allocation59_spill] sm:$0xff] }
 0x69f   :  { %7503 = vmatpush.msrb.mxu1 %v6085_v21  ;;  %7464 = vmatpush.msra.mxu0 %v5953_v13  ;;  %v6061_v55 = vunpack.c.h.bf16 %v16041_v49  ;;  %v11308_v21 = vld [vmem:[#allocation11 + $0x628] sm:$0xff]  ;;  %v16042_v13 = vld [vmem:[#allocation51_spill] sm:$0xff]  ;;  %v6409_v49 = vunpack.c.h.bf16 %v14371_v36 }
 0x6a0   :  { %7480 = vmatpush.msra.mxu2 %v6033_v4  ;;  %7527 = vmatpush.msrb.mxu3 %v6133_v25  ;;  %v5929_v41 = vunpack.c.h.bf16 %v11308_v21  ;;  %v6429_v34 = vunpack.c.h.bf16 %v16042_v13  ;;  %v11309_v4 = vld [vmem:[#allocation11 + $0x768] sm:$0xff]  ;;  %v11322_v36 = vld [vmem:[#allocation11 + $0xab8] sm:$0xff] }
 0x6a1   :  { %7504 = vmatpush.msrb.mxu1 %v6081_v59  ;;  %10871 = vrot.lane.b32.xlu0 %v14460_v19, %s11452_s29  ;;  %v6009_v25 = vunpack.c.h.bf16 %v11309_v4  ;;  %v6057_v59 = vunpack.c.h.bf16 %v16043_v37  ;;  %v11321_v37 = vld [vmem:[#allocation11 + $0x708] sm:$0xff] }
 0x6a2   :  { %10856 = vrot.lane.b32.xlu1 %v14460_v19, %s11435_s1  ;;  %7465 = vmatpush.msra.mxu0 %v5949_v33  ;;  %v5937_v19 = vunpack.c.h.bf16 %v11304_v58  ;;  %v5925_v33 = vunpack.c.h.bf16 %v11310_v39  ;;  %v16050_v58 = vld [vmem:[#allocation64_spill] sm:$0xff]  ;;  %v16056_v39 = vld [vmem:[#allocation63_spill] sm:$0xff] }
 0x6a3   :  { %7481 = vmatpush.msra.mxu2 %v6029_v9  ;;  %7528 = vmatpush.msrb.mxu3 %v6129_v28  ;;  %v6425_v9 = vunpack.c.h.bf16 %v16044_v57  ;;  %v11311_v28 = vld [vmem:[#allocation11 + $0x758] sm:$0xff]  ;;  %v6221_v57 = vunpack.c.h.bf16 %v11322_v36 }
 0x6a4   :  { %7505 = vmatpush.msrb.mxu1 %v6077_v54  ;;  %7466 = vmatpush.msra.mxu0 %v5945_v1  ;;  %v6005_v32 = vunpack.c.h.bf16 %v11311_v28  ;;  %v16045_v54 = vld [vmem:[#allocation47_spill] sm:$0xff]  ;;  %v6053_v1 = vunpack.c.h.bf16 %v16046_v42 }
 0x6a5   :  { %7482 = vmatpush.msra.mxu2 %v6025_v5  ;;  %7529 = vmatpush.msrb.mxu3 %v6125_v8  ;;  %v5921_v5 = vunpack.c.h.bf16 %v11312_v2  ;;  %v6421_v8 = vunpack.c.h.bf16 %v16047_v44  ;;  %v11325_v2 = vld [vmem:[#allocation11 + $0xbe8] sm:$0xff]  ;;  %v14511_v44 = vpop.permute.xlu0 %10821 }
 0x6a6   :  { %7506 = vmatpush.msrb.mxu1 %v6073_v12  ;;  %7467 = vmatpush.msra.mxu0 %v5941_v26  ;;  %v6001_v12 = vunpack.c.h.bf16 %v11313_v3  ;;  %v6049_v26 = vunpack.c.h.bf16 %v16048_v46  ;;  %v6397_v3 = vunpack.c.h.bf16 %v14390_v47 }
 0x6a7   :  { %7483 = vmatpush.msra.mxu2 %v6021_v17  ;;  %7530 = vmatpush.msrb.mxu3 %v6121_v23  ;;  %v6237_v17 = vunpack.c.h.bf16 %v11314_v15  ;;  %v6417_v23 = vunpack.c.h.bf16 %v16049_v31  ;;  %v11327_v15 = vld [vmem:[#allocation11 + $0xbd8] sm:$0xff]  ;;  %v6393_v31 = vunpack.c.h.bf16 %v14399_v18 }
 0x6a8   :  { %7507 = vmatpush.msrb.mxu1 %v6069_v48  ;;  %7468 = vmatpush.msra.mxu0 %v5937_v19  ;;  %v5997_v48 = vunpack.c.h.bf16 %v11315_v20  ;;  %v6365_v19 = vunpack.c.h.bf16 %v16050_v58 }
 0x6a9   :  { %7484 = vmatpush.msra.mxu2 %v6017_v43  ;;  %7531 = vmatpush.msrb.mxu3 %v6117_v35  ;;  %v6233_v43 = vunpack.c.h.bf16 %v11316_v29  ;;  %v16052_v35 = vld [vmem:[#allocation33_spill] sm:$0xff]  ;;  %v6389_v29 = vunpack.c.h.bf16 %v14405_v10 }
 0x6aa   :  { %7508 = vmatpush.msrb.mxu1 %v6065_v11  ;;  %7469 = vmatpush.msra.mxu0 %v5933_v14  ;;  %v6413_v27 = vunpack.c.h.bf16 %v16052_v35  ;;  %v11317_v11 = vld [vmem:[#allocation11 + $0x728] sm:$0xff]  ;;  %v11330_v35 = vld [vmem:[#allocation11 + $0xa78] sm:$0xff] }
 0x6ab   :  { %7485 = vmatpush.msra.mxu2 %v6013_v53  ;;  %7532 = vmatpush.msrb.mxu3 %v6113_v52  ;;  %v5993_v30 = vunpack.c.h.bf16 %v11317_v11  ;;  %v16053_v14 = vld [vmem:[#allocation17_spill] sm:$0xff]  ;;  %v11318_v53 = vld [vmem:[#allocation11 + $0xad8] sm:$0xff]  ;;  %v16054_v52 = vld [vmem:[#allocation66_spill] sm:$0xff] }
 0x6ac   :  { %7509 = vmatpush.msrb.mxu1 %v6061_v55  ;;  %7533 = vmatmul.f32.vlgmr.msrb.gmra.mxu3 %v16045_v54  ;;  %v6361_v61 = vunpack.c.h.bf16 %v16053_v14  ;;  %v6229_v22 = vunpack.c.h.bf16 %v11318_v53  ;;  %v11319_v55 = vld [vmem:[#allocation11 + $0x718] sm:$0xff]  ;;  %v16057_v54 = vld [vmem:[#allocation62_spill] sm:$0xff]  ;;  %v16062_v14 = vld [vmem:[#allocation36_spill] sm:$0xff] }
 0x6ad   :  { %7470 = vmatpush.msra.mxu0 %v5929_v41  ;;  %7597 = vmatpush.msra.mxu3 %v6429_v34  ;;  %v5989_v21 = vunpack.c.h.bf16 %v11319_v55  ;;  %v16055_v41 = vld [vmem:[#allocation37_spill] sm:$0xff]  ;;  %v6349_v42 = vunpack.c.h.bf16 %v16057_v54  ;;  %v11331_v11 = vld [vmem:[#allocation11 + $0xbb8] sm:$0xff] }
 0x6ae   :  { %7486 = vmatpush.msra.mxu2 %v6009_v25  ;;  %7510 = vmatpush.msrb.mxu1 %v6057_v59  ;;  %v6357_v13 = vunpack.c.h.bf16 %v16055_v41  ;;  %v11320_v34 = vld [vmem:[#allocation11 + $0xac8] sm:$0xff]  ;;  %v6405_v25 = vunpack.c.h.bf16 %v14377_v24  ;;  %v5985_v59 = vunpack.c.h.bf16 %v11321_v37  ;;  %v6285_v18 = vunpack.c.h.bf16 %v11331_v11  ;;  %v16063_v55 = vld [vmem:[#allocation39_spill] sm:$0xff] }
 0x6af   :  { %7471 = vmatpush.msra.mxu0 %v5925_v33  ;;  %7598 = vmatpush.msra.mxu3 %v6425_v9  ;;  %v6225_v4 = vunpack.c.h.bf16 %v11320_v34  ;;  %v6353_v33 = vunpack.c.h.bf16 %v16056_v39  ;;  %v11323_v9 = vld [vmem:[#allocation11 + $0xbf8] sm:$0xff]  ;;  %v11324_v24 = vld [vmem:[#allocation11 + $0xaa8] sm:$0xff] }
 0x6b0   :  { %7487 = vmatpush.msra.mxu2 %v6005_v32  ;;  %7511 = vmatpush.msrb.mxu1 %v6053_v1  ;;  %v6301_v28 = vunpack.c.h.bf16 %v11323_v9  ;;  %v6401_v32 = vunpack.c.h.bf16 %v14383_v63  ;;  %v6217_v1 = vunpack.c.h.bf16 %v11324_v24  ;;  %v11326_v63 = vld [vmem:[#allocation11 + $0xa98] sm:$0xff]  ;;  %v11332_v53 = vld [vmem:[#allocation11 + $0xa68] sm:$0xff]  ;;  %v16065_v9 = vld [vmem:[#allocation50_spill] sm:$0xff]  ;;  %v6369_v24 = vunpack.c.h.bf16 %v14431_v6 }
 0x6b1   :  { %7472 = vmatpush.msra.mxu0 %v5921_v5  ;;  %7599 = vmatpush.msra.mxu3 %v6421_v8  ;;  %v6297_v5 = vunpack.c.h.bf16 %v11325_v2  ;;  %v16058_v8 = vld [vmem:[#allocation60_spill] sm:$0xff]  ;;  %v11334_v41 = vld [vmem:[#allocation11 + $0xa58] sm:$0xff]  ;;  %v16064_v37 = vld [vmem:[#allocation57_spill] sm:$0xff]  ;;  %v10824_v2 = vunpack.i.h.bf16 %v14511_v44 }
 0x6b2   :  { %7488 = vmatpush.msra.mxu2 %v6001_v12  ;;  %7473 = vmatmul.f32.vlgmr.msra.gmra.mxu0 %v16051_v51  ;;  %v16059_v12 = vld [vmem:[#allocation53_spill] sm:$0xff]  ;;  %v11335_v34 = vld [vmem:[#allocation11 + $0xb98] sm:$0xff] }
 0x6b3   :  { %7512 = vmatpush.msrb.mxu1 %v6049_v26  ;;  %7537 = vmatpush.msrb.mxu0 %v6237_v17  ;;  %v6345_v46 = vunpack.c.h.bf16 %v16059_v12  ;;  %v6213_v26 = vunpack.c.h.bf16 %v11326_v63  ;;  %v6293_v17 = vunpack.c.h.bf16 %v11327_v15  ;;  %v11336_v39 = vld [vmem:[#allocation11 + $0xa48] sm:$0xff] }
 0x6b4   :  { %7600 = vmatpush.msra.mxu3 %v6417_v23  ;;  %7489 = vmatpush.msra.mxu2 %v5997_v48  ;;  %v16060_v23 = vld [vmem:[#allocation34_spill] sm:$0xff]  ;;  %v11328_v48 = vld [vmem:[#allocation11 + $0xa88] sm:$0xff] }
 0x6b5   :  { %7513 = vmatmul.f32.vlgmr.msrb.gmra.mxu1 %v16054_v52  ;;  %7538 = vmatpush.msrb.mxu0 %v6233_v43  ;;  %v6341_v20 = vunpack.c.h.bf16 %v16060_v23  ;;  %v6209_v58 = vunpack.c.h.bf16 %v11328_v48  ;;  %v16061_v43 = vld [vmem:[#allocation41_spill] sm:$0xff] }
 0x6b6   :  { %7577 = vmatpush.msra.mxu1 %v6365_v19  ;;  %7601 = vmatpush.msra.mxu3 %v6413_v27  ;;  %v11329_v19 = vld [vmem:[#allocation11 + $0xbc8] sm:$0xff]  ;;  %v6337_v51 = vunpack.c.h.bf16 %v16061_v43  ;;  %v6205_v27 = vunpack.c.h.bf16 %v11330_v35 }
 0x6b7   :  { %7490 = vmatpush.msra.mxu2 %v5993_v30  ;;  %7539 = vmatpush.msrb.mxu0 %v6229_v22  ;;  %v6289_v47 = vunpack.c.h.bf16 %v11329_v19  ;;  %v6385_v30 = vunpack.c.h.bf16 %v14412_v40  ;;  %v6201_v22 = vunpack.c.h.bf16 %v11332_v53  ;;  %v11333_v52 = vld [vmem:[#allocation11 + $0xba8] sm:$0xff]  ;;  %v6277_v40 = vunpack.c.h.bf16 %v11335_v34  ;;  %v14553_v53 = vld [vmem:[%s15696_s5] sm:$0xff] }
 0x6b8   :  { %7578 = vmatpush.msra.mxu1 %v6361_v61  ;;  %7602 = vmatpush.msra.mxu3 %v6409_v49  ;;  %v6333_v61 = vunpack.c.h.bf16 %v16062_v14  ;;  %v6281_v10 = vunpack.c.h.bf16 %v11333_v52  ;;  %v6381_v49 = vunpack.c.h.bf16 %v14420_v62  ;;  %v6193_v62 = vunpack.c.h.bf16 %v11336_v39  ;;  %v11344_v19 = vld [vmem:[#allocation11 + $0xa08] sm:$0xff]  ;;  %v16067_v52 = vld [vmem:[#allocation32_spill] sm:$0xff]  ;;  %v7114_v39 = vpop.f32.mrf.mxu1 }
 0x6b9   :  { %7491 = vmatpush.msra.mxu2 %v5989_v21  ;;  %7540 = vmatpush.msrb.mxu0 %v6225_v4  ;;  %v6329_v21 = vunpack.c.h.bf16 %v16063_v55  ;;  %v14524_v4 = vpop.permute.xlu0 %10826  ;;  %v11349_v55 = vld [vmem:[#allocation11 + $0xb18] sm:$0xff] }
 0x6ba   :  { %7579 = vmatpush.msra.mxu1 %v6357_v13  ;;  %7603 = vmatpush.msra.mxu3 %v6405_v25  ;;  %v6197_v13 = vunpack.c.h.bf16 %v11334_v41  ;;  %v6377_v25 = vunpack.c.h.bf16 %v14423_v60  ;;  %v10828_v12 = vunpack.i.l.bf16 %v14524_v4  ;;  %v7094_v41 = vpop.f32.mrf.mxu3 }
 0x6bb   :  { %7492 = vmatpush.msra.mxu2 %v5985_v59  ;;  %7541 = vmatpush.msrb.mxu0 %v6221_v57  ;;  %v6325_v59 = vunpack.c.h.bf16 %v16064_v37  ;;  %v6373_v57 = vunpack.c.h.bf16 %v14426_v50  ;;  %v11340_v50 = vld [vmem:[#allocation11 + $0xa28] sm:$0xff] }
 0x6bc   :  { %7580 = vmatpush.msra.mxu1 %v6353_v33  ;;  %7493 = vmatmul.f32.vlgmr.msra.gmra.mxu2 %v16058_v8  ;;  %v11337_v33 = vld [vmem:[#allocation11 + $0xb88] sm:$0xff]  ;;  %v6185_v8 = vunpack.c.h.bf16 %v11340_v50 }
 0x6bd   :  { %7557 = vmatpush.msrb.mxu2 %v6301_v28  ;;  %7604 = vmatpush.msra.mxu3 %v6401_v32  ;;  %v6273_v36 = vunpack.c.h.bf16 %v11337_v33  ;;  %v6321_v28 = vunpack.c.h.bf16 %v16065_v9  ;;  %v11338_v32 = vld [vmem:[#allocation11 + $0xa38] sm:$0xff]  ;;  %v16069_v9 = vld [vmem:[#allocation28_spill] sm:$0xff] }
 0x6be   :  { %7581 = vmatpush.msra.mxu1 %v6349_v42  ;;  %7542 = vmatpush.msrb.mxu0 %v6217_v1  ;;  %v6189_v54 = vunpack.c.h.bf16 %v11338_v32  ;;  %v11339_v42 = vld [vmem:[#allocation11 + $0xb78] sm:$0xff]  ;;  %v6317_v1 = vunpack.c.h.bf16 %v14388_v45  ;;  %v16066_v45 = vld [vmem:[#allocation38_spill] sm:$0xff] }
 0x6bf   :  { %7558 = vmatpush.msrb.mxu2 %v6297_v5  ;;  %7605 = vmatpush.msra.mxu3 %v6397_v3  ;;  %v6269_v60 = vunpack.c.h.bf16 %v11339_v42  ;;  %v10823_v5 = vunpack.i.l.bf16 %v14511_v44  ;;  %v10829_v3 = vunpack.i.h.bf16 %v14524_v4  ;;  %v6313_v6 = vunpack.c.h.bf16 %v16066_v45  ;;  %v8603_v4 = vld [vmem:[%s15697_s6] sm:$0xff] }
 0x6c0   :  { %7582 = vmatpush.msra.mxu1 %v6345_v46  ;;  %7543 = vmatpush.msrb.mxu0 %v6213_v26  ;;  %v11341_v46 = vld [vmem:[#allocation11 + $0xb68] sm:$0xff]  ;;  %v11342_v26 = vld [vmem:[#allocation11 + $0xa18] sm:$0xff]  ;;  %v7194_v50 = vpop.f32.mrf.mxu1 }
 0x6c1   :  { %7559 = vmatpush.msrb.mxu2 %v6293_v17  ;;  %7606 = vmatpush.msra.mxu3 %v6393_v31  ;;  %v6265_v63 = vunpack.c.h.bf16 %v11341_v46  ;;  %v6181_v15 = vunpack.c.h.bf16 %v11342_v26  ;;  %v11343_v17 = vld [vmem:[#allocation11 + $0xb58] sm:$0xff]  ;;  %v7767_v23 = vsel %vm7766_vm14, %v10823_v5, %v10824_v2  ;;  %v14542_v48 = vpop.permute.xlu0 %10831 }
 0x6c2   :  { %7583 = vmatpush.msra.mxu1 %v6341_v20  ;;  %7544 = vmatpush.msrb.mxu0 %v6209_v58  ;;  %v6261_v31 = vunpack.c.h.bf16 %v11343_v17  ;;  %v6309_v20 = vunpack.c.h.bf16 %v14402_v7  ;;  %v7871_v58 = vsel %vm7870_vm15, %v10828_v12, %v10829_v3  ;;  %v11346_v7 = vld [vmem:[#allocation11 + $0xb38] sm:$0xff]  ;;  %v10834_v11 = vunpack.i.h.bf16 %v14542_v48 }
 0x6c3   :  { %7560 = vmatpush.msrb.mxu2 %v6289_v47  ;;  %7607 = vmatpush.msra.mxu3 %v6389_v29  ;;  %v6177_v47 = vunpack.c.h.bf16 %v11344_v19  ;;  %v11345_v29 = vld [vmem:[#allocation11 + $0xb48] sm:$0xff]  ;;  %v6253_v35 = vunpack.c.h.bf16 %v11346_v7  ;;  %v14582_v5 = vld [vmem:[%s15696_s5 + $0x18] sm:$0xff]  ;;  %v14591_v26 = vld [vmem:[%s15696_s5 + $0x20] sm:$0xff] }
 0x6c4   :  { %7584 = vmatpush.msra.mxu1 %v6337_v51  ;;  %7545 = vmatpush.msrb.mxu0 %v6205_v27  ;;  %v6257_v43 = vunpack.c.h.bf16 %v11345_v29  ;;  %v6305_v51 = vunpack.c.h.bf16 %v14409_v56  ;;  %v7054_v27 = vpop.f32.mrf.mxu0  ;;  %v11348_v56 = vld [vmem:[#allocation11 + $0xb28] sm:$0xff] }
 0x6c5   :  { %7561 = vmatpush.msrb.mxu2 %v6285_v18  ;;  %7608 = vmatpush.msra.mxu3 %v6385_v30  ;;  %v10833_v18 = vunpack.i.l.bf16 %v14542_v48  ;;  %v11347_v30 = vld [vmem:[#allocation11 + $0xe08] sm:$0xff] }
 0x6c6   :  { %7585 = vmatpush.msra.mxu1 %v6333_v61  ;;  %7546 = vmatpush.msrb.mxu0 %v6201_v22  ;;  %v6433_v14 = vunpack.c.h.bf16 %v11347_v30  ;;  %v6249_v22 = vunpack.c.h.bf16 %v11348_v56 }
 0x6c7   :  { %7562 = vmatpush.msrb.mxu2 %v6281_v10  ;;  %7609 = vmatpush.msra.mxu3 %v6381_v49  ;;  %v10817_v10 = vpop.permute.xlu1 %10816  ;;  %v16068_v49 = vld [vmem:[#allocation24_spill] sm:$0xff] }
 0x6c8   :  { %7586 = vmatpush.msra.mxu1 %v6329_v21  ;;  %7547 = vmatpush.msrb.mxu0 %v6197_v13  ;;  %v6245_v21 = vunpack.c.h.bf16 %v11349_v55  ;;  %v7978_v13 = vsel %vm2595_vm12, %v10833_v18, %v10834_v11  ;;  %v10819_v37 = vunpack.i.h.bf16 %v10817_v10 }
 0x6c9   :  { %7563 = vmatpush.msrb.mxu2 %v6277_v40  ;;  %7610 = vmatpush.msra.mxu3 %v6377_v25  ;;  %v11350_v40 = vld [vmem:[#allocation11 + $0xb08] sm:$0xff] }
 0x6ca   :  { %7587 = vmatpush.msra.mxu1 %v6325_v59  ;;  %7548 = vmatpush.msrb.mxu0 %v6193_v62  ;;  %v6241_v25 = vunpack.c.h.bf16 %v11350_v40  ;;  %v10818_v59 = vunpack.i.l.bf16 %v10817_v10  ;;  %v14689_v40 = vld [vmem:[%s15696_s5 + $0x40] sm:$0xff] }
 0x6cb   :  { %7564 = vmatpush.msrb.mxu2 %v6273_v36  ;;  %7611 = vmatpush.msra.mxu3 %v6373_v57  ;;  %v14565_v36 = vld [vmem:[%s15696_s5 + $0x10] sm:$0xff] }
 0x6cc   :  { %7588 = vmatpush.msra.mxu1 %v6321_v28  ;;  %7549 = vmatpush.msrb.mxu0 %v6189_v54  ;;  %v7134_v62 = vpop.f32.mrf.mxu0  ;;  %v16070_v28 = vld [vmem:[#allocation52_spill] sm:$0xff]  ;;  %v7665_v32 = vsel %vm7664_vm2, %v10818_v59, %v10819_v37 }
 0x6cd   :  { %7565 = vmatpush.msrb.mxu2 %v6269_v60  ;;  %7612 = vmatpush.msra.mxu3 %v6369_v24  ;;  %v7174_v60 = vpop.f32.mrf.mxu3 }
 0x6ce   :  { %7589 = vmatpush.msra.mxu1 %v6317_v1  ;;  %7613 = vmatmul.f32.vlgmr.msra.gmra.mxu3 %v14144_v38  ;;  %v7074_v38 = vpop.f32.mrf.mxu2  ;;  %v14577_v1 = vld [vmem:[%s15696_s5 + $0x8] sm:$0xff] }
 0x6cf   :  { %7550 = vmatpush.msrb.mxu0 %v6185_v8  ;;  %7793 = vmatpush.msrb.mxu3 %v7767_v23  ;;  %v7075_v61 = vadd.f32 %v7074_v38, %v7054_v27 }
 0x6d0   :  { %7566 = vmatpush.msrb.mxu2 %v6265_v63  ;;  %7590 = vmatpush.msra.mxu1 %v6313_v6 }
 0x6d1   :  { %7897 = vmatpush.msra.mxu3 %v7871_v58  ;;  %7551 = vmatpush.msrb.mxu0 %v6181_v15  ;;  %v7095_v34 = vadd.f32 %v7094_v41, %v7075_v61  ;;  %v7274_v15 = vpop.f32.mrf.mxu1  ;;  %v14672_v41 = vld [vmem:[%s15696_s5 + $0x30] sm:$0xff] }
 0x6d2   :  { %7567 = vmatpush.msrb.mxu2 %v6261_v31  ;;  %7591 = vmatpush.msra.mxu1 %v6309_v20 }
 0x6d3   :  { %7552 = vmatpush.msrb.mxu0 %v6177_v47  ;;  %v7115_v33 = vadd.f32 %v7114_v39, %v7095_v34  ;;  %v14682_v34 = vld [vmem:[%s15696_s5 + $0x38] sm:$0xff] }
 0x6d4   :  { %7568 = vmatpush.msrb.mxu2 %v6257_v43  ;;  %7553 = vmatmul.f32.vlgmr.msrb.gmra.mxu0 %v16067_v52  ;;  %v7214_v8 = vpop.f32.mrf.mxu0 }
 0x6d5   :  { %7592 = vmatpush.msra.mxu1 %v6305_v51  ;;  %7632 = vmatpush.msra.mxu0 %v6433_v14  ;;  %v7135_v54 = vadd.f32 %v7134_v62, %v7115_v33  ;;  %v7254_v45 = vpop.f32.mrf.mxu3 }
 0x6d6   :  { %7569 = vmatpush.msrb.mxu2 %v6253_v35  ;;  %7593 = vmatmul.f32.vlgmr.msra.gmra.mxu1 %v16068_v49  ;;  %v7154_v57 = vpop.f32.mrf.mxu2 }
 0x6d7   :  { %10258 = vmatmul.msk.f32.vlgmr.msrb.gmra.mxu3 %vm109_vm0, %v14553_v53  ;;  %v7155_v42 = vadd.f32 %v7154_v57, %v7135_v54 }
 0x6d8   :  { %8004 = vmatpush.msrb.mxu3 %v7978_v13  ;;  %7570 = vmatpush.msrb.mxu2 %v6249_v22 }
 0x6d9   :  { %v7175_v24 = vadd.f32 %v7174_v60, %v7155_v42 }
 0x6da   :  { %7571 = vmatpush.msrb.mxu2 %v6245_v21 }
 0x6dc   :  { %7572 = vmatpush.msrb.mxu2 %v6241_v25  ;;  %10252 = vmatmul.msk.f32.vlgmr.msra.gmra.mxu0 %vm109_vm0, %v16070_v28 }
 0x6dd   :  { %7573 = vmatmul.f32.vlgmr.msrb.gmra.mxu2 %v16069_v9  ;;  %v7334_v29 = vpop.f32.mrf.mxu3 }
 0x6de   :  { %7691 = vmatpush.msra.mxu2 %v7665_v32  ;;  %v7234_v12 = vpop.f32.mrf.mxu2 }
 0x6df   :  { %10263 = vmatmul.msk.f32.vlgmr.msra.gmra.mxu3 %vm109_vm0, %v14565_v36 }
 0x6e0   :  { %8093 = vmatpush.msra.mxu3 %v14193_v0  ;;  %v7195_v0 = vadd.f32 %v7194_v50, %v7175_v24 }
 0x6e2   :  { %v7215_v46 = vadd.f32 %v7214_v8, %v7195_v0 }
 0x6e4   :  { %v7235_v63 = vadd.f32 %v7234_v12, %v7215_v46 }
 0x6e5   :  { %10254 = vmatmul.msk.f32.vlgmr.msra.gmra.mxu2 %vm109_vm0, %v14577_v1 }
 0x6e6   :  { %v7255_v6 = vadd.f32 %v7254_v45, %v7235_v63 }
 0x6e7   :  { %10268 = vmatmul.msk.f32.vlgmr.msrb.gmra.mxu3 %vm109_vm0, %v14582_v5  ;;  %v7294_v17 = vpop.f32.mrf.mxu0  ;;  %v7374_v25 = vpop.f32.mrf.mxu3 }
 0x6e8   :  { %v7275_v31 = vadd.f32 %v7274_v15, %v7255_v6 }
 0x6ea   :  { %v7295_v23 = vadd.f32 %v7294_v17, %v7275_v31 }
 0x6ef   :  { %10273 = vmatmul.msk.f32.vlgmr.msra.gmra.mxu3 %vm109_vm0, %v14591_v26 }
 0x6f6   :  { %v14595_v20 = vpop.permute.xlu1 %7658  ;;  %v14603_v38 = vpop.permute.xlu0 %7972 }
 0x6f7   :  { %v7314_v58 = vpop.f32.mrf.mxu2  ;;  %v7666_v19 = vsel %vm7664_vm2, %v10819_v37, %v14595_v20  ;;  %v7979_v44 = vsel %vm2595_vm12, %v10834_v11, %v14603_v38  ;;  %v7354_v37 = vpop.f32.mrf.mxu1 }
 0x6f8   :  { %v7315_v47 = vadd.f32 %v7314_v58, %v7295_v23  ;;  %7711 = vmatpush.msrb.mxu0 %v7666_v19  ;;  %v7375_v39 = vadd.f32 %v7374_v25, %v7354_v37 }
 0x6f9   :  { %10255 = vmatmul.msk.f32.vlgmr.msrb.gmra.mxu0 %vm109_vm0, %v14577_v1 }
 0x6fa   :  { %v14599_v43 = vadd.f32 %v7334_v29, %v7315_v47 }
 0x6fc   :  { %8501 = vrot.lane.b32.xlu0 %v14599_v43, %s11452_s29  ;;  %8178 = vrot.lane.b32.xlu1 %v14599_v43, %s11435_s1 }
 0x6ff   :  { %v14619_v35 = vpop.permute.xlu0 %10861 }
 0x700   :  { %v14609_v51 = vpop.permute.xlu1 %7760  ;;  %v10864_v48 = vunpack.i.h.bf16 %v14619_v35  ;;  %v10863_v11 = vunpack.i.l.bf16 %v14619_v35 }
 0x701   :  { %v7768_v7 = vsel %vm7766_vm14, %v10824_v2, %v14609_v51 }
 0x702   :  { %7813 = vmatpush.msra.mxu0 %v7768_v7  ;;  %v8292_v52 = vsel %vm8291_vm3, %v10863_v11, %v10864_v48 }
 0x703   :  { %10259 = vmatmul.msk.f32.vlgmr.msra.gmra.mxu0 %vm109_vm0, %v14553_v53 }
 0x704   :  { %8285 = vrot.lane.b32.xlu1 %v14599_v43, %s11450_s24 }
 0x709   :  { %v14635_v2 = vpop.permute.xlu0 %10866 }
 0x70a   :  { %v14621_v27 = vpop.permute.xlu1 %7864  ;;  %v10869_v61 = vunpack.i.h.bf16 %v14635_v2  ;;  %v10868_v56 = vunpack.i.l.bf16 %v14635_v2  ;;  %v7454_v32 = vpop.f32.mrf.mxu3 }
 0x70b   :  { %v7872_v18 = vsel %vm7870_vm15, %v10829_v3, %v14621_v27  ;;  %v7394_v59 = vpop.f32.mrf.mxu0 }
 0x70c   :  { %8393 = vrot.lane.b32.xlu1 %v14599_v43, %s11451_s28  ;;  %7917 = vmatpush.msrb.mxu0 %v7872_v18  ;;  %v8400_v49 = vsel %vm8399_vm4, %v10868_v56, %v10869_v61  ;;  %v7395_v33 = vadd.f32 %v7394_v59, %v7375_v39 }
 0x70d   :  { %10264 = vmatmul.msk.f32.vlgmr.msrb.gmra.mxu0 %vm109_vm0, %v14565_v36 }
 0x70e   :  { %8024 = vmatpush.msra.mxu0 %v7979_v44  ;;  %v7434_v9 = vpop.f32.mrf.mxu1 }
 0x710   :  { %8113 = vmatpush.msrb.mxu0 %v14446_v16  ;;  %v14652_v16 = vld [vmem:[%s15696_s5 + $0x28] sm:$0xff] }
 0x713   :  { %v14662_v10 = vpop.permute.xlu0 %10871 }
 0x714   :  { %v14641_v3 = vpop.permute.xlu1 %10856  ;;  %8606 = vperm.xlu1 %10423, %v8603_v4   ;;  %v10874_v55 = vunpack.i.h.bf16 %v14662_v10  ;;  %v10873_v21 = vunpack.i.l.bf16 %v14662_v10 }
 0x715   :  { %v10859_v30 = vunpack.i.h.bf16 %v14641_v3  ;;  %v10858_v14 = vunpack.i.l.bf16 %v14641_v3  ;;  %10269 = vmatmul.msk.f32.vlgmr.msra.gmra.mxu0 %vm109_vm0, %v14582_v5 }
 0x716   :  { %v8508_v13 = vsel %vm8507_vm5, %v10873_v21, %v10874_v55 }
 0x717   :  { %v8184_v22 = vsel %vm268_vm1, %v10858_v14, %v10859_v30 }
 0x718   :  { %8210 = vmatpush.msrb.mxu3 %v8184_v22  ;;  %v14727_v22 = vld [vmem:[#allocation3] sm:$0xff] }
 0x719   :  { %10278 = vmatmul.msk.f32.vlgmr.msrb.gmra.mxu3 %vm109_vm0, %v14652_v16 }
 0x71a   :  { %8318 = vmatpush.msra.mxu3 %v8292_v52 }
 0x71c   :  { %8426 = vmatpush.msrb.mxu3 %v8400_v49  ;;  %v7414_v62 = vpop.f32.mrf.mxu2 }
 0x71d   :  { %10274 = vmatmul.msk.f32.vlgmr.msrb.gmra.mxu0 %vm109_vm0, %v14591_v26  ;;  %v7415_v57 = vadd.f32 %v7414_v62, %v7395_v33 }
 0x71f   :  { %v7435_v28 = vadd.f32 %v7434_v9, %v7415_v57  ;;  %v14737_v57 = vld [vmem:[#allocation9] sm:$0xf] }
 0x721   :  { %10283 = vmatmul.msk.f32.vlgmr.msra.gmra.mxu3 %vm109_vm0, %v14672_v41  ;;  %v7455_v42 = vadd.f32 %v7454_v32, %v7435_v28 }
 0x722   :  { %8534 = vmatpush.msra.mxu3 %v8508_v13 }
 0x729   :  { %10288 = vmatmul.msk.f32.vlgmr.msrb.gmra.mxu3 %vm109_vm0, %v14682_v34 }
 0x72f   :  { %v7474_v54 = vpop.f32.mrf.mxu0  ;;  %v7534_v12 = vpop.f32.mrf.mxu3 }
 0x730   :  { %v7475_v24 = vadd.f32 %v7474_v54, %v7455_v42  ;;  %v8619_v54 = vperm.slane %v14737_v57, 0 }
 0x731   :  { %10293 = vmatmul.msk.f32.vlgmr.msra.gmra.mxu3 %vm109_vm0, %v14689_v40 }
 0x732   :  { %v7514_v8 = vpop.f32.mrf.mxu1 }
 0x73f   :  { %v7494_v60 = vpop.f32.mrf.mxu2 }
 0x740   :  { %v7495_v50 = vadd.f32 %v7494_v60, %v7475_v24 }
 0x742   :  { %v7515_v0 = vadd.f32 %v7514_v8, %v7495_v50 }
 0x744   :  { %v7535_v63 = vadd.f32 %v7534_v12, %v7515_v0 }
 0x751   :  { %v7554_v46 = vpop.f32.mrf.mxu0  ;;  %v7614_v23 = vpop.f32.mrf.mxu3 }
 0x752   :  { %v7555_v45 = vadd.f32 %v7554_v46, %v7535_v63 }
 0x753   :  { %v7594_v17 = vpop.f32.mrf.mxu1 }
 0x759   :  { %v7634_v19 = vpop.f32.mrf.mxu0 }
 0x75a   :  { %v7795_v44 = vpop.f32.mrf.mxu3 }
 0x760   :  { %v7574_v6 = vpop.f32.mrf.mxu2 }
 0x761   :  { %v7575_v15 = vadd.f32 %v7574_v6, %v7555_v45 }
 0x762   :  { %v7899_v11 = vpop.f32.mrf.mxu3 }
 0x763   :  { %v7595_v31 = vadd.f32 %v7594_v17, %v7575_v15 }
 0x765   :  { %v7615_v58 = vadd.f32 %v7614_v23, %v7595_v31 }
 0x767   :  { %v14693_v47 = vadd.f32 %v7634_v19, %v7615_v58 }
 0x769   :  { %v10835_v29 = vpack.i.bf16 %v14693_v47, %v14599_v43  ;;  %v10875_v52 = vpack.i.bf16 %v14727_v22, %v14693_v47 }
 0x76b   :  { %10836 = vrot.lane.b32.xlu2 %v10835_v29, %s11432_s18 }
 0x76e   :  { %v14698_v7 = vpop.permute.xlu1 %8178 }
 0x76f   :  { %v8185_v18 = vsel %vm268_vm1, %v10859_v30, %v14698_v7  ;;  %v14714_v30 = vpop.permute.xlu0 %8501 }
 0x770   :  { %8230 = vmatpush.msra.mxu0 %v8185_v18  ;;  %v8509_v35 = vsel %vm8507_vm5, %v10874_v55, %v14714_v30 }
 0x771   :  { %10279 = vmatmul.msk.f32.vlgmr.msra.gmra.mxu0 %vm109_vm0, %v14652_v16 }
 0x773   :  { %10841 = vrot.lane.b32.xlu2 %v10835_v29, %s11448_s3 }
 0x776   :  { %v14705_v4 = vpop.permute.xlu1 %8285  ;;  %v7713_v24 = vpop.f32.mrf.mxu0 }
 0x777   :  { %v8293_v3 = vsel %vm8291_vm3, %v10864_v48, %v14705_v4  ;;  %v8006_v48 = vpop.f32.mrf.mxu3 }
 0x778   :  { %8338 = vmatpush.msrb.mxu0 %v8293_v3 }
 0x779   :  { %10284 = vmatmul.msk.f32.vlgmr.msrb.gmra.mxu0 %vm109_vm0, %v14672_v41 }
 0x77b   :  { %10846 = vrot.lane.b32.xlu2 %v10835_v29, %s11449_s21 }
 0x77e   :  { %v14716_v14 = vpop.permute.xlu1 %8393 }
 0x77f   :  { %v8401_v56 = vsel %vm8399_vm4, %v10869_v61, %v14716_v14  ;;  %v8095_v2 = vpop.f32.mrf.mxu3  ;;  %v7693_v61 = vpop.f32.mrf.mxu2 }
 0x780   :  { %8446 = vmatpush.msra.mxu0 %v8401_v56  ;;  %v7796_v10 = vadd.f32 %v7795_v44, %v7693_v61  ;;  %v7815_v46 = vpop.f32.mrf.mxu0 }
 0x781   :  { %10289 = vmatmul.msk.f32.vlgmr.msra.gmra.mxu0 %vm109_vm0, %v14682_v34 }
 0x782   :  { %8554 = vmatpush.msrb.mxu0 %v8509_v35  ;;  %v7962_v55 = vadd.f32 %v7899_v11, %v7796_v10 }
 0x783   :  { %10851 = vrot.lane.b32.xlu2 %v10835_v29, %s11446_s22 }
 0x784   :  { %v8069_v21 = vadd.f32 %v8006_v48, %v7962_v55 }
 0x786   :  { %v8158_v25 = vadd.f32 %v8095_v2, %v8069_v21  ;;  %v14739_v28 = vpop.permute.xlu1 %8606 }
 0x789   :  { %10294 = vmatmul.msk.f32.vlgmr.msrb.gmra.mxu0 %vm109_vm0, %v14689_v40 }
 0x78a   :  { %v7919_v23 = vpop.f32.mrf.mxu0 }
 0x78b   :  { %10876 = vrot.lane.b32.xlu2 %v10875_v52, %s11435_s1 }
 0x792   :  { %v8026_v18 = vpop.f32.mrf.mxu0 }
 0x793   :  { %10881 = vrot.lane.b32.xlu2 %v10875_v52, %s11450_s24 }
 0x79b   :  { %10886 = vrot.lane.b32.xlu2 %v10875_v52, %s11451_s28 }
 0x79c   :  { %v8212_v49 = vpop.f32.mrf.mxu3 }
 0x79d   :  { %v8275_v37 = vadd.f32 %v8212_v49, %v8158_v25 }
 0x7a3   :  { %10891 = vrot.lane.b32.xlu2 %v10875_v52, %s11452_s29 }
 0x7a4   :  { %v8320_v13 = vpop.f32.mrf.mxu3 }
 0x7a5   :  { %v8383_v39 = vadd.f32 %v8320_v13, %v8275_v37 }
 0x7ac   :  { %v8428_v59 = vpop.f32.mrf.mxu3 }
 0x7ad   :  { %v8491_v62 = vadd.f32 %v8428_v59, %v8383_v39 }
 0x7b4   :  { %v8536_v33 = vpop.f32.mrf.mxu3 }
 0x7b5   :  { %v8599_v9 = vadd.f32 %v8536_v33, %v8491_v62 }
 0x7b7   :  { %v8609_v32 = vadd.f32 %v14739_v28, %v8599_v9 }
 0x7b9   :  { %v8613_v42 = vmax.f32 %v8609_v32, 0.0 }
 0x7bb   :  { %v14743_v60 = vmul.f32 %v8619_v54, %v8613_v42 }
 0x7bd   :  { %v10895_v50 = vpack.i.bf16 %v14743_v60, %v14727_v22 }
 0x7bf   :  { %10896 = vrot.lane.b32.xlu2 %v10895_v50, %s11432_s18 }
 0x7c5   :  { %v10837_v8 = vpop.permute.xlu2 %10836 }
 0x7c6   :  { %v10839_v0 = vunpack.i.h.bf16 %v10837_v8  ;;  %v10838_v12 = vunpack.i.l.bf16 %v10837_v8  ;;  %v8620_v8 = vperm.slane %v14737_v57, 1 }
 0x7c7   :  { %10901 = vrot.lane.b32.xlu2 %v10895_v50, %s11448_s3 }
 0x7c8   :  { %v7667_v63 = vsel %vm7664_vm2, %v14595_v20, %v10838_v12  ;;  %v7668_v45 = vsel %vm7664_vm2, %v10838_v12, %v10839_v0 }
 0x7c9   :  { %7731 = vmatpush.msrb.mxu1 %v7667_v63  ;;  %7751 = vmatpush.msrb.mxu2 %v7668_v45 }
 0x7ca   :  { %10256 = vmatmul.msk.f32.vlgmr.msrb.gmra.mxu1 %vm109_vm0, %v14577_v1  ;;  %10257 = vmatmul.msk.f32.vlgmr.msrb.gmra.mxu2 %vm109_vm0, %v14577_v1 }
 0x7cd   :  { %v10842_v6 = vpop.permute.xlu2 %10841 }
 0x7ce   :  { %v10844_v15 = vunpack.i.h.bf16 %v10842_v6  ;;  %v10843_v17 = vunpack.i.l.bf16 %v10842_v6 }
 0x7cf   :  { %10906 = vrot.lane.b32.xlu2 %v10895_v50, %s11449_s21 }
 0x7d0   :  { %v7769_v31 = vsel %vm7766_vm14, %v14609_v51, %v10843_v17  ;;  %v7770_v20 = vsel %vm7766_vm14, %v10843_v17, %v10844_v15 }
 0x7d1   :  { %7833 = vmatpush.msra.mxu1 %v7769_v31  ;;  %7853 = vmatpush.msra.mxu2 %v7770_v20  ;;  %v14843_v31 = vld [vmem:[%s15698_s7] sm:$0xff] }
 0x7d2   :  { %10260 = vmatmul.msk.f32.vlgmr.msra.gmra.mxu1 %vm109_vm0, %v14553_v53  ;;  %10261 = vmatmul.msk.f32.vlgmr.msra.gmra.mxu2 %vm109_vm0, %v14553_v53 }
 0x7d5   :  { %v10847_v1 = vpop.permute.xlu2 %10846 }
 0x7d6   :  { %v10849_v58 = vunpack.i.h.bf16 %v10847_v1  ;;  %v10848_v19 = vunpack.i.l.bf16 %v10847_v1 }
 0x7d7   :  { %10911 = vrot.lane.b32.xlu2 %v10895_v50, %s11446_s22 }
 0x7d8   :  { %v7873_v29 = vsel %vm7870_vm15, %v14621_v27, %v10848_v19  ;;  %v7874_v51 = vsel %vm7870_vm15, %v10848_v19, %v10849_v58  ;;  %v14858_v19 = vld [vmem:[%s15698_s7 + $0x10] sm:$0xff] }
 0x7d9   :  { %7937 = vmatpush.msrb.mxu1 %v7873_v29  ;;  %7957 = vmatpush.msrb.mxu2 %v7874_v51  ;;  %v9591_v51 = vld [vmem:[%s15699_s8] sm:$0xff] }
 0x7da   :  { %10265 = vmatmul.msk.f32.vlgmr.msrb.gmra.mxu1 %vm109_vm0, %v14565_v36  ;;  %10266 = vmatmul.msk.f32.vlgmr.msrb.gmra.mxu2 %vm109_vm0, %v14565_v36  ;;  %v8115_v36 = vpop.f32.mrf.mxu0 }
 0x7dd   :  { %v10852_v53 = vpop.permute.xlu2 %10851 }
 0x7de   :  { %v10854_v44 = vunpack.i.h.bf16 %v10852_v53  ;;  %v10853_v3 = vunpack.i.l.bf16 %v10852_v53 }
 0x7e0   :  { %v7980_v11 = vsel %vm2595_vm12, %v14603_v38, %v10853_v3  ;;  %v7981_v56 = vsel %vm2595_vm12, %v10853_v3, %v10854_v44 }
 0x7e1   :  { %8044 = vmatpush.msra.mxu1 %v7980_v11  ;;  %8064 = vmatpush.msra.mxu2 %v7981_v56  ;;  %v14879_v56 = vld [vmem:[%s15698_s7 + $0x18] sm:$0xff] }
 0x7e2   :  { %10270 = vmatmul.msk.f32.vlgmr.msra.gmra.mxu1 %vm109_vm0, %v14582_v5  ;;  %10271 = vmatmul.msk.f32.vlgmr.msra.gmra.mxu2 %vm109_vm0, %v14582_v5  ;;  %v7816_v5 = vadd.f32 %v7815_v46, %v7713_v24 }
 0x7e3   :  { %8133 = vmatpush.msrb.mxu1 %v14599_v43  ;;  %8153 = vmatpush.msrb.mxu2 %v14693_v47 }
 0x7e4   :  { %v7963_v10 = vadd.f32 %v7919_v23, %v7816_v5 }
 0x7e5   :  { %v10877_v27 = vpop.permute.xlu2 %10876 }
 0x7e6   :  { %v10879_v35 = vunpack.i.h.bf16 %v10877_v27  ;;  %v10878_v48 = vunpack.i.l.bf16 %v10877_v27 }
 0x7e8   :  { %v8186_v38 = vsel %vm268_vm1, %v14698_v7, %v10878_v48  ;;  %v8187_v52 = vsel %vm268_vm1, %v10878_v48, %v10879_v35  ;;  %v14886_v35 = vld [vmem:[%s15698_s7 + $0x20] sm:$0xff] }
 0x7e9   :  { %8250 = vmatpush.msra.mxu1 %v8186_v38  ;;  %8270 = vmatpush.msra.mxu2 %v8187_v52 }
 0x7ea   :  { %10275 = vmatmul.msk.f32.vlgmr.msrb.gmra.mxu1 %vm109_vm0, %v14591_v26  ;;  %10276 = vmatmul.msk.f32.vlgmr.msrb.gmra.mxu2 %vm109_vm0, %v14591_v26  ;;  %v8070_v26 = vadd.f32 %v8026_v18, %v7963_v10 }
 0x7ec   :  { %v8159_v37 = vadd.f32 %v8115_v36, %v8070_v26 }
 0x7ed   :  { %v10882_v43 = vpop.permute.xlu2 %10881 }
 0x7ee   :  { %v10884_v47 = vunpack.i.h.bf16 %v10882_v43  ;;  %v10883_v2 = vunpack.i.l.bf16 %v10882_v43  ;;  %v8232_v61 = vpop.f32.mrf.mxu0 }
 0x7f0   :  { %v8294_v49 = vsel %vm8291_vm3, %v14705_v4, %v10883_v2  ;;  %v8295_v7 = vsel %vm8291_vm3, %v10883_v2, %v10884_v47 }
 0x7f1   :  { %8358 = vmatpush.msrb.mxu1 %v8294_v49  ;;  %8378 = vmatpush.msrb.mxu2 %v8295_v7  ;;  %v14897_v49 = vld [vmem:[%s15698_s7 + $0x28] sm:$0xff] }
 0x7f2   :  { %10280 = vmatmul.msk.f32.vlgmr.msra.gmra.mxu1 %vm109_vm0, %v14652_v16  ;;  %10281 = vmatmul.msk.f32.vlgmr.msra.gmra.mxu2 %vm109_vm0, %v14652_v16  ;;  %v8276_v16 = vadd.f32 %v8232_v61, %v8159_v37  ;;  %v14911_v37 = vld [vmem:[%s15698_s7 + $0x30] sm:$0xff] }
 0x7f5   :  { %v10887_v55 = vpop.permute.xlu2 %10886 }
 0x7f6   :  { %v10889_v21 = vunpack.i.h.bf16 %v10887_v55  ;;  %v10888_v13 = vunpack.i.l.bf16 %v10887_v55  ;;  %v8340_v25 = vpop.f32.mrf.mxu0 }
 0x7f7   :  { %v8384_v32 = vadd.f32 %v8340_v25, %v8276_v16 }
 0x7f8   :  { %v8402_v59 = vsel %vm8399_vm4, %v14716_v14, %v10888_v13  ;;  %v8403_v4 = vsel %vm8399_vm4, %v10888_v13, %v10889_v21 }
 0x7f9   :  { %8466 = vmatpush.msra.mxu1 %v8402_v59  ;;  %8486 = vmatpush.msra.mxu2 %v8403_v4 }
 0x7fa   :  { %10285 = vmatmul.msk.f32.vlgmr.msrb.gmra.mxu1 %vm109_vm0, %v14672_v41  ;;  %10286 = vmatmul.msk.f32.vlgmr.msrb.gmra.mxu2 %vm109_vm0, %v14672_v41 }
 0x7fd   :  { %v10892_v39 = vpop.permute.xlu2 %10891 }
 0x7fe   :  { %v10894_v62 = vunpack.i.h.bf16 %v10892_v39  ;;  %v10893_v33 = vunpack.i.l.bf16 %v10892_v39  ;;  %v8448_v9 = vpop.f32.mrf.mxu0 }
 0x7ff   :  { %v8492_v41 = vadd.f32 %v8448_v9, %v8384_v32 }
 0x800   :  { %v8510_v54 = vsel %vm8507_vm5, %v14714_v30, %v10893_v33  ;;  %v8511_v14 = vsel %vm8507_vm5, %v10893_v33, %v10894_v62 }
 0x801   :  { %8574 = vmatpush.msrb.mxu1 %v8510_v54  ;;  %8594 = vmatpush.msrb.mxu2 %v8511_v14  ;;  %v14925_v54 = vld [vmem:[%s15698_s7 + $0x38] sm:$0xff] }
 0x802   :  { %10290 = vmatmul.msk.f32.vlgmr.msra.gmra.mxu1 %vm109_vm0, %v14682_v34  ;;  %10291 = vmatmul.msk.f32.vlgmr.msra.gmra.mxu2 %vm109_vm0, %v14682_v34 }
 0x806   :  { %v8556_v42 = vpop.f32.mrf.mxu0 }
 0x807   :  { %v8600_v24 = vadd.f32 %v8556_v42, %v8492_v41 }
 0x809   :  { %v8610_v50 = vadd.f32 %v14739_v28, %v8600_v24 }
 0x80a   :  { %10295 = vmatmul.msk.f32.vlgmr.msrb.gmra.mxu1 %vm109_vm0, %v14689_v40  ;;  %10296 = vmatmul.msk.f32.vlgmr.msrb.gmra.mxu2 %vm109_vm0, %v14689_v40  ;;  %v14828_v40 = vld [vmem:[%s15698_s7 + $0x8] sm:$0xff] }
 0x80b   :  { %v8614_v30 = vmax.f32 %v8610_v50, 0.0 }
 0x80d   :  { %v14815_v0 = vmul.f32 %v8620_v8, %v8614_v30 }
 0x80f   :  { %v10935_v12 = vpack.i.bf16 %v14815_v0, %v14743_v60 }
 0x811   :  { %10936 = vrot.lane.b32.xlu2 %v10935_v12, %s11435_s1 }
 0x819   :  { %v14820_v34 = vpop.permute.xlu2 %10896  ;;  %10941 = vrot.lane.b32.xlu2 %v10935_v12, %s11450_s24 }
 0x81a   :  { %v10899_v46 = vunpack.i.h.bf16 %v14820_v34  ;;  %v10898_v63 = vunpack.i.l.bf16 %v14820_v34 }
 0x81c   :  { %v8658_v45 = vsel %vm7664_vm2, %v10898_v63, %v10899_v46 }
 0x81d   :  { %8684 = vmatpush.msrb.mxu3 %v8658_v45 }
 0x81e   :  { %10298 = vmatmul.msk.f32.vlgmr.msrb.gmra.mxu3 %vm109_vm0, %v14828_v40 }
 0x821   :  { %v14835_v6 = vpop.permute.xlu2 %10901  ;;  %10946 = vrot.lane.b32.xlu2 %v10935_v12, %s11451_s28 }
 0x822   :  { %v10904_v15 = vunpack.i.h.bf16 %v14835_v6  ;;  %v10903_v17 = vunpack.i.l.bf16 %v14835_v6 }
 0x824   :  { %v8759_v20 = vsel %vm7766_vm14, %v10903_v17, %v10904_v15 }
 0x825   :  { %8785 = vmatpush.msra.mxu3 %v8759_v20 }
 0x826   :  { %10302 = vmatmul.msk.f32.vlgmr.msra.gmra.mxu3 %vm109_vm0, %v14843_v31 }
 0x829   :  { %v14850_v23 = vpop.permute.xlu2 %10906  ;;  %10951 = vrot.lane.b32.xlu2 %v10935_v12, %s11452_s29 }
 0x82a   :  { %v10909_v1 = vunpack.i.h.bf16 %v14850_v23  ;;  %v10908_v58 = vunpack.i.l.bf16 %v14850_v23 }
 0x82c   :  { %v8862_v29 = vsel %vm7870_vm15, %v10908_v58, %v10909_v1 }
 0x82d   :  { %8888 = vmatpush.msrb.mxu3 %v8862_v29  ;;  %v14939_v29 = vld [vmem:[%s15698_s7 + $0x40] sm:$0xff] }
 0x82e   :  { %10307 = vmatmul.msk.f32.vlgmr.msrb.gmra.mxu3 %vm109_vm0, %v14858_v19 }
 0x831   :  { %v14868_v18 = vpop.permute.xlu2 %10911  ;;  %9594 = vperm.xlu2 %10424, %v9591_v51  }
 0x832   :  { %v10914_v53 = vunpack.i.h.bf16 %v14868_v18  ;;  %v10913_v44 = vunpack.i.l.bf16 %v14868_v18 }
 0x834   :  { %v8969_v3 = vsel %vm2595_vm12, %v10913_v44, %v10914_v53 }
 0x835   :  { %8995 = vmatpush.msra.mxu3 %v8969_v3 }
 0x836   :  { %10312 = vmatmul.msk.f32.vlgmr.msra.gmra.mxu3 %vm109_vm0, %v14879_v56 }
 0x837   :  { %9084 = vmatpush.msrb.mxu3 %v14743_v60 }
 0x83e   :  { %10317 = vmatmul.msk.f32.vlgmr.msrb.gmra.mxu3 %vm109_vm0, %v14886_v35 }
 0x847   :  { %v7733_v11 = vpop.f32.mrf.mxu1 }
 0x84d   :  { %v7753_v36 = vpop.f32.mrf.mxu2 }
 0x84f   :  { %v7835_v27 = vpop.f32.mrf.mxu1 }
 0x850   :  { %v7836_v16 = vadd.f32 %v7835_v27, %v7733_v11 }
 0x855   :  { %v7855_v60 = vpop.f32.mrf.mxu2 }
 0x856   :  { %v7856_v24 = vadd.f32 %v7855_v60, %v7753_v36 }
 0x857   :  { %v7939_v48 = vpop.f32.mrf.mxu1 }
 0x858   :  { %v7964_v62 = vadd.f32 %v7939_v48, %v7836_v16 }
 0x85d   :  { %v7959_v38 = vpop.f32.mrf.mxu2 }
 0x85e   :  { %v7965_v8 = vadd.f32 %v7959_v38, %v7856_v24  ;;  %v8621_v38 = vperm.slane %v14737_v57, 2 }
 0x85f   :  { %v8046_v52 = vpop.f32.mrf.mxu1 }
 0x860   :  { %v8071_v14 = vadd.f32 %v8046_v52, %v7964_v62 }
 0x865   :  { %v8066_v5 = vpop.f32.mrf.mxu2 }
 0x866   :  { %v8072_v63 = vadd.f32 %v8066_v5, %v7965_v8 }
 0x867   :  { %v8135_v43 = vpop.f32.mrf.mxu1 }
 0x868   :  { %v8160_v50 = vadd.f32 %v8135_v43, %v8071_v14 }
 0x86b   :  { %v14890_v47 = vpop.permute.xlu2 %10936 }
 0x86c   :  { %v10939_v2 = vunpack.i.h.bf16 %v14890_v47  ;;  %v10938_v61 = vunpack.i.l.bf16 %v14890_v47 }
 0x86d   :  { %v8155_v10 = vpop.f32.mrf.mxu2 }
 0x86e   :  { %v9175_v7 = vsel %vm268_vm1, %v10938_v61, %v10939_v2  ;;  %v8161_v51 = vadd.f32 %v8155_v10, %v8072_v63 }
 0x86f   :  { %v8252_v26 = vpop.f32.mrf.mxu1  ;;  %9201 = vmatpush.msra.mxu3 %v9175_v7 }
 0x870   :  { %10322 = vmatmul.msk.f32.vlgmr.msra.gmra.mxu3 %vm109_vm0, %v14897_v49  ;;  %v8277_v30 = vadd.f32 %v8252_v26, %v8160_v50  ;;  %v8622_v26 = vperm.slane %v14737_v57, 3 }
 0x873   :  { %v14904_v55 = vpop.permute.xlu2 %10941 }
 0x874   :  { %v10944_v21 = vunpack.i.h.bf16 %v14904_v55  ;;  %v10943_v13 = vunpack.i.l.bf16 %v14904_v55 }
 0x875   :  { %v8272_v25 = vpop.f32.mrf.mxu2 }
 0x876   :  { %v9282_v59 = vsel %vm8291_vm3, %v10943_v13, %v10944_v21  ;;  %v8278_v36 = vadd.f32 %v8272_v25, %v8161_v51 }
 0x877   :  { %v8360_v4 = vpop.f32.mrf.mxu1  ;;  %9308 = vmatpush.msrb.mxu3 %v9282_v59 }
 0x878   :  { %10327 = vmatmul.msk.f32.vlgmr.msrb.gmra.mxu3 %vm109_vm0, %v14911_v37  ;;  %v8385_v45 = vadd.f32 %v8360_v4, %v8277_v30 }
 0x87b   :  { %v14918_v39 = vpop.permute.xlu2 %10946 }
 0x87c   :  { %v10949_v33 = vunpack.i.h.bf16 %v14918_v39  ;;  %v10948_v9 = vunpack.i.l.bf16 %v14918_v39 }
 0x87d   :  { %v8380_v32 = vpop.f32.mrf.mxu2 }
 0x87e   :  { %v9389_v41 = vsel %vm8399_vm4, %v10948_v9, %v10949_v33  ;;  %v8386_v60 = vadd.f32 %v8380_v32, %v8278_v36 }
 0x87f   :  { %v8468_v42 = vpop.f32.mrf.mxu1  ;;  %9415 = vmatpush.msra.mxu3 %v9389_v41 }
 0x880   :  { %10332 = vmatmul.msk.f32.vlgmr.msra.gmra.mxu3 %vm109_vm0, %v14925_v54  ;;  %v8493_v44 = vadd.f32 %v8468_v42, %v8385_v45 }
 0x883   :  { %v14932_v12 = vpop.permute.xlu2 %10951 }
 0x884   :  { %v10954_v17 = vunpack.i.h.bf16 %v14932_v12  ;;  %v10953_v20 = vunpack.i.l.bf16 %v14932_v12 }
 0x885   :  { %v8488_v58 = vpop.f32.mrf.mxu2 }
 0x886   :  { %v9496_v3 = vsel %vm8507_vm5, %v10953_v20, %v10954_v17  ;;  %v8494_v52 = vadd.f32 %v8488_v58, %v8386_v60 }
 0x887   :  { %v8576_v11 = vpop.f32.mrf.mxu1  ;;  %9522 = vmatpush.msrb.mxu3 %v9496_v3 }
 0x888   :  { %v8601_v27 = vadd.f32 %v8576_v11, %v8493_v44  ;;  %10337 = vmatmul.msk.f32.vlgmr.msrb.gmra.mxu3 %vm109_vm0, %v14939_v29 }
 0x88a   :  { %v8611_v48 = vadd.f32 %v14739_v28, %v8601_v27 }
 0x88b   :  { %v14995_v60 = vpop.permute.xlu2 %9594 }
 0x88c   :  { %v8615_v5 = vmax.f32 %v8611_v48, 0.0 }
 0x88d   :  { %v8596_v43 = vpop.f32.mrf.mxu2 }
 0x88e   :  { %v14948_v61 = vmul.f32 %v8621_v38, %v8615_v5  ;;  %v8602_v10 = vadd.f32 %v8596_v43, %v8494_v52 }
 0x890   :  { %v8612_v7 = vadd.f32 %v14739_v28, %v8602_v10  ;;  %v10915_v13 = vpack.i.bf16 %v14948_v61, %v14815_v0 }
 0x892   :  { %v8616_v25 = vmax.f32 %v8612_v7, 0.0  ;;  %10916 = vrot.lane.b32.xlu0 %v10915_v13, %s11432_s18 }
 0x894   :  { %v14955_v59 = vmul.f32 %v8622_v26, %v8616_v25 }
 0x896   :  { %8656 = vrot.lane.b32.xlu1 %v14955_v59, %s11432_s18  ;;  %v10955_v57 = vpack.i.bf16 %v14955_v59, %v14948_v61 }
 0x89a   :  { %10921 = vrot.lane.b32.xlu0 %v10915_v13, %s11448_s3 }
 0x89e   :  { %8757 = vrot.lane.b32.xlu1 %v14955_v59, %s11448_s3 }
 0x8a1   :  { %v8686_v28 = vpop.f32.mrf.mxu3 }
 0x8a2   :  { %10926 = vrot.lane.b32.xlu0 %v10915_v13, %s11449_s21 }
 0x8a6   :  { %8860 = vrot.lane.b32.xlu1 %v14955_v59, %s11449_s21 }
 0x8a9   :  { %v8787_v4 = vpop.f32.mrf.mxu3 }
 0x8aa   :  { %10931 = vrot.lane.b32.xlu0 %v10915_v13, %s11446_s22  ;;  %v8788_v32 = vadd.f32 %v8787_v4, %v8686_v28 }
 0x8ae   :  { %8967 = vrot.lane.b32.xlu1 %v14955_v59, %s11446_s22 }
 0x8b1   :  { %v8890_v16 = vpop.f32.mrf.mxu3 }
 0x8b2   :  { %10956 = vrot.lane.b32.xlu0 %v10955_v57, %s11435_s1  ;;  %v8953_v41 = vadd.f32 %v8890_v16, %v8788_v32 }
 0x8b6   :  { %9173 = vrot.lane.b32.xlu1 %v14727_v22, %s11435_s1 }
 0x8b9   :  { %v8997_v62 = vpop.f32.mrf.mxu3 }
 0x8ba   :  { %10961 = vrot.lane.b32.xlu0 %v10955_v57, %s11450_s24  ;;  %v9060_v42 = vadd.f32 %v8997_v62, %v8953_v41 }
 0x8be   :  { %9280 = vrot.lane.b32.xlu1 %v14727_v22, %s11450_s24 }
 0x8c1   :  { %v9086_v9 = vpop.f32.mrf.mxu3 }
 0x8c2   :  { %10966 = vrot.lane.b32.xlu0 %v10955_v57, %s11451_s28  ;;  %v9149_v50 = vadd.f32 %v9086_v9, %v9060_v42 }
 0x8c6   :  { %9387 = vrot.lane.b32.xlu1 %v14727_v22, %s11451_s28 }
 0x8ca   :  { %10971 = vrot.lane.b32.xlu0 %v10955_v57, %s11452_s29 }
 0x8ce   :  { %9494 = vrot.lane.b32.xlu1 %v14727_v22, %s11452_s29 }
 0x8d6   :  { %9631 = vrot.lane.b32.xlu1 %v14727_v22, %s11435_s1 }
 0x8f3   :  { %v9203_v14 = vpop.f32.mrf.mxu3 }
 0x8f4   :  { %v9266_v8 = vadd.f32 %v9203_v14, %v9149_v50 }
 0x8fb   :  { %v9310_v24 = vpop.f32.mrf.mxu3 }
 0x8fc   :  { %v9373_v45 = vadd.f32 %v9310_v24, %v9266_v8 }
 0x903   :  { %v9417_v30 = vpop.f32.mrf.mxu3 }
 0x904   :  { %v10917_v63 = vpop.permute.xlu0 %10916  ;;  %v9480_v11 = vadd.f32 %v9417_v30, %v9373_v45 }
 0x905   :  { %v10919_v20 = vunpack.i.h.bf16 %v10917_v63  ;;  %v10918_v58 = vunpack.i.l.bf16 %v10917_v63 }
 0x907   :  { %v8659_v51 = vsel %vm7664_vm2, %v10899_v46, %v10918_v58  ;;  %v8660_v44 = vsel %vm7664_vm2, %v10918_v58, %v10919_v20 }
 0x908   :  { %8704 = vmatpush.msra.mxu0 %v8659_v51  ;;  %8724 = vmatpush.msra.mxu1 %v8660_v44  ;;  %v8657_v3 = vpop.permute.xlu1 %8656 }
 0x909   :  { %v8661_v36 = vsel %vm7664_vm2, %v10919_v20, %v8657_v3  ;;  %10299 = vmatmul.msk.f32.vlgmr.msra.gmra.mxu0 %vm109_vm0, %v14828_v40  ;;  %10300 = vmatmul.msk.f32.vlgmr.msra.gmra.mxu1 %vm109_vm0, %v14828_v40 }
 0x90a   :  { %8744 = vmatpush.msra.mxu2 %v8661_v36 }
 0x90b   :  { %10301 = vmatmul.msk.f32.vlgmr.msra.gmra.mxu2 %vm109_vm0, %v14828_v40  ;;  %v9524_v34 = vpop.f32.mrf.mxu3 }
 0x90c   :  { %v10922_v46 = vpop.permute.xlu0 %10921  ;;  %v9587_v27 = vadd.f32 %v9524_v34, %v9480_v11 }
 0x90d   :  { %v10924_v48 = vunpack.i.h.bf16 %v10922_v46  ;;  %v10923_v38 = vunpack.i.l.bf16 %v10922_v46 }
 0x90e   :  { %v9597_v52 = vadd.f32 %v14995_v60, %v9587_v27 }
 0x90f   :  { %v8760_v5 = vsel %vm7766_vm14, %v10904_v15, %v10923_v38  ;;  %v8761_v43 = vsel %vm7766_vm14, %v10923_v38, %v10924_v48 }
 0x910   :  { %8805 = vmatpush.msrb.mxu0 %v8760_v5  ;;  %8825 = vmatpush.msrb.mxu1 %v8761_v43  ;;  %v8758_v10 = vpop.permute.xlu1 %8757  ;;  %v15002_v7 = vmax.f32 %v9597_v52, 0.0 }
 0x911   :  { %v8762_v40 = vsel %vm7766_vm14, %v10924_v48, %v8758_v10  ;;  %10303 = vmatmul.msk.f32.vlgmr.msrb.gmra.mxu0 %vm109_vm0, %v14843_v31  ;;  %10304 = vmatmul.msk.f32.vlgmr.msrb.gmra.mxu1 %vm109_vm0, %v14843_v31 }
 0x912   :  { %8845 = vmatpush.msrb.mxu2 %v8762_v40  ;;  %9645 = vrot.lane.b32.xlu2 %v15002_v7, %s11451_s28 }
 0x913   :  { %10305 = vmatmul.msk.f32.vlgmr.msrb.gmra.mxu2 %vm109_vm0, %v14843_v31  ;;  %9623 = vrot.lane.b32.xlu0 %v15002_v7, %s11435_s1 }
 0x914   :  { %v10927_v6 = vpop.permute.xlu0 %10926  ;;  %9667 = vrot.lane.b32.xlu1 %v15002_v7, %s11452_s29 }
 0x915   :  { %v10929_v15 = vunpack.i.h.bf16 %v10927_v6  ;;  %v10928_v26 = vunpack.i.l.bf16 %v10927_v6 }
 0x917   :  { %v8863_v13 = vsel %vm7870_vm15, %v10909_v1, %v10928_v26  ;;  %v8864_v25 = vsel %vm7870_vm15, %v10928_v26, %v10929_v15 }
 0x918   :  { %8908 = vmatpush.msra.mxu0 %v8863_v13  ;;  %8928 = vmatpush.msra.mxu1 %v8864_v25  ;;  %v8861_v57 = vpop.permute.xlu1 %8860 }
 0x919   :  { %v8865_v31 = vsel %vm7870_vm15, %v10929_v15, %v8861_v57  ;;  %10308 = vmatmul.msk.f32.vlgmr.msra.gmra.mxu0 %vm109_vm0, %v14858_v19  ;;  %10309 = vmatmul.msk.f32.vlgmr.msra.gmra.mxu1 %vm109_vm0, %v14858_v19 }
 0x91a   :  { %8948 = vmatpush.msra.mxu2 %v8865_v31 }
 0x91b   :  { %10310 = vmatmul.msk.f32.vlgmr.msra.gmra.mxu2 %vm109_vm0, %v14858_v19 }
 0x91c   :  { %v10932_v23 = vpop.permute.xlu0 %10931 }
 0x91d   :  { %v10934_v28 = vunpack.i.h.bf16 %v10932_v23  ;;  %v10933_v1 = vunpack.i.l.bf16 %v10932_v23 }
 0x91f   :  { %v8970_v4 = vsel %vm2595_vm12, %v10914_v53, %v10933_v1  ;;  %v8971_v16 = vsel %vm2595_vm12, %v10933_v1, %v10934_v28 }
 0x920   :  { %9015 = vmatpush.msrb.mxu0 %v8970_v4  ;;  %9035 = vmatpush.msrb.mxu1 %v8971_v16  ;;  %v8968_v62 = vpop.permute.xlu1 %8967 }
 0x921   :  { %v8972_v9 = vsel %vm2595_vm12, %v10934_v28, %v8968_v62  ;;  %10313 = vmatmul.msk.f32.vlgmr.msrb.gmra.mxu0 %vm109_vm0, %v14879_v56  ;;  %10314 = vmatmul.msk.f32.vlgmr.msrb.gmra.mxu1 %vm109_vm0, %v14879_v56 }
 0x922   :  { %9104 = vmatpush.msra.mxu0 %v14815_v0  ;;  %9124 = vmatpush.msra.mxu1 %v14948_v61 }
 0x923   :  { %9055 = vmatpush.msrb.mxu2 %v8972_v9 }
 0x924   :  { %10315 = vmatmul.msk.f32.vlgmr.msrb.gmra.mxu2 %vm109_vm0, %v14879_v56  ;;  %v10957_v19 = vpop.permute.xlu0 %10956 }
 0x925   :  { %9144 = vmatpush.msra.mxu2 %v14955_v59  ;;  %v10959_v18 = vunpack.i.h.bf16 %v10957_v19  ;;  %v10958_v53 = vunpack.i.l.bf16 %v10957_v19 }
 0x927   :  { %v9176_v32 = vsel %vm268_vm1, %v10939_v2, %v10958_v53  ;;  %v9177_v14 = vsel %vm268_vm1, %v10958_v53, %v10959_v18 }
 0x928   :  { %9221 = vmatpush.msrb.mxu0 %v9176_v32  ;;  %9241 = vmatpush.msrb.mxu1 %v9177_v14  ;;  %v9174_v0 = vpop.permute.xlu1 %9173 }
 0x929   :  { %v9178_v61 = vsel %vm268_vm1, %v10959_v18, %v9174_v0  ;;  %10318 = vmatmul.msk.f32.vlgmr.msra.gmra.mxu0 %vm109_vm0, %v14886_v35  ;;  %10319 = vmatmul.msk.f32.vlgmr.msra.gmra.mxu1 %vm109_vm0, %v14886_v35 }
 0x92a   :  { %9261 = vmatpush.msrb.mxu2 %v9178_v61 }
 0x92c   :  { %10320 = vmatmul.msk.f32.vlgmr.msra.gmra.mxu2 %vm109_vm0, %v14886_v35  ;;  %v10962_v56 = vpop.permute.xlu0 %10961 }
 0x92d   :  { %v10964_v47 = vunpack.i.h.bf16 %v10962_v56  ;;  %v10963_v2 = vunpack.i.l.bf16 %v10962_v56 }
 0x92f   :  { %v9283_v59 = vsel %vm8291_vm3, %v10944_v21, %v10963_v2  ;;  %v9284_v41 = vsel %vm8291_vm3, %v10963_v2, %v10964_v47 }
 0x930   :  { %9328 = vmatpush.msra.mxu0 %v9283_v59  ;;  %9348 = vmatpush.msra.mxu1 %v9284_v41  ;;  %v9281_v42 = vpop.permute.xlu1 %9280 }
 0x931   :  { %v9285_v24 = vsel %vm8291_vm3, %v10964_v47, %v9281_v42  ;;  %10323 = vmatmul.msk.f32.vlgmr.msrb.gmra.mxu0 %vm109_vm0, %v14897_v49  ;;  %10324 = vmatmul.msk.f32.vlgmr.msrb.gmra.mxu1 %vm109_vm0, %v14897_v49 }
 0x932   :  { %9368 = vmatpush.msra.mxu2 %v9285_v24 }
 0x934   :  { %10325 = vmatmul.msk.f32.vlgmr.msrb.gmra.mxu2 %vm109_vm0, %v14897_v49  ;;  %v10967_v35 = vpop.permute.xlu0 %10966 }
 0x935   :  { %v10969_v55 = vunpack.i.h.bf16 %v10967_v35  ;;  %v10968_v21 = vunpack.i.l.bf16 %v10967_v35 }
 0x937   :  { %v9390_v50 = vsel %vm8399_vm4, %v10949_v33, %v10968_v21  ;;  %v9391_v8 = vsel %vm8399_vm4, %v10968_v21, %v10969_v55 }
 0x938   :  { %9435 = vmatpush.msrb.mxu0 %v9390_v50  ;;  %9455 = vmatpush.msrb.mxu1 %v9391_v8  ;;  %v9388_v30 = vpop.permute.xlu1 %9387 }
 0x939   :  { %v9392_v63 = vsel %vm8399_vm4, %v10969_v55, %v9388_v30  ;;  %10328 = vmatmul.msk.f32.vlgmr.msra.gmra.mxu0 %vm109_vm0, %v14911_v37  ;;  %10329 = vmatmul.msk.f32.vlgmr.msra.gmra.mxu1 %vm109_vm0, %v14911_v37 }
 0x93a   :  { %9475 = vmatpush.msrb.mxu2 %v9392_v63 }
 0x93c   :  { %10330 = vmatmul.msk.f32.vlgmr.msra.gmra.mxu2 %vm109_vm0, %v14911_v37  ;;  %v10972_v49 = vpop.permute.xlu0 %10971 }
 0x93d   :  { %v10974_v39 = vunpack.i.h.bf16 %v10972_v49  ;;  %v10973_v33 = vunpack.i.l.bf16 %v10972_v49 }
 0x93f   :  { %v9497_v45 = vsel %vm8507_vm5, %v10954_v17, %v10973_v33  ;;  %v9498_v20 = vsel %vm8507_vm5, %v10973_v33, %v10974_v39 }
 0x940   :  { %9542 = vmatpush.msra.mxu0 %v9497_v45  ;;  %9562 = vmatpush.msra.mxu1 %v9498_v20  ;;  %v9495_v58 = vpop.permute.xlu1 %9494  ;;  %v9984_v45 = vld [vmem:[%s15704_s13] sm:$0xff]  ;;  %v9951_v20 = vld [vmem:[%s15705_s14 + $0xf8] sm:$0xff] }
 0x941   :  { %v9499_v51 = vsel %vm8507_vm5, %v10974_v39, %v9495_v58  ;;  %10333 = vmatmul.msk.f32.vlgmr.msrb.gmra.mxu0 %vm109_vm0, %v14925_v54  ;;  %10334 = vmatmul.msk.f32.vlgmr.msrb.gmra.mxu1 %vm109_vm0, %v14925_v54  ;;  %v9934_v58 = vld [vmem:[%s15705_s14 + $0x70] sm:$0xff] }
 0x942   :  { %9582 = vmatpush.msra.mxu2 %v9499_v51  ;;  %10019 = vmatpush.msrb.mxu0 %v9951_v20  ;;  %v9950_v51 = vld [vmem:[%s15705_s14 + $0xf0] sm:$0xff] }
 0x944   :  { %10335 = vmatmul.msk.f32.vlgmr.msrb.gmra.mxu2 %vm109_vm0, %v14925_v54  ;;  %10020 = vmatpush.msrb.mxu0 %v9950_v51 }
 0x949   :  { %10338 = vmatmul.msk.f32.vlgmr.msra.gmra.mxu0 %vm109_vm0, %v14939_v29  ;;  %10339 = vmatmul.msk.f32.vlgmr.msra.gmra.mxu1 %vm109_vm0, %v14939_v29 }
 0x94c   :  { %10340 = vmatmul.msk.f32.vlgmr.msra.gmra.mxu2 %vm109_vm0, %v14939_v29  ;;  %vm10088_vm0 = vcmask 15360  }
 0x986   :  { %v8706_v37 = vpop.f32.mrf.mxu0  ;;  %v8726_v12 = vpop.f32.mrf.mxu1 }
 0x98e   :  { %v8746_v17 = vpop.f32.mrf.mxu2  ;;  %v8807_v44 = vpop.f32.mrf.mxu0 }
 0x98f   :  { %v8827_v3 = vpop.f32.mrf.mxu1  ;;  %v8808_v26 = vadd.f32 %v8807_v44, %v8706_v37  ;;  %v9933_v37 = vld [vmem:[%s15705_s14 + $0x68] sm:$0xff]  ;;  %v9932_v44 = vld [vmem:[%s15705_s14 + $0x60] sm:$0xff] }
 0x990   :  { %v8828_v40 = vadd.f32 %v8827_v3, %v8726_v12  ;;  %v9949_v12 = vld [vmem:[%s15705_s14 + $0xe8] sm:$0xff]  ;;  %v9948_v3 = vld [vmem:[%s15705_s14 + $0xe0] sm:$0xff] }
 0x991   :  { %10021 = vmatpush.msrb.mxu0 %v9949_v12  ;;  %v9958_v12 = vld [vmem:[%s15705_s14 + $0x130] sm:$0xff] }
 0x993   :  { %10022 = vmatpush.msrb.mxu0 %v9948_v3 }
 0x996   :  { %v8847_v11 = vpop.f32.mrf.mxu2  ;;  %v8910_v36 = vpop.f32.mrf.mxu0 }
 0x997   :  { %v8930_v34 = vpop.f32.mrf.mxu1  ;;  %v8954_v25 = vadd.f32 %v8910_v36, %v8808_v26  ;;  %v8848_v9 = vadd.f32 %v8847_v11, %v8746_v17  ;;  %v15147_v17 = vpop.permute.xlu2 %9645  ;;  %v9931_v11 = vld [vmem:[%s15705_s14 + $0x58] sm:$0xff]  ;;  %v9941_v26 = vld [vmem:[%s15705_s14 + $0xa8] sm:$0xff] }
 0x998   :  { %v8955_v13 = vadd.f32 %v8930_v34, %v8828_v40  ;;  %v9947_v36 = vld [vmem:[%s15705_s14 + $0xd8] sm:$0xff]  ;;  %v9930_v34 = vld [vmem:[%s15705_s14 + $0x50] sm:$0xff] }
 0x999   :  { %10023 = vmatpush.msrb.mxu0 %v9947_v36  ;;  %v9942_v40 = vld [vmem:[%s15705_s14 + $0xb0] sm:$0xff]  ;;  %v9689_v36 = vld [vmem:[%s15703_s12] sm:$0xff] }
 0x99e   :  { %v8950_v46 = vpop.f32.mrf.mxu2  ;;  %v9017_v27 = vpop.f32.mrf.mxu0 }
 0x99f   :  { %v9037_v54 = vpop.f32.mrf.mxu1  ;;  %v9061_v57 = vadd.f32 %v9017_v27, %v8954_v25  ;;  %v8956_v18 = vadd.f32 %v8950_v46, %v8848_v9  ;;  %v9946_v46 = vld [vmem:[%s15705_s14 + $0xd0] sm:$0xff]  ;;  %v9929_v27 = vld [vmem:[%s15705_s14 + $0x48] sm:$0xff] }
 0x9a0   :  { %v9062_v31 = vadd.f32 %v9037_v54, %v8955_v13  ;;  %10024 = vmatpush.msrb.mxu0 %v9946_v46  ;;  %v9945_v54 = vld [vmem:[%s15705_s14 + $0xc8] sm:$0xff]  ;;  %v15205_v13 = vpop.permute.xlu1 %9631  ;;  %v9922_v9 = vld [vmem:[%s15705_s14 + $0x10] sm:$0xff] }
 0x9a2   :  { %10025 = vmatpush.msrb.mxu0 %v9945_v54  ;;  %v9973_v54 = vld [vmem:[%s15705_s14 + $0x1a8] sm:$0xff] }
 0x9a6   :  { %v9106_v48 = vpop.f32.mrf.mxu0 }
 0x9a7   :  { %v9057_v38 = vpop.f32.mrf.mxu2  ;;  %v9126_v52 = vpop.f32.mrf.mxu1  ;;  %v9150_v28 = vadd.f32 %v9106_v48, %v9061_v57  ;;  %v9924_v57 = vld [vmem:[%s15705_s14 + $0x20] sm:$0xff] }
 0x9a8   :  { %v9151_v16 = vadd.f32 %v9126_v52, %v9062_v31  ;;  %v9063_v14 = vadd.f32 %v9057_v38, %v8956_v18  ;;  %v9928_v38 = vld [vmem:[%s15705_s14 + $0x40] sm:$0xff] }
 0x9a9   :  { %v9944_v52 = vld [vmem:[%s15705_s14 + $0xc0] sm:$0xff] }
 0x9aa   :  { %10026 = vmatpush.msrb.mxu0 %v9944_v52  ;;  %v9940_v31 = vld [vmem:[%s15705_s14 + $0xa0] sm:$0xff] }
 0x9ab   :  { %v9964_v18 = vld [vmem:[%s15705_s14 + $0x160] sm:$0xff] }
 0x9ae   :  { %v9223_v5 = vpop.f32.mrf.mxu0 }
 0x9af   :  { %v9146_v43 = vpop.f32.mrf.mxu2  ;;  %v9243_v10 = vpop.f32.mrf.mxu1  ;;  %v9267_v62 = vadd.f32 %v9223_v5, %v9150_v28  ;;  %v9927_v5 = vld [vmem:[%s15705_s14 + $0x38] sm:$0xff]  ;;  %v9982_v28 = vld [vmem:[%s15705_s14 + $0x1f0] sm:$0xff] }
 0x9b0   :  { %v9268_v53 = vadd.f32 %v9243_v10, %v9151_v16  ;;  %v9152_v2 = vadd.f32 %v9146_v43, %v9063_v14  ;;  %v9943_v43 = vld [vmem:[%s15705_s14 + $0xb8] sm:$0xff]  ;;  %v9926_v10 = vld [vmem:[%s15705_s14 + $0x30] sm:$0xff]  ;;  %v9965_v16 = vld [vmem:[%s15705_s14 + $0x168] sm:$0xff] }
 0x9b1   :  { %10027 = vmatpush.msrb.mxu0 %v9943_v43  ;;  %v9937_v14 = vld [vmem:[%s15705_s14 + $0x88] sm:$0xff] }
 0x9b3   :  { %10028 = vmatpush.msrb.mxu0 %v9942_v40  ;;  %v9972_v40 = vld [vmem:[%s15705_s14 + $0x1a0] sm:$0xff] }
 0x9b5   :  { %10029 = vmatpush.msrb.mxu0 %v9941_v26  ;;  %v9955_v26 = vld [vmem:[%s15705_s14 + $0x118] sm:$0xff] }
 0x9b6   :  { %v9330_v6 = vpop.f32.mrf.mxu0 }
 0x9b7   :  { %v9263_v29 = vpop.f32.mrf.mxu2  ;;  %v9350_v15 = vpop.f32.mrf.mxu1  ;;  %v9374_v19 = vadd.f32 %v9330_v6, %v9267_v62  ;;  %v9967_v6 = vld [vmem:[%s15705_s14 + $0x178] sm:$0xff]  ;;  %10030 = vmatpush.msrb.mxu0 %v9940_v31  ;;  %v9981_v62 = vld [vmem:[%s15705_s14 + $0x1e8] sm:$0xff] }
 0x9b8   :  { %v9375_v61 = vadd.f32 %v9350_v15, %v9268_v53  ;;  %v9269_v24 = vadd.f32 %v9263_v29, %v9152_v2  ;;  %v9983_v29 = vld [vmem:[%s15705_s14 + $0x1f8] sm:$0xff]  ;;  %v9925_v15 = vld [vmem:[%s15705_s14 + $0x28] sm:$0xff]  ;;  %10042 = vmatpush.msrb.mxu1 %v9967_v6  ;;  %v9980_v53 = vld [vmem:[%s15705_s14 + $0x1e0] sm:$0xff] }
 0x9b9   :  { %10065 = vmatpush.msrb.mxu2 %v9983_v29  ;;  %v9920_v2 = vld [vmem:[%s15705_s14] sm:$0xff] }
 0x9ba   :  { %v10349_v29 = vld [vmem:[%s15703_s12 + $0x80] sm:$0xff] }
 0x9bb   :  { %10066 = vmatpush.msrb.mxu2 %v9982_v28  ;;  %v9971_v28 = vld [vmem:[%s15705_s14 + $0x198] sm:$0xff] }
 0x9bd   :  { %10067 = vmatpush.msrb.mxu2 %v9981_v62  ;;  %v9954_v62 = vld [vmem:[%s15705_s14 + $0x110] sm:$0xff] }
 0x9be   :  { %v9437_v23 = vpop.f32.mrf.mxu0 }
 0x9bf   :  { %v9370_v1 = vpop.f32.mrf.mxu2  ;;  %v9457_v4 = vpop.f32.mrf.mxu1  ;;  %v9481_v32 = vadd.f32 %v9437_v23, %v9374_v19  ;;  %v9966_v23 = vld [vmem:[%s15705_s14 + $0x170] sm:$0xff]  ;;  %10068 = vmatpush.msrb.mxu2 %v9980_v53  ;;  %v10373_v53 = vld [vmem:[%s15703_s12 + $0x140] sm:$0xff] }
 0x9c0   :  { %v9482_v41 = vadd.f32 %v9457_v4, %v9375_v61  ;;  %v9376_v21 = vadd.f32 %v9370_v1, %v9269_v24  ;;  %v9923_v1 = vld [vmem:[%s15705_s14 + $0x18] sm:$0xff]  ;;  %10043 = vmatpush.msrb.mxu1 %v9966_v23  ;;  %v9938_v19 = vld [vmem:[%s15705_s14 + $0x90] sm:$0xff]  ;;  %v10357_v23 = vld [vmem:[%s15703_s12 + $0xc0] sm:$0xff] }
 0x9c1   :  { %v9939_v4 = vld [vmem:[%s15705_s14 + $0x98] sm:$0xff]  ;;  %v9978_v24 = vld [vmem:[%s15705_s14 + $0x1d0] sm:$0xff] }
 0x9c2   :  { %10031 = vmatpush.msrb.mxu0 %v9939_v4  ;;  %10044 = vmatpush.msrb.mxu1 %v9965_v16  ;;  %v9979_v61 = vld [vmem:[%s15705_s14 + $0x1d8] sm:$0xff]  ;;  %v9690_v16 = vld [vmem:[%s15703_s12 + $0x8] sm:$0xff] }
 0x9c3   :  { %10069 = vmatpush.msrb.mxu2 %v9979_v61 }
 0x9c4   :  { %10032 = vmatpush.msrb.mxu0 %v9938_v19  ;;  %10045 = vmatpush.msrb.mxu1 %v9964_v18 }
 0x9c5   :  { %10070 = vmatpush.msrb.mxu2 %v9978_v24 }
 0x9c6   :  { %v9544_v0 = vpop.f32.mrf.mxu0  ;;  %10033 = vmatpush.msrb.mxu0 %v9937_v14  ;;  %v10342_v14 = vld [vmem:[%s15703_s12 + $0x48] sm:$0xff] }
 0x9c7   :  { %v9477_v56 = vpop.f32.mrf.mxu2  ;;  %v9588_v47 = vadd.f32 %v9544_v0, %v9481_v32  ;;  %v9564_v59 = vpop.f32.mrf.mxu1  ;;  %v9921_v32 = vld [vmem:[%s15705_s14 + $0x8] sm:$0xff]  ;;  %v9963_v0 = vld [vmem:[%s15705_s14 + $0x158] sm:$0xff] }
 0x9c8   :  { %v9589_v55 = vadd.f32 %v9564_v59, %v9482_v41  ;;  %v9483_v50 = vadd.f32 %v9477_v56, %v9376_v21  ;;  %v9624_v56 = vpop.permute.xlu0 %9623  ;;  %10046 = vmatpush.msrb.mxu1 %v9963_v0  ;;  %v9936_v59 = vld [vmem:[%s15705_s14 + $0x80] sm:$0xff]  ;;  %v9962_v41 = vld [vmem:[%s15705_s14 + $0x150] sm:$0xff]  ;;  %v9961_v21 = vld [vmem:[%s15705_s14 + $0x148] sm:$0xff] }
 0x9c9   :  { %v9598_v42 = vadd.f32 %v14995_v60, %v9588_v47  ;;  %v9668_v47 = vpop.permute.xlu1 %9667  ;;  %10034 = vmatpush.msrb.mxu0 %v9936_v59  ;;  %v9970_v0 = vld [vmem:[%s15705_s14 + $0x190] sm:$0xff]  ;;  %v9953_v59 = vld [vmem:[%s15705_s14 + $0x108] sm:$0xff] }
 0x9ca   :  { %v9599_v8 = vadd.f32 %v14995_v60, %v9589_v55  ;;  %10047 = vmatpush.msrb.mxu1 %v9962_v41 }
 0x9cb   :  { %v15093_v35 = vmax.f32 %v9598_v42, 0.0 }
 0x9cc   :  { %v15103_v39 = vmax.f32 %v9599_v8, 0.0  ;;  %v9960_v8 = vld [vmem:[%s15705_s14 + $0x140] sm:$0xff]  ;;  %10048 = vmatpush.msrb.mxu1 %v9961_v21 }
 0x9cd   :  { %9669 = vrot.lane.b32.xlu2 %v15093_v35, %s11452_s29  ;;  %9647 = vrot.lane.b32.xlu0 %v15093_v35, %s11451_s28  ;;  %v9693_v21 = vld [vmem:[%s15703_s12 + $0x20] sm:$0x3] }
 0x9ce   :  { %9625 = vrot.lane.b32.xlu1 %v15093_v35, %s11435_s1  ;;  %10049 = vmatpush.msrb.mxu1 %v9960_v8 }
 0x9cf   :  { %v9584_v30 = vpop.f32.mrf.mxu2 }
 0x9d0   :  { %v9590_v63 = vadd.f32 %v9584_v30, %v9483_v50  ;;  %v9977_v50 = vld [vmem:[%s15705_s14 + $0x1c8] sm:$0xff] }
 0x9d1   :  { %10071 = vmatpush.msrb.mxu2 %v9977_v50  ;;  %v9969_v50 = vld [vmem:[%s15705_s14 + $0x188] sm:$0xff] }
 0x9d2   :  { %v9600_v49 = vadd.f32 %v14995_v60, %v9590_v63  ;;  %v9985_v60 = vld [vmem:[%s15704_s13 + $0x8] sm:$0x3]  ;;  %v9976_v63 = vld [vmem:[%s15705_s14 + $0x1c0] sm:$0xff] }
 0x9d3   :  { %10072 = vmatpush.msrb.mxu2 %v9976_v63 }
 0x9d4   :  { %v15105_v33 = vmax.f32 %v9600_v49, 0.0 }
 0x9d5   :  { %9627 = vrot.lane.b32.xlu2 %v15103_v39, %s11435_s1 }
 0x9d6   :  { %9653 = vrot.lane.b32.xlu1 %v14727_v22, %s11451_s28  ;;  %9629 = vrot.lane.b32.xlu0 %v15105_v33, %s11435_s1 }
 0x9dd   :  { %9649 = vrot.lane.b32.xlu2 %v15103_v39, %s11451_s28 }
 0x9de   :  { %9675 = vrot.lane.b32.xlu1 %v14727_v22, %s11452_s29  ;;  %9651 = vrot.lane.b32.xlu0 %v15105_v33, %s11451_s28  ;;  %v9935_v22 = vld [vmem:[%s15705_s14 + $0x78] sm:$0xff] }
 0x9df   :  { %9996 = vmatpush.msra.mxu3 %v9935_v22  ;;  %v9975_v22 = vld [vmem:[%s15705_s14 + $0x1b8] sm:$0xff] }
 0x9e0   :  { %10073 = vmatpush.msrb.mxu2 %v9975_v22 }
 0x9e1   :  { %9997 = vmatpush.msra.mxu3 %v9934_v58 }
 0x9e3   :  { %9998 = vmatpush.msra.mxu3 %v9933_v37 }
 0x9e5   :  { %9671 = vrot.lane.b32.xlu2 %v15103_v39, %s11452_s29  ;;  %9999 = vmatpush.msra.mxu3 %v9932_v44  ;;  %v9974_v44 = vld [vmem:[%s15705_s14 + $0x1b0] sm:$0xff] }
 0x9e6   :  { %9993 = vperm.xlu1 %10423, %v9985_v60   ;;  %9673 = vrot.lane.b32.xlu0 %v15105_v33, %s11452_s29 }
 0x9e7   :  { %10000 = vmatpush.msra.mxu3 %v9931_v11  ;;  %10074 = vmatpush.msrb.mxu2 %v9974_v44 }
 0x9e9   :  { %10001 = vmatpush.msra.mxu3 %v9930_v34  ;;  %v10341_v34 = vld [vmem:[%s15703_s12 + $0x40] sm:$0xff]  ;;  %10075 = vmatpush.msrb.mxu2 %v9973_v54 }
 0x9eb   :  { %10002 = vmatpush.msra.mxu3 %v9929_v27  ;;  %v9957_v27 = vld [vmem:[%s15705_s14 + $0x128] sm:$0xff]  ;;  %10076 = vmatpush.msrb.mxu2 %v9972_v40 }
 0x9ed   :  { %10003 = vmatpush.msra.mxu3 %v9928_v38  ;;  %v9956_v38 = vld [vmem:[%s15705_s14 + $0x120] sm:$0xff]  ;;  %10077 = vmatpush.msrb.mxu2 %v9971_v28  ;;  %v10346_v28 = vld [vmem:[%s15703_s12 + $0x68] sm:$0x3] }
 0x9ee   :  { %9988 = vperm.xlu0 %10422, %v9984_v45   ;;  %v9959_v45 = vld [vmem:[%s15705_s14 + $0x138] sm:$0xff] }
 0x9ef   :  { %10004 = vmatpush.msra.mxu3 %v9927_v5  ;;  %10050 = vmatpush.msrb.mxu1 %v9959_v45 }
 0x9f0   :  { %10078 = vmatpush.msrb.mxu2 %v9970_v0 }
 0x9f1   :  { %10005 = vmatpush.msra.mxu3 %v9926_v10  ;;  %10051 = vmatpush.msrb.mxu1 %v9958_v12  ;;  %v10358_v12 = vld [vmem:[%s15703_s12 + $0xc8] sm:$0xff] }
 0x9f2   :  { %10079 = vmatpush.msrb.mxu2 %v9969_v50 }
 0x9f3   :  { %10006 = vmatpush.msra.mxu3 %v9925_v15  ;;  %10052 = vmatpush.msrb.mxu1 %v9957_v27  ;;  %v10366_v27 = vld [vmem:[%s15703_s12 + $0x108] sm:$0xff] }
 0x9f5   :  { %10007 = vmatpush.msra.mxu3 %v9924_v57  ;;  %10053 = vmatpush.msrb.mxu1 %v9956_v38 }
 0x9f7   :  { %10008 = vmatpush.msra.mxu3 %v9923_v1  ;;  %10054 = vmatpush.msrb.mxu1 %v9955_v26 }
 0x9f9   :  { %10009 = vmatpush.msra.mxu3 %v9922_v9  ;;  %10055 = vmatpush.msrb.mxu1 %v9954_v62 }
 0x9fb   :  { %10010 = vmatpush.msra.mxu3 %v9921_v32  ;;  %10056 = vmatpush.msrb.mxu1 %v9953_v59 }
 0x9fd   :  { %10011 = vmatpush.msra.mxu3 %v9920_v2 }
 0xa27   :  { %v15173_v48 = vpop.permute.xlu2 %9669 }
 0xa2f   :  { %v15207_v25 = vpop.permute.xlu2 %9627 }
 0xa37   :  { %v15266_v42 = vpop.permute.xlu2 %9649 }
 0xa3f   :  { %v9648_v55 = vpop.permute.xlu0 %9647  ;;  %v15304_v3 = vpop.permute.xlu2 %9671 }
 0xa40   :  { %v9626_v30 = vpop.permute.xlu1 %9625  ;;  %v9655_v51 = vsel %vm8399_vm4, %v15147_v17, %v9648_v55  ;;  %v9656_v37 = vsel %vm8399_vm4, %v9648_v55, %v15266_v42  ;;  %v9677_v17 = vsel %vm8507_vm5, %v9668_v47, %v15173_v48  ;;  %v9678_v46 = vsel %vm8507_vm5, %v15173_v48, %v15304_v3  ;;  %v10350_v47 = vld [vmem:[%s15703_s12 + $0x88] sm:$0xff] }
 0xa41   :  { %v9633_v49 = vsel %vm268_vm1, %v9624_v56, %v9626_v30  ;;  %v9634_v60 = vsel %vm268_vm1, %v9626_v30, %v15207_v25 }
 0xa42   :  { %v9641_v20 = vmax.f32 %v15002_v7, %v9633_v49  ;;  %v9642_v58 = vmax.f32 %v15093_v35, %v9634_v60  ;;  %v10381_v49 = vld [vmem:[%s15703_s12 + $0x180] sm:$0xff] }
 0xa43   :  { %v10389_v60 = vld [vmem:[%s15703_s12 + $0x1c0] sm:$0xff] }
 0xa44   :  { %v9663_v7 = vmax.f32 %v9641_v20, %v9655_v51  ;;  %v9664_v35 = vmax.f32 %v9642_v58, %v9656_v37  ;;  %v9952_v20 = vld [vmem:[%s15705_s14 + $0x100] sm:$0xff] }
 0xa45   :  { %10057 = vmatpush.msrb.mxu1 %v9952_v20 }
 0xa46   :  { %v15308_v11 = vmax.f32 %v9663_v7, %v9677_v17  ;;  %v15328_v52 = vmax.f32 %v9664_v35, %v9678_v46  ;;  %v10345_v35 = vld [vmem:[%s15703_s12 + $0x60] sm:$0x3] }
 0xa47   :  { %v9968_v17 = vld [vmem:[%s15705_s14 + $0x180] sm:$0xff] }
 0xa48   :  { %v9630_v5 = vpop.permute.xlu0 %9629  ;;  %v9697_v43 = vperm.slane %v15308_v11, 0  ;;  %v9726_v10 = vperm.slane %v15308_v11, 1  ;;  %v9755_v48 = vperm.slane %v15308_v11, 2  ;;  %v9784_v15 = vperm.slane %v15308_v11, 3  ;;  %v9654_v8 = vpop.permute.xlu1 %9653  ;;  %10080 = vmatpush.msrb.mxu2 %v9968_v17 }
 0xa49   :  { %v15338_v6 = vsel %vm268_vm1, %v15207_v25, %v9630_v5  ;;  %v15349_v57 = vsel %vm268_vm1, %v9630_v5, %v15205_v13  ;;  %v10365_v13 = vld [vmem:[%s15703_s12 + $0x100] sm:$0xff]  ;;  %v9813_v1 = vperm.slane %v15308_v11, 4  ;;  %v9842_v4 = vperm.slane %v15308_v11, 5 }
 0xa4a   :  { %v9701_v31 = vmul.f32 %v9697_v43, %v9689_v36  ;;  %v9730_v25 = vmul.f32 %v10341_v34, %v9726_v10  ;;  %v9643_v9 = vmax.f32 %v15103_v39, %v15338_v6  ;;  %v9759_v18 = vmul.f32 %v10349_v29, %v9755_v48  ;;  %v10353_v29 = vld [vmem:[%s15703_s12 + $0xa0] sm:$0x3] }
 0xa4b   :  { %v9698_v32 = vperm.slane %v15328_v52, 0  ;;  %v9644_v39 = vmax.f32 %v15105_v33, %v15349_v57  ;;  %v9788_v61 = vmul.f32 %v10357_v23, %v9784_v15  ;;  %v9727_v56 = vperm.slane %v15328_v52, 1  ;;  %v10382_v57 = vld [vmem:[%s15703_s12 + $0x188] sm:$0xff] }
 0xa4c   :  { %v9738_v19 = vadd.f32 %v9730_v25, %v9701_v31  ;;  %v9756_v2 = vperm.slane %v15328_v52, 2  ;;  %v9871_v24 = vperm.slane %v15308_v11, 6  ;;  %v9900_v33 = vperm.slane %v15308_v11, 7  ;;  %v9694_v23 = vld [vmem:[%s15703_s12 + $0x28] sm:$0x3]  ;;  %v10344_v11 = vld [vmem:[%s15703_s12 + $0x58] sm:$0xff] }
 0xa4d   :  { %v9702_v55 = vmul.f32 %v9698_v32, %v9690_v16  ;;  %v9817_v30 = vmul.f32 %v10365_v13, %v9813_v1  ;;  %v9846_v63 = vmul.f32 %v10373_v53, %v9842_v4  ;;  %v9731_v45 = vmul.f32 %v10342_v14, %v9727_v56 }
 0xa4e   :  { %v9767_v41 = vadd.f32 %v9759_v18, %v9738_v19  ;;  %v9785_v22 = vperm.slane %v15328_v52, 3  ;;  %v9760_v37 = vmul.f32 %v10350_v47, %v9756_v2  ;;  %v9814_v44 = vperm.slane %v15328_v52, 4  ;;  %v10390_v18 = vld [vmem:[%s15703_s12 + $0x1c8] sm:$0xff] }
 0xa4f   :  { %v9843_v7 = vperm.slane %v15328_v52, 5  ;;  %v9739_v46 = vadd.f32 %v9731_v45, %v9702_v55  ;;  %v9705_v54 = vmul.f32 %v9697_v43, %v9693_v21  ;;  %v9875_v5 = vmul.f32 %v10381_v49, %v9871_v24 }
 0xa50   :  { %v9652_v58 = vpop.permute.xlu0 %9651  ;;  %v9796_v51 = vadd.f32 %v9788_v61, %v9767_v41  ;;  %v9904_v40 = vmul.f32 %v10389_v60, %v9900_v33  ;;  %v9872_v6 = vperm.slane %v15328_v52, 6  ;;  %v9789_v26 = vmul.f32 %v10358_v12, %v9785_v22  ;;  %v10354_v61 = vld [vmem:[%s15703_s12 + $0xa8] sm:$0x3]  ;;  %v10377_v41 = vld [vmem:[%s15703_s12 + $0x160] sm:$0x3] }
 0xa51   :  { %v9657_v36 = vsel %vm8399_vm4, %v15266_v42, %v9652_v58  ;;  %v9658_v34 = vsel %vm8399_vm4, %v9652_v58, %v9654_v8  ;;  %v10374_v42 = vld [vmem:[%s15703_s12 + $0x148] sm:$0xff]  ;;  %v9768_v43 = vadd.f32 %v9760_v37, %v9739_v46  ;;  %v9901_v31 = vperm.slane %v15328_v52, 7  ;;  %v9676_v58 = vpop.permute.xlu1 %9675  ;;  %v10352_v52 = vld [vmem:[%s15703_s12 + $0x98] sm:$0xff] }
 0xa52   :  { %v9825_v38 = vadd.f32 %v9817_v30, %v9796_v51  ;;  %v9734_v25 = vmul.f32 %v10345_v35, %v9726_v10  ;;  %v9665_v13 = vmax.f32 %v9643_v9, %v9657_v36  ;;  %v9666_v16 = vmax.f32 %v9644_v39, %v9658_v34  ;;  %v10361_v10 = vld [vmem:[%s15703_s12 + $0xe0] sm:$0x3]  ;;  %v10378_v34 = vld [vmem:[%s15703_s12 + $0x168] sm:$0x3] }
 0xa53   :  { %v9818_v19 = vmul.f32 %v10366_v27, %v9814_v44  ;;  %v9797_v53 = vadd.f32 %v9789_v26, %v9768_v43  ;;  %v9847_v14 = vmul.f32 %v10374_v42, %v9843_v7  ;;  %v9763_v9 = vmul.f32 %v10353_v29, %v9755_v48  ;;  %v10369_v39 = vld [vmem:[%s15703_s12 + $0x120] sm:$0x3] }
 0xa54   :  { %v9854_v62 = vadd.f32 %v9846_v63, %v9825_v38  ;;  %v9742_v0 = vadd.f32 %v9734_v25, %v9705_v54  ;;  %v9876_v59 = vmul.f32 %v10382_v57, %v9872_v6  ;;  %v9706_v55 = vmul.f32 %v9698_v32, %v9694_v23  ;;  %v10362_v63 = vld [vmem:[%s15703_s12 + $0xe8] sm:$0x3]  ;;  %v10343_v38 = vld [vmem:[%s15703_s12 + $0x50] sm:$0xff] }
 0xa55   :  { %v9735_v48 = vmul.f32 %v10346_v28, %v9727_v56  ;;  %v9826_v21 = vadd.f32 %v9818_v19, %v9797_v53  ;;  %v9905_v50 = vmul.f32 %v10390_v18, %v9901_v31  ;;  %v9792_v30 = vmul.f32 %v10361_v10, %v9784_v15  ;;  %v10385_v56 = vld [vmem:[%s15703_s12 + $0x1a0] sm:$0x3]  ;;  %v10370_v15 = vld [vmem:[%s15703_s12 + $0x128] sm:$0x3]  ;;  %v10351_v25 = vld [vmem:[%s15703_s12 + $0x90] sm:$0xff] }
 0xa56   :  { %v9883_v47 = vadd.f32 %v9875_v5, %v9854_v62  ;;  %v9771_v8 = vadd.f32 %v9763_v9, %v9742_v0  ;;  %v9821_v32 = vmul.f32 %v10369_v39, %v9813_v1  ;;  %v9764_v20 = vmul.f32 %v10354_v61, %v9756_v2  ;;  %v10394_v28 = vld [vmem:[%s15703_s12 + $0x1e8] sm:$0x3]  ;;  %v10359_v10 = vld [vmem:[%s15703_s12 + $0xd0] sm:$0xff]  ;;  %v9692_v39 = vld [vmem:[%s15703_s12 + $0x18] sm:$0xff] }
 0xa57   :  { %v9743_v45 = vadd.f32 %v9735_v48, %v9706_v55  ;;  %v9855_v37 = vadd.f32 %v9847_v14, %v9826_v21  ;;  %v9850_v1 = vmul.f32 %v10377_v41, %v9842_v4  ;;  %v9793_v2 = vmul.f32 %v10362_v63, %v9785_v22  ;;  %v10393_v4 = vld [vmem:[%s15703_s12 + $0x1e0] sm:$0x3]  ;;  %v9691_v22 = vld [vmem:[%s15703_s12 + $0x10] sm:$0xff]  ;;  %v10360_v63 = vld [vmem:[%s15703_s12 + $0xd8] sm:$0xff] }
 0xa58   :  { %v9674_v49 = vpop.permute.xlu0 %9673  ;;  %v9912_v60 = vadd.f32 %v9904_v40, %v9883_v47  ;;  %v9800_v12 = vadd.f32 %v9792_v30, %v9771_v8  ;;  %v9879_v27 = vmul.f32 %v10385_v56, %v9871_v24  ;;  %v9822_v54 = vmul.f32 %v10370_v15, %v9814_v44  ;;  %v10386_v24 = vld [vmem:[%s15703_s12 + $0x1a8] sm:$0x3]  ;;  %v10367_v61 = vld [vmem:[%s15703_s12 + $0x110] sm:$0xff] }
 0xa59   :  { %v9679_v51 = vsel %vm8507_vm5, %v15304_v3, %v9674_v49  ;;  %v9680_v35 = vsel %vm8507_vm5, %v9674_v49, %v9676_v58  ;;  %v9772_v36 = vadd.f32 %v9764_v20, %v9743_v45  ;;  %v9884_v46 = vadd.f32 %v9876_v59, %v9855_v37  ;;  %v9695_v20 = vld [vmem:[%s15703_s12 + $0x30] sm:$0x3] }
 0xa5a   :  { %v15519_v17 = vmax.f32 %v9665_v13, %v9679_v51  ;;  %10012 = vmatmul.f32.vlgmr.msra.gmra.mxu3 %v9912_v60  ;;  %v9829_v3 = vadd.f32 %v9821_v32, %v9800_v12  ;;  %v15545_v44 = vmax.f32 %v9666_v16, %v9680_v35  ;;  %v9851_v57 = vmul.f32 %v10378_v34, %v9843_v7  ;;  %v10347_v15 = vld [vmem:[%s15703_s12 + $0x70] sm:$0x3]  ;;  %v10368_v34 = vld [vmem:[%s15703_s12 + $0x118] sm:$0xff] }
 0xa5b   :  { %v9801_v5 = vadd.f32 %v9793_v2, %v9772_v36  ;;  %v9913_v43 = vadd.f32 %v9905_v50, %v9884_v46  ;;  %v9908_v18 = vmul.f32 %v10393_v4, %v9900_v33  ;;  %v9880_v7 = vmul.f32 %v10386_v24, %v9872_v6  ;;  %v10383_v51 = vld [vmem:[%s15703_s12 + $0x190] sm:$0xff] }
 0xa5c   :  { %v9699_v40 = vperm.slane %v15519_v17, 0  ;;  %v9728_v42 = vperm.slane %v15519_v17, 1  ;;  %v9757_v29 = vperm.slane %v15519_v17, 2  ;;  %v9858_v26 = vadd.f32 %v9850_v1, %v9829_v3  ;;  %v10391_v37 = vld [vmem:[%s15703_s12 + $0x1d0] sm:$0xff] }
 0xa5d   :  { %v9830_v23 = vadd.f32 %v9822_v54, %v9801_v5  ;;  %v9786_v19 = vperm.slane %v15519_v17, 3  ;;  %10035 = vmatmul.f32.vlgmr.msrb.gmra.mxu0 %v9913_v43  ;;  %v9815_v9 = vperm.slane %v15519_v17, 4  ;;  %v9909_v6 = vmul.f32 %v10394_v28, %v9901_v31  ;;  %v10375_v31 = vld [vmem:[%s15703_s12 + $0x150] sm:$0xff]  ;;  %v10376_v54 = vld [vmem:[%s15703_s12 + $0x158] sm:$0xff] }
 0xa5e   :  { %v9703_v13 = vmul.f32 %v9699_v40, %v9691_v22  ;;  %v9732_v62 = vmul.f32 %v10343_v38, %v9728_v42  ;;  %v9887_v16 = vadd.f32 %v9879_v27, %v9858_v26  ;;  %v9761_v0 = vmul.f32 %v10351_v25, %v9757_v29  ;;  %v10355_v3 = vld [vmem:[%s15703_s12 + $0xb0] sm:$0x3]  ;;  %v9696_v5 = vld [vmem:[%s15703_s12 + $0x38] sm:$0x3] }
 0xa5f   :  { %v9859_v53 = vadd.f32 %v9851_v57, %v9830_v23  ;;  %v9700_v47 = vperm.slane %v15545_v44, 0  ;;  %v9729_v59 = vperm.slane %v15545_v44, 1  ;;  %v9790_v48 = vmul.f32 %v10359_v10, %v9786_v19  ;;  %v10363_v25 = vld [vmem:[%s15703_s12 + $0xf0] sm:$0x3]  ;;  %v10384_v28 = vld [vmem:[%s15703_s12 + $0x198] sm:$0xff] }
 0xa60   :  { %v9740_v14 = vadd.f32 %v9732_v62, %v9703_v13  ;;  %v9916_v33 = vadd.f32 %v9908_v18, %v9887_v16  ;;  %v9844_v21 = vperm.slane %v15519_v17, 5  ;;  %v9758_v30 = vperm.slane %v15545_v44, 2  ;;  %v10371_v16 = vld [vmem:[%s15703_s12 + $0x130] sm:$0x3] }
 0xa61   :  { %v9888_v41 = vadd.f32 %v9880_v7, %v9859_v53  ;;  %v9704_v50 = vmul.f32 %v9700_v47, %v9692_v39  ;;  %v9733_v8 = vmul.f32 %v10344_v11, %v9729_v59  ;;  %v9787_v49 = vperm.slane %v15545_v44, 3  ;;  %v10392_v39 = vld [vmem:[%s15703_s12 + $0x1d8] sm:$0xff] }
 0xa62   :  { %v9769_v55 = vadd.f32 %v9761_v0, %v9740_v14  ;;  %10015 = vmatmul.f32.gmra.mxu3 %v9916_v33  ;;  %v9819_v32 = vmul.f32 %v10367_v61, %v9815_v9  ;;  %v9873_v56 = vperm.slane %v15519_v17, 6  ;;  %v9902_v45 = vperm.slane %v15519_v17, 7  ;;  %v10356_v14 = vld [vmem:[%s15703_s12 + $0xb8] sm:$0x3]  ;;  %v10379_v33 = vld [vmem:[%s15703_s12 + $0x170] sm:$0x3] }
 0xa63   :  { %v9917_v58 = vadd.f32 %v9909_v6, %v9888_v41  ;;  %v9741_v12 = vadd.f32 %v9733_v8, %v9704_v50  ;;  %v9762_v1 = vmul.f32 %v10352_v52, %v9758_v30  ;;  %v9816_v35 = vperm.slane %v15545_v44, 4 }
 0xa64   :  { %v9798_v60 = vadd.f32 %v9790_v48, %v9769_v55  ;;  %v9848_v2 = vmul.f32 %v10375_v31, %v9844_v21  ;;  %v9845_v46 = vperm.slane %v15545_v44, 5  ;;  %v9791_v4 = vmul.f32 %v10360_v63, %v9787_v49  ;;  %v10364_v55 = vld [vmem:[%s15703_s12 + $0xf8] sm:$0x3] }
 0xa65   :  { %10038 = vmatmul.f32.gmra.mxu0 %v9917_v58  ;;  %v9770_v27 = vadd.f32 %v9762_v1, %v9741_v12  ;;  %v9707_v22 = vmul.f32 %v9699_v40, %v9695_v20  ;;  %v9736_v38 = vmul.f32 %v10347_v15, %v9728_v42  ;;  %v9877_v43 = vmul.f32 %v10383_v51, %v9873_v56  ;;  %v10348_v40 = vld [vmem:[%s15703_s12 + $0x78] sm:$0x3] }
 0xa66   :  { %v9827_v36 = vadd.f32 %v9819_v32, %v9798_v60  ;;  %v9906_v26 = vmul.f32 %v10391_v37, %v9902_v45  ;;  %v9874_v57 = vperm.slane %v15545_v44, 6  ;;  %v9820_v23 = vmul.f32 %v10368_v34, %v9816_v35  ;;  %v10380_v58 = vld [vmem:[%s15703_s12 + $0x178] sm:$0x3] }
 0xa67   :  { %v9799_v42 = vadd.f32 %v9791_v4, %v9770_v27  ;;  %v9744_v13 = vadd.f32 %v9736_v38, %v9707_v22  ;;  %v9765_v62 = vmul.f32 %v10355_v3, %v9757_v29  ;;  %v9849_v7 = vmul.f32 %v10376_v54, %v9845_v46  ;;  %v10388_v1 = vld [vmem:[%s15703_s12 + $0x1b8] sm:$0x3]  ;;  %v9989_v38 = vpop.permute.xlu0 %9988 }
 0xa68   :  { %v9856_v24 = vadd.f32 %v9848_v2, %v9827_v36  ;;  %v9903_v10 = vperm.slane %v15545_v44, 7  ;;  %v9708_v53 = vmul.f32 %v9700_v47, %v9696_v5  ;;  %v9794_v29 = vmul.f32 %v10363_v25, %v9786_v19  ;;  %v10387_v19 = vld [vmem:[%s15703_s12 + $0x1b0] sm:$0x3]  ;;  %v10396_v2 = vld [vmem:[%s15703_s12 + $0x1f8] sm:$0x3] }
 0xa69   :  { %v9828_v0 = vadd.f32 %v9820_v23, %v9799_v42  ;;  %v9773_v11 = vadd.f32 %v9765_v62, %v9744_v13  ;;  %v9737_v6 = vmul.f32 %v10348_v40, %v9729_v59  ;;  %v9878_v47 = vmul.f32 %v10384_v28, %v9874_v57 }
 0xa6a   :  { %v9885_v18 = vadd.f32 %v9877_v43, %v9856_v24  ;;  %v9823_v41 = vmul.f32 %v10371_v16, %v9815_v9  ;;  %v9766_v50 = vmul.f32 %v10356_v14, %v9758_v30  ;;  %v9907_v8 = vmul.f32 %v10392_v39, %v9903_v10  ;;  %v10372_v9 = vld [vmem:[%s15703_s12 + $0x138] sm:$0x3]  ;;  %v10395_v30 = vld [vmem:[%s15703_s12 + $0x1f0] sm:$0x3] }
 0xa6b   :  { %v9857_v48 = vadd.f32 %v9849_v7, %v9828_v0  ;;  %v9802_v52 = vadd.f32 %v9794_v29, %v9773_v11  ;;  %v9745_v31 = vadd.f32 %v9737_v6, %v9708_v53  ;;  %v9852_v59 = vmul.f32 %v10379_v33, %v9844_v21 }
 0xa6c   :  { %v9914_v61 = vadd.f32 %v9906_v26, %v9885_v18  ;;  %v9795_v20 = vmul.f32 %v10364_v55, %v9787_v49  ;;  %v9881_v15 = vmul.f32 %v10387_v19, %v9873_v56  ;;  %v9824_v12 = vmul.f32 %v10372_v9, %v9816_v35  ;;  %v9994_v26 = vpop.permute.xlu1 %9993 }
 0xa6d   :  { %v9886_v63 = vadd.f32 %v9878_v47, %v9857_v48  ;;  %v9831_v60 = vadd.f32 %v9823_v41, %v9802_v52  ;;  %v9774_v32 = vadd.f32 %v9766_v50, %v9745_v31  ;;  %v9910_v49 = vmul.f32 %v10395_v30, %v9902_v45 }
 0xa6e   :  { %10058 = vmatmul.f32.vlgmr.msrb.gmra.mxu1 %v9914_v61  ;;  %v9853_v36 = vmul.f32 %v10380_v58, %v9845_v46  ;;  %v9882_v27 = vmul.f32 %v10388_v1, %v9874_v57  ;;  %v9911_v4 = vmul.f32 %v10396_v2, %v9903_v10  ;;  %vm10090_vm1 = vcmask 9216  }
 0xa6f   :  { %v9915_v21 = vadd.f32 %v9907_v8, %v9886_v63  ;;  %v9860_v51 = vadd.f32 %v9852_v59, %v9831_v60  ;;  %v9803_v37 = vadd.f32 %v9795_v20, %v9774_v32 }
 0xa71   :  { %10081 = vmatmul.f32.vlgmr.msrb.gmra.mxu2 %v9915_v21  ;;  %v9889_v44 = vadd.f32 %v9881_v15, %v9860_v51  ;;  %v9832_v56 = vadd.f32 %v9824_v12, %v9803_v37 }
 0xa73   :  { %v9918_v34 = vadd.f32 %v9910_v49, %v9889_v44  ;;  %v9861_v3 = vadd.f32 %v9853_v36, %v9832_v56 }
 0xa75   :  { %v9890_v35 = vadd.f32 %v9882_v27, %v9861_v3 }
 0xa76   :  { %10061 = vmatmul.f32.gmra.mxu1 %v9918_v34 }
 0xa77   :  { %v9919_v54 = vadd.f32 %v9911_v4, %v9890_v35 }
 0xa79   :  { %10084 = vmatmul.f32.gmra.mxu2 %v9919_v54 }
 0xada   :  { %v10036_v24 = vpop.f32.mrf.mxu0 }
 0xadd   :  { %v10013_v22 = vpop.f32.mrf.mxu3 }
 0xade   :  { %v10014_v5 = vadd.f32 %v10013_v22, %v9989_v38 }
 0xae0   :  { %v10037_v45 = vadd.f32 %v10036_v24, %v10014_v5 }
 0xae2   :  { %v10039_v57 = vpop.f32.mrf.mxu0 }
 0xae5   :  { %v10016_v43 = vpop.f32.mrf.mxu3 }
 0xae6   :  { %v10017_v40 = vadd.f32 %v10016_v43, %v9994_v26 }
 0xae8   :  { %v10040_v28 = vadd.f32 %v10039_v57, %v10017_v40 }
 0xaeb   :  { %v10059_v17 = vpop.f32.mrf.mxu1 }
 0xaec   :  { %v10060_v46 = vadd.f32 %v10059_v17, %v10037_v45 }
 0xaf3   :  { %v10062_v23 = vpop.f32.mrf.mxu1 }
 0xaf4   :  { %v10082_v25 = vpop.f32.mrf.mxu2  ;;  %v10063_v13 = vadd.f32 %v10062_v23, %v10040_v28 }
 0xaf5   :  { %v10083_v42 = vadd.f32 %v10082_v25, %v10060_v46 }
 0xaf7   :  { %10089 = vst.msk [vmem:[%s15706_s15] sm:$0xff] %vm10088_vm0, %v10083_v42 }
 0xafc   :  { %v10085_v62 = vpop.f32.mrf.mxu2 }
 0xafd   :  { %v10086_v16 = vadd.f32 %v10085_v62, %v10063_v13 }
 0xaff   :  { %10091 = vst.msk [vmem:[%s15706_s15 + $0x8] sm:$0x3] %vm10090_vm1, %v10086_v16 }
 0xb00   :  { %10096 = vsyncpa [#allocation8], 1 }
 0xb01   :  { %10097 = vsyncpa [#allocation10], 1 }

</bundles_post_ra>
